<compile_context>
chip_gen: v7x
topology: tpu7x:2x2x1
jax: 0.10.0
libtpu: 0.0.40
codegen_flags: <defaults>
</compile_context>

<pallas_src>
import functools

import jax
import jax.numpy as jnp
from jax import lax
from jax.experimental import pallas as pl
from jax.experimental.pallas import tpu as pltpu

ODE_UNFOLDS = 6
EPSILON = 1e-8


def _ltc_kernel(x_ref, h0_ref,
                in_w_ref, in_b_ref,
                s_mu_ref, s_sig_half_ref, s_num_half_ref, s_den_half_ref,
                mu_ref, sig_half_ref, num_half_ref, den_half_ref,
                cm_t_ref, num_fixed_ref, den_fixed_ref,
                out_w_ref, out_b_ref, w_av_ref, b_av_ref,
                av_ref, hT_ref,
                sens_num_scr, sens_den_scr, v_scr,
                *, j_tile):
    c = pl.program_id(1)                 # time-chunk index ("arbitrary" axis)
    rows, I = x_ref.shape                # rows = t_chunk * Bg
    Bg, H = h0_ref.shape
    t_chunk = rows // Bg

    # ---- sensory path: depends only on x, off the serial chain.  Accumulate over input
    #      channels so only two (rows, H) partials are live (no (rows, I, H) temporary). ----
    x_m = x_ref[...] * in_w_ref[...] + in_b_ref[...]                      # (rows, I)
    acc_n = None
    acc_d = None
    for i in range(I):
        # sigmoid folded: the 0.5*tanh+0.5 affine lives in the *_half coefficients and the
        # *_fixed constants; here only a bare tanh touches the big tensor.
        t_s = jnp.tanh((x_m[:, i:i + 1] - s_mu_ref[i:i + 1, :]) * s_sig_half_ref[i:i + 1, :])
        tn = s_num_half_ref[i:i + 1, :] * t_s
        td = s_den_half_ref[i:i + 1, :] * t_s
        acc_n = tn if acc_n is None else acc_n + tn
        acc_d = td if acc_d is None else acc_d + td
    sens_num_scr[...] = acc_n                                             # (rows, H)
    sens_den_scr[...] = acc_d                                             # (rows, H)

    # ---- cross-chunk hidden carry: hT output block has a constant block index along the
    #      chunk axis -> VMEM resident; use it directly as the accumulator (P3 pattern). ----
    @pl.when(c == 0)
    def _():
        hT_ref[...] = h0_ref[...]

    v = hT_ref[...]                                                       # (Bg, H)

    cm_t = cm_t_ref[...]                                                  # (1, H)
    num_fixed = num_fixed_ref[...]                                        # (1, H)
    den_fixed = den_fixed_ref[...]                                        # (1, H)

    # Statically unrolled time loop within the chunk; only the 6 ODE unfolds remain on the
    # serial dependence chain.
    for t in range(t_chunk):
        r0 = t * Bg
        num_c = num_fixed + sens_num_scr[r0:r0 + Bg, :]                   # (Bg, H)
        den_c = den_fixed + sens_den_scr[r0:r0 + Bg, :]                   # (Bg, H)
        for _ in range(ODE_UNFOLDS):
            w_num = None
            w_den = None
            # Tile the presynaptic axis: live activation temp is (Bg, j_tile, H).
            for j0 in range(0, H, j_tile):
                t_act = jnp.tanh(
                    (v[:, j0:j0 + j_tile, None] - mu_ref[j0:j0 + j_tile, :][None, :, :])
                    * sig_half_ref[j0:j0 + j_tile, :][None, :, :])        # (Bg, jt, H)
                tn = jnp.sum(num_half_ref[j0:j0 + j_tile, :][None, :, :] * t_act, axis=1)
                td = jnp.sum(den_half_ref[j0:j0 + j_tile, :][None, :, :] * t_act, axis=1)
                w_num = tn if w_num is None else w_num + tn
                w_den = td if w_den is None else w_den + td
            den = den_c + w_den
            # approx reciprocal (EUP slot) + one Newton refinement instead of a full divide.
            r = pl.reciprocal(den, approx=True)
            r = r * (2.0 - den * r)
            v = (cm_t * v + num_c + w_num) * r
        v_scr[r0:r0 + Bg, :] = v

    hT_ref[...] = v

    # ---- affine output map + fused, lane-dense actor/critic head: one matmul per chunk ----
    out_all = v_scr[...] * out_w_ref[...] + out_b_ref[...]                # (rows, H)
    av_ref[...] = (jnp.dot(out_all, w_av_ref[...],
                           preferred_element_type=jnp.float32) + b_av_ref[...])  # (rows, 128)


def _default_vmem_limit_bytes():
    """Device-aware scoped-VMEM limit: ~48 MiB on v7x (64 MiB phys), ~96 MiB on v5e/v6e."""
    try:
        cap = int(pltpu.get_tpu_info().vmem_capacity_bytes)
    except Exception:
        cap = 64 * 1024 * 1024                    # conservative (v7x per-core VMEM)
    return min(cap * 3 // 4, 100 * 1024 * 1024)


def _pick_j_tile(H, Bg, budget_bytes=8 * 1024 * 1024):
    """Largest divisor of H (prefer 128-, then 8-multiples) with Bg*jt*H*4 within budget."""
    if Bg * H * H * 4 <= budget_bytes:
        return H
    divs = [d for d in range(1, H + 1) if H % d == 0]
    for pref in (lambda d: d % 128 == 0, lambda d: d % 8 == 0, lambda d: True):
        cands = [d for d in divs if pref(d) and Bg * d * H * 4 <= budget_bytes]
        if cands:
            return max(cands)
    return 1


def _pick_t_chunk(T, Bg, I, H, av_pad, param_bytes, vmem_budget, max_steps=64):
    """Largest divisor of T whose chunk fits the VMEM budget (rows sublane-aligned unless
    t_chunk == T).  max_steps bounds the static unroll for compile time."""
    divs = [d for d in range(1, T + 1) if T % d == 0]
    valid = [d for d in divs if d == T or (d * Bg) % 8 == 0] or [T]

    def need(d):
        rows = d * Bg
        # 3 (rows,H) scratch slabs + double-buffered x / av blocks + h blocks + params.
        return 4 * (3 * rows * H + 2 * rows * I + 2 * rows * av_pad + 4 * Bg * H) + param_bytes

    fitting = [d for d in valid if d <= max_steps and need(d) <= vmem_budget]
    if fitting:
        return max(fitting)
    return min(valid)


def _full_spec(arr):
    n = arr.ndim
    return pl.BlockSpec(arr.shape, lambda g, c, _n=n: (0,) * _n)


def ltc_network_forward(x_bti, h0, p, *, t_chunk=None, batch_groups=1, j_tile=None,
                        vmem_limit_bytes=None):
    """x_bti: (B,T,isize) f32, h0: (B,hsize) f32 -> (actions (B,T,A), values (B,T,1), next_hidden)."""
    B, T, I = x_bti.shape
    H = h0.shape[-1]
    A = p["h2o_w"].shape[0]
    AV = A + 1
    AV_PAD = ((AV + 127) // 128) * 128            # lane-dense fused head width

    if B % batch_groups:
        raise ValueError("batch_groups must divide batch size")
    nb, Bg = batch_groups, B // batch_groups

    # ---- fold softplus / mask / erev / sigmoid-affine constants ONCE, outside the kernel ----
    sp = jax.nn.softplus
    f32 = lambda a: jnp.asarray(a, jnp.float32)
    gleak = sp(f32(p["gleak"]))                                           # (1, H)
    cm_t = sp(f32(p["cm"])) * ODE_UNFOLDS                                 # (1, H) (elapsed_time=1)
    w_pos = sp(f32(p["w"])) * f32(p["sparsity_mask"])                     # (H, H)
    num_half = 0.5 * w_pos * f32(p["erev"])
    den_half = 0.5 * w_pos
    sig_half = 0.5 * f32(p["sigma"])
    mu = f32(p["mu"])
    s_pos = sp(f32(p["sensory_w"])) * f32(p["sensory_sparsity_mask"])     # (I, H)
    s_num_half = 0.5 * s_pos * f32(p["sensory_erev"])
    s_den_half = 0.5 * s_pos
    s_sig_half = 0.5 * f32(p["sensory_sigma"])
    s_mu = f32(p["sensory_mu"])
    # sigmoid = 0.5*tanh + 0.5: the "+0.5" column sums are loop-invariant -> folded here.
    num_fixed = (gleak * f32(p["vleak"])
                 + jnp.sum(num_half, axis=0, keepdims=True)
                 + jnp.sum(s_num_half, axis=0, keepdims=True))            # (1, H)
    den_fixed = (cm_t + gleak + EPSILON
                 + jnp.sum(den_half, axis=0, keepdims=True)
                 + jnp.sum(s_den_half, axis=0, keepdims=True))            # (1, H)

    # Fused, lane-dense actor/critic head: [actions | value | zero-pad] -> (H, AV_PAD).
    w_av = jnp.zeros((H, AV_PAD), jnp.float32)
    w_av = w_av.at[:, :A].set(f32(p["h2o_w"]).T).at[:, A:AV].set(f32(p["h2v_w"]).T)
    b_av = jnp.zeros((1, AV_PAD), jnp.float32)
    b_av = b_av.at[:, :A].set(f32(p["h2o_b"])).at[:, A:AV].set(f32(p["h2v_b"]))

    params = (f32(p["input_w"]), f32(p["input_b"]),
              s_mu, s_sig_half, s_num_half, s_den_half,
              mu, sig_half, num_half, den_half,
              cm_t, num_fixed, den_fixed,
              f32(p["output_w"]), f32(p["output_b"]),
              w_av, b_av)
    param_bytes = 2 * sum(int(a.size) * 4 for a in params)   # worst case: double-buffered

    if vmem_limit_bytes is None:
        vmem_limit_bytes = _default_vmem_limit_bytes()
    if j_tile is None:
        j_tile = _pick_j_tile(H, Bg)
    if H % j_tile:
        raise ValueError("j_tile must divide hsize")
    if t_chunk is None:
        t_chunk = _pick_t_chunk(T, Bg, I, H, AV_PAD, param_bytes, int(vmem_limit_bytes * 0.75))
    if T % t_chunk:
        raise ValueError(f"t_chunk={t_chunk} must divide T={T}")
    n_chunks = T // t_chunk
    rows = t_chunk * Bg
    if n_chunks > 1 and rows % 8:
        raise ValueError("t_chunk * (batch / batch_groups) must be a multiple of 8 "
                         "(or t_chunk == T)")

    # Group-major / time-major row layout: row within group = t*Bg + b (layout plumbing only).
    x_rows = jnp.transpose(x_bti.reshape(nb, Bg, T, I), (0, 2, 1, 3)).reshape(nb, T * Bg, I)
    h0_g = h0.reshape(nb, Bg, H)

    in_specs = [pl.BlockSpec((None, rows, I), lambda g, c: (g, c, 0)),    # x: one chunk of rows
                pl.BlockSpec((None, Bg, H), lambda g, c: (g, 0, 0))]      # h0: per batch group
    in_specs += [_full_spec(a) for a in params]

    cost = pl.CostEstimate(
        flops=int(T * B * (ODE_UNFOLDS * (5 * H * H + 10 * H) + 5 * I * H
                           + 2 * H * AV_PAD + 2 * H)),
        transcendentals=int(T * B * (ODE_UNFOLDS * H * (H + 1) + I * H)),
        bytes_accessed=int(4 * (B * T * I + B * T * AV_PAD + 2 * B * H)) + param_bytes)

    av, hT = pl.pallas_call(
        functools.partial(_ltc_kernel, j_tile=j_tile),
        out_shape=(jax.ShapeDtypeStruct((nb, T * Bg, AV_PAD), jnp.float32),
                   jax.ShapeDtypeStruct((nb, Bg, H), jnp.float32)),
        grid_spec=pltpu.PrefetchScalarGridSpec(
            num_scalar_prefetch=0,
            grid=(nb, n_chunks),
            in_specs=in_specs,
            out_specs=(pl.BlockSpec((None, rows, AV_PAD), lambda g, c: (g, c, 0)),
                       pl.BlockSpec((None, Bg, H), lambda g, c: (g, 0, 0))),
            scratch_shapes=[pltpu.VMEM((rows, H), jnp.float32),   # sensory numerator terms
                            pltpu.VMEM((rows, H), jnp.float32),   # sensory denominator terms
                            pltpu.VMEM((rows, H), jnp.float32)]), # per-step LTC state for heads
        compiler_params=pltpu.CompilerParams(
            dimension_semantics=("parallel", "arbitrary"),        # batch groups ∥, time serial
            vmem_limit_bytes=int(vmem_limit_bytes)),
        cost_estimate=cost,
    )(x_rows, h0_g, *params)

    av_btx = jnp.transpose(av.reshape(nb, T, Bg, AV_PAD), (0, 2, 1, 3)).reshape(B, T, AV_PAD)
    return av_btx[..., :A], av_btx[..., A:AV], hT.reshape(B, H)


def ltc_network_reference(x_bti, h0, p):
    """Pure-JAX reference of the same forward pass (for correctness check)."""
    sp = jax.nn.softplus
    gleak, cm = sp(p["gleak"]), sp(p["cm"])
    w_pos, s_w_pos = sp(p["w"]), sp(p["sensory_w"])
    cm_t = cm / (1.0 / ODE_UNFOLDS)

    def step(v, x_t):
        x_m = x_t * p["input_w"] + p["input_b"]
        s_act = s_w_pos[None] * jax.nn.sigmoid(
            (x_m[:, :, None] - p["sensory_mu"][None]) * p["sensory_sigma"][None])
        s_act = s_act * p["sensory_sparsity_mask"][None]
        w_num_s = jnp.sum(s_act * p["sensory_erev"][None], axis=1)
        w_den_s = jnp.sum(s_act, axis=1)
        for _ in range(ODE_UNFOLDS):
            w_act = w_pos[None] * jax.nn.sigmoid(
                (v[:, :, None] - p["mu"][None]) * p["sigma"][None])
            w_act = w_act * p["sparsity_mask"][None]
            num = cm_t * v + gleak * p["vleak"] + jnp.sum(w_act * p["erev"][None], axis=1) + w_num_s
            den = cm_t + gleak + jnp.sum(w_act, axis=1) + w_den_s
            v = num / (den + EPSILON)
        out = v * p["output_w"] + p["output_b"]
        a = out @ p["h2o_w"].T + p["h2o_b"]
        vv = out @ p["h2v_w"].T + p["h2v_b"]
        return v, (a, vv)

    v_final, (acts, vals) = lax.scan(step, h0, jnp.transpose(x_bti, (1, 0, 2)))
    return jnp.transpose(acts, (1, 0, 2)), jnp.transpose(vals, (1, 0, 2)), v_final


def init_params(key, isize, hsize, num_actions):
    """Deterministic synthetic init following ncps LTCCell init ranges + PyTorch Linear init."""
    ks = jax.random.split(key, 16)
    u = lambda k, shape, lo, hi: jax.random.uniform(k, shape, jnp.float32, lo, hi)
    pm1 = lambda k, shape: jnp.where(jax.random.bernoulli(k, 0.5, shape), 1.0, -1.0).astype(jnp.float32)
    bound = 1.0 / (hsize ** 0.5)
    return dict(
        gleak=u(ks[0], (1, hsize), 0.001, 1.0),
        vleak=u(ks[1], (1, hsize), -0.2, 0.2),
        cm=u(ks[2], (1, hsize), 0.4, 0.6),
        sigma=u(ks[3], (hsize, hsize), 3.0, 8.0),
        mu=u(ks[4], (hsize, hsize), 0.3, 0.8),
        w=u(ks[5], (hsize, hsize), 0.001, 1.0),
        erev=pm1(ks[6], (hsize, hsize)),
        sensory_sigma=u(ks[7], (isize, hsize), 3.0, 8.0),
        sensory_mu=u(ks[8], (isize, hsize), 0.3, 0.8),
        sensory_w=u(ks[9], (isize, hsize), 0.001, 1.0),
        sensory_erev=pm1(ks[10], (isize, hsize)),
        sparsity_mask=jnp.ones((hsize, hsize), jnp.float32),
        sensory_sparsity_mask=jnp.ones((isize, hsize), jnp.float32),
        input_w=jnp.ones((1, isize), jnp.float32),
        input_b=jnp.zeros((1, isize), jnp.float32),
        output_w=jnp.ones((1, hsize), jnp.float32),
        output_b=jnp.zeros((1, hsize), jnp.float32),
        h2o_w=u(ks[11], (num_actions, hsize), -bound, bound),
        h2o_b=u(ks[12], (1, num_actions), -bound, bound),
        h2v_w=u(ks[13], (1, hsize), -bound, bound),
        h2v_b=u(ks[14], (1, 1), -bound, bound),
    )


if __name__ == "__main__":
    B, T, ISIZE, HSIZE, NUM_ACTIONS = 2, 8, 4, 32, 4

    key = jax.random.PRNGKey(0)
    kx, kh, kp = jax.random.split(key, 3)
    x = jax.random.normal(kx, (B, T, ISIZE), jnp.float32)
    h0 = jnp.zeros((B, HSIZE), jnp.float32)
    params = init_params(kp, ISIZE, HSIZE, NUM_ACTIONS)

    fwd = jax.jit(ltc_network_forward,
                  static_argnames=("t_chunk", "batch_groups", "j_tile", "vmem_limit_bytes"))

    ra, rv, rh = ltc_network_reference(x, h0, params)

    # Multi-chunk path: exercises the cross-chunk hidden-state carry in the hT output block.
    a1, v1, h1 = jax.block_until_ready(fwd(x, h0, params, t_chunk=4, batch_groups=1))
    # Batch-group path: leading "parallel" grid axis (one batch group per TensorCore on v7x),
    # t_chunk auto-picked from the VMEM budget.
    a2, v2, h2 = jax.block_until_ready(fwd(x, h0, params, batch_groups=2))

    for a, vv, h in ((a1, v1, h1), (a2, v2, h2)):
        assert a.shape == (B, T, NUM_ACTIONS)
        assert vv.shape == (B, T, 1)
        assert h.shape == (B, HSIZE)
        assert jnp.allclose(a, ra, atol=2e-3, rtol=2e-3)
        assert jnp.allclose(vv, rv, atol=2e-3, rtol=2e-3)
        assert jnp.allclose(h, rh, atol=2e-3, rtol=2e-3)

    print("KERNEL_OK")
</pallas_src>

<mosaic_0001>
module attributes {stable_mosaic.version = 11 : i64} {
  func.func @_ltc_kernel(%arg0: i32, %arg1: i32, %arg2: memref<1x8x4xf32, #tpu.memory_space<vmem>>, %arg3: memref<1x2x32xf32, #tpu.memory_space<vmem>>, %arg4: memref<1x4xf32, #tpu.memory_space<vmem>>, %arg5: memref<1x4xf32, #tpu.memory_space<vmem>>, %arg6: memref<4x32xf32, #tpu.memory_space<vmem>>, %arg7: memref<4x32xf32, #tpu.memory_space<vmem>>, %arg8: memref<4x32xf32, #tpu.memory_space<vmem>>, %arg9: memref<4x32xf32, #tpu.memory_space<vmem>>, %arg10: memref<32x32xf32, #tpu.memory_space<vmem>>, %arg11: memref<32x32xf32, #tpu.memory_space<vmem>>, %arg12: memref<32x32xf32, #tpu.memory_space<vmem>>, %arg13: memref<32x32xf32, #tpu.memory_space<vmem>>, %arg14: memref<1x32xf32, #tpu.memory_space<vmem>>, %arg15: memref<1x32xf32, #tpu.memory_space<vmem>>, %arg16: memref<1x32xf32, #tpu.memory_space<vmem>>, %arg17: memref<1x32xf32, #tpu.memory_space<vmem>>, %arg18: memref<1x32xf32, #tpu.memory_space<vmem>>, %arg19: memref<32x128xf32, #tpu.memory_space<vmem>>, %arg20: memref<1x128xf32, #tpu.memory_space<vmem>>, %arg21: memref<1x8x128xf32, #tpu.memory_space<vmem>>, %arg22: memref<1x2x32xf32, #tpu.memory_space<vmem>>, %arg23: memref<8x32xf32, #tpu.memory_space<vmem>>, %arg24: memref<8x32xf32, #tpu.memory_space<vmem>>, %arg25: memref<8x32xf32, #tpu.memory_space<vmem>>) attributes {dimension_semantics = [#tpu.dimension_semantics<parallel>, #tpu.dimension_semantics<arbitrary>], iteration_bounds = array<i64: 1, 2>, scalar_prefetch = 0 : i64, scratch_operands = 3 : i64, tpu.core_type = #tpu.core_type<tc>, window_params = [{transform_indices = @transform_0, window_bounds = array<i64: 1, 8, 4>}, {transform_indices = @transform_1, window_bounds = array<i64: 1, 2, 32>}, {pipeline_mode = #tpu.pipeline_mode<synchronous>, transform_indices = @transform_2, window_bounds = array<i64: 1, 4>}, {pipeline_mode = #tpu.pipeline_mode<synchronous>, transform_indices = @transform_3, window_bounds = array<i64: 1, 4>}, {pipeline_mode = #tpu.pipeline_mode<synchronous>, transform_indices = @transform_4, window_bounds = array<i64: 4, 32>}, {pipeline_mode = #tpu.pipeline_mode<synchronous>, transform_indices = @transform_5, window_bounds = array<i64: 4, 32>}, {pipeline_mode = #tpu.pipeline_mode<synchronous>, transform_indices = @transform_6, window_bounds = array<i64: 4, 32>}, {pipeline_mode = #tpu.pipeline_mode<synchronous>, transform_indices = @transform_7, window_bounds = array<i64: 4, 32>}, {pipeline_mode = #tpu.pipeline_mode<synchronous>, transform_indices = @transform_8, window_bounds = array<i64: 32, 32>}, {pipeline_mode = #tpu.pipeline_mode<synchronous>, transform_indices = @transform_9, window_bounds = array<i64: 32, 32>}, {pipeline_mode = #tpu.pipeline_mode<synchronous>, transform_indices = @transform_10, window_bounds = array<i64: 32, 32>}, {pipeline_mode = #tpu.pipeline_mode<synchronous>, transform_indices = @transform_11, window_bounds = array<i64: 32, 32>}, {pipeline_mode = #tpu.pipeline_mode<synchronous>, transform_indices = @transform_12, window_bounds = array<i64: 1, 32>}, {pipeline_mode = #tpu.pipeline_mode<synchronous>, transform_indices = @transform_13, window_bounds = array<i64: 1, 32>}, {pipeline_mode = #tpu.pipeline_mode<synchronous>, transform_indices = @transform_14, window_bounds = array<i64: 1, 32>}, {pipeline_mode = #tpu.pipeline_mode<synchronous>, transform_indices = @transform_15, window_bounds = array<i64: 1, 32>}, {pipeline_mode = #tpu.pipeline_mode<synchronous>, transform_indices = @transform_16, window_bounds = array<i64: 1, 32>}, {pipeline_mode = #tpu.pipeline_mode<synchronous>, transform_indices = @transform_17, window_bounds = array<i64: 32, 128>}, {pipeline_mode = #tpu.pipeline_mode<synchronous>, transform_indices = @transform_18, window_bounds = array<i64: 1, 128>}, {transform_indices = @transform_19, window_bounds = array<i64: 1, 8, 128>}, {transform_indices = @transform_20, window_bounds = array<i64: 1, 2, 32>}]} {
    %c0 = arith.constant 0 : index
    %c0_0 = arith.constant 0 : index
    %c0_1 = arith.constant 0 : index
    %0 = vector.load %arg2[%c0, %c0_0, %c0_1] : memref<1x8x4xf32, #tpu.memory_space<vmem>>, vector<1x8x4xf32>
    %1 = vector.shape_cast %0 : vector<1x8x4xf32> to vector<8x4xf32>
    %c0_2 = arith.constant 0 : index
    %c0_3 = arith.constant 0 : index
    %2 = vector.load %arg4[%c0_2, %c0_3] : memref<1x4xf32, #tpu.memory_space<vmem>>, vector<1x4xf32>
    %3 = vector.broadcast %2 : vector<1x4xf32> to vector<8x4xf32>
    %4 = arith.mulf %1, %3 : vector<8x4xf32>
    %c0_4 = arith.constant 0 : index
    %c0_5 = arith.constant 0 : index
    %5 = vector.load %arg5[%c0_4, %c0_5] : memref<1x4xf32, #tpu.memory_space<vmem>>, vector<1x4xf32>
    %6 = vector.broadcast %5 : vector<1x4xf32> to vector<8x4xf32>
    %7 = arith.addf %4, %6 : vector<8x4xf32>
    %8 = vector.extract_strided_slice %7 {offsets = [0, 0], sizes = [8, 1], strides = [1, 1]} : vector<8x4xf32> to vector<8x1xf32>
    %c0_6 = arith.constant 0 : index
    %c0_7 = arith.constant 0 : index
    %9 = vector.load %arg6[%c0_6, %c0_7] : memref<4x32xf32, #tpu.memory_space<vmem>>, vector<1x32xf32>
    %10 = vector.broadcast %8 : vector<8x1xf32> to vector<8x32xf32>
    %11 = vector.broadcast %9 : vector<1x32xf32> to vector<8x32xf32>
    %12 = arith.subf %10, %11 : vector<8x32xf32>
    %c0_8 = arith.constant 0 : index
    %c0_9 = arith.constant 0 : index
    %13 = vector.load %arg7[%c0_8, %c0_9] : memref<4x32xf32, #tpu.memory_space<vmem>>, vector<1x32xf32>
    %14 = vector.broadcast %13 : vector<1x32xf32> to vector<8x32xf32>
    %15 = arith.mulf %12, %14 : vector<8x32xf32>
    %16 = math.tanh %15 : vector<8x32xf32>
    %c0_10 = arith.constant 0 : index
    %c0_11 = arith.constant 0 : index
    %17 = vector.load %arg8[%c0_10, %c0_11] : memref<4x32xf32, #tpu.memory_space<vmem>>, vector<1x32xf32>
    %18 = vector.broadcast %17 : vector<1x32xf32> to vector<8x32xf32>
    %19 = arith.mulf %18, %16 : vector<8x32xf32>
    %c0_12 = arith.constant 0 : index
    %c0_13 = arith.constant 0 : index
    %20 = vector.load %arg9[%c0_12, %c0_13] : memref<4x32xf32, #tpu.memory_space<vmem>>, vector<1x32xf32>
    %21 = vector.broadcast %20 : vector<1x32xf32> to vector<8x32xf32>
    %22 = arith.mulf %21, %16 : vector<8x32xf32>
    %23 = vector.extract_strided_slice %7 {offsets = [0, 1], sizes = [8, 1], strides = [1, 1]} : vector<8x4xf32> to vector<8x1xf32>
    %c1 = arith.constant 1 : index
    %c0_14 = arith.constant 0 : index
    %24 = vector.load %arg6[%c1, %c0_14] : memref<4x32xf32, #tpu.memory_space<vmem>>, vector<1x32xf32>
    %25 = vector.broadcast %23 : vector<8x1xf32> to vector<8x32xf32>
    %26 = vector.broadcast %24 : vector<1x32xf32> to vector<8x32xf32>
    %27 = arith.subf %25, %26 : vector<8x32xf32>
    %c1_15 = arith.constant 1 : index
    %c0_16 = arith.constant 0 : index
    %28 = vector.load %arg7[%c1_15, %c0_16] : memref<4x32xf32, #tpu.memory_space<vmem>>, vector<1x32xf32>
    %29 = vector.broadcast %28 : vector<1x32xf32> to vector<8x32xf32>
    %30 = arith.mulf %27, %29 : vector<8x32xf32>
    %31 = math.tanh %30 : vector<8x32xf32>
    %c1_17 = arith.constant 1 : index
    %c0_18 = arith.constant 0 : index
    %32 = vector.load %arg8[%c1_17, %c0_18] : memref<4x32xf32, #tpu.memory_space<vmem>>, vector<1x32xf32>
    %33 = vector.broadcast %32 : vector<1x32xf32> to vector<8x32xf32>
    %34 = arith.mulf %33, %31 : vector<8x32xf32>
    %c1_19 = arith.constant 1 : index
    %c0_20 = arith.constant 0 : index
    %35 = vector.load %arg9[%c1_19, %c0_20] : memref<4x32xf32, #tpu.memory_space<vmem>>, vector<1x32xf32>
    %36 = vector.broadcast %35 : vector<1x32xf32> to vector<8x32xf32>
    %37 = arith.mulf %36, %31 : vector<8x32xf32>
    %38 = arith.addf %19, %34 : vector<8x32xf32>
    %39 = arith.addf %22, %37 : vector<8x32xf32>
    %40 = vector.extract_strided_slice %7 {offsets = [0, 2], sizes = [8, 1], strides = [1, 1]} : vector<8x4xf32> to vector<8x1xf32>
    %c2 = arith.constant 2 : index
    %c0_21 = arith.constant 0 : index
    %41 = vector.load %arg6[%c2, %c0_21] : memref<4x32xf32, #tpu.memory_space<vmem>>, vector<1x32xf32>
    %42 = vector.broadcast %40 : vector<8x1xf32> to vector<8x32xf32>
    %43 = vector.broadcast %41 : vector<1x32xf32> to vector<8x32xf32>
    %44 = arith.subf %42, %43 : vector<8x32xf32>
    %c2_22 = arith.constant 2 : index
    %c0_23 = arith.constant 0 : index
    %45 = vector.load %arg7[%c2_22, %c0_23] : memref<4x32xf32, #tpu.memory_space<vmem>>, vector<1x32xf32>
    %46 = vector.broadcast %45 : vector<1x32xf32> to vector<8x32xf32>
    %47 = arith.mulf %44, %46 : vector<8x32xf32>
    %48 = math.tanh %47 : vector<8x32xf32>
    %c2_24 = arith.constant 2 : index
    %c0_25 = arith.constant 0 : index
    %49 = vector.load %arg8[%c2_24, %c0_25] : memref<4x32xf32, #tpu.memory_space<vmem>>, vector<1x32xf32>
    %50 = vector.broadcast %49 : vector<1x32xf32> to vector<8x32xf32>
    %51 = arith.mulf %50, %48 : vector<8x32xf32>
    %c2_26 = arith.constant 2 : index
    %c0_27 = arith.constant 0 : index
    %52 = vector.load %arg9[%c2_26, %c0_27] : memref<4x32xf32, #tpu.memory_space<vmem>>, vector<1x32xf32>
    %53 = vector.broadcast %52 : vector<1x32xf32> to vector<8x32xf32>
    %54 = arith.mulf %53, %48 : vector<8x32xf32>
    %55 = arith.addf %38, %51 : vector<8x32xf32>
    %56 = arith.addf %39, %54 : vector<8x32xf32>
    %57 = vector.extract_strided_slice %7 {offsets = [0, 3], sizes = [8, 1], strides = [1, 1]} : vector<8x4xf32> to vector<8x1xf32>
    %c3 = arith.constant 3 : index
    %c0_28 = arith.constant 0 : index
    %58 = vector.load %arg6[%c3, %c0_28] : memref<4x32xf32, #tpu.memory_space<vmem>>, vector<1x32xf32>
    %59 = vector.broadcast %57 : vector<8x1xf32> to vector<8x32xf32>
    %60 = vector.broadcast %58 : vector<1x32xf32> to vector<8x32xf32>
    %61 = arith.subf %59, %60 : vector<8x32xf32>
    %c3_29 = arith.constant 3 : index
    %c0_30 = arith.constant 0 : index
    %62 = vector.load %arg7[%c3_29, %c0_30] : memref<4x32xf32, #tpu.memory_space<vmem>>, vector<1x32xf32>
    %63 = vector.broadcast %62 : vector<1x32xf32> to vector<8x32xf32>
    %64 = arith.mulf %61, %63 : vector<8x32xf32>
    %65 = math.tanh %64 : vector<8x32xf32>
    %c3_31 = arith.constant 3 : index
    %c0_32 = arith.constant 0 : index
    %66 = vector.load %arg8[%c3_31, %c0_32] : memref<4x32xf32, #tpu.memory_space<vmem>>, vector<1x32xf32>
    %67 = vector.broadcast %66 : vector<1x32xf32> to vector<8x32xf32>
    %68 = arith.mulf %67, %65 : vector<8x32xf32>
    %c3_33 = arith.constant 3 : index
    %c0_34 = arith.constant 0 : index
    %69 = vector.load %arg9[%c3_33, %c0_34] : memref<4x32xf32, #tpu.memory_space<vmem>>, vector<1x32xf32>
    %70 = vector.broadcast %69 : vector<1x32xf32> to vector<8x32xf32>
    %71 = arith.mulf %70, %65 : vector<8x32xf32>
    %72 = arith.addf %55, %68 : vector<8x32xf32>
    %73 = arith.addf %56, %71 : vector<8x32xf32>
    %c0_35 = arith.constant 0 : index
    %c0_36 = arith.constant 0 : index
    %74 = vector.load %arg23[%c0_35, %c0_36] : memref<8x32xf32, #tpu.memory_space<vmem>>, vector<8x32xf32>
    tpu.vector_store %arg23[%c0_35, %c0_36], %72 {strides = array<i32>} : memref<8x32xf32, #tpu.memory_space<vmem>>, vector<8x32xf32>,
    %c0_37 = arith.constant 0 : index
    %c0_38 = arith.constant 0 : index
    %75 = vector.load %arg24[%c0_37, %c0_38] : memref<8x32xf32, #tpu.memory_space<vmem>>, vector<8x32xf32>
    tpu.vector_store %arg24[%c0_37, %c0_38], %73 {strides = array<i32>} : memref<8x32xf32, #tpu.memory_space<vmem>>, vector<8x32xf32>,
    %c0_i32 = arith.constant 0 : i32
    %76 = arith.cmpi eq, %arg1, %c0_i32 : i32
    %77 = arith.extui %76 : i1 to i32
    %c0_i32_39 = arith.constant 0 : i32
    %78 = arith.cmpi ne, %77, %c0_i32_39 : i32
    scf.if %78 {
      %c0_351 = arith.constant 0 : index
      %c0_352 = arith.constant 0 : index
      %c0_353 = arith.constant 0 : index
      %898 = vector.load %arg3[%c0_351, %c0_352, %c0_353] : memref<1x2x32xf32, #tpu.memory_space<vmem>>, vector<1x2x32xf32>
      %899 = vector.shape_cast %898 : vector<1x2x32xf32> to vector<2x32xf32>
      %c0_354 = arith.constant 0 : index
      %c0_355 = arith.constant 0 : index
      %c0_356 = arith.constant 0 : index
      %900 = vector.load %arg22[%c0_354, %c0_355, %c0_356] : memref<1x2x32xf32, #tpu.memory_space<vmem>>, vector<1x2x32xf32>
      %901 = vector.shape_cast %900 : vector<1x2x32xf32> to vector<2x32xf32>
      %902 = vector.shape_cast %899 : vector<2x32xf32> to vector<1x2x32xf32>
      tpu.vector_store %arg22[%c0_354, %c0_355, %c0_356], %902 {strides = array<i32>} : memref<1x2x32xf32, #tpu.memory_space<vmem>>, vector<1x2x32xf32>,
    } else {
    }
    %c0_40 = arith.constant 0 : index
    %c0_41 = arith.constant 0 : index
    %c0_42 = arith.constant 0 : index
    %79 = vector.load %arg22[%c0_40, %c0_41, %c0_42] : memref<1x2x32xf32, #tpu.memory_space<vmem>>, vector<1x2x32xf32>
    %80 = vector.shape_cast %79 : vector<1x2x32xf32> to vector<2x32xf32>
    %c0_43 = arith.constant 0 : index
    %c0_44 = arith.constant 0 : index
    %81 = vector.load %arg14[%c0_43, %c0_44] : memref<1x32xf32, #tpu.memory_space<vmem>>, vector<1x32xf32>
    %c0_45 = arith.constant 0 : index
    %c0_46 = arith.constant 0 : index
    %82 = vector.load %arg15[%c0_45, %c0_46] : memref<1x32xf32, #tpu.memory_space<vmem>>, vector<1x32xf32>
    %c0_47 = arith.constant 0 : index
    %c0_48 = arith.constant 0 : index
    %83 = vector.load %arg16[%c0_47, %c0_48] : memref<1x32xf32, #tpu.memory_space<vmem>>, vector<1x32xf32>
    %c0_49 = arith.constant 0 : index
    %c0_50 = arith.constant 0 : index
    %84 = vector.load %arg23[%c0_49, %c0_50] : memref<8x32xf32, #tpu.memory_space<vmem>>, vector<2x32xf32>
    %85 = vector.broadcast %82 : vector<1x32xf32> to vector<2x32xf32>
    %86 = arith.addf %85, %84 : vector<2x32xf32>
    %c0_51 = arith.constant 0 : index
    %c0_52 = arith.constant 0 : index
    %87 = vector.load %arg24[%c0_51, %c0_52] : memref<8x32xf32, #tpu.memory_space<vmem>>, vector<2x32xf32>
    %88 = vector.broadcast %83 : vector<1x32xf32> to vector<2x32xf32>
    %89 = arith.addf %88, %87 : vector<2x32xf32>
    %90 = vector.shape_cast %80 : vector<2x32xf32> to vector<2x32x1xf32>
    %c0_53 = arith.constant 0 : index
    %c0_54 = arith.constant 0 : index
    %91 = vector.load %arg10[%c0_53, %c0_54] : memref<32x32xf32, #tpu.memory_space<vmem>>, vector<32x32xf32>
    %92 = vector.shape_cast %91 : vector<32x32xf32> to vector<1x32x32xf32>
    %93 = vector.broadcast %90 : vector<2x32x1xf32> to vector<2x32x32xf32>
    %94 = vector.broadcast %92 : vector<1x32x32xf32> to vector<2x32x32xf32>
    %95 = arith.subf %93, %94 : vector<2x32x32xf32>
    %c0_55 = arith.constant 0 : index
    %c0_56 = arith.constant 0 : index
    %96 = vector.load %arg11[%c0_55, %c0_56] : memref<32x32xf32, #tpu.memory_space<vmem>>, vector<32x32xf32>
    %97 = vector.shape_cast %96 : vector<32x32xf32> to vector<1x32x32xf32>
    %98 = vector.broadcast %97 : vector<1x32x32xf32> to vector<2x32x32xf32>
    %99 = arith.mulf %95, %98 : vector<2x32x32xf32>
    %100 = math.tanh %99 : vector<2x32x32xf32>
    %c0_57 = arith.constant 0 : index
    %c0_58 = arith.constant 0 : index
    %101 = vector.load %arg12[%c0_57, %c0_58] : memref<32x32xf32, #tpu.memory_space<vmem>>, vector<32x32xf32>
    %102 = vector.shape_cast %101 : vector<32x32xf32> to vector<1x32x32xf32>
    %103 = vector.broadcast %102 : vector<1x32x32xf32> to vector<2x32x32xf32>
    %104 = arith.mulf %103, %100 : vector<2x32x32xf32>
    %cst = arith.constant dense<0.000000e+00> : vector<2x32xf32>
    %105 = vector.multi_reduction <add>, %104, %cst [1] : vector<2x32x32xf32> to vector<2x32xf32>
    %c0_59 = arith.constant 0 : index
    %c0_60 = arith.constant 0 : index
    %106 = vector.load %arg13[%c0_59, %c0_60] : memref<32x32xf32, #tpu.memory_space<vmem>>, vector<32x32xf32>
    %107 = vector.shape_cast %106 : vector<32x32xf32> to vector<1x32x32xf32>
    %108 = vector.broadcast %107 : vector<1x32x32xf32> to vector<2x32x32xf32>
    %109 = arith.mulf %108, %100 : vector<2x32x32xf32>
    %cst_61 = arith.constant dense<0.000000e+00> : vector<2x32xf32>
    %110 = vector.multi_reduction <add>, %109, %cst_61 [1] : vector<2x32x32xf32> to vector<2x32xf32>
    %111 = arith.addf %89, %110 : vector<2x32xf32>
    %112 = tpu.reciprocal %111 {approx = true} : vector<2x32xf32> -> vector<2x32xf32>
    %113 = arith.mulf %111, %112 : vector<2x32xf32>
    %cst_62 = arith.constant 2.000000e+00 : f32
    %114 = vector.broadcast %cst_62 : f32 to vector<2x32xf32>
    %115 = arith.subf %114, %113 : vector<2x32xf32>
    %116 = arith.mulf %112, %115 : vector<2x32xf32>
    %117 = vector.broadcast %81 : vector<1x32xf32> to vector<2x32xf32>
    %118 = arith.mulf %117, %80 : vector<2x32xf32>
    %119 = arith.addf %118, %86 : vector<2x32xf32>
    %120 = arith.addf %119, %105 : vector<2x32xf32>
    %121 = arith.mulf %120, %116 : vector<2x32xf32>
    %122 = vector.shape_cast %121 : vector<2x32xf32> to vector<2x32x1xf32>
    %c0_63 = arith.constant 0 : index
    %c0_64 = arith.constant 0 : index
    %123 = vector.load %arg10[%c0_63, %c0_64] : memref<32x32xf32, #tpu.memory_space<vmem>>, vector<32x32xf32>
    %124 = vector.shape_cast %123 : vector<32x32xf32> to vector<1x32x32xf32>
    %125 = vector.broadcast %122 : vector<2x32x1xf32> to vector<2x32x32xf32>
    %126 = vector.broadcast %124 : vector<1x32x32xf32> to vector<2x32x32xf32>
    %127 = arith.subf %125, %126 : vector<2x32x32xf32>
    %c0_65 = arith.constant 0 : index
    %c0_66 = arith.constant 0 : index
    %128 = vector.load %arg11[%c0_65, %c0_66] : memref<32x32xf32, #tpu.memory_space<vmem>>, vector<32x32xf32>
    %129 = vector.shape_cast %128 : vector<32x32xf32> to vector<1x32x32xf32>
    %130 = vector.broadcast %129 : vector<1x32x32xf32> to vector<2x32x32xf32>
    %131 = arith.mulf %127, %130 : vector<2x32x32xf32>
    %132 = math.tanh %131 : vector<2x32x32xf32>
    %c0_67 = arith.constant 0 : index
    %c0_68 = arith.constant 0 : index
    %133 = vector.load %arg12[%c0_67, %c0_68] : memref<32x32xf32, #tpu.memory_space<vmem>>, vector<32x32xf32>
    %134 = vector.shape_cast %133 : vector<32x32xf32> to vector<1x32x32xf32>
    %135 = vector.broadcast %134 : vector<1x32x32xf32> to vector<2x32x32xf32>
    %136 = arith.mulf %135, %132 : vector<2x32x32xf32>
    %cst_69 = arith.constant dense<0.000000e+00> : vector<2x32xf32>
    %137 = vector.multi_reduction <add>, %136, %cst_69 [1] : vector<2x32x32xf32> to vector<2x32xf32>
    %c0_70 = arith.constant 0 : index
    %c0_71 = arith.constant 0 : index
    %138 = vector.load %arg13[%c0_70, %c0_71] : memref<32x32xf32, #tpu.memory_space<vmem>>, vector<32x32xf32>
    %139 = vector.shape_cast %138 : vector<32x32xf32> to vector<1x32x32xf32>
    %140 = vector.broadcast %139 : vector<1x32x32xf32> to vector<2x32x32xf32>
    %141 = arith.mulf %140, %132 : vector<2x32x32xf32>
    %cst_72 = arith.constant dense<0.000000e+00> : vector<2x32xf32>
    %142 = vector.multi_reduction <add>, %141, %cst_72 [1] : vector<2x32x32xf32> to vector<2x32xf32>
    %143 = arith.addf %89, %142 : vector<2x32xf32>
    %144 = tpu.reciprocal %143 {approx = true} : vector<2x32xf32> -> vector<2x32xf32>
    %145 = arith.mulf %143, %144 : vector<2x32xf32>
    %cst_73 = arith.constant 2.000000e+00 : f32
    %146 = vector.broadcast %cst_73 : f32 to vector<2x32xf32>
    %147 = arith.subf %146, %145 : vector<2x32xf32>
    %148 = arith.mulf %144, %147 : vector<2x32xf32>
    %149 = vector.broadcast %81 : vector<1x32xf32> to vector<2x32xf32>
    %150 = arith.mulf %149, %121 : vector<2x32xf32>
    %151 = arith.addf %150, %86 : vector<2x32xf32>
    %152 = arith.addf %151, %137 : vector<2x32xf32>
    %153 = arith.mulf %152, %148 : vector<2x32xf32>
    %154 = vector.shape_cast %153 : vector<2x32xf32> to vector<2x32x1xf32>
    %c0_74 = arith.constant 0 : index
    %c0_75 = arith.constant 0 : index
    %155 = vector.load %arg10[%c0_74, %c0_75] : memref<32x32xf32, #tpu.memory_space<vmem>>, vector<32x32xf32>
    %156 = vector.shape_cast %155 : vector<32x32xf32> to vector<1x32x32xf32>
    %157 = vector.broadcast %154 : vector<2x32x1xf32> to vector<2x32x32xf32>
    %158 = vector.broadcast %156 : vector<1x32x32xf32> to vector<2x32x32xf32>
    %159 = arith.subf %157, %158 : vector<2x32x32xf32>
    %c0_76 = arith.constant 0 : index
    %c0_77 = arith.constant 0 : index
    %160 = vector.load %arg11[%c0_76, %c0_77] : memref<32x32xf32, #tpu.memory_space<vmem>>, vector<32x32xf32>
    %161 = vector.shape_cast %160 : vector<32x32xf32> to vector<1x32x32xf32>
    %162 = vector.broadcast %161 : vector<1x32x32xf32> to vector<2x32x32xf32>
    %163 = arith.mulf %159, %162 : vector<2x32x32xf32>
    %164 = math.tanh %163 : vector<2x32x32xf32>
    %c0_78 = arith.constant 0 : index
    %c0_79 = arith.constant 0 : index
    %165 = vector.load %arg12[%c0_78, %c0_79] : memref<32x32xf32, #tpu.memory_space<vmem>>, vector<32x32xf32>
    %166 = vector.shape_cast %165 : vector<32x32xf32> to vector<1x32x32xf32>
    %167 = vector.broadcast %166 : vector<1x32x32xf32> to vector<2x32x32xf32>
    %168 = arith.mulf %167, %164 : vector<2x32x32xf32>
    %cst_80 = arith.constant dense<0.000000e+00> : vector<2x32xf32>
    %169 = vector.multi_reduction <add>, %168, %cst_80 [1] : vector<2x32x32xf32> to vector<2x32xf32>
    %c0_81 = arith.constant 0 : index
    %c0_82 = arith.constant 0 : index
    %170 = vector.load %arg13[%c0_81, %c0_82] : memref<32x32xf32, #tpu.memory_space<vmem>>, vector<32x32xf32>
    %171 = vector.shape_cast %170 : vector<32x32xf32> to vector<1x32x32xf32>
    %172 = vector.broadcast %171 : vector<1x32x32xf32> to vector<2x32x32xf32>
    %173 = arith.mulf %172, %164 : vector<2x32x32xf32>
    %cst_83 = arith.constant dense<0.000000e+00> : vector<2x32xf32>
    %174 = vector.multi_reduction <add>, %173, %cst_83 [1] : vector<2x32x32xf32> to vector<2x32xf32>
    %175 = arith.addf %89, %174 : vector<2x32xf32>
    %176 = tpu.reciprocal %175 {approx = true} : vector<2x32xf32> -> vector<2x32xf32>
    %177 = arith.mulf %175, %176 : vector<2x32xf32>
    %cst_84 = arith.constant 2.000000e+00 : f32
    %178 = vector.broadcast %cst_84 : f32 to vector<2x32xf32>
    %179 = arith.subf %178, %177 : vector<2x32xf32>
    %180 = arith.mulf %176, %179 : vector<2x32xf32>
    %181 = vector.broadcast %81 : vector<1x32xf32> to vector<2x32xf32>
    %182 = arith.mulf %181, %153 : vector<2x32xf32>
    %183 = arith.addf %182, %86 : vector<2x32xf32>
    %184 = arith.addf %183, %169 : vector<2x32xf32>
    %185 = arith.mulf %184, %180 : vector<2x32xf32>
    %186 = vector.shape_cast %185 : vector<2x32xf32> to vector<2x32x1xf32>
    %c0_85 = arith.constant 0 : index
    %c0_86 = arith.constant 0 : index
    %187 = vector.load %arg10[%c0_85, %c0_86] : memref<32x32xf32, #tpu.memory_space<vmem>>, vector<32x32xf32>
    %188 = vector.shape_cast %187 : vector<32x32xf32> to vector<1x32x32xf32>
    %189 = vector.broadcast %186 : vector<2x32x1xf32> to vector<2x32x32xf32>
    %190 = vector.broadcast %188 : vector<1x32x32xf32> to vector<2x32x32xf32>
    %191 = arith.subf %189, %190 : vector<2x32x32xf32>
    %c0_87 = arith.constant 0 : index
    %c0_88 = arith.constant 0 : index
    %192 = vector.load %arg11[%c0_87, %c0_88] : memref<32x32xf32, #tpu.memory_space<vmem>>, vector<32x32xf32>
    %193 = vector.shape_cast %192 : vector<32x32xf32> to vector<1x32x32xf32>
    %194 = vector.broadcast %193 : vector<1x32x32xf32> to vector<2x32x32xf32>
    %195 = arith.mulf %191, %194 : vector<2x32x32xf32>
    %196 = math.tanh %195 : vector<2x32x32xf32>
    %c0_89 = arith.constant 0 : index
    %c0_90 = arith.constant 0 : index
    %197 = vector.load %arg12[%c0_89, %c0_90] : memref<32x32xf32, #tpu.memory_space<vmem>>, vector<32x32xf32>
    %198 = vector.shape_cast %197 : vector<32x32xf32> to vector<1x32x32xf32>
    %199 = vector.broadcast %198 : vector<1x32x32xf32> to vector<2x32x32xf32>
    %200 = arith.mulf %199, %196 : vector<2x32x32xf32>
    %cst_91 = arith.constant dense<0.000000e+00> : vector<2x32xf32>
    %201 = vector.multi_reduction <add>, %200, %cst_91 [1] : vector<2x32x32xf32> to vector<2x32xf32>
    %c0_92 = arith.constant 0 : index
    %c0_93 = arith.constant 0 : index
    %202 = vector.load %arg13[%c0_92, %c0_93] : memref<32x32xf32, #tpu.memory_space<vmem>>, vector<32x32xf32>
    %203 = vector.shape_cast %202 : vector<32x32xf32> to vector<1x32x32xf32>
    %204 = vector.broadcast %203 : vector<1x32x32xf32> to vector<2x32x32xf32>
    %205 = arith.mulf %204, %196 : vector<2x32x32xf32>
    %cst_94 = arith.constant dense<0.000000e+00> : vector<2x32xf32>
    %206 = vector.multi_reduction <add>, %205, %cst_94 [1] : vector<2x32x32xf32> to vector<2x32xf32>
    %207 = arith.addf %89, %206 : vector<2x32xf32>
    %208 = tpu.reciprocal %207 {approx = true} : vector<2x32xf32> -> vector<2x32xf32>
    %209 = arith.mulf %207, %208 : vector<2x32xf32>
    %cst_95 = arith.constant 2.000000e+00 : f32
    %210 = vector.broadcast %cst_95 : f32 to vector<2x32xf32>
    %211 = arith.subf %210, %209 : vector<2x32xf32>
    %212 = arith.mulf %208, %211 : vector<2x32xf32>
    %213 = vector.broadcast %81 : vector<1x32xf32> to vector<2x32xf32>
    %214 = arith.mulf %213, %185 : vector<2x32xf32>
    %215 = arith.addf %214, %86 : vector<2x32xf32>
    %216 = arith.addf %215, %201 : vector<2x32xf32>
    %217 = arith.mulf %216, %212 : vector<2x32xf32>
    %218 = vector.shape_cast %217 : vector<2x32xf32> to vector<2x32x1xf32>
    %c0_96 = arith.constant 0 : index
    %c0_97 = arith.constant 0 : index
    %219 = vector.load %arg10[%c0_96, %c0_97] : memref<32x32xf32, #tpu.memory_space<vmem>>, vector<32x32xf32>
    %220 = vector.shape_cast %219 : vector<32x32xf32> to vector<1x32x32xf32>
    %221 = vector.broadcast %218 : vector<2x32x1xf32> to vector<2x32x32xf32>
    %222 = vector.broadcast %220 : vector<1x32x32xf32> to vector<2x32x32xf32>
    %223 = arith.subf %221, %222 : vector<2x32x32xf32>
    %c0_98 = arith.constant 0 : index
    %c0_99 = arith.constant 0 : index
    %224 = vector.load %arg11[%c0_98, %c0_99] : memref<32x32xf32, #tpu.memory_space<vmem>>, vector<32x32xf32>
    %225 = vector.shape_cast %224 : vector<32x32xf32> to vector<1x32x32xf32>
    %226 = vector.broadcast %225 : vector<1x32x32xf32> to vector<2x32x32xf32>
    %227 = arith.mulf %223, %226 : vector<2x32x32xf32>
    %228 = math.tanh %227 : vector<2x32x32xf32>
    %c0_100 = arith.constant 0 : index
    %c0_101 = arith.constant 0 : index
    %229 = vector.load %arg12[%c0_100, %c0_101] : memref<32x32xf32, #tpu.memory_space<vmem>>, vector<32x32xf32>
    %230 = vector.shape_cast %229 : vector<32x32xf32> to vector<1x32x32xf32>
    %231 = vector.broadcast %230 : vector<1x32x32xf32> to vector<2x32x32xf32>
    %232 = arith.mulf %231, %228 : vector<2x32x32xf32>
    %cst_102 = arith.constant dense<0.000000e+00> : vector<2x32xf32>
    %233 = vector.multi_reduction <add>, %232, %cst_102 [1] : vector<2x32x32xf32> to vector<2x32xf32>
    %c0_103 = arith.constant 0 : index
    %c0_104 = arith.constant 0 : index
    %234 = vector.load %arg13[%c0_103, %c0_104] : memref<32x32xf32, #tpu.memory_space<vmem>>, vector<32x32xf32>
    %235 = vector.shape_cast %234 : vector<32x32xf32> to vector<1x32x32xf32>
    %236 = vector.broadcast %235 : vector<1x32x32xf32> to vector<2x32x32xf32>
    %237 = arith.mulf %236, %228 : vector<2x32x32xf32>
    %cst_105 = arith.constant dense<0.000000e+00> : vector<2x32xf32>
    %238 = vector.multi_reduction <add>, %237, %cst_105 [1] : vector<2x32x32xf32> to vector<2x32xf32>
    %239 = arith.addf %89, %238 : vector<2x32xf32>
    %240 = tpu.reciprocal %239 {approx = true} : vector<2x32xf32> -> vector<2x32xf32>
    %241 = arith.mulf %239, %240 : vector<2x32xf32>
    %cst_106 = arith.constant 2.000000e+00 : f32
    %242 = vector.broadcast %cst_106 : f32 to vector<2x32xf32>
    %243 = arith.subf %242, %241 : vector<2x32xf32>
    %244 = arith.mulf %240, %243 : vector<2x32xf32>
    %245 = vector.broadcast %81 : vector<1x32xf32> to vector<2x32xf32>
    %246 = arith.mulf %245, %217 : vector<2x32xf32>
    %247 = arith.addf %246, %86 : vector<2x32xf32>
    %248 = arith.addf %247, %233 : vector<2x32xf32>
    %249 = arith.mulf %248, %244 : vector<2x32xf32>
    %250 = vector.shape_cast %249 : vector<2x32xf32> to vector<2x32x1xf32>
    %c0_107 = arith.constant 0 : index
    %c0_108 = arith.constant 0 : index
    %251 = vector.load %arg10[%c0_107, %c0_108] : memref<32x32xf32, #tpu.memory_space<vmem>>, vector<32x32xf32>
    %252 = vector.shape_cast %251 : vector<32x32xf32> to vector<1x32x32xf32>
    %253 = vector.broadcast %250 : vector<2x32x1xf32> to vector<2x32x32xf32>
    %254 = vector.broadcast %252 : vector<1x32x32xf32> to vector<2x32x32xf32>
    %255 = arith.subf %253, %254 : vector<2x32x32xf32>
    %c0_109 = arith.constant 0 : index
    %c0_110 = arith.constant 0 : index
    %256 = vector.load %arg11[%c0_109, %c0_110] : memref<32x32xf32, #tpu.memory_space<vmem>>, vector<32x32xf32>
    %257 = vector.shape_cast %256 : vector<32x32xf32> to vector<1x32x32xf32>
    %258 = vector.broadcast %257 : vector<1x32x32xf32> to vector<2x32x32xf32>
    %259 = arith.mulf %255, %258 : vector<2x32x32xf32>
    %260 = math.tanh %259 : vector<2x32x32xf32>
    %c0_111 = arith.constant 0 : index
    %c0_112 = arith.constant 0 : index
    %261 = vector.load %arg12[%c0_111, %c0_112] : memref<32x32xf32, #tpu.memory_space<vmem>>, vector<32x32xf32>
    %262 = vector.shape_cast %261 : vector<32x32xf32> to vector<1x32x32xf32>
    %263 = vector.broadcast %262 : vector<1x32x32xf32> to vector<2x32x32xf32>
    %264 = arith.mulf %263, %260 : vector<2x32x32xf32>
    %cst_113 = arith.constant dense<0.000000e+00> : vector<2x32xf32>
    %265 = vector.multi_reduction <add>, %264, %cst_113 [1] : vector<2x32x32xf32> to vector<2x32xf32>
    %c0_114 = arith.constant 0 : index
    %c0_115 = arith.constant 0 : index
    %266 = vector.load %arg13[%c0_114, %c0_115] : memref<32x32xf32, #tpu.memory_space<vmem>>, vector<32x32xf32>
    %267 = vector.shape_cast %266 : vector<32x32xf32> to vector<1x32x32xf32>
    %268 = vector.broadcast %267 : vector<1x32x32xf32> to vector<2x32x32xf32>
    %269 = arith.mulf %268, %260 : vector<2x32x32xf32>
    %cst_116 = arith.constant dense<0.000000e+00> : vector<2x32xf32>
    %270 = vector.multi_reduction <add>, %269, %cst_116 [1] : vector<2x32x32xf32> to vector<2x32xf32>
    %271 = arith.addf %89, %270 : vector<2x32xf32>
    %272 = tpu.reciprocal %271 {approx = true} : vector<2x32xf32> -> vector<2x32xf32>
    %273 = arith.mulf %271, %272 : vector<2x32xf32>
    %cst_117 = arith.constant 2.000000e+00 : f32
    %274 = vector.broadcast %cst_117 : f32 to vector<2x32xf32>
    %275 = arith.subf %274, %273 : vector<2x32xf32>
    %276 = arith.mulf %272, %275 : vector<2x32xf32>
    %277 = vector.broadcast %81 : vector<1x32xf32> to vector<2x32xf32>
    %278 = arith.mulf %277, %249 : vector<2x32xf32>
    %279 = arith.addf %278, %86 : vector<2x32xf32>
    %280 = arith.addf %279, %265 : vector<2x32xf32>
    %281 = arith.mulf %280, %276 : vector<2x32xf32>
    %c0_118 = arith.constant 0 : index
    %c0_119 = arith.constant 0 : index
    %282 = vector.load %arg25[%c0_118, %c0_119] : memref<8x32xf32, #tpu.memory_space<vmem>>, vector<2x32xf32>
    tpu.vector_store %arg25[%c0_118, %c0_119], %281 {strides = array<i32>} : memref<8x32xf32, #tpu.memory_space<vmem>>, vector<2x32xf32>,
    %c2_120 = arith.constant 2 : index
    %c0_121 = arith.constant 0 : index
    %283 = vector.load %arg23[%c2_120, %c0_121] : memref<8x32xf32, #tpu.memory_space<vmem>>, vector<2x32xf32>
    %284 = vector.broadcast %82 : vector<1x32xf32> to vector<2x32xf32>
    %285 = arith.addf %284, %283 : vector<2x32xf32>
    %c2_122 = arith.constant 2 : index
    %c0_123 = arith.constant 0 : index
    %286 = vector.load %arg24[%c2_122, %c0_123] : memref<8x32xf32, #tpu.memory_space<vmem>>, vector<2x32xf32>
    %287 = vector.broadcast %83 : vector<1x32xf32> to vector<2x32xf32>
    %288 = arith.addf %287, %286 : vector<2x32xf32>
    %289 = vector.shape_cast %281 : vector<2x32xf32> to vector<2x32x1xf32>
    %c0_124 = arith.constant 0 : index
    %c0_125 = arith.constant 0 : index
    %290 = vector.load %arg10[%c0_124, %c0_125] : memref<32x32xf32, #tpu.memory_space<vmem>>, vector<32x32xf32>
    %291 = vector.shape_cast %290 : vector<32x32xf32> to vector<1x32x32xf32>
    %292 = vector.broadcast %289 : vector<2x32x1xf32> to vector<2x32x32xf32>
    %293 = vector.broadcast %291 : vector<1x32x32xf32> to vector<2x32x32xf32>
    %294 = arith.subf %292, %293 : vector<2x32x32xf32>
    %c0_126 = arith.constant 0 : index
    %c0_127 = arith.constant 0 : index
    %295 = vector.load %arg11[%c0_126, %c0_127] : memref<32x32xf32, #tpu.memory_space<vmem>>, vector<32x32xf32>
    %296 = vector.shape_cast %295 : vector<32x32xf32> to vector<1x32x32xf32>
    %297 = vector.broadcast %296 : vector<1x32x32xf32> to vector<2x32x32xf32>
    %298 = arith.mulf %294, %297 : vector<2x32x32xf32>
    %299 = math.tanh %298 : vector<2x32x32xf32>
    %c0_128 = arith.constant 0 : index
    %c0_129 = arith.constant 0 : index
    %300 = vector.load %arg12[%c0_128, %c0_129] : memref<32x32xf32, #tpu.memory_space<vmem>>, vector<32x32xf32>
    %301 = vector.shape_cast %300 : vector<32x32xf32> to vector<1x32x32xf32>
    %302 = vector.broadcast %301 : vector<1x32x32xf32> to vector<2x32x32xf32>
    %303 = arith.mulf %302, %299 : vector<2x32x32xf32>
    %cst_130 = arith.constant dense<0.000000e+00> : vector<2x32xf32>
    %304 = vector.multi_reduction <add>, %303, %cst_130 [1] : vector<2x32x32xf32> to vector<2x32xf32>
    %c0_131 = arith.constant 0 : index
    %c0_132 = arith.constant 0 : index
    %305 = vector.load %arg13[%c0_131, %c0_132] : memref<32x32xf32, #tpu.memory_space<vmem>>, vector<32x32xf32>
    %306 = vector.shape_cast %305 : vector<32x32xf32> to vector<1x32x32xf32>
    %307 = vector.broadcast %306 : vector<1x32x32xf32> to vector<2x32x32xf32>
    %308 = arith.mulf %307, %299 : vector<2x32x32xf32>
    %cst_133 = arith.constant dense<0.000000e+00> : vector<2x32xf32>
    %309 = vector.multi_reduction <add>, %308, %cst_133 [1] : vector<2x32x32xf32> to vector<2x32xf32>
    %310 = arith.addf %288, %309 : vector<2x32xf32>
    %311 = tpu.reciprocal %310 {approx = true} : vector<2x32xf32> -> vector<2x32xf32>
    %312 = arith.mulf %310, %311 : vector<2x32xf32>
    %cst_134 = arith.constant 2.000000e+00 : f32
    %313 = vector.broadcast %cst_134 : f32 to vector<2x32xf32>
    %314 = arith.subf %313, %312 : vector<2x32xf32>
    %315 = arith.mulf %311, %314 : vector<2x32xf32>
    %316 = vector.broadcast %81 : vector<1x32xf32> to vector<2x32xf32>
    %317 = arith.mulf %316, %281 : vector<2x32xf32>
    %318 = arith.addf %317, %285 : vector<2x32xf32>
    %319 = arith.addf %318, %304 : vector<2x32xf32>
    %320 = arith.mulf %319, %315 : vector<2x32xf32>
    %321 = vector.shape_cast %320 : vector<2x32xf32> to vector<2x32x1xf32>
    %c0_135 = arith.constant 0 : index
    %c0_136 = arith.constant 0 : index
    %322 = vector.load %arg10[%c0_135, %c0_136] : memref<32x32xf32, #tpu.memory_space<vmem>>, vector<32x32xf32>
    %323 = vector.shape_cast %322 : vector<32x32xf32> to vector<1x32x32xf32>
    %324 = vector.broadcast %321 : vector<2x32x1xf32> to vector<2x32x32xf32>
    %325 = vector.broadcast %323 : vector<1x32x32xf32> to vector<2x32x32xf32>
    %326 = arith.subf %324, %325 : vector<2x32x32xf32>
    %c0_137 = arith.constant 0 : index
    %c0_138 = arith.constant 0 : index
    %327 = vector.load %arg11[%c0_137, %c0_138] : memref<32x32xf32, #tpu.memory_space<vmem>>, vector<32x32xf32>
    %328 = vector.shape_cast %327 : vector<32x32xf32> to vector<1x32x32xf32>
    %329 = vector.broadcast %328 : vector<1x32x32xf32> to vector<2x32x32xf32>
    %330 = arith.mulf %326, %329 : vector<2x32x32xf32>
    %331 = math.tanh %330 : vector<2x32x32xf32>
    %c0_139 = arith.constant 0 : index
    %c0_140 = arith.constant 0 : index
    %332 = vector.load %arg12[%c0_139, %c0_140] : memref<32x32xf32, #tpu.memory_space<vmem>>, vector<32x32xf32>
    %333 = vector.shape_cast %332 : vector<32x32xf32> to vector<1x32x32xf32>
    %334 = vector.broadcast %333 : vector<1x32x32xf32> to vector<2x32x32xf32>
    %335 = arith.mulf %334, %331 : vector<2x32x32xf32>
    %cst_141 = arith.constant dense<0.000000e+00> : vector<2x32xf32>
    %336 = vector.multi_reduction <add>, %335, %cst_141 [1] : vector<2x32x32xf32> to vector<2x32xf32>
    %c0_142 = arith.constant 0 : index
    %c0_143 = arith.constant 0 : index
    %337 = vector.load %arg13[%c0_142, %c0_143] : memref<32x32xf32, #tpu.memory_space<vmem>>, vector<32x32xf32>
    %338 = vector.shape_cast %337 : vector<32x32xf32> to vector<1x32x32xf32>
    %339 = vector.broadcast %338 : vector<1x32x32xf32> to vector<2x32x32xf32>
    %340 = arith.mulf %339, %331 : vector<2x32x32xf32>
    %cst_144 = arith.constant dense<0.000000e+00> : vector<2x32xf32>
    %341 = vector.multi_reduction <add>, %340, %cst_144 [1] : vector<2x32x32xf32> to vector<2x32xf32>
    %342 = arith.addf %288, %341 : vector<2x32xf32>
    %343 = tpu.reciprocal %342 {approx = true} : vector<2x32xf32> -> vector<2x32xf32>
    %344 = arith.mulf %342, %343 : vector<2x32xf32>
    %cst_145 = arith.constant 2.000000e+00 : f32
    %345 = vector.broadcast %cst_145 : f32 to vector<2x32xf32>
    %346 = arith.subf %345, %344 : vector<2x32xf32>
    %347 = arith.mulf %343, %346 : vector<2x32xf32>
    %348 = vector.broadcast %81 : vector<1x32xf32> to vector<2x32xf32>
    %349 = arith.mulf %348, %320 : vector<2x32xf32>
    %350 = arith.addf %349, %285 : vector<2x32xf32>
    %351 = arith.addf %350, %336 : vector<2x32xf32>
    %352 = arith.mulf %351, %347 : vector<2x32xf32>
    %353 = vector.shape_cast %352 : vector<2x32xf32> to vector<2x32x1xf32>
    %c0_146 = arith.constant 0 : index
    %c0_147 = arith.constant 0 : index
    %354 = vector.load %arg10[%c0_146, %c0_147] : memref<32x32xf32, #tpu.memory_space<vmem>>, vector<32x32xf32>
    %355 = vector.shape_cast %354 : vector<32x32xf32> to vector<1x32x32xf32>
    %356 = vector.broadcast %353 : vector<2x32x1xf32> to vector<2x32x32xf32>
    %357 = vector.broadcast %355 : vector<1x32x32xf32> to vector<2x32x32xf32>
    %358 = arith.subf %356, %357 : vector<2x32x32xf32>
    %c0_148 = arith.constant 0 : index
    %c0_149 = arith.constant 0 : index
    %359 = vector.load %arg11[%c0_148, %c0_149] : memref<32x32xf32, #tpu.memory_space<vmem>>, vector<32x32xf32>
    %360 = vector.shape_cast %359 : vector<32x32xf32> to vector<1x32x32xf32>
    %361 = vector.broadcast %360 : vector<1x32x32xf32> to vector<2x32x32xf32>
    %362 = arith.mulf %358, %361 : vector<2x32x32xf32>
    %363 = math.tanh %362 : vector<2x32x32xf32>
    %c0_150 = arith.constant 0 : index
    %c0_151 = arith.constant 0 : index
    %364 = vector.load %arg12[%c0_150, %c0_151] : memref<32x32xf32, #tpu.memory_space<vmem>>, vector<32x32xf32>
    %365 = vector.shape_cast %364 : vector<32x32xf32> to vector<1x32x32xf32>
    %366 = vector.broadcast %365 : vector<1x32x32xf32> to vector<2x32x32xf32>
    %367 = arith.mulf %366, %363 : vector<2x32x32xf32>
    %cst_152 = arith.constant dense<0.000000e+00> : vector<2x32xf32>
    %368 = vector.multi_reduction <add>, %367, %cst_152 [1] : vector<2x32x32xf32> to vector<2x32xf32>
    %c0_153 = arith.constant 0 : index
    %c0_154 = arith.constant 0 : index
    %369 = vector.load %arg13[%c0_153, %c0_154] : memref<32x32xf32, #tpu.memory_space<vmem>>, vector<32x32xf32>
    %370 = vector.shape_cast %369 : vector<32x32xf32> to vector<1x32x32xf32>
    %371 = vector.broadcast %370 : vector<1x32x32xf32> to vector<2x32x32xf32>
    %372 = arith.mulf %371, %363 : vector<2x32x32xf32>
    %cst_155 = arith.constant dense<0.000000e+00> : vector<2x32xf32>
    %373 = vector.multi_reduction <add>, %372, %cst_155 [1] : vector<2x32x32xf32> to vector<2x32xf32>
    %374 = arith.addf %288, %373 : vector<2x32xf32>
    %375 = tpu.reciprocal %374 {approx = true} : vector<2x32xf32> -> vector<2x32xf32>
    %376 = arith.mulf %374, %375 : vector<2x32xf32>
    %cst_156 = arith.constant 2.000000e+00 : f32
    %377 = vector.broadcast %cst_156 : f32 to vector<2x32xf32>
    %378 = arith.subf %377, %376 : vector<2x32xf32>
    %379 = arith.mulf %375, %378 : vector<2x32xf32>
    %380 = vector.broadcast %81 : vector<1x32xf32> to vector<2x32xf32>
    %381 = arith.mulf %380, %352 : vector<2x32xf32>
    %382 = arith.addf %381, %285 : vector<2x32xf32>
    %383 = arith.addf %382, %368 : vector<2x32xf32>
    %384 = arith.mulf %383, %379 : vector<2x32xf32>
    %385 = vector.shape_cast %384 : vector<2x32xf32> to vector<2x32x1xf32>
    %c0_157 = arith.constant 0 : index
    %c0_158 = arith.constant 0 : index
    %386 = vector.load %arg10[%c0_157, %c0_158] : memref<32x32xf32, #tpu.memory_space<vmem>>, vector<32x32xf32>
    %387 = vector.shape_cast %386 : vector<32x32xf32> to vector<1x32x32xf32>
    %388 = vector.broadcast %385 : vector<2x32x1xf32> to vector<2x32x32xf32>
    %389 = vector.broadcast %387 : vector<1x32x32xf32> to vector<2x32x32xf32>
    %390 = arith.subf %388, %389 : vector<2x32x32xf32>
    %c0_159 = arith.constant 0 : index
    %c0_160 = arith.constant 0 : index
    %391 = vector.load %arg11[%c0_159, %c0_160] : memref<32x32xf32, #tpu.memory_space<vmem>>, vector<32x32xf32>
    %392 = vector.shape_cast %391 : vector<32x32xf32> to vector<1x32x32xf32>
    %393 = vector.broadcast %392 : vector<1x32x32xf32> to vector<2x32x32xf32>
    %394 = arith.mulf %390, %393 : vector<2x32x32xf32>
    %395 = math.tanh %394 : vector<2x32x32xf32>
    %c0_161 = arith.constant 0 : index
    %c0_162 = arith.constant 0 : index
    %396 = vector.load %arg12[%c0_161, %c0_162] : memref<32x32xf32, #tpu.memory_space<vmem>>, vector<32x32xf32>
    %397 = vector.shape_cast %396 : vector<32x32xf32> to vector<1x32x32xf32>
    %398 = vector.broadcast %397 : vector<1x32x32xf32> to vector<2x32x32xf32>
    %399 = arith.mulf %398, %395 : vector<2x32x32xf32>
    %cst_163 = arith.constant dense<0.000000e+00> : vector<2x32xf32>
    %400 = vector.multi_reduction <add>, %399, %cst_163 [1] : vector<2x32x32xf32> to vector<2x32xf32>
    %c0_164 = arith.constant 0 : index
    %c0_165 = arith.constant 0 : index
    %401 = vector.load %arg13[%c0_164, %c0_165] : memref<32x32xf32, #tpu.memory_space<vmem>>, vector<32x32xf32>
    %402 = vector.shape_cast %401 : vector<32x32xf32> to vector<1x32x32xf32>
    %403 = vector.broadcast %402 : vector<1x32x32xf32> to vector<2x32x32xf32>
    %404 = arith.mulf %403, %395 : vector<2x32x32xf32>
    %cst_166 = arith.constant dense<0.000000e+00> : vector<2x32xf32>
    %405 = vector.multi_reduction <add>, %404, %cst_166 [1] : vector<2x32x32xf32> to vector<2x32xf32>
    %406 = arith.addf %288, %405 : vector<2x32xf32>
    %407 = tpu.reciprocal %406 {approx = true} : vector<2x32xf32> -> vector<2x32xf32>
    %408 = arith.mulf %406, %407 : vector<2x32xf32>
    %cst_167 = arith.constant 2.000000e+00 : f32
    %409 = vector.broadcast %cst_167 : f32 to vector<2x32xf32>
    %410 = arith.subf %409, %408 : vector<2x32xf32>
    %411 = arith.mulf %407, %410 : vector<2x32xf32>
    %412 = vector.broadcast %81 : vector<1x32xf32> to vector<2x32xf32>
    %413 = arith.mulf %412, %384 : vector<2x32xf32>
    %414 = arith.addf %413, %285 : vector<2x32xf32>
    %415 = arith.addf %414, %400 : vector<2x32xf32>
    %416 = arith.mulf %415, %411 : vector<2x32xf32>
    %417 = vector.shape_cast %416 : vector<2x32xf32> to vector<2x32x1xf32>
    %c0_168 = arith.constant 0 : index
    %c0_169 = arith.constant 0 : index
    %418 = vector.load %arg10[%c0_168, %c0_169] : memref<32x32xf32, #tpu.memory_space<vmem>>, vector<32x32xf32>
    %419 = vector.shape_cast %418 : vector<32x32xf32> to vector<1x32x32xf32>
    %420 = vector.broadcast %417 : vector<2x32x1xf32> to vector<2x32x32xf32>
    %421 = vector.broadcast %419 : vector<1x32x32xf32> to vector<2x32x32xf32>
    %422 = arith.subf %420, %421 : vector<2x32x32xf32>
    %c0_170 = arith.constant 0 : index
    %c0_171 = arith.constant 0 : index
    %423 = vector.load %arg11[%c0_170, %c0_171] : memref<32x32xf32, #tpu.memory_space<vmem>>, vector<32x32xf32>
    %424 = vector.shape_cast %423 : vector<32x32xf32> to vector<1x32x32xf32>
    %425 = vector.broadcast %424 : vector<1x32x32xf32> to vector<2x32x32xf32>
    %426 = arith.mulf %422, %425 : vector<2x32x32xf32>
    %427 = math.tanh %426 : vector<2x32x32xf32>
    %c0_172 = arith.constant 0 : index
    %c0_173 = arith.constant 0 : index
    %428 = vector.load %arg12[%c0_172, %c0_173] : memref<32x32xf32, #tpu.memory_space<vmem>>, vector<32x32xf32>
    %429 = vector.shape_cast %428 : vector<32x32xf32> to vector<1x32x32xf32>
    %430 = vector.broadcast %429 : vector<1x32x32xf32> to vector<2x32x32xf32>
    %431 = arith.mulf %430, %427 : vector<2x32x32xf32>
    %cst_174 = arith.constant dense<0.000000e+00> : vector<2x32xf32>
    %432 = vector.multi_reduction <add>, %431, %cst_174 [1] : vector<2x32x32xf32> to vector<2x32xf32>
    %c0_175 = arith.constant 0 : index
    %c0_176 = arith.constant 0 : index
    %433 = vector.load %arg13[%c0_175, %c0_176] : memref<32x32xf32, #tpu.memory_space<vmem>>, vector<32x32xf32>
    %434 = vector.shape_cast %433 : vector<32x32xf32> to vector<1x32x32xf32>
    %435 = vector.broadcast %434 : vector<1x32x32xf32> to vector<2x32x32xf32>
    %436 = arith.mulf %435, %427 : vector<2x32x32xf32>
    %cst_177 = arith.constant dense<0.000000e+00> : vector<2x32xf32>
    %437 = vector.multi_reduction <add>, %436, %cst_177 [1] : vector<2x32x32xf32> to vector<2x32xf32>
    %438 = arith.addf %288, %437 : vector<2x32xf32>
    %439 = tpu.reciprocal %438 {approx = true} : vector<2x32xf32> -> vector<2x32xf32>
    %440 = arith.mulf %438, %439 : vector<2x32xf32>
    %cst_178 = arith.constant 2.000000e+00 : f32
    %441 = vector.broadcast %cst_178 : f32 to vector<2x32xf32>
    %442 = arith.subf %441, %440 : vector<2x32xf32>
    %443 = arith.mulf %439, %442 : vector<2x32xf32>
    %444 = vector.broadcast %81 : vector<1x32xf32> to vector<2x32xf32>
    %445 = arith.mulf %444, %416 : vector<2x32xf32>
    %446 = arith.addf %445, %285 : vector<2x32xf32>
    %447 = arith.addf %446, %432 : vector<2x32xf32>
    %448 = arith.mulf %447, %443 : vector<2x32xf32>
    %449 = vector.shape_cast %448 : vector<2x32xf32> to vector<2x32x1xf32>
    %c0_179 = arith.constant 0 : index
    %c0_180 = arith.constant 0 : index
    %450 = vector.load %arg10[%c0_179, %c0_180] : memref<32x32xf32, #tpu.memory_space<vmem>>, vector<32x32xf32>
    %451 = vector.shape_cast %450 : vector<32x32xf32> to vector<1x32x32xf32>
    %452 = vector.broadcast %449 : vector<2x32x1xf32> to vector<2x32x32xf32>
    %453 = vector.broadcast %451 : vector<1x32x32xf32> to vector<2x32x32xf32>
    %454 = arith.subf %452, %453 : vector<2x32x32xf32>
    %c0_181 = arith.constant 0 : index
    %c0_182 = arith.constant 0 : index
    %455 = vector.load %arg11[%c0_181, %c0_182] : memref<32x32xf32, #tpu.memory_space<vmem>>, vector<32x32xf32>
    %456 = vector.shape_cast %455 : vector<32x32xf32> to vector<1x32x32xf32>
    %457 = vector.broadcast %456 : vector<1x32x32xf32> to vector<2x32x32xf32>
    %458 = arith.mulf %454, %457 : vector<2x32x32xf32>
    %459 = math.tanh %458 : vector<2x32x32xf32>
    %c0_183 = arith.constant 0 : index
    %c0_184 = arith.constant 0 : index
    %460 = vector.load %arg12[%c0_183, %c0_184] : memref<32x32xf32, #tpu.memory_space<vmem>>, vector<32x32xf32>
    %461 = vector.shape_cast %460 : vector<32x32xf32> to vector<1x32x32xf32>
    %462 = vector.broadcast %461 : vector<1x32x32xf32> to vector<2x32x32xf32>
    %463 = arith.mulf %462, %459 : vector<2x32x32xf32>
    %cst_185 = arith.constant dense<0.000000e+00> : vector<2x32xf32>
    %464 = vector.multi_reduction <add>, %463, %cst_185 [1] : vector<2x32x32xf32> to vector<2x32xf32>
    %c0_186 = arith.constant 0 : index
    %c0_187 = arith.constant 0 : index
    %465 = vector.load %arg13[%c0_186, %c0_187] : memref<32x32xf32, #tpu.memory_space<vmem>>, vector<32x32xf32>
    %466 = vector.shape_cast %465 : vector<32x32xf32> to vector<1x32x32xf32>
    %467 = vector.broadcast %466 : vector<1x32x32xf32> to vector<2x32x32xf32>
    %468 = arith.mulf %467, %459 : vector<2x32x32xf32>
    %cst_188 = arith.constant dense<0.000000e+00> : vector<2x32xf32>
    %469 = vector.multi_reduction <add>, %468, %cst_188 [1] : vector<2x32x32xf32> to vector<2x32xf32>
    %470 = arith.addf %288, %469 : vector<2x32xf32>
    %471 = tpu.reciprocal %470 {approx = true} : vector<2x32xf32> -> vector<2x32xf32>
    %472 = arith.mulf %470, %471 : vector<2x32xf32>
    %cst_189 = arith.constant 2.000000e+00 : f32
    %473 = vector.broadcast %cst_189 : f32 to vector<2x32xf32>
    %474 = arith.subf %473, %472 : vector<2x32xf32>
    %475 = arith.mulf %471, %474 : vector<2x32xf32>
    %476 = vector.broadcast %81 : vector<1x32xf32> to vector<2x32xf32>
    %477 = arith.mulf %476, %448 : vector<2x32xf32>
    %478 = arith.addf %477, %285 : vector<2x32xf32>
    %479 = arith.addf %478, %464 : vector<2x32xf32>
    %480 = arith.mulf %479, %475 : vector<2x32xf32>
    %c2_190 = arith.constant 2 : index
    %c0_191 = arith.constant 0 : index
    %481 = vector.load %arg25[%c2_190, %c0_191] : memref<8x32xf32, #tpu.memory_space<vmem>>, vector<2x32xf32>
    tpu.vector_store %arg25[%c2_190, %c0_191], %480 {strides = array<i32>} : memref<8x32xf32, #tpu.memory_space<vmem>>, vector<2x32xf32>,
    %c4 = arith.constant 4 : index
    %c0_192 = arith.constant 0 : index
    %482 = vector.load %arg23[%c4, %c0_192] : memref<8x32xf32, #tpu.memory_space<vmem>>, vector<2x32xf32>
    %483 = vector.broadcast %82 : vector<1x32xf32> to vector<2x32xf32>
    %484 = arith.addf %483, %482 : vector<2x32xf32>
    %c4_193 = arith.constant 4 : index
    %c0_194 = arith.constant 0 : index
    %485 = vector.load %arg24[%c4_193, %c0_194] : memref<8x32xf32, #tpu.memory_space<vmem>>, vector<2x32xf32>
    %486 = vector.broadcast %83 : vector<1x32xf32> to vector<2x32xf32>
    %487 = arith.addf %486, %485 : vector<2x32xf32>
    %488 = vector.shape_cast %480 : vector<2x32xf32> to vector<2x32x1xf32>
    %c0_195 = arith.constant 0 : index
    %c0_196 = arith.constant 0 : index
    %489 = vector.load %arg10[%c0_195, %c0_196] : memref<32x32xf32, #tpu.memory_space<vmem>>, vector<32x32xf32>
    %490 = vector.shape_cast %489 : vector<32x32xf32> to vector<1x32x32xf32>
    %491 = vector.broadcast %488 : vector<2x32x1xf32> to vector<2x32x32xf32>
    %492 = vector.broadcast %490 : vector<1x32x32xf32> to vector<2x32x32xf32>
    %493 = arith.subf %491, %492 : vector<2x32x32xf32>
    %c0_197 = arith.constant 0 : index
    %c0_198 = arith.constant 0 : index
    %494 = vector.load %arg11[%c0_197, %c0_198] : memref<32x32xf32, #tpu.memory_space<vmem>>, vector<32x32xf32>
    %495 = vector.shape_cast %494 : vector<32x32xf32> to vector<1x32x32xf32>
    %496 = vector.broadcast %495 : vector<1x32x32xf32> to vector<2x32x32xf32>
    %497 = arith.mulf %493, %496 : vector<2x32x32xf32>
    %498 = math.tanh %497 : vector<2x32x32xf32>
    %c0_199 = arith.constant 0 : index
    %c0_200 = arith.constant 0 : index
    %499 = vector.load %arg12[%c0_199, %c0_200] : memref<32x32xf32, #tpu.memory_space<vmem>>, vector<32x32xf32>
    %500 = vector.shape_cast %499 : vector<32x32xf32> to vector<1x32x32xf32>
    %501 = vector.broadcast %500 : vector<1x32x32xf32> to vector<2x32x32xf32>
    %502 = arith.mulf %501, %498 : vector<2x32x32xf32>
    %cst_201 = arith.constant dense<0.000000e+00> : vector<2x32xf32>
    %503 = vector.multi_reduction <add>, %502, %cst_201 [1] : vector<2x32x32xf32> to vector<2x32xf32>
    %c0_202 = arith.constant 0 : index
    %c0_203 = arith.constant 0 : index
    %504 = vector.load %arg13[%c0_202, %c0_203] : memref<32x32xf32, #tpu.memory_space<vmem>>, vector<32x32xf32>
    %505 = vector.shape_cast %504 : vector<32x32xf32> to vector<1x32x32xf32>
    %506 = vector.broadcast %505 : vector<1x32x32xf32> to vector<2x32x32xf32>
    %507 = arith.mulf %506, %498 : vector<2x32x32xf32>
    %cst_204 = arith.constant dense<0.000000e+00> : vector<2x32xf32>
    %508 = vector.multi_reduction <add>, %507, %cst_204 [1] : vector<2x32x32xf32> to vector<2x32xf32>
    %509 = arith.addf %487, %508 : vector<2x32xf32>
    %510 = tpu.reciprocal %509 {approx = true} : vector<2x32xf32> -> vector<2x32xf32>
    %511 = arith.mulf %509, %510 : vector<2x32xf32>
    %cst_205 = arith.constant 2.000000e+00 : f32
    %512 = vector.broadcast %cst_205 : f32 to vector<2x32xf32>
    %513 = arith.subf %512, %511 : vector<2x32xf32>
    %514 = arith.mulf %510, %513 : vector<2x32xf32>
    %515 = vector.broadcast %81 : vector<1x32xf32> to vector<2x32xf32>
    %516 = arith.mulf %515, %480 : vector<2x32xf32>
    %517 = arith.addf %516, %484 : vector<2x32xf32>
    %518 = arith.addf %517, %503 : vector<2x32xf32>
    %519 = arith.mulf %518, %514 : vector<2x32xf32>
    %520 = vector.shape_cast %519 : vector<2x32xf32> to vector<2x32x1xf32>
    %c0_206 = arith.constant 0 : index
    %c0_207 = arith.constant 0 : index
    %521 = vector.load %arg10[%c0_206, %c0_207] : memref<32x32xf32, #tpu.memory_space<vmem>>, vector<32x32xf32>
    %522 = vector.shape_cast %521 : vector<32x32xf32> to vector<1x32x32xf32>
    %523 = vector.broadcast %520 : vector<2x32x1xf32> to vector<2x32x32xf32>
    %524 = vector.broadcast %522 : vector<1x32x32xf32> to vector<2x32x32xf32>
    %525 = arith.subf %523, %524 : vector<2x32x32xf32>
    %c0_208 = arith.constant 0 : index
    %c0_209 = arith.constant 0 : index
    %526 = vector.load %arg11[%c0_208, %c0_209] : memref<32x32xf32, #tpu.memory_space<vmem>>, vector<32x32xf32>
    %527 = vector.shape_cast %526 : vector<32x32xf32> to vector<1x32x32xf32>
    %528 = vector.broadcast %527 : vector<1x32x32xf32> to vector<2x32x32xf32>
    %529 = arith.mulf %525, %528 : vector<2x32x32xf32>
    %530 = math.tanh %529 : vector<2x32x32xf32>
    %c0_210 = arith.constant 0 : index
    %c0_211 = arith.constant 0 : index
    %531 = vector.load %arg12[%c0_210, %c0_211] : memref<32x32xf32, #tpu.memory_space<vmem>>, vector<32x32xf32>
    %532 = vector.shape_cast %531 : vector<32x32xf32> to vector<1x32x32xf32>
    %533 = vector.broadcast %532 : vector<1x32x32xf32> to vector<2x32x32xf32>
    %534 = arith.mulf %533, %530 : vector<2x32x32xf32>
    %cst_212 = arith.constant dense<0.000000e+00> : vector<2x32xf32>
    %535 = vector.multi_reduction <add>, %534, %cst_212 [1] : vector<2x32x32xf32> to vector<2x32xf32>
    %c0_213 = arith.constant 0 : index
    %c0_214 = arith.constant 0 : index
    %536 = vector.load %arg13[%c0_213, %c0_214] : memref<32x32xf32, #tpu.memory_space<vmem>>, vector<32x32xf32>
    %537 = vector.shape_cast %536 : vector<32x32xf32> to vector<1x32x32xf32>
    %538 = vector.broadcast %537 : vector<1x32x32xf32> to vector<2x32x32xf32>
    %539 = arith.mulf %538, %530 : vector<2x32x32xf32>
    %cst_215 = arith.constant dense<0.000000e+00> : vector<2x32xf32>
    %540 = vector.multi_reduction <add>, %539, %cst_215 [1] : vector<2x32x32xf32> to vector<2x32xf32>
    %541 = arith.addf %487, %540 : vector<2x32xf32>
    %542 = tpu.reciprocal %541 {approx = true} : vector<2x32xf32> -> vector<2x32xf32>
    %543 = arith.mulf %541, %542 : vector<2x32xf32>
    %cst_216 = arith.constant 2.000000e+00 : f32
    %544 = vector.broadcast %cst_216 : f32 to vector<2x32xf32>
    %545 = arith.subf %544, %543 : vector<2x32xf32>
    %546 = arith.mulf %542, %545 : vector<2x32xf32>
    %547 = vector.broadcast %81 : vector<1x32xf32> to vector<2x32xf32>
    %548 = arith.mulf %547, %519 : vector<2x32xf32>
    %549 = arith.addf %548, %484 : vector<2x32xf32>
    %550 = arith.addf %549, %535 : vector<2x32xf32>
    %551 = arith.mulf %550, %546 : vector<2x32xf32>
    %552 = vector.shape_cast %551 : vector<2x32xf32> to vector<2x32x1xf32>
    %c0_217 = arith.constant 0 : index
    %c0_218 = arith.constant 0 : index
    %553 = vector.load %arg10[%c0_217, %c0_218] : memref<32x32xf32, #tpu.memory_space<vmem>>, vector<32x32xf32>
    %554 = vector.shape_cast %553 : vector<32x32xf32> to vector<1x32x32xf32>
    %555 = vector.broadcast %552 : vector<2x32x1xf32> to vector<2x32x32xf32>
    %556 = vector.broadcast %554 : vector<1x32x32xf32> to vector<2x32x32xf32>
    %557 = arith.subf %555, %556 : vector<2x32x32xf32>
    %c0_219 = arith.constant 0 : index
    %c0_220 = arith.constant 0 : index
    %558 = vector.load %arg11[%c0_219, %c0_220] : memref<32x32xf32, #tpu.memory_space<vmem>>, vector<32x32xf32>
    %559 = vector.shape_cast %558 : vector<32x32xf32> to vector<1x32x32xf32>
    %560 = vector.broadcast %559 : vector<1x32x32xf32> to vector<2x32x32xf32>
    %561 = arith.mulf %557, %560 : vector<2x32x32xf32>
    %562 = math.tanh %561 : vector<2x32x32xf32>
    %c0_221 = arith.constant 0 : index
    %c0_222 = arith.constant 0 : index
    %563 = vector.load %arg12[%c0_221, %c0_222] : memref<32x32xf32, #tpu.memory_space<vmem>>, vector<32x32xf32>
    %564 = vector.shape_cast %563 : vector<32x32xf32> to vector<1x32x32xf32>
    %565 = vector.broadcast %564 : vector<1x32x32xf32> to vector<2x32x32xf32>
    %566 = arith.mulf %565, %562 : vector<2x32x32xf32>
    %cst_223 = arith.constant dense<0.000000e+00> : vector<2x32xf32>
    %567 = vector.multi_reduction <add>, %566, %cst_223 [1] : vector<2x32x32xf32> to vector<2x32xf32>
    %c0_224 = arith.constant 0 : index
    %c0_225 = arith.constant 0 : index
    %568 = vector.load %arg13[%c0_224, %c0_225] : memref<32x32xf32, #tpu.memory_space<vmem>>, vector<32x32xf32>
    %569 = vector.shape_cast %568 : vector<32x32xf32> to vector<1x32x32xf32>
    %570 = vector.broadcast %569 : vector<1x32x32xf32> to vector<2x32x32xf32>
    %571 = arith.mulf %570, %562 : vector<2x32x32xf32>
    %cst_226 = arith.constant dense<0.000000e+00> : vector<2x32xf32>
    %572 = vector.multi_reduction <add>, %571, %cst_226 [1] : vector<2x32x32xf32> to vector<2x32xf32>
    %573 = arith.addf %487, %572 : vector<2x32xf32>
    %574 = tpu.reciprocal %573 {approx = true} : vector<2x32xf32> -> vector<2x32xf32>
    %575 = arith.mulf %573, %574 : vector<2x32xf32>
    %cst_227 = arith.constant 2.000000e+00 : f32
    %576 = vector.broadcast %cst_227 : f32 to vector<2x32xf32>
    %577 = arith.subf %576, %575 : vector<2x32xf32>
    %578 = arith.mulf %574, %577 : vector<2x32xf32>
    %579 = vector.broadcast %81 : vector<1x32xf32> to vector<2x32xf32>
    %580 = arith.mulf %579, %551 : vector<2x32xf32>
    %581 = arith.addf %580, %484 : vector<2x32xf32>
    %582 = arith.addf %581, %567 : vector<2x32xf32>
    %583 = arith.mulf %582, %578 : vector<2x32xf32>
    %584 = vector.shape_cast %583 : vector<2x32xf32> to vector<2x32x1xf32>
    %c0_228 = arith.constant 0 : index
    %c0_229 = arith.constant 0 : index
    %585 = vector.load %arg10[%c0_228, %c0_229] : memref<32x32xf32, #tpu.memory_space<vmem>>, vector<32x32xf32>
    %586 = vector.shape_cast %585 : vector<32x32xf32> to vector<1x32x32xf32>
    %587 = vector.broadcast %584 : vector<2x32x1xf32> to vector<2x32x32xf32>
    %588 = vector.broadcast %586 : vector<1x32x32xf32> to vector<2x32x32xf32>
    %589 = arith.subf %587, %588 : vector<2x32x32xf32>
    %c0_230 = arith.constant 0 : index
    %c0_231 = arith.constant 0 : index
    %590 = vector.load %arg11[%c0_230, %c0_231] : memref<32x32xf32, #tpu.memory_space<vmem>>, vector<32x32xf32>
    %591 = vector.shape_cast %590 : vector<32x32xf32> to vector<1x32x32xf32>
    %592 = vector.broadcast %591 : vector<1x32x32xf32> to vector<2x32x32xf32>
    %593 = arith.mulf %589, %592 : vector<2x32x32xf32>
    %594 = math.tanh %593 : vector<2x32x32xf32>
    %c0_232 = arith.constant 0 : index
    %c0_233 = arith.constant 0 : index
    %595 = vector.load %arg12[%c0_232, %c0_233] : memref<32x32xf32, #tpu.memory_space<vmem>>, vector<32x32xf32>
    %596 = vector.shape_cast %595 : vector<32x32xf32> to vector<1x32x32xf32>
    %597 = vector.broadcast %596 : vector<1x32x32xf32> to vector<2x32x32xf32>
    %598 = arith.mulf %597, %594 : vector<2x32x32xf32>
    %cst_234 = arith.constant dense<0.000000e+00> : vector<2x32xf32>
    %599 = vector.multi_reduction <add>, %598, %cst_234 [1] : vector<2x32x32xf32> to vector<2x32xf32>
    %c0_235 = arith.constant 0 : index
    %c0_236 = arith.constant 0 : index
    %600 = vector.load %arg13[%c0_235, %c0_236] : memref<32x32xf32, #tpu.memory_space<vmem>>, vector<32x32xf32>
    %601 = vector.shape_cast %600 : vector<32x32xf32> to vector<1x32x32xf32>
    %602 = vector.broadcast %601 : vector<1x32x32xf32> to vector<2x32x32xf32>
    %603 = arith.mulf %602, %594 : vector<2x32x32xf32>
    %cst_237 = arith.constant dense<0.000000e+00> : vector<2x32xf32>
    %604 = vector.multi_reduction <add>, %603, %cst_237 [1] : vector<2x32x32xf32> to vector<2x32xf32>
    %605 = arith.addf %487, %604 : vector<2x32xf32>
    %606 = tpu.reciprocal %605 {approx = true} : vector<2x32xf32> -> vector<2x32xf32>
    %607 = arith.mulf %605, %606 : vector<2x32xf32>
    %cst_238 = arith.constant 2.000000e+00 : f32
    %608 = vector.broadcast %cst_238 : f32 to vector<2x32xf32>
    %609 = arith.subf %608, %607 : vector<2x32xf32>
    %610 = arith.mulf %606, %609 : vector<2x32xf32>
    %611 = vector.broadcast %81 : vector<1x32xf32> to vector<2x32xf32>
    %612 = arith.mulf %611, %583 : vector<2x32xf32>
    %613 = arith.addf %612, %484 : vector<2x32xf32>
    %614 = arith.addf %613, %599 : vector<2x32xf32>
    %615 = arith.mulf %614, %610 : vector<2x32xf32>
    %616 = vector.shape_cast %615 : vector<2x32xf32> to vector<2x32x1xf32>
    %c0_239 = arith.constant 0 : index
    %c0_240 = arith.constant 0 : index
    %617 = vector.load %arg10[%c0_239, %c0_240] : memref<32x32xf32, #tpu.memory_space<vmem>>, vector<32x32xf32>
    %618 = vector.shape_cast %617 : vector<32x32xf32> to vector<1x32x32xf32>
    %619 = vector.broadcast %616 : vector<2x32x1xf32> to vector<2x32x32xf32>
    %620 = vector.broadcast %618 : vector<1x32x32xf32> to vector<2x32x32xf32>
    %621 = arith.subf %619, %620 : vector<2x32x32xf32>
    %c0_241 = arith.constant 0 : index
    %c0_242 = arith.constant 0 : index
    %622 = vector.load %arg11[%c0_241, %c0_242] : memref<32x32xf32, #tpu.memory_space<vmem>>, vector<32x32xf32>
    %623 = vector.shape_cast %622 : vector<32x32xf32> to vector<1x32x32xf32>
    %624 = vector.broadcast %623 : vector<1x32x32xf32> to vector<2x32x32xf32>
    %625 = arith.mulf %621, %624 : vector<2x32x32xf32>
    %626 = math.tanh %625 : vector<2x32x32xf32>
    %c0_243 = arith.constant 0 : index
    %c0_244 = arith.constant 0 : index
    %627 = vector.load %arg12[%c0_243, %c0_244] : memref<32x32xf32, #tpu.memory_space<vmem>>, vector<32x32xf32>
    %628 = vector.shape_cast %627 : vector<32x32xf32> to vector<1x32x32xf32>
    %629 = vector.broadcast %628 : vector<1x32x32xf32> to vector<2x32x32xf32>
    %630 = arith.mulf %629, %626 : vector<2x32x32xf32>
    %cst_245 = arith.constant dense<0.000000e+00> : vector<2x32xf32>
    %631 = vector.multi_reduction <add>, %630, %cst_245 [1] : vector<2x32x32xf32> to vector<2x32xf32>
    %c0_246 = arith.constant 0 : index
    %c0_247 = arith.constant 0 : index
    %632 = vector.load %arg13[%c0_246, %c0_247] : memref<32x32xf32, #tpu.memory_space<vmem>>, vector<32x32xf32>
    %633 = vector.shape_cast %632 : vector<32x32xf32> to vector<1x32x32xf32>
    %634 = vector.broadcast %633 : vector<1x32x32xf32> to vector<2x32x32xf32>
    %635 = arith.mulf %634, %626 : vector<2x32x32xf32>
    %cst_248 = arith.constant dense<0.000000e+00> : vector<2x32xf32>
    %636 = vector.multi_reduction <add>, %635, %cst_248 [1] : vector<2x32x32xf32> to vector<2x32xf32>
    %637 = arith.addf %487, %636 : vector<2x32xf32>
    %638 = tpu.reciprocal %637 {approx = true} : vector<2x32xf32> -> vector<2x32xf32>
    %639 = arith.mulf %637, %638 : vector<2x32xf32>
    %cst_249 = arith.constant 2.000000e+00 : f32
    %640 = vector.broadcast %cst_249 : f32 to vector<2x32xf32>
    %641 = arith.subf %640, %639 : vector<2x32xf32>
    %642 = arith.mulf %638, %641 : vector<2x32xf32>
    %643 = vector.broadcast %81 : vector<1x32xf32> to vector<2x32xf32>
    %644 = arith.mulf %643, %615 : vector<2x32xf32>
    %645 = arith.addf %644, %484 : vector<2x32xf32>
    %646 = arith.addf %645, %631 : vector<2x32xf32>
    %647 = arith.mulf %646, %642 : vector<2x32xf32>
    %648 = vector.shape_cast %647 : vector<2x32xf32> to vector<2x32x1xf32>
    %c0_250 = arith.constant 0 : index
    %c0_251 = arith.constant 0 : index
    %649 = vector.load %arg10[%c0_250, %c0_251] : memref<32x32xf32, #tpu.memory_space<vmem>>, vector<32x32xf32>
    %650 = vector.shape_cast %649 : vector<32x32xf32> to vector<1x32x32xf32>
    %651 = vector.broadcast %648 : vector<2x32x1xf32> to vector<2x32x32xf32>
    %652 = vector.broadcast %650 : vector<1x32x32xf32> to vector<2x32x32xf32>
    %653 = arith.subf %651, %652 : vector<2x32x32xf32>
    %c0_252 = arith.constant 0 : index
    %c0_253 = arith.constant 0 : index
    %654 = vector.load %arg11[%c0_252, %c0_253] : memref<32x32xf32, #tpu.memory_space<vmem>>, vector<32x32xf32>
    %655 = vector.shape_cast %654 : vector<32x32xf32> to vector<1x32x32xf32>
    %656 = vector.broadcast %655 : vector<1x32x32xf32> to vector<2x32x32xf32>
    %657 = arith.mulf %653, %656 : vector<2x32x32xf32>
    %658 = math.tanh %657 : vector<2x32x32xf32>
    %c0_254 = arith.constant 0 : index
    %c0_255 = arith.constant 0 : index
    %659 = vector.load %arg12[%c0_254, %c0_255] : memref<32x32xf32, #tpu.memory_space<vmem>>, vector<32x32xf32>
    %660 = vector.shape_cast %659 : vector<32x32xf32> to vector<1x32x32xf32>
    %661 = vector.broadcast %660 : vector<1x32x32xf32> to vector<2x32x32xf32>
    %662 = arith.mulf %661, %658 : vector<2x32x32xf32>
    %cst_256 = arith.constant dense<0.000000e+00> : vector<2x32xf32>
    %663 = vector.multi_reduction <add>, %662, %cst_256 [1] : vector<2x32x32xf32> to vector<2x32xf32>
    %c0_257 = arith.constant 0 : index
    %c0_258 = arith.constant 0 : index
    %664 = vector.load %arg13[%c0_257, %c0_258] : memref<32x32xf32, #tpu.memory_space<vmem>>, vector<32x32xf32>
    %665 = vector.shape_cast %664 : vector<32x32xf32> to vector<1x32x32xf32>
    %666 = vector.broadcast %665 : vector<1x32x32xf32> to vector<2x32x32xf32>
    %667 = arith.mulf %666, %658 : vector<2x32x32xf32>
    %cst_259 = arith.constant dense<0.000000e+00> : vector<2x32xf32>
    %668 = vector.multi_reduction <add>, %667, %cst_259 [1] : vector<2x32x32xf32> to vector<2x32xf32>
    %669 = arith.addf %487, %668 : vector<2x32xf32>
    %670 = tpu.reciprocal %669 {approx = true} : vector<2x32xf32> -> vector<2x32xf32>
    %671 = arith.mulf %669, %670 : vector<2x32xf32>
    %cst_260 = arith.constant 2.000000e+00 : f32
    %672 = vector.broadcast %cst_260 : f32 to vector<2x32xf32>
    %673 = arith.subf %672, %671 : vector<2x32xf32>
    %674 = arith.mulf %670, %673 : vector<2x32xf32>
    %675 = vector.broadcast %81 : vector<1x32xf32> to vector<2x32xf32>
    %676 = arith.mulf %675, %647 : vector<2x32xf32>
    %677 = arith.addf %676, %484 : vector<2x32xf32>
    %678 = arith.addf %677, %663 : vector<2x32xf32>
    %679 = arith.mulf %678, %674 : vector<2x32xf32>
    %c4_261 = arith.constant 4 : index
    %c0_262 = arith.constant 0 : index
    %680 = vector.load %arg25[%c4_261, %c0_262] : memref<8x32xf32, #tpu.memory_space<vmem>>, vector<2x32xf32>
    tpu.vector_store %arg25[%c4_261, %c0_262], %679 {strides = array<i32>} : memref<8x32xf32, #tpu.memory_space<vmem>>, vector<2x32xf32>,
    %c6 = arith.constant 6 : index
    %c0_263 = arith.constant 0 : index
    %681 = vector.load %arg23[%c6, %c0_263] : memref<8x32xf32, #tpu.memory_space<vmem>>, vector<2x32xf32>
    %682 = vector.broadcast %82 : vector<1x32xf32> to vector<2x32xf32>
    %683 = arith.addf %682, %681 : vector<2x32xf32>
    %c6_264 = arith.constant 6 : index
    %c0_265 = arith.constant 0 : index
    %684 = vector.load %arg24[%c6_264, %c0_265] : memref<8x32xf32, #tpu.memory_space<vmem>>, vector<2x32xf32>
    %685 = vector.broadcast %83 : vector<1x32xf32> to vector<2x32xf32>
    %686 = arith.addf %685, %684 : vector<2x32xf32>
    %687 = vector.shape_cast %679 : vector<2x32xf32> to vector<2x32x1xf32>
    %c0_266 = arith.constant 0 : index
    %c0_267 = arith.constant 0 : index
    %688 = vector.load %arg10[%c0_266, %c0_267] : memref<32x32xf32, #tpu.memory_space<vmem>>, vector<32x32xf32>
    %689 = vector.shape_cast %688 : vector<32x32xf32> to vector<1x32x32xf32>
    %690 = vector.broadcast %687 : vector<2x32x1xf32> to vector<2x32x32xf32>
    %691 = vector.broadcast %689 : vector<1x32x32xf32> to vector<2x32x32xf32>
    %692 = arith.subf %690, %691 : vector<2x32x32xf32>
    %c0_268 = arith.constant 0 : index
    %c0_269 = arith.constant 0 : index
    %693 = vector.load %arg11[%c0_268, %c0_269] : memref<32x32xf32, #tpu.memory_space<vmem>>, vector<32x32xf32>
    %694 = vector.shape_cast %693 : vector<32x32xf32> to vector<1x32x32xf32>
    %695 = vector.broadcast %694 : vector<1x32x32xf32> to vector<2x32x32xf32>
    %696 = arith.mulf %692, %695 : vector<2x32x32xf32>
    %697 = math.tanh %696 : vector<2x32x32xf32>
    %c0_270 = arith.constant 0 : index
    %c0_271 = arith.constant 0 : index
    %698 = vector.load %arg12[%c0_270, %c0_271] : memref<32x32xf32, #tpu.memory_space<vmem>>, vector<32x32xf32>
    %699 = vector.shape_cast %698 : vector<32x32xf32> to vector<1x32x32xf32>
    %700 = vector.broadcast %699 : vector<1x32x32xf32> to vector<2x32x32xf32>
    %701 = arith.mulf %700, %697 : vector<2x32x32xf32>
    %cst_272 = arith.constant dense<0.000000e+00> : vector<2x32xf32>
    %702 = vector.multi_reduction <add>, %701, %cst_272 [1] : vector<2x32x32xf32> to vector<2x32xf32>
    %c0_273 = arith.constant 0 : index
    %c0_274 = arith.constant 0 : index
    %703 = vector.load %arg13[%c0_273, %c0_274] : memref<32x32xf32, #tpu.memory_space<vmem>>, vector<32x32xf32>
    %704 = vector.shape_cast %703 : vector<32x32xf32> to vector<1x32x32xf32>
    %705 = vector.broadcast %704 : vector<1x32x32xf32> to vector<2x32x32xf32>
    %706 = arith.mulf %705, %697 : vector<2x32x32xf32>
    %cst_275 = arith.constant dense<0.000000e+00> : vector<2x32xf32>
    %707 = vector.multi_reduction <add>, %706, %cst_275 [1] : vector<2x32x32xf32> to vector<2x32xf32>
    %708 = arith.addf %686, %707 : vector<2x32xf32>
    %709 = tpu.reciprocal %708 {approx = true} : vector<2x32xf32> -> vector<2x32xf32>
    %710 = arith.mulf %708, %709 : vector<2x32xf32>
    %cst_276 = arith.constant 2.000000e+00 : f32
    %711 = vector.broadcast %cst_276 : f32 to vector<2x32xf32>
    %712 = arith.subf %711, %710 : vector<2x32xf32>
    %713 = arith.mulf %709, %712 : vector<2x32xf32>
    %714 = vector.broadcast %81 : vector<1x32xf32> to vector<2x32xf32>
    %715 = arith.mulf %714, %679 : vector<2x32xf32>
    %716 = arith.addf %715, %683 : vector<2x32xf32>
    %717 = arith.addf %716, %702 : vector<2x32xf32>
    %718 = arith.mulf %717, %713 : vector<2x32xf32>
    %719 = vector.shape_cast %718 : vector<2x32xf32> to vector<2x32x1xf32>
    %c0_277 = arith.constant 0 : index
    %c0_278 = arith.constant 0 : index
    %720 = vector.load %arg10[%c0_277, %c0_278] : memref<32x32xf32, #tpu.memory_space<vmem>>, vector<32x32xf32>
    %721 = vector.shape_cast %720 : vector<32x32xf32> to vector<1x32x32xf32>
    %722 = vector.broadcast %719 : vector<2x32x1xf32> to vector<2x32x32xf32>
    %723 = vector.broadcast %721 : vector<1x32x32xf32> to vector<2x32x32xf32>
    %724 = arith.subf %722, %723 : vector<2x32x32xf32>
    %c0_279 = arith.constant 0 : index
    %c0_280 = arith.constant 0 : index
    %725 = vector.load %arg11[%c0_279, %c0_280] : memref<32x32xf32, #tpu.memory_space<vmem>>, vector<32x32xf32>
    %726 = vector.shape_cast %725 : vector<32x32xf32> to vector<1x32x32xf32>
    %727 = vector.broadcast %726 : vector<1x32x32xf32> to vector<2x32x32xf32>
    %728 = arith.mulf %724, %727 : vector<2x32x32xf32>
    %729 = math.tanh %728 : vector<2x32x32xf32>
    %c0_281 = arith.constant 0 : index
    %c0_282 = arith.constant 0 : index
    %730 = vector.load %arg12[%c0_281, %c0_282] : memref<32x32xf32, #tpu.memory_space<vmem>>, vector<32x32xf32>
    %731 = vector.shape_cast %730 : vector<32x32xf32> to vector<1x32x32xf32>
    %732 = vector.broadcast %731 : vector<1x32x32xf32> to vector<2x32x32xf32>
    %733 = arith.mulf %732, %729 : vector<2x32x32xf32>
    %cst_283 = arith.constant dense<0.000000e+00> : vector<2x32xf32>
    %734 = vector.multi_reduction <add>, %733, %cst_283 [1] : vector<2x32x32xf32> to vector<2x32xf32>
    %c0_284 = arith.constant 0 : index
    %c0_285 = arith.constant 0 : index
    %735 = vector.load %arg13[%c0_284, %c0_285] : memref<32x32xf32, #tpu.memory_space<vmem>>, vector<32x32xf32>
    %736 = vector.shape_cast %735 : vector<32x32xf32> to vector<1x32x32xf32>
    %737 = vector.broadcast %736 : vector<1x32x32xf32> to vector<2x32x32xf32>
    %738 = arith.mulf %737, %729 : vector<2x32x32xf32>
    %cst_286 = arith.constant dense<0.000000e+00> : vector<2x32xf32>
    %739 = vector.multi_reduction <add>, %738, %cst_286 [1] : vector<2x32x32xf32> to vector<2x32xf32>
    %740 = arith.addf %686, %739 : vector<2x32xf32>
    %741 = tpu.reciprocal %740 {approx = true} : vector<2x32xf32> -> vector<2x32xf32>
    %742 = arith.mulf %740, %741 : vector<2x32xf32>
    %cst_287 = arith.constant 2.000000e+00 : f32
    %743 = vector.broadcast %cst_287 : f32 to vector<2x32xf32>
    %744 = arith.subf %743, %742 : vector<2x32xf32>
    %745 = arith.mulf %741, %744 : vector<2x32xf32>
    %746 = vector.broadcast %81 : vector<1x32xf32> to vector<2x32xf32>
    %747 = arith.mulf %746, %718 : vector<2x32xf32>
    %748 = arith.addf %747, %683 : vector<2x32xf32>
    %749 = arith.addf %748, %734 : vector<2x32xf32>
    %750 = arith.mulf %749, %745 : vector<2x32xf32>
    %751 = vector.shape_cast %750 : vector<2x32xf32> to vector<2x32x1xf32>
    %c0_288 = arith.constant 0 : index
    %c0_289 = arith.constant 0 : index
    %752 = vector.load %arg10[%c0_288, %c0_289] : memref<32x32xf32, #tpu.memory_space<vmem>>, vector<32x32xf32>
    %753 = vector.shape_cast %752 : vector<32x32xf32> to vector<1x32x32xf32>
    %754 = vector.broadcast %751 : vector<2x32x1xf32> to vector<2x32x32xf32>
    %755 = vector.broadcast %753 : vector<1x32x32xf32> to vector<2x32x32xf32>
    %756 = arith.subf %754, %755 : vector<2x32x32xf32>
    %c0_290 = arith.constant 0 : index
    %c0_291 = arith.constant 0 : index
    %757 = vector.load %arg11[%c0_290, %c0_291] : memref<32x32xf32, #tpu.memory_space<vmem>>, vector<32x32xf32>
    %758 = vector.shape_cast %757 : vector<32x32xf32> to vector<1x32x32xf32>
    %759 = vector.broadcast %758 : vector<1x32x32xf32> to vector<2x32x32xf32>
    %760 = arith.mulf %756, %759 : vector<2x32x32xf32>
    %761 = math.tanh %760 : vector<2x32x32xf32>
    %c0_292 = arith.constant 0 : index
    %c0_293 = arith.constant 0 : index
    %762 = vector.load %arg12[%c0_292, %c0_293] : memref<32x32xf32, #tpu.memory_space<vmem>>, vector<32x32xf32>
    %763 = vector.shape_cast %762 : vector<32x32xf32> to vector<1x32x32xf32>
    %764 = vector.broadcast %763 : vector<1x32x32xf32> to vector<2x32x32xf32>
    %765 = arith.mulf %764, %761 : vector<2x32x32xf32>
    %cst_294 = arith.constant dense<0.000000e+00> : vector<2x32xf32>
    %766 = vector.multi_reduction <add>, %765, %cst_294 [1] : vector<2x32x32xf32> to vector<2x32xf32>
    %c0_295 = arith.constant 0 : index
    %c0_296 = arith.constant 0 : index
    %767 = vector.load %arg13[%c0_295, %c0_296] : memref<32x32xf32, #tpu.memory_space<vmem>>, vector<32x32xf32>
    %768 = vector.shape_cast %767 : vector<32x32xf32> to vector<1x32x32xf32>
    %769 = vector.broadcast %768 : vector<1x32x32xf32> to vector<2x32x32xf32>
    %770 = arith.mulf %769, %761 : vector<2x32x32xf32>
    %cst_297 = arith.constant dense<0.000000e+00> : vector<2x32xf32>
    %771 = vector.multi_reduction <add>, %770, %cst_297 [1] : vector<2x32x32xf32> to vector<2x32xf32>
    %772 = arith.addf %686, %771 : vector<2x32xf32>
    %773 = tpu.reciprocal %772 {approx = true} : vector<2x32xf32> -> vector<2x32xf32>
    %774 = arith.mulf %772, %773 : vector<2x32xf32>
    %cst_298 = arith.constant 2.000000e+00 : f32
    %775 = vector.broadcast %cst_298 : f32 to vector<2x32xf32>
    %776 = arith.subf %775, %774 : vector<2x32xf32>
    %777 = arith.mulf %773, %776 : vector<2x32xf32>
    %778 = vector.broadcast %81 : vector<1x32xf32> to vector<2x32xf32>
    %779 = arith.mulf %778, %750 : vector<2x32xf32>
    %780 = arith.addf %779, %683 : vector<2x32xf32>
    %781 = arith.addf %780, %766 : vector<2x32xf32>
    %782 = arith.mulf %781, %777 : vector<2x32xf32>
    %783 = vector.shape_cast %782 : vector<2x32xf32> to vector<2x32x1xf32>
    %c0_299 = arith.constant 0 : index
    %c0_300 = arith.constant 0 : index
    %784 = vector.load %arg10[%c0_299, %c0_300] : memref<32x32xf32, #tpu.memory_space<vmem>>, vector<32x32xf32>
    %785 = vector.shape_cast %784 : vector<32x32xf32> to vector<1x32x32xf32>
    %786 = vector.broadcast %783 : vector<2x32x1xf32> to vector<2x32x32xf32>
    %787 = vector.broadcast %785 : vector<1x32x32xf32> to vector<2x32x32xf32>
    %788 = arith.subf %786, %787 : vector<2x32x32xf32>
    %c0_301 = arith.constant 0 : index
    %c0_302 = arith.constant 0 : index
    %789 = vector.load %arg11[%c0_301, %c0_302] : memref<32x32xf32, #tpu.memory_space<vmem>>, vector<32x32xf32>
    %790 = vector.shape_cast %789 : vector<32x32xf32> to vector<1x32x32xf32>
    %791 = vector.broadcast %790 : vector<1x32x32xf32> to vector<2x32x32xf32>
    %792 = arith.mulf %788, %791 : vector<2x32x32xf32>
    %793 = math.tanh %792 : vector<2x32x32xf32>
    %c0_303 = arith.constant 0 : index
    %c0_304 = arith.constant 0 : index
    %794 = vector.load %arg12[%c0_303, %c0_304] : memref<32x32xf32, #tpu.memory_space<vmem>>, vector<32x32xf32>
    %795 = vector.shape_cast %794 : vector<32x32xf32> to vector<1x32x32xf32>
    %796 = vector.broadcast %795 : vector<1x32x32xf32> to vector<2x32x32xf32>
    %797 = arith.mulf %796, %793 : vector<2x32x32xf32>
    %cst_305 = arith.constant dense<0.000000e+00> : vector<2x32xf32>
    %798 = vector.multi_reduction <add>, %797, %cst_305 [1] : vector<2x32x32xf32> to vector<2x32xf32>
    %c0_306 = arith.constant 0 : index
    %c0_307 = arith.constant 0 : index
    %799 = vector.load %arg13[%c0_306, %c0_307] : memref<32x32xf32, #tpu.memory_space<vmem>>, vector<32x32xf32>
    %800 = vector.shape_cast %799 : vector<32x32xf32> to vector<1x32x32xf32>
    %801 = vector.broadcast %800 : vector<1x32x32xf32> to vector<2x32x32xf32>
    %802 = arith.mulf %801, %793 : vector<2x32x32xf32>
    %cst_308 = arith.constant dense<0.000000e+00> : vector<2x32xf32>
    %803 = vector.multi_reduction <add>, %802, %cst_308 [1] : vector<2x32x32xf32> to vector<2x32xf32>
    %804 = arith.addf %686, %803 : vector<2x32xf32>
    %805 = tpu.reciprocal %804 {approx = true} : vector<2x32xf32> -> vector<2x32xf32>
    %806 = arith.mulf %804, %805 : vector<2x32xf32>
    %cst_309 = arith.constant 2.000000e+00 : f32
    %807 = vector.broadcast %cst_309 : f32 to vector<2x32xf32>
    %808 = arith.subf %807, %806 : vector<2x32xf32>
    %809 = arith.mulf %805, %808 : vector<2x32xf32>
    %810 = vector.broadcast %81 : vector<1x32xf32> to vector<2x32xf32>
    %811 = arith.mulf %810, %782 : vector<2x32xf32>
    %812 = arith.addf %811, %683 : vector<2x32xf32>
    %813 = arith.addf %812, %798 : vector<2x32xf32>
    %814 = arith.mulf %813, %809 : vector<2x32xf32>
    %815 = vector.shape_cast %814 : vector<2x32xf32> to vector<2x32x1xf32>
    %c0_310 = arith.constant 0 : index
    %c0_311 = arith.constant 0 : index
    %816 = vector.load %arg10[%c0_310, %c0_311] : memref<32x32xf32, #tpu.memory_space<vmem>>, vector<32x32xf32>
    %817 = vector.shape_cast %816 : vector<32x32xf32> to vector<1x32x32xf32>
    %818 = vector.broadcast %815 : vector<2x32x1xf32> to vector<2x32x32xf32>
    %819 = vector.broadcast %817 : vector<1x32x32xf32> to vector<2x32x32xf32>
    %820 = arith.subf %818, %819 : vector<2x32x32xf32>
    %c0_312 = arith.constant 0 : index
    %c0_313 = arith.constant 0 : index
    %821 = vector.load %arg11[%c0_312, %c0_313] : memref<32x32xf32, #tpu.memory_space<vmem>>, vector<32x32xf32>
    %822 = vector.shape_cast %821 : vector<32x32xf32> to vector<1x32x32xf32>
    %823 = vector.broadcast %822 : vector<1x32x32xf32> to vector<2x32x32xf32>
    %824 = arith.mulf %820, %823 : vector<2x32x32xf32>
    %825 = math.tanh %824 : vector<2x32x32xf32>
    %c0_314 = arith.constant 0 : index
    %c0_315 = arith.constant 0 : index
    %826 = vector.load %arg12[%c0_314, %c0_315] : memref<32x32xf32, #tpu.memory_space<vmem>>, vector<32x32xf32>
    %827 = vector.shape_cast %826 : vector<32x32xf32> to vector<1x32x32xf32>
    %828 = vector.broadcast %827 : vector<1x32x32xf32> to vector<2x32x32xf32>
    %829 = arith.mulf %828, %825 : vector<2x32x32xf32>
    %cst_316 = arith.constant dense<0.000000e+00> : vector<2x32xf32>
    %830 = vector.multi_reduction <add>, %829, %cst_316 [1] : vector<2x32x32xf32> to vector<2x32xf32>
    %c0_317 = arith.constant 0 : index
    %c0_318 = arith.constant 0 : index
    %831 = vector.load %arg13[%c0_317, %c0_318] : memref<32x32xf32, #tpu.memory_space<vmem>>, vector<32x32xf32>
    %832 = vector.shape_cast %831 : vector<32x32xf32> to vector<1x32x32xf32>
    %833 = vector.broadcast %832 : vector<1x32x32xf32> to vector<2x32x32xf32>
    %834 = arith.mulf %833, %825 : vector<2x32x32xf32>
    %cst_319 = arith.constant dense<0.000000e+00> : vector<2x32xf32>
    %835 = vector.multi_reduction <add>, %834, %cst_319 [1] : vector<2x32x32xf32> to vector<2x32xf32>
    %836 = arith.addf %686, %835 : vector<2x32xf32>
    %837 = tpu.reciprocal %836 {approx = true} : vector<2x32xf32> -> vector<2x32xf32>
    %838 = arith.mulf %836, %837 : vector<2x32xf32>
    %cst_320 = arith.constant 2.000000e+00 : f32
    %839 = vector.broadcast %cst_320 : f32 to vector<2x32xf32>
    %840 = arith.subf %839, %838 : vector<2x32xf32>
    %841 = arith.mulf %837, %840 : vector<2x32xf32>
    %842 = vector.broadcast %81 : vector<1x32xf32> to vector<2x32xf32>
    %843 = arith.mulf %842, %814 : vector<2x32xf32>
    %844 = arith.addf %843, %683 : vector<2x32xf32>
    %845 = arith.addf %844, %830 : vector<2x32xf32>
    %846 = arith.mulf %845, %841 : vector<2x32xf32>
    %847 = vector.shape_cast %846 : vector<2x32xf32> to vector<2x32x1xf32>
    %c0_321 = arith.constant 0 : index
    %c0_322 = arith.constant 0 : index
    %848 = vector.load %arg10[%c0_321, %c0_322] : memref<32x32xf32, #tpu.memory_space<vmem>>, vector<32x32xf32>
    %849 = vector.shape_cast %848 : vector<32x32xf32> to vector<1x32x32xf32>
    %850 = vector.broadcast %847 : vector<2x32x1xf32> to vector<2x32x32xf32>
    %851 = vector.broadcast %849 : vector<1x32x32xf32> to vector<2x32x32xf32>
    %852 = arith.subf %850, %851 : vector<2x32x32xf32>
    %c0_323 = arith.constant 0 : index
    %c0_324 = arith.constant 0 : index
    %853 = vector.load %arg11[%c0_323, %c0_324] : memref<32x32xf32, #tpu.memory_space<vmem>>, vector<32x32xf32>
    %854 = vector.shape_cast %853 : vector<32x32xf32> to vector<1x32x32xf32>
    %855 = vector.broadcast %854 : vector<1x32x32xf32> to vector<2x32x32xf32>
    %856 = arith.mulf %852, %855 : vector<2x32x32xf32>
    %857 = math.tanh %856 : vector<2x32x32xf32>
    %c0_325 = arith.constant 0 : index
    %c0_326 = arith.constant 0 : index
    %858 = vector.load %arg12[%c0_325, %c0_326] : memref<32x32xf32, #tpu.memory_space<vmem>>, vector<32x32xf32>
    %859 = vector.shape_cast %858 : vector<32x32xf32> to vector<1x32x32xf32>
    %860 = vector.broadcast %859 : vector<1x32x32xf32> to vector<2x32x32xf32>
    %861 = arith.mulf %860, %857 : vector<2x32x32xf32>
    %cst_327 = arith.constant dense<0.000000e+00> : vector<2x32xf32>
    %862 = vector.multi_reduction <add>, %861, %cst_327 [1] : vector<2x32x32xf32> to vector<2x32xf32>
    %c0_328 = arith.constant 0 : index
    %c0_329 = arith.constant 0 : index
    %863 = vector.load %arg13[%c0_328, %c0_329] : memref<32x32xf32, #tpu.memory_space<vmem>>, vector<32x32xf32>
    %864 = vector.shape_cast %863 : vector<32x32xf32> to vector<1x32x32xf32>
    %865 = vector.broadcast %864 : vector<1x32x32xf32> to vector<2x32x32xf32>
    %866 = arith.mulf %865, %857 : vector<2x32x32xf32>
    %cst_330 = arith.constant dense<0.000000e+00> : vector<2x32xf32>
    %867 = vector.multi_reduction <add>, %866, %cst_330 [1] : vector<2x32x32xf32> to vector<2x32xf32>
    %868 = arith.addf %686, %867 : vector<2x32xf32>
    %869 = tpu.reciprocal %868 {approx = true} : vector<2x32xf32> -> vector<2x32xf32>
    %870 = arith.mulf %868, %869 : vector<2x32xf32>
    %cst_331 = arith.constant 2.000000e+00 : f32
    %871 = vector.broadcast %cst_331 : f32 to vector<2x32xf32>
    %872 = arith.subf %871, %870 : vector<2x32xf32>
    %873 = arith.mulf %869, %872 : vector<2x32xf32>
    %874 = vector.broadcast %81 : vector<1x32xf32> to vector<2x32xf32>
    %875 = arith.mulf %874, %846 : vector<2x32xf32>
    %876 = arith.addf %875, %683 : vector<2x32xf32>
    %877 = arith.addf %876, %862 : vector<2x32xf32>
    %878 = arith.mulf %877, %873 : vector<2x32xf32>
    %c6_332 = arith.constant 6 : index
    %c0_333 = arith.constant 0 : index
    %879 = vector.load %arg25[%c6_332, %c0_333] : memref<8x32xf32, #tpu.memory_space<vmem>>, vector<2x32xf32>
    tpu.vector_store %arg25[%c6_332, %c0_333], %878 {strides = array<i32>} : memref<8x32xf32, #tpu.memory_space<vmem>>, vector<2x32xf32>,
    %c0_334 = arith.constant 0 : index
    %c0_335 = arith.constant 0 : index
    %c0_336 = arith.constant 0 : index
    %880 = vector.load %arg22[%c0_334, %c0_335, %c0_336] : memref<1x2x32xf32, #tpu.memory_space<vmem>>, vector<1x2x32xf32>
    %881 = vector.shape_cast %880 : vector<1x2x32xf32> to vector<2x32xf32>
    %882 = vector.shape_cast %878 : vector<2x32xf32> to vector<1x2x32xf32>
    tpu.vector_store %arg22[%c0_334, %c0_335, %c0_336], %882 {strides = array<i32>} : memref<1x2x32xf32, #tpu.memory_space<vmem>>, vector<1x2x32xf32>,
    %c0_337 = arith.constant 0 : index
    %c0_338 = arith.constant 0 : index
    %883 = vector.load %arg25[%c0_337, %c0_338] : memref<8x32xf32, #tpu.memory_space<vmem>>, vector<8x32xf32>
    %c0_339 = arith.constant 0 : index
    %c0_340 = arith.constant 0 : index
    %884 = vector.load %arg17[%c0_339, %c0_340] : memref<1x32xf32, #tpu.memory_space<vmem>>, vector<1x32xf32>
    %885 = vector.broadcast %884 : vector<1x32xf32> to vector<8x32xf32>
    %886 = arith.mulf %883, %885 : vector<8x32xf32>
    %c0_341 = arith.constant 0 : index
    %c0_342 = arith.constant 0 : index
    %887 = vector.load %arg18[%c0_341, %c0_342] : memref<1x32xf32, #tpu.memory_space<vmem>>, vector<1x32xf32>
    %888 = vector.broadcast %887 : vector<1x32xf32> to vector<8x32xf32>
    %889 = arith.addf %886, %888 : vector<8x32xf32>
    %c0_343 = arith.constant 0 : index
    %c0_344 = arith.constant 0 : index
    %890 = vector.load %arg19[%c0_343, %c0_344] : memref<32x128xf32, #tpu.memory_space<vmem>>, vector<32x128xf32>
    %cst_345 = arith.constant dense<0.000000e+00> : vector<8x128xf32>
    %891 = tpu.matmul %889, %890, %cst_345 {dimension_numbers = #tpu.dot_dimension_numbers<[1], [0], [0], [1], [0, 0, 1, 1], [], []>} : vector<8x32xf32>, vector<32x128xf32>, vector<8x128xf32> -> vector<8x128xf32>
    %c0_346 = arith.constant 0 : index
    %c0_347 = arith.constant 0 : index
    %892 = vector.load %arg20[%c0_346, %c0_347] : memref<1x128xf32, #tpu.memory_space<vmem>>, vector<1x128xf32>
    %893 = vector.broadcast %892 : vector<1x128xf32> to vector<8x128xf32>
    %894 = arith.addf %891, %893 : vector<8x128xf32>
    %c0_348 = arith.constant 0 : index
    %c0_349 = arith.constant 0 : index
    %c0_350 = arith.constant 0 : index
    %895 = vector.load %arg21[%c0_348, %c0_349, %c0_350] : memref<1x8x128xf32, #tpu.memory_space<vmem>>, vector<1x8x128xf32>
    %896 = vector.shape_cast %895 : vector<1x8x128xf32> to vector<8x128xf32>
    %897 = vector.shape_cast %894 : vector<8x128xf32> to vector<1x8x128xf32>
    tpu.vector_store %arg21[%c0_348, %c0_349, %c0_350], %897 {strides = array<i32>} : memref<1x8x128xf32, #tpu.memory_space<vmem>>, vector<1x8x128xf32>,
    return
  }
  func.func @transform_0(%arg0: i32, %arg1: i32) -> (i32, i32, i32) {
    %c0_i32 = arith.constant 0 : i32
    %c0_i32_0 = arith.constant 0 : i32
    return %arg0, %arg1, %c0_i32 : i32, i32, i32
  }
  func.func @transform_1(%arg0: i32, %arg1: i32) -> (i32, i32, i32) {
    %c0_i32 = arith.constant 0 : i32
    %c0_i32_0 = arith.constant 0 : i32
    %c0_i32_1 = arith.constant 0 : i32
    return %arg0, %c0_i32, %c0_i32_0 : i32, i32, i32
  }
  func.func @transform_2(%arg0: i32, %arg1: i32) -> (i32, i32) {
    %c0_i32 = arith.constant 0 : i32
    %c0_i32_0 = arith.constant 0 : i32
    %c0_i32_1 = arith.constant 0 : i32
    return %c0_i32, %c0_i32_0 : i32, i32
  }
  func.func @transform_3(%arg0: i32, %arg1: i32) -> (i32, i32) {
    %c0_i32 = arith.constant 0 : i32
    %c0_i32_0 = arith.constant 0 : i32
    %c0_i32_1 = arith.constant 0 : i32
    return %c0_i32, %c0_i32_0 : i32, i32
  }
  func.func @transform_4(%arg0: i32, %arg1: i32) -> (i32, i32) {
    %c0_i32 = arith.constant 0 : i32
    %c0_i32_0 = arith.constant 0 : i32
    %c0_i32_1 = arith.constant 0 : i32
    return %c0_i32, %c0_i32_0 : i32, i32
  }
  func.func @transform_5(%arg0: i32, %arg1: i32) -> (i32, i32) {
    %c0_i32 = arith.constant 0 : i32
    %c0_i32_0 = arith.constant 0 : i32
    %c0_i32_1 = arith.constant 0 : i32
    return %c0_i32, %c0_i32_0 : i32, i32
  }
  func.func @transform_6(%arg0: i32, %arg1: i32) -> (i32, i32) {
    %c0_i32 = arith.constant 0 : i32
    %c0_i32_0 = arith.constant 0 : i32
    %c0_i32_1 = arith.constant 0 : i32
    return %c0_i32, %c0_i32_0 : i32, i32
  }
  func.func @transform_7(%arg0: i32, %arg1: i32) -> (i32, i32) {
    %c0_i32 = arith.constant 0 : i32
    %c0_i32_0 = arith.constant 0 : i32
    %c0_i32_1 = arith.constant 0 : i32
    return %c0_i32, %c0_i32_0 : i32, i32
  }
  func.func @transform_8(%arg0: i32, %arg1: i32) -> (i32, i32) {
    %c0_i32 = arith.constant 0 : i32
    %c0_i32_0 = arith.constant 0 : i32
    %c0_i32_1 = arith.constant 0 : i32
    return %c0_i32, %c0_i32_0 : i32, i32
  }
  func.func @transform_9(%arg0: i32, %arg1: i32) -> (i32, i32) {
    %c0_i32 = arith.constant 0 : i32
    %c0_i32_0 = arith.constant 0 : i32
    %c0_i32_1 = arith.constant 0 : i32
    return %c0_i32, %c0_i32_0 : i32, i32
  }
  func.func @transform_10(%arg0: i32, %arg1: i32) -> (i32, i32) {
    %c0_i32 = arith.constant 0 : i32
    %c0_i32_0 = arith.constant 0 : i32
    %c0_i32_1 = arith.constant 0 : i32
    return %c0_i32, %c0_i32_0 : i32, i32
  }
  func.func @transform_11(%arg0: i32, %arg1: i32) -> (i32, i32) {
    %c0_i32 = arith.constant 0 : i32
    %c0_i32_0 = arith.constant 0 : i32
    %c0_i32_1 = arith.constant 0 : i32
    return %c0_i32, %c0_i32_0 : i32, i32
  }
  func.func @transform_12(%arg0: i32, %arg1: i32) -> (i32, i32) {
    %c0_i32 = arith.constant 0 : i32
    %c0_i32_0 = arith.constant 0 : i32
    %c0_i32_1 = arith.constant 0 : i32
    return %c0_i32, %c0_i32_0 : i32, i32
  }
  func.func @transform_13(%arg0: i32, %arg1: i32) -> (i32, i32) {
    %c0_i32 = arith.constant 0 : i32
    %c0_i32_0 = arith.constant 0 : i32
    %c0_i32_1 = arith.constant 0 : i32
    return %c0_i32, %c0_i32_0 : i32, i32
  }
  func.func @transform_14(%arg0: i32, %arg1: i32) -> (i32, i32) {
    %c0_i32 = arith.constant 0 : i32
    %c0_i32_0 = arith.constant 0 : i32
    %c0_i32_1 = arith.constant 0 : i32
    return %c0_i32, %c0_i32_0 : i32, i32
  }
  func.func @transform_15(%arg0: i32, %arg1: i32) -> (i32, i32) {
    %c0_i32 = arith.constant 0 : i32
    %c0_i32_0 = arith.constant 0 : i32
    %c0_i32_1 = arith.constant 0 : i32
    return %c0_i32, %c0_i32_0 : i32, i32
  }
  func.func @transform_16(%arg0: i32, %arg1: i32) -> (i32, i32) {
    %c0_i32 = arith.constant 0 : i32
    %c0_i32_0 = arith.constant 0 : i32
    %c0_i32_1 = arith.constant 0 : i32
    return %c0_i32, %c0_i32_0 : i32, i32
  }
  func.func @transform_17(%arg0: i32, %arg1: i32) -> (i32, i32) {
    %c0_i32 = arith.constant 0 : i32
    %c0_i32_0 = arith.constant 0 : i32
    %c0_i32_1 = arith.constant 0 : i32
    return %c0_i32, %c0_i32_0 : i32, i32
  }
  func.func @transform_18(%arg0: i32, %arg1: i32) -> (i32, i32) {
    %c0_i32 = arith.constant 0 : i32
    %c0_i32_0 = arith.constant 0 : i32
    %c0_i32_1 = arith.constant 0 : i32
    return %c0_i32, %c0_i32_0 : i32, i32
  }
  func.func @transform_19(%arg0: i32, %arg1: i32) -> (i32, i32, i32) {
    %c0_i32 = arith.constant 0 : i32
    %c0_i32_0 = arith.constant 0 : i32
    return %arg0, %arg1, %c0_i32 : i32, i32, i32
  }
  func.func @transform_20(%arg0: i32, %arg1: i32) -> (i32, i32, i32) {
    %c0_i32 = arith.constant 0 : i32
    %c0_i32_0 = arith.constant 0 : i32
    %c0_i32_1 = arith.constant 0 : i32
    return %arg0, %c0_i32, %c0_i32_0 : i32, i32, i32
  }
}

</mosaic_0001>

<bundles_post_ra>
// kernel: ltc_network_forward.1
= control target key start
LH: loop header
LB: loop body
LE: loop exit
PB: predicated region body
PF: predicated region fallthrough
CT: control target
= control target key end

     0   :  { %s7796_s0 = inlined_call_operand.vmem [shape: f32[1,16,4], index: 0, kind: input, shape index: {}]   ;;  %s7797_s1 = inlined_call_operand.vmem [shape: f32[1,2,32], index: 1, kind: input, shape index: {}]   ;;  %s7798_s2 = inlined_call_operand.vmem [shape: f32[1,4], index: 2, kind: input, shape index: {}]   ;;  %s7799_s3 = inlined_call_operand.vmem [shape: f32[1,4], index: 3, kind: input, shape index: {}]   ;;  %s7800_s4 = inlined_call_operand.vmem [shape: f32[4,32], index: 4, kind: input, shape index: {}]   ;;  %s7801_s5 = inlined_call_operand.vmem [shape: f32[4,32], index: 5, kind: input, shape index: {}]   ;;  %s7802_s6 = inlined_call_operand.vmem [shape: f32[4,32], index: 6, kind: input, shape index: {}]   ;;  %s7803_s7 = inlined_call_operand.vmem [shape: f32[4,32], index: 7, kind: input, shape index: {}]   ;;  %s7804_s8 = inlined_call_operand.vmem [shape: f32[32,32], index: 8, kind: input, shape index: {}]   ;;  %s7805_s9 = inlined_call_operand.vmem [shape: f32[32,32], index: 9, kind: input, shape index: {}]   ;;  %s7806_s10 = inlined_call_operand.vmem [shape: f32[32,32], index: 10, kind: input, shape index: {}]   ;;  %s7807_s11 = inlined_call_operand.vmem [shape: f32[32,32], index: 11, kind: input, shape index: {}]   ;;  %s7808_s12 = inlined_call_operand.vmem [shape: f32[1,32], index: 12, kind: input, shape index: {}]   ;;  %s7809_s13 = inlined_call_operand.vmem [shape: f32[1,32], index: 13, kind: input, shape index: {}]   ;;  %s7810_s14 = inlined_call_operand.vmem [shape: f32[1,32], index: 14, kind: input, shape index: {}]   ;;  %s7811_s15 = inlined_call_operand.vmem [shape: f32[1,32], index: 15, kind: input, shape index: {}]   ;;  %s7812_s16 = inlined_call_operand.vmem [shape: f32[1,32], index: 16, kind: input, shape index: {}]   ;;  %s7813_s17 = inlined_call_operand.vmem [shape: f32[32,128], index: 17, kind: input, shape index: {}]   ;;  %s7814_s18 = inlined_call_operand.vmem [shape: f32[1,128], index: 18, kind: input, shape index: {}]   ;;  %s7815_s19 = inlined_call_operand.vmem [shape: f32[1,16,128], index: 19, kind: output, shape index: {0}]   ;;  %s7816_s20 = inlined_call_operand.hbm [shape: f32[1,2,32], index: 20, kind: output, shape index: {1}]  }
   0x1   :  { %7820 = sst [smem:[#allocation10_spill]] %s7796_s0 }
   0x2   :  { %7821 = sst [smem:[#allocation11_spill]] %s7797_s1 }
   0x3   :  { %7822 = sst [smem:[#allocation12_spill]] %s7798_s2 }
   0x4   :  { %7823 = sst [smem:[#allocation13_spill]] %s7799_s3 }
   0x5   :  { %7824 = sst [smem:[#allocation14_spill]] %s7800_s4 }
   0x6   :  { %7825 = sst [smem:[#allocation15_spill]] %s7814_s18 }
   0x7   :  { %7826 = sst [smem:[#allocation16_spill]] %s7816_s20 }
   0x8   :  { %26 = vsyncpa [#allocation6], 0  ;;  %s5483_s1 = smov 0   ;;  %s5485_s22 = smov 0  }
   0x9   :  { %s5487_s23 = smov 0  }
   0xa LB: > { %7827 = sst [smem:[#allocation8_spill]] %s5364_s22  ;;  %s41_s2 = sadd.s32 1, %s5364_s22  ;;  %s5368_s23 = sphi %s5487_s23, %s32_s23   ;;  %s5364_s22 = sphi %s5485_s22, %s7839_s22   ;;  %s5360_s1 = sphi %s5483_s1, %s7838_s1  }
   0xb   : > { %p42_p0 = scmp.ge.s32.totalorder %s41_s2, 2  ;;  %p4703_p1 = scmp.ge.s32.totalorder %s5368_s23, 1 }
   0xc   : > { %p594_p2 = scmp.lt.s32.totalorder %s5368_s23, 3 }
   0xd   : > { %s7841_s2 = smov (%p42_p0, %s41_s2), 0 }
   0xe   : > { %7828 = sst [smem:[#allocation9_spill]] %s7841_s2  ;;  %p595_p3 = pnand %p4703_p1, %p594_p2 }
   0xf   : > { %p664_p4 = scmp.lt.s32.totalorder (!%p595_p3), %s5360_s1, 1  ;;  %v5370_v0 = vmov (!%p595_p3), 0   ;;  %v5371_v1 = vmov (!%p595_p3), 2   ;;  %s7829_s28 = sld [smem:[#allocation12_spill]] (!%p595_p3)  ;;  %v5372_v7 = vmov (!%p595_p3), 1   ;;  %v5373_v8 = vmov (!%p595_p3), 3  }
  0x10   : > { %598 = sbr.rel (%p595_p3) target bundleno = 4840 (0x12e8), region = 96  ;;  %4796 = vset.pattern.permute.xlu0 (!%p595_p3), %v5370_v0  ;;  %4798 = vset.pattern.permute.xlu1 (!%p595_p3), %v5371_v1  ;;  %s7830_s30 = sld [smem:[#allocation10_spill]] (!%p595_p3)  ;;  %v4709_v13 = vld [vmem:[%s7801_s5] ss:$0 sm:$0xff] (!%p595_p3)  ;;  %v4717_v16 = vld [vmem:[%s7801_s5 + $0x2] ss:$0 sm:$0xff] (!%p595_p3) }
  0x11   : > { %s7831_s20 = sld [smem:[#allocation13_spill]] (!%p595_p3)  ;;  %v4713_v21 = vld [vmem:[%s7801_s5 + $0x1] ss:$0 sm:$0xff] (!%p595_p3)  ;;  %v4721_v23 = vld [vmem:[%s7801_s5 + $0x3] ss:$0 sm:$0xff] (!%p595_p3)  ;;  %vm822_vm0 = vcmask (!%p595_p3), 261120  }
  0x12   : > { %v4710_v29 = vld [vmem:[%s7802_s6] ss:$0 sm:$0xff] (!%p595_p3)  ;;  %v4714_v32 = vld [vmem:[%s7802_s6 + $0x1] ss:$0 sm:$0xff] (!%p595_p3)  ;;  %v4718_v35 = vld [vmem:[%s7802_s6 + $0x2] ss:$0 sm:$0xff] (!%p595_p3) }
  0x13   : > { %v4711_v31 = vld [vmem:[%s7803_s7] ss:$0 sm:$0xff] (!%p595_p3)  ;;  %v4715_v33 = vld [vmem:[%s7803_s7 + $0x1] ss:$0 sm:$0xff] (!%p595_p3)  ;;  %v4719_v36 = vld [vmem:[%s7803_s7 + $0x2] ss:$0 sm:$0xff] (!%p595_p3) }
  0x14   : > { %v4722_v38 = vld [vmem:[%s7802_s6 + $0x3] ss:$0 sm:$0xff] (!%p595_p3)  ;;  %p4724_p5 = scmp.ne.s32.totalorder (!%p595_p3), %s5360_s1, 0 }
  0x15   : > { %v4706_v2 = vld [vmem:[%s7829_s28] ss:$0 sm:$0xff] (!%p595_p3)  ;;  %v4723_v39 = vld [vmem:[%s7803_s7 + $0x3] ss:$0 sm:$0xff] (!%p595_p3) }
  0x17   : > { %s665_s25 = scalar_select %p664_p4, %s5360_s1, 1  ;;  %v4707_v4 = vld [vmem:[%s7831_s20] ss:$0 sm:$0xff] }
  0x18   : > { %s7833_s4 = sld [smem:[#allocation11_spill]] (!%p4724_p5)  ;;  %vm830_vm1 = vcmask (!%p4724_p5), 254976  }
  0x19   : > { %s4704_s3 = sshll.u32 %s665_s25, 3 }
  0x1a   : > { %s669_s0 = scalar_lea.vmem %s7830_s30, %s4704_s3  ;;  %s5515_s2 = scalar_lea.vmem %s7815_s19, %s4704_s3 }
  0x1b   : > { %v682_v3 = vld [vmem:[%s669_s0] sm:$0xff]  ;;  %s7832_s3 = sld [smem:[#allocation14_spill]] }
  0x1c   : > { %v690_v5 = vmul.f32 %v4706_v2, %v682_v3 }
  0x1e   : > { %v698_v6 = vadd.f32 %v4707_v4, %v690_v5  ;;  %v829_v55 = vld [vmem:[%s7833_s4] sm:$0x3] (!%p4724_p5) }
  0x1f   : > { %831 = vst.msk [vmem:[#allocation5] sm:$0x3] (!%p4724_p5), %vm830_vm1, %v829_v55 }
  0x20   : > { %702 = vperm.xlu0 %4796, %v698_v6   ;;  %762 = vperm.xlu1 %4798, %v698_v6  }
  0x21   : > { %v4708_v9 = vld [vmem:[%s7832_s3] ss:$0 sm:$0xff]  ;;  %v4716_v10 = vld [vmem:[%s7832_s3 + $0x2] ss:$0 sm:$0xff]  ;;  %v4712_v17 = vld [vmem:[%s7832_s3 + $0x1] ss:$0 sm:$0xff] }
  0x22   : > { %v4720_v18 = vld [vmem:[%s7832_s3 + $0x3] ss:$0 sm:$0xff] }
  0x24   : > { %4797 = vset.pattern.permute.xlu0 %v5372_v7  ;;  %4799 = vset.pattern.permute.xlu1 %v5373_v8 }
  0x25   : > { %731 = vperm.xlu0 %4797, %v698_v6   ;;  %793 = vperm.xlu1 %4799, %v698_v6  }
  0x29   : > { %4800 = vset.pattern.permute.xlu0 %v5373_v8 }
  0x9f   : > { %v703_v11 = vpop.permute.xlu0 %702  ;;  %v763_v12 = vpop.permute.xlu1 %762 }
  0xa0   : > { %v709_v14 = vsub.f32 %v703_v11, %v4708_v9  ;;  %v769_v15 = vsub.f32 %v763_v12, %v4716_v10 }
  0xa2   : > { %v715_v19 = vmul.f32 %v4709_v13, %v709_v14  ;;  %v775_v20 = vmul.f32 %v4717_v16, %v769_v15 }
  0xa4   : > { %v732_v22 = vpop.permute.xlu0 %731  ;;  %v794_v24 = vpop.permute.xlu1 %793  ;;  %4801 = vtanh.f32 %v715_v19 }
  0xa5   : > { %v738_v25 = vsub.f32 %v732_v22, %v4712_v17  ;;  %v800_v26 = vsub.f32 %v794_v24, %v4720_v18  ;;  %4803 = vtanh.f32 %v775_v20 }
  0xa7   : > { %v744_v27 = vmul.f32 %v4713_v21, %v738_v25  ;;  %v806_v28 = vmul.f32 %v4721_v23, %v800_v26 }
  0xa9   : > { %4805 = vtanh.f32 %v744_v27 }
  0xaa   : > { %4807 = vtanh.f32 %v806_v28 }
  0xae   : > { %v4802_v30 = vpop.eup %4801 }
  0xaf   : > { %v4804_v34 = vpop.eup %4803  ;;  %v722_v41 = vmul.f32 %v4802_v30, %v4710_v29  ;;  %v728_v42 = vmul.f32 %v4802_v30, %v4711_v31 }
  0xb0   : > { %v782_v45 = vmul.f32 %v4804_v34, %v4718_v35  ;;  %v788_v46 = vmul.f32 %v4804_v34, %v4719_v36 }
  0xb3   : > { %v4806_v37 = vpop.eup %4805 }
  0xb4   : > { %v4808_v40 = vpop.eup %4807  ;;  %v751_v43 = vmul.f32 %v4806_v37, %v4714_v32  ;;  %v757_v44 = vmul.f32 %v4806_v37, %v4715_v33 }
  0xb5   : > { %v813_v49 = vmul.f32 %v4808_v40, %v4722_v38  ;;  %v819_v50 = vmul.f32 %v4808_v40, %v4723_v39 }
  0xb6   : > { %v758_v47 = vadd.f32 %v751_v43, %v722_v41  ;;  %v759_v48 = vadd.f32 %v757_v44, %v728_v42  ;;  %828 = sbr.rel (%p4724_p5) target bundleno = 189 (0xbd), region = 100 }
  0xb8   : > { %v789_v51 = vadd.f32 %v782_v45, %v758_v47  ;;  %v790_v52 = vadd.f32 %v788_v46, %v759_v48 }
  0xba   : > { %v820_v53 = vadd.f32 %v813_v49, %v789_v51  ;;  %v821_v54 = vadd.f32 %v819_v50, %v790_v52 }
  0xbc   : > { %823 = vst.msk [vmem:[#allocation2] sm:$0xff] %vm822_vm0, %v820_v53  ;;  %824 = vst.msk [vmem:[#allocation3] sm:$0xff] %vm822_vm0, %v821_v54 }
  0xbd PF: > { %v852_v56 = vlaneseq  ;;  %v5574_v58 = vld [vmem:[#allocation5] sm:$0x3]  ;;  %v5587_v63 = vld [vmem:[%s7804_s8] sm:$0xff]  ;;  %v5599_v5 = vld [vmem:[%s7804_s8 + $0x8] sm:$0xff]  ;;  %vm1000_vm2 = vcmask 1041409   ;;  %vm1757_vm3 = vcmask 254976  }
  0xbe   : > { %v5592_v0 = vld [vmem:[%s7805_s9] sm:$0xff]  ;;  %v5606_v8 = vld [vmem:[%s7805_s9 + $0x8] sm:$0xff]  ;;  %v5613_v13 = vld [vmem:[%s7804_s8 + $0x10] sm:$0xff]  ;;  %vm5375_vm4 = vmmov 0   ;;  %s7834_s30 = sadd.s32 4294967295, %s5368_s23   ;;  %s5377_s21 = smov [#allocation5]  }
  0xbf   : > { %v853_v57 = vshrl.u32 %v852_v56, 7  ;;  %v5620_v16 = vld [vmem:[%s7805_s9 + $0x10] sm:$0xff]  ;;  %v5627_v21 = vld [vmem:[%s7804_s8 + $0x18] sm:$0xff]  ;;  %v5643_v32 = vld [vmem:[%s7806_s10] sm:$0xff]  ;;  %p7757_p6 = scmp.eq.s32.totalorder %s7834_s30, 1  ;;  %s4591_s25 = sshll.u32 %s5377_s21, 4  ;;  %s4592_s25 = int_to_ptr.vmem [resolvable:$true] %s4591_s25 }
  0xc0   : > { %v5634_v24 = vld [vmem:[%s7805_s9 + $0x18] sm:$0xff]  ;;  %v5648_v33 = vld [vmem:[%s7806_s10 + $0x8] sm:$0xff]  ;;  %v5658_v36 = vld [vmem:[%s7807_s11] sm:$0xff]  ;;  %s5316_s24 = scalar_lea.vmem %s4592_s25, 32  ;;  %p5323_p10 = scmp.lt.s32.totalorder %s4592_s25, %s4592_s25 }
  0xc1   : > { %v5576_v59 = vsub.s32 1, %v853_v57  ;;  %v5578_v60 = vsub.s32 0, %v853_v57  ;;  %v5653_v34 = vld [vmem:[%s7807_s11 + $0x8] sm:$0xff]  ;;  %v5668_v44 = vld [vmem:[%s7806_s10 + $0x10] sm:$0xff]  ;;  %p5317_p7 = scmp.ne.s32.totalorder %s4592_s25, %s5316_s24  ;;  %p5324_p11 = scmp.lt.s32.totalorder %s5316_s24, %s5316_s24 }
  0xc2   : > { %v5673_v45 = vld [vmem:[%s7807_s11 + $0x10] sm:$0xff] }
  0xc3   : > { %v874_v61 = vrot.slane %v5574_v58, %v5576_v59  ;;  %v855_v62 = vrot.slane %v5574_v58, %v5578_v60  ;;  %p5318_p8 = pnand %p5317_p7, %p7757_p6  ;;  %p5325_p12 = por %p5324_p11, %p5323_p10 }
  0xc5   : > { %876 = vbcast.lane.b32.xlu1 %v874_v61, 256  ;;  %857 = vbcast.lane.b32.xlu0 %v855_v62, 256  ;;  %p5319_p9 = pneg %p5318_p8 }
  0xc7   : > { %p5326_p13 = pnand %p5325_p12, %p5319_p9 }
  0xc9   : > { %880 = vbcast.lane.b32.xlu1 %v874_v61, 264  ;;  %861 = vbcast.lane.b32.xlu0 %v855_v62, 264 }
  0xcd   : > { %884 = vbcast.lane.b32.xlu1 %v874_v61, 272  ;;  %865 = vbcast.lane.b32.xlu0 %v855_v62, 272 }
  0xd1   : > { %888 = vbcast.lane.b32.xlu1 %v874_v61, 280  ;;  %869 = vbcast.lane.b32.xlu0 %v855_v62, 280 }
 0x137   : > { %v877_v1 = vpop.permute.xlu1 %876  ;;  %v858_v2 = vpop.permute.xlu0 %857 }
 0x138   : > { %v898_v3 = vsub.f32 %v877_v1, %v5587_v63  ;;  %v894_v4 = vsub.f32 %v858_v2, %v5587_v63  ;;  %v5690_v1 = vld [vmem:[%s7806_s10 + $0x18] sm:$0xff] }
 0x139   : > { %v5695_v2 = vld [vmem:[%s7807_s11 + $0x18] sm:$0xff] }
 0x13a   : > { %v910_v6 = vmul.f32 %v5592_v0, %v898_v3  ;;  %v906_v7 = vmul.f32 %v5592_v0, %v894_v4 }
 0x13b   : > { %v881_v9 = vpop.permute.xlu1 %880  ;;  %v862_v10 = vpop.permute.xlu0 %861 }
 0x13c   : > { %v899_v11 = vsub.f32 %v881_v9, %v5599_v5  ;;  %v895_v12 = vsub.f32 %v862_v10, %v5599_v5  ;;  %4809 = vtanh.f32 %v910_v6 }
 0x13d   : > { %4811 = vtanh.f32 %v906_v7 }
 0x13e   : > { %v911_v14 = vmul.f32 %v5606_v8, %v899_v11  ;;  %v907_v15 = vmul.f32 %v5606_v8, %v895_v12 }
 0x13f   : > { %v885_v17 = vpop.permute.xlu1 %884  ;;  %v866_v18 = vpop.permute.xlu0 %865 }
 0x140   : > { %4813 = vtanh.f32 %v911_v14  ;;  %v900_v19 = vsub.f32 %v885_v17, %v5613_v13  ;;  %v896_v20 = vsub.f32 %v866_v18, %v5613_v13 }
 0x141   : > { %4815 = vtanh.f32 %v907_v15 }
 0x142   : > { %v912_v22 = vmul.f32 %v5620_v16, %v900_v19  ;;  %v908_v23 = vmul.f32 %v5620_v16, %v896_v20 }
 0x143   : > { %v889_v25 = vpop.permute.xlu1 %888  ;;  %v870_v26 = vpop.permute.xlu0 %869 }
 0x144   : > { %4817 = vtanh.f32 %v912_v22  ;;  %v901_v27 = vsub.f32 %v889_v25, %v5627_v21  ;;  %v897_v28 = vsub.f32 %v870_v26, %v5627_v21 }
 0x145   : > { %4819 = vtanh.f32 %v908_v23 }
 0x146   : > { %v913_v29 = vmul.f32 %v5634_v24, %v901_v27  ;;  %v909_v30 = vmul.f32 %v5634_v24, %v897_v28  ;;  %v4810_v31 = vpop.eup %4809 }
 0x147   : > { %v4812_v35 = vpop.eup %4811  ;;  %v930_v38 = vmul.f32 %v4810_v31, %v5643_v32  ;;  %v968_v42 = vmul.f32 %v4810_v31, %v5658_v36 }
 0x148   : > { %4821 = vtanh.f32 %v913_v29  ;;  %v926_v46 = vmul.f32 %v4812_v35, %v5643_v32  ;;  %v964_v47 = vmul.f32 %v4812_v35, %v5658_v36 }
 0x149   : > { %4823 = vtanh.f32 %v909_v30  ;;  %v947_v50 = vsel %vm822_vm0, %v930_v38, 0.0  ;;  %v985_v56 = vsel %vm822_vm0, %v968_v42, 0.0 }
 0x14a   : > { %v4814_v37 = vpop.eup %4813  ;;  %v934_v3 = vsel %vm822_vm0, %v926_v46, 0.0  ;;  %v972_v4 = vsel %vm822_vm0, %v964_v47, 0.0 }
 0x14b   : > { %v4816_v39 = vpop.eup %4815  ;;  %v931_v40 = vmul.f32 %v4814_v37, %v5648_v33  ;;  %v969_v41 = vmul.f32 %v4814_v37, %v5653_v34 }
 0x14c   : > { %v965_v43 = vmul.f32 %v4816_v39, %v5653_v34  ;;  %v927_v48 = vmul.f32 %v4816_v39, %v5648_v33 }
 0x14d   : > { %v948_v52 = vsel %vm822_vm0, %v931_v40, 0.0  ;;  %v986_v53 = vsel %vm822_vm0, %v969_v41, 0.0 }
 0x14e   : > { %v4818_v49 = vpop.eup %4817  ;;  %v973_v57 = vsel %vm822_vm0, %v965_v43, 0.0  ;;  %v935_v6 = vsel %vm822_vm0, %v927_v48, 0.0  ;;  %v949_v10 = vadd.f32 %v948_v52, %v947_v50  ;;  %v987_v11 = vadd.f32 %v986_v53, %v985_v56 }
 0x14f   : > { %v4820_v51 = vpop.eup %4819  ;;  %v932_v54 = vmul.f32 %v4818_v49, %v5668_v44  ;;  %v970_v55 = vmul.f32 %v4818_v49, %v5673_v45  ;;  %v974_v17 = vadd.f32 %v973_v57, %v972_v4  ;;  %v936_v22 = vadd.f32 %v935_v6, %v934_v3 }
 0x150   : > { %v928_v61 = vmul.f32 %v4820_v51, %v5668_v44  ;;  %v966_v62 = vmul.f32 %v4820_v51, %v5673_v45 }
 0x151   : > { %v988_v7 = vsel %vm822_vm0, %v970_v55, 0.0  ;;  %v950_v12 = vsel %vm822_vm0, %v932_v54, 0.0  ;;  %v4726_v54 = vld [vmem:[%s7810_s14] ss:$0 sm:$0xff]  ;;  %v844_v55 = vld [vmem:[#allocation3] sm:$0x3] }
 0x152   : > { %v4822_v9 = vpop.eup %4821  ;;  %v975_v14 = vsel %vm822_vm0, %v966_v62, 0.0  ;;  %v937_v18 = vsel %vm822_vm0, %v928_v61, 0.0  ;;  %v989_v23 = vadd.f32 %v988_v7, %v987_v11  ;;  %v951_v27 = vadd.f32 %v950_v12, %v949_v10 }
 0x153   : > { %v4824_v15 = vpop.eup %4823  ;;  %v933_v19 = vmul.f32 %v4822_v9, %v5690_v1  ;;  %v971_v20 = vmul.f32 %v4822_v9, %v5695_v2  ;;  %v976_v28 = vadd.f32 %v975_v14, %v974_v17  ;;  %v938_v31 = vadd.f32 %v937_v18, %v936_v22  ;;  %v4725_v17 = vld [vmem:[%s7809_s13] ss:$0 sm:$0xff] }
 0x154   : > { %v929_v25 = vmul.f32 %v4824_v15, %v5690_v1  ;;  %v967_v26 = vmul.f32 %v4824_v15, %v5695_v2  ;;  %v5715_v4 = vadd.f32 %v4726_v54, %v844_v55  ;;  %v5722_v15 = vld [vmem:[%s7808_s12] ss:$0 sm:$0xff] }
 0x155   : > { %v952_v29 = vsel %vm822_vm0, %v933_v19, 0.0  ;;  %v990_v30 = vsel %vm822_vm0, %v971_v20, 0.0  ;;  %v836_v18 = vld [vmem:[#allocation2] sm:$0x3]  ;;  %v1014_v22 = vmul.f32 %v5722_v15, %v5574_v58 }
 0x156   : > { %v991_v35 = vadd.f32 %v990_v30, %v989_v23  ;;  %v939_v37 = vsel %vm822_vm0, %v929_v25, 0.0  ;;  %v977_v38 = vsel %vm822_vm0, %v967_v26, 0.0  ;;  %v953_v40 = vadd.f32 %v952_v29, %v951_v27 }
 0x157   : > { %v978_v39 = vadd.f32 %v977_v38, %v976_v28  ;;  %v940_v42 = vadd.f32 %v939_v37, %v938_v31  ;;  %v5729_v23 = vadd.f32 %v4725_v17, %v836_v18 }
 0x158   : > { %v992_v41 = vrot.slane %v991_v35, 4  ;;  %v954_v48 = vrot.slane %v953_v40, 4 }
 0x159   : > { %v979_v43 = vrot.slane %v978_v39, 4  ;;  %v941_v50 = vrot.slane %v940_v42, 4  ;;  %v1015_v29 = vadd.f32 %v1014_v22, %v5729_v23 }
 0x15a   : > { %v993_v46 = vadd.f32 %v992_v41, %v991_v35  ;;  %v955_v56 = vadd.f32 %v954_v48, %v953_v40 }
 0x15b   : > { %v980_v47 = vadd.f32 %v979_v43, %v978_v39  ;;  %v942_v61 = vadd.f32 %v941_v50, %v940_v42 }
 0x15c   : > { %v994_v49 = vrot.slane %v993_v46, 2  ;;  %v956_v7 = vrot.slane %v955_v56, 2 }
 0x15d   : > { %v981_v51 = vrot.slane %v980_v47, 2  ;;  %v943_v9 = vrot.slane %v942_v61, 2 }
 0x15e   : > { %v995_v52 = vadd.f32 %v994_v49, %v993_v46  ;;  %v957_v12 = vadd.f32 %v956_v7, %v955_v56 }
 0x15f   : > { %v982_v53 = vadd.f32 %v981_v51, %v980_v47  ;;  %v944_v14 = vadd.f32 %v943_v9, %v942_v61 }
 0x160   : > { %v996_v57 = vrot.slane %v995_v52, 1  ;;  %v958_v20 = vrot.slane %v957_v12, 1 }
 0x161   : > { %v983_v62 = vrot.slane %v982_v53, 1  ;;  %v945_v19 = vrot.slane %v944_v14, 1 }
 0x162   : > { %v997_v3 = vadd.f32 %v996_v57, %v995_v52  ;;  %v959_v26 = vadd.f32 %v958_v20, %v957_v12 }
 0x163   : > { %v984_v6 = vadd.f32 %v983_v62, %v982_v53  ;;  %v946_v25 = vadd.f32 %v945_v19, %v944_v14 }
 0x165   : > { %v1001_v10 = vsel %vm1000_vm2, %v997_v3, %v984_v6  ;;  %v1018_v30 = vsel %vm1000_vm2, %v959_v26, %v946_v25 }
 0x166   : > { %v1003_v11 = vadd.f32 %v1001_v10, %v5715_v4  ;;  %v1020_v37 = vadd.f32 %v1018_v30, %v1015_v29 }
 0x168   : > { %4825 = vrcp.f32 %v1003_v11 }
 0x172   : > { %v4826_v27 = vpop.eup %4825 }
 0x173   : > { %v1005_v28 = vmul.f32 %v4826_v27, %v1003_v11 }
 0x175   : > { %v1006_v31 = vsub.f32 2.0, %v1005_v28 }
 0x177   : > { %v1007_v35 = vmul.f32 %v4826_v27, %v1006_v31 }
 0x179   : > { %v5733_v38 = vmul.f32 %v1020_v37, %v1007_v35 }
 0x17b   : > { %v1025_v39 = vrot.slane %v5733_v38, %v5578_v60  ;;  %v1044_v58 = vrot.slane %v5733_v38, %v5576_v59 }
 0x17d   : > { %1031 = vbcast.lane.b32.xlu1 %v1025_v39, 264  ;;  %1027 = vbcast.lane.b32.xlu0 %v1025_v39, 256 }
 0x181   : > { %1050 = vbcast.lane.b32.xlu1 %v1044_v58, 264  ;;  %1046 = vbcast.lane.b32.xlu0 %v1044_v58, 256 }
 0x185   : > { %1054 = vbcast.lane.b32.xlu1 %v1044_v58, 272  ;;  %1035 = vbcast.lane.b32.xlu0 %v1025_v39, 272 }
 0x189   : > { %1058 = vbcast.lane.b32.xlu1 %v1044_v58, 280  ;;  %1039 = vbcast.lane.b32.xlu0 %v1025_v39, 280 }
 0x1ef   : > { %v1032_v40 = vpop.permute.xlu1 %1031  ;;  %v1028_v41 = vpop.permute.xlu0 %1027 }
 0x1f0   : > { %v1061_v42 = vsub.f32 %v1032_v40, %v5599_v5  ;;  %v1060_v43 = vsub.f32 %v1028_v41, %v5587_v63 }
 0x1f2   : > { %v1069_v46 = vmul.f32 %v1061_v42, %v5606_v8  ;;  %v1068_v47 = vmul.f32 %v1060_v43, %v5592_v0 }
 0x1f3   : > { %v1051_v48 = vpop.permute.xlu1 %1050  ;;  %v1047_v49 = vpop.permute.xlu0 %1046 }
 0x1f4   : > { %4827 = vtanh.f32 %v1069_v46  ;;  %v1065_v50 = vsub.f32 %v1051_v48, %v5599_v5  ;;  %v1064_v51 = vsub.f32 %v1047_v49, %v5587_v63 }
 0x1f5   : > { %4829 = vtanh.f32 %v1068_v47 }
 0x1f6   : > { %v1073_v52 = vmul.f32 %v1065_v50, %v5606_v8  ;;  %v1072_v53 = vmul.f32 %v1064_v51, %v5592_v0 }
 0x1f7   : > { %v1055_v54 = vpop.permute.xlu1 %1054  ;;  %v1036_v55 = vpop.permute.xlu0 %1035 }
 0x1f8   : > { %4831 = vtanh.f32 %v1073_v52  ;;  %v1066_v56 = vsub.f32 %v1055_v54, %v5613_v13  ;;  %v1062_v57 = vsub.f32 %v1036_v55, %v5613_v13 }
 0x1f9   : > { %4833 = vtanh.f32 %v1072_v53 }
 0x1fa   : > { %v1074_v61 = vmul.f32 %v1066_v56, %v5620_v16  ;;  %v1070_v62 = vmul.f32 %v1062_v57, %v5620_v16 }
 0x1fb   : > { %v1059_v3 = vpop.permute.xlu1 %1058  ;;  %v1040_v6 = vpop.permute.xlu0 %1039 }
 0x1fc   : > { %4835 = vtanh.f32 %v1074_v61  ;;  %v1067_v7 = vsub.f32 %v1059_v3, %v5627_v21  ;;  %v1063_v9 = vsub.f32 %v1040_v6, %v5627_v21 }
 0x1fd   : > { %4837 = vtanh.f32 %v1070_v62 }
 0x1fe   : > { %v4828_v10 = vpop.eup %4827  ;;  %v1075_v11 = vmul.f32 %v1067_v7, %v5634_v24  ;;  %v1071_v12 = vmul.f32 %v1063_v9, %v5634_v24 }
 0x1ff   : > { %v4830_v14 = vpop.eup %4829  ;;  %v1119_v18 = vmul.f32 %v4828_v10, %v5653_v34  ;;  %v1085_v28 = vmul.f32 %v4828_v10, %v5648_v33 }
 0x200   : > { %4839 = vtanh.f32 %v1075_v11  ;;  %v1118_v19 = vmul.f32 %v4830_v14, %v5658_v36  ;;  %v1084_v29 = vmul.f32 %v4830_v14, %v5643_v32 }
 0x201   : > { %4841 = vtanh.f32 %v1071_v12  ;;  %v1127_v31 = vsel %vm822_vm0, %v1119_v18, 0.0  ;;  %v1093_v48 = vsel %vm822_vm0, %v1085_v28, 0.0 }
 0x202   : > { %v4832_v17 = vpop.eup %4831  ;;  %v1126_v35 = vsel %vm822_vm0, %v1118_v19, 0.0  ;;  %v1092_v49 = vsel %vm822_vm0, %v1084_v29, 0.0 }
 0x203   : > { %v4834_v20 = vpop.eup %4833  ;;  %v1123_v22 = vmul.f32 %v4832_v17, %v5653_v34  ;;  %v1089_v25 = vmul.f32 %v4832_v17, %v5648_v33  ;;  %v1128_v52 = vadd.f32 %v1127_v31, %v1126_v35  ;;  %v1094_v6 = vadd.f32 %v1093_v48, %v1092_v49 }
 0x204   : > { %v1088_v26 = vmul.f32 %v4834_v20, %v5643_v32  ;;  %v1122_v27 = vmul.f32 %v4834_v20, %v5658_v36 }
 0x205   : > { %v1140_v39 = vsel %vm822_vm0, %v1123_v22, 0.0  ;;  %v1106_v42 = vsel %vm822_vm0, %v1089_v25, 0.0 }
 0x206   : > { %v4836_v30 = vpop.eup %4835  ;;  %v1139_v58 = vsel %vm822_vm0, %v1122_v27, 0.0  ;;  %v1105_v43 = vsel %vm822_vm0, %v1088_v26, 0.0 }
 0x207   : > { %v4838_v37 = vpop.eup %4837  ;;  %v1090_v40 = vmul.f32 %v4836_v30, %v5668_v44  ;;  %v1124_v41 = vmul.f32 %v4836_v30, %v5673_v45  ;;  %v1141_v53 = vadd.f32 %v1140_v39, %v1139_v58  ;;  %v1107_v57 = vadd.f32 %v1106_v42, %v1105_v43 }
 0x208   : > { %v1086_v46 = vmul.f32 %v4838_v37, %v5668_v44  ;;  %v1120_v47 = vmul.f32 %v4838_v37, %v5673_v45 }
 0x209   : > { %v1142_v50 = vsel %vm822_vm0, %v1124_v41, 0.0  ;;  %v1108_v54 = vsel %vm822_vm0, %v1090_v40, 0.0 }
 0x20a   : > { %v4840_v51 = vpop.eup %4839  ;;  %v1129_v55 = vsel %vm822_vm0, %v1120_v47, 0.0  ;;  %v1095_v61 = vsel %vm822_vm0, %v1086_v46, 0.0  ;;  %v1143_v7 = vadd.f32 %v1142_v50, %v1141_v53  ;;  %v1109_v11 = vadd.f32 %v1108_v54, %v1107_v57 }
 0x20b   : > { %v4842_v56 = vpop.eup %4841  ;;  %v1091_v62 = vmul.f32 %v4840_v51, %v5690_v1  ;;  %v1125_v3 = vmul.f32 %v4840_v51, %v5695_v2  ;;  %v1130_v12 = vadd.f32 %v1129_v55, %v1128_v52  ;;  %v1096_v18 = vadd.f32 %v1095_v61, %v1094_v6 }
 0x20c   : > { %v1087_v9 = vmul.f32 %v4842_v56, %v5690_v1  ;;  %v1121_v10 = vmul.f32 %v4842_v56, %v5695_v2 }
 0x20d   : > { %v1110_v14 = vsel %vm822_vm0, %v1091_v62, 0.0  ;;  %v1144_v17 = vsel %vm822_vm0, %v1125_v3, 0.0  ;;  %v1161_v3 = vmul.f32 %v5722_v15, %v5733_v38 }
 0x20e   : > { %v1145_v19 = vadd.f32 %v1144_v17, %v1143_v7  ;;  %v1097_v20 = vsel %vm822_vm0, %v1087_v9, 0.0  ;;  %v1131_v22 = vsel %vm822_vm0, %v1121_v10, 0.0  ;;  %v1111_v26 = vadd.f32 %v1110_v14, %v1109_v11 }
 0x20f   : > { %v1132_v25 = vadd.f32 %v1131_v22, %v1130_v12  ;;  %v1098_v28 = vadd.f32 %v1097_v20, %v1096_v18  ;;  %v1162_v11 = vadd.f32 %v1161_v3, %v5729_v23 }
 0x210   : > { %v1146_v27 = vrot.slane %v1145_v19, 4  ;;  %v1112_v35 = vrot.slane %v1111_v26, 4 }
 0x211   : > { %v1133_v29 = vrot.slane %v1132_v25, 4  ;;  %v1099_v39 = vrot.slane %v1098_v28, 4 }
 0x212   : > { %v1147_v30 = vadd.f32 %v1146_v27, %v1145_v19  ;;  %v1113_v42 = vadd.f32 %v1112_v35, %v1111_v26 }
 0x213   : > { %v1134_v31 = vadd.f32 %v1133_v29, %v1132_v25  ;;  %v1100_v46 = vadd.f32 %v1099_v39, %v1098_v28 }
 0x214   : > { %v1148_v37 = vrot.slane %v1147_v30, 2  ;;  %v1114_v50 = vrot.slane %v1113_v42, 2 }
 0x215   : > { %v1135_v58 = vrot.slane %v1134_v31, 2  ;;  %v1101_v51 = vrot.slane %v1100_v46, 2 }
 0x216   : > { %v1149_v40 = vadd.f32 %v1148_v37, %v1147_v30  ;;  %v1115_v54 = vadd.f32 %v1114_v50, %v1113_v42 }
 0x217   : > { %v1136_v41 = vadd.f32 %v1135_v58, %v1134_v31  ;;  %v1102_v55 = vadd.f32 %v1101_v51, %v1100_v46 }
 0x218   : > { %v1150_v43 = vrot.slane %v1149_v40, 1  ;;  %v1116_v57 = vrot.slane %v1115_v54, 1 }
 0x219   : > { %v1137_v47 = vrot.slane %v1136_v41, 1  ;;  %v1103_v56 = vrot.slane %v1102_v55, 1 }
 0x21a   : > { %v1151_v48 = vadd.f32 %v1150_v43, %v1149_v40  ;;  %v1117_v62 = vadd.f32 %v1116_v57, %v1115_v54 }
 0x21b   : > { %v1138_v49 = vadd.f32 %v1137_v47, %v1136_v41  ;;  %v1104_v61 = vadd.f32 %v1103_v56, %v1102_v55 }
 0x21d   : > { %v1154_v52 = vsel %vm1000_vm2, %v1151_v48, %v1138_v49  ;;  %v1165_v9 = vsel %vm1000_vm2, %v1117_v62, %v1104_v61 }
 0x21e   : > { %v1156_v53 = vadd.f32 %v1154_v52, %v5715_v4  ;;  %v1167_v14 = vadd.f32 %v1165_v9, %v1162_v11 }
 0x220   : > { %4843 = vrcp.f32 %v1156_v53 }
 0x22a   : > { %v4844_v6 = vpop.eup %4843 }
 0x22b   : > { %v1158_v7 = vmul.f32 %v4844_v6, %v1156_v53 }
 0x22d   : > { %v1159_v10 = vsub.f32 2.0, %v1158_v7 }
 0x22f   : > { %v1160_v12 = vmul.f32 %v4844_v6, %v1159_v10 }
 0x231   : > { %v5793_v17 = vmul.f32 %v1167_v14, %v1160_v12 }
 0x233   : > { %v1172_v18 = vrot.slane %v5793_v17, %v5578_v60  ;;  %v1191_v19 = vrot.slane %v5793_v17, %v5576_v59 }
 0x235   : > { %1178 = vbcast.lane.b32.xlu1 %v1172_v18, 264  ;;  %1174 = vbcast.lane.b32.xlu0 %v1172_v18, 256 }
 0x239   : > { %1197 = vbcast.lane.b32.xlu1 %v1191_v19, 264  ;;  %1193 = vbcast.lane.b32.xlu0 %v1191_v19, 256 }
 0x23d   : > { %1201 = vbcast.lane.b32.xlu1 %v1191_v19, 272  ;;  %1182 = vbcast.lane.b32.xlu0 %v1172_v18, 272 }
 0x241   : > { %1205 = vbcast.lane.b32.xlu1 %v1191_v19, 280  ;;  %1186 = vbcast.lane.b32.xlu0 %v1172_v18, 280 }
 0x2a7   : > { %v1179_v38 = vpop.permute.xlu1 %1178  ;;  %v1175_v20 = vpop.permute.xlu0 %1174 }
 0x2a8   : > { %v1208_v22 = vsub.f32 %v1179_v38, %v5599_v5  ;;  %v1207_v25 = vsub.f32 %v1175_v20, %v5587_v63 }
 0x2aa   : > { %v1216_v26 = vmul.f32 %v1208_v22, %v5606_v8  ;;  %v1215_v27 = vmul.f32 %v1207_v25, %v5592_v0 }
 0x2ab   : > { %v1198_v28 = vpop.permute.xlu1 %1197  ;;  %v1194_v29 = vpop.permute.xlu0 %1193 }
 0x2ac   : > { %4845 = vtanh.f32 %v1216_v26  ;;  %v1212_v30 = vsub.f32 %v1198_v28, %v5599_v5  ;;  %v1211_v31 = vsub.f32 %v1194_v29, %v5587_v63 }
 0x2ad   : > { %4847 = vtanh.f32 %v1215_v27 }
 0x2ae   : > { %v1220_v35 = vmul.f32 %v1212_v30, %v5606_v8  ;;  %v1219_v37 = vmul.f32 %v1211_v31, %v5592_v0 }
 0x2af   : > { %v1202_v39 = vpop.permute.xlu1 %1201  ;;  %v1183_v58 = vpop.permute.xlu0 %1182 }
 0x2b0   : > { %4849 = vtanh.f32 %v1220_v35  ;;  %v1213_v40 = vsub.f32 %v1202_v39, %v5613_v13  ;;  %v1209_v41 = vsub.f32 %v1183_v58, %v5613_v13 }
 0x2b1   : > { %4851 = vtanh.f32 %v1219_v37 }
 0x2b2   : > { %v1221_v42 = vmul.f32 %v1213_v40, %v5620_v16  ;;  %v1217_v43 = vmul.f32 %v1209_v41, %v5620_v16 }
 0x2b3   : > { %v1206_v46 = vpop.permute.xlu1 %1205  ;;  %v1187_v47 = vpop.permute.xlu0 %1186 }
 0x2b4   : > { %4853 = vtanh.f32 %v1221_v42  ;;  %v1214_v48 = vsub.f32 %v1206_v46, %v5627_v21  ;;  %v1210_v49 = vsub.f32 %v1187_v47, %v5627_v21 }
 0x2b5   : > { %4855 = vtanh.f32 %v1217_v43 }
 0x2b6   : > { %v4846_v50 = vpop.eup %4845  ;;  %v1222_v51 = vmul.f32 %v1214_v48, %v5634_v24  ;;  %v1218_v52 = vmul.f32 %v1210_v49, %v5634_v24 }
 0x2b7   : > { %v4848_v53 = vpop.eup %4847  ;;  %v1266_v55 = vmul.f32 %v4846_v50, %v5653_v34  ;;  %v1232_v7 = vmul.f32 %v4846_v50, %v5648_v33 }
 0x2b8   : > { %4857 = vtanh.f32 %v1222_v51  ;;  %v1265_v56 = vmul.f32 %v4848_v53, %v5658_v36  ;;  %v1231_v9 = vmul.f32 %v4848_v53, %v5643_v32 }
 0x2b9   : > { %4859 = vtanh.f32 %v1218_v52  ;;  %v1274_v11 = vsel %vm822_vm0, %v1266_v55, 0.0  ;;  %v1240_v28 = vsel %vm822_vm0, %v1232_v7, 0.0 }
 0x2ba   : > { %v4850_v54 = vpop.eup %4849  ;;  %v1273_v12 = vsel %vm822_vm0, %v1265_v56, 0.0  ;;  %v1239_v29 = vsel %vm822_vm0, %v1231_v9, 0.0 }
 0x2bb   : > { %v4852_v57 = vpop.eup %4851  ;;  %v1270_v61 = vmul.f32 %v4850_v54, %v5653_v34  ;;  %v1236_v62 = vmul.f32 %v4850_v54, %v5648_v33  ;;  %v1275_v35 = vadd.f32 %v1274_v11, %v1273_v12  ;;  %v1241_v47 = vadd.f32 %v1240_v28, %v1239_v29 }
 0x2bc   : > { %v1235_v3 = vmul.f32 %v4852_v57, %v5643_v32  ;;  %v1269_v6 = vmul.f32 %v4852_v57, %v5658_v36 }
 0x2bd   : > { %v1287_v18 = vsel %vm822_vm0, %v1270_v61, 0.0  ;;  %v1253_v22 = vsel %vm822_vm0, %v1236_v62, 0.0 }
 0x2be   : > { %v4854_v10 = vpop.eup %4853  ;;  %v1286_v19 = vsel %vm822_vm0, %v1269_v6, 0.0  ;;  %v1252_v25 = vsel %vm822_vm0, %v1235_v3, 0.0 }
 0x2bf   : > { %v4856_v14 = vpop.eup %4855  ;;  %v1237_v38 = vmul.f32 %v4854_v10, %v5668_v44  ;;  %v1271_v20 = vmul.f32 %v4854_v10, %v5673_v45  ;;  %v1288_v37 = vadd.f32 %v1287_v18, %v1286_v19  ;;  %v1254_v41 = vadd.f32 %v1253_v22, %v1252_v25 }
 0x2c0   : > { %v1233_v26 = vmul.f32 %v4856_v14, %v5668_v44  ;;  %v1267_v27 = vmul.f32 %v4856_v14, %v5673_v45 }
 0x2c1   : > { %v1289_v30 = vsel %vm822_vm0, %v1271_v20, 0.0  ;;  %v1255_v39 = vsel %vm822_vm0, %v1237_v38, 0.0 }
 0x2c2   : > { %v4858_v31 = vpop.eup %4857  ;;  %v1276_v58 = vsel %vm822_vm0, %v1267_v27, 0.0  ;;  %v1242_v42 = vsel %vm822_vm0, %v1233_v26, 0.0  ;;  %v1290_v48 = vadd.f32 %v1289_v30, %v1288_v37  ;;  %v1256_v51 = vadd.f32 %v1255_v39, %v1254_v41 }
 0x2c3   : > { %v4860_v40 = vpop.eup %4859  ;;  %v1238_v43 = vmul.f32 %v4858_v31, %v5690_v1  ;;  %v1272_v46 = vmul.f32 %v4858_v31, %v5695_v2  ;;  %v1277_v52 = vadd.f32 %v1276_v58, %v1275_v35  ;;  %v1243_v55 = vadd.f32 %v1242_v42, %v1241_v47 }
 0x2c4   : > { %v1234_v49 = vmul.f32 %v4860_v40, %v5690_v1  ;;  %v1268_v50 = vmul.f32 %v4860_v40, %v5695_v2 }
 0x2c5   : > { %v1257_v53 = vsel %vm822_vm0, %v1238_v43, 0.0  ;;  %v1291_v54 = vsel %vm822_vm0, %v1272_v46, 0.0  ;;  %v1308_v46 = vmul.f32 %v5722_v15, %v5793_v17 }
 0x2c6   : > { %v1292_v56 = vadd.f32 %v1291_v54, %v1290_v48  ;;  %v1244_v57 = vsel %vm822_vm0, %v1234_v49, 0.0  ;;  %v1278_v61 = vsel %vm822_vm0, %v1268_v50, 0.0  ;;  %v1258_v3 = vadd.f32 %v1257_v53, %v1256_v51 }
 0x2c7   : > { %v1279_v62 = vadd.f32 %v1278_v61, %v1277_v52  ;;  %v1245_v7 = vadd.f32 %v1244_v57, %v1243_v55  ;;  %v1309_v51 = vadd.f32 %v1308_v46, %v5729_v23 }
 0x2c8   : > { %v1293_v6 = vrot.slane %v1292_v56, 4  ;;  %v1259_v12 = vrot.slane %v1258_v3, 4 }
 0x2c9   : > { %v1280_v9 = vrot.slane %v1279_v62, 4  ;;  %v1246_v18 = vrot.slane %v1245_v7, 4 }
 0x2ca   : > { %v1294_v10 = vadd.f32 %v1293_v6, %v1292_v56  ;;  %v1260_v22 = vadd.f32 %v1259_v12, %v1258_v3 }
 0x2cb   : > { %v1281_v11 = vadd.f32 %v1280_v9, %v1279_v62  ;;  %v1247_v26 = vadd.f32 %v1246_v18, %v1245_v7 }
 0x2cc   : > { %v1295_v14 = vrot.slane %v1294_v10, 2  ;;  %v1261_v30 = vrot.slane %v1260_v22, 2 }
 0x2cd   : > { %v1282_v19 = vrot.slane %v1281_v11, 2  ;;  %v1248_v31 = vrot.slane %v1247_v26, 2 }
 0x2ce   : > { %v1296_v38 = vadd.f32 %v1295_v14, %v1294_v10  ;;  %v1262_v39 = vadd.f32 %v1261_v30, %v1260_v22 }
 0x2cf   : > { %v1283_v20 = vadd.f32 %v1282_v19, %v1281_v11  ;;  %v1249_v58 = vadd.f32 %v1248_v31, %v1247_v26 }
 0x2d0   : > { %v1297_v25 = vrot.slane %v1296_v38, 1  ;;  %v1263_v41 = vrot.slane %v1262_v39, 1 }
 0x2d1   : > { %v1284_v27 = vrot.slane %v1283_v20, 1  ;;  %v1250_v40 = vrot.slane %v1249_v58, 1 }
 0x2d2   : > { %v1298_v28 = vadd.f32 %v1297_v25, %v1296_v38  ;;  %v1264_v43 = vadd.f32 %v1263_v41, %v1262_v39 }
 0x2d3   : > { %v1285_v29 = vadd.f32 %v1284_v27, %v1283_v20  ;;  %v1251_v42 = vadd.f32 %v1250_v40, %v1249_v58 }
 0x2d5   : > { %v1301_v35 = vsel %vm1000_vm2, %v1298_v28, %v1285_v29  ;;  %v1312_v49 = vsel %vm1000_vm2, %v1264_v43, %v1251_v42 }
 0x2d6   : > { %v1303_v37 = vadd.f32 %v1301_v35, %v5715_v4  ;;  %v1314_v53 = vadd.f32 %v1312_v49, %v1309_v51 }
 0x2d8   : > { %4861 = vrcp.f32 %v1303_v37 }
 0x2e2   : > { %v4862_v47 = vpop.eup %4861 }
 0x2e3   : > { %v1305_v48 = vmul.f32 %v4862_v47, %v1303_v37 }
 0x2e5   : > { %v1306_v50 = vsub.f32 2.0, %v1305_v48 }
 0x2e7   : > { %v1307_v52 = vmul.f32 %v4862_v47, %v1306_v50 }
 0x2e9   : > { %v5853_v54 = vmul.f32 %v1314_v53, %v1307_v52 }
 0x2eb   : > { %v1319_v55 = vrot.slane %v5853_v54, %v5578_v60  ;;  %v1338_v56 = vrot.slane %v5853_v54, %v5576_v59 }
 0x2ed   : > { %1325 = vbcast.lane.b32.xlu1 %v1319_v55, 264  ;;  %1321 = vbcast.lane.b32.xlu0 %v1319_v55, 256 }
 0x2f1   : > { %1344 = vbcast.lane.b32.xlu1 %v1338_v56, 264  ;;  %1340 = vbcast.lane.b32.xlu0 %v1338_v56, 256 }
 0x2f5   : > { %1348 = vbcast.lane.b32.xlu1 %v1338_v56, 272  ;;  %1329 = vbcast.lane.b32.xlu0 %v1319_v55, 272 }
 0x2f9   : > { %1352 = vbcast.lane.b32.xlu1 %v1338_v56, 280  ;;  %1333 = vbcast.lane.b32.xlu0 %v1319_v55, 280 }
 0x35f   : > { %v1326_v17 = vpop.permute.xlu1 %1325  ;;  %v1322_v57 = vpop.permute.xlu0 %1321 }
 0x360   : > { %v1355_v61 = vsub.f32 %v1326_v17, %v5599_v5  ;;  %v1354_v62 = vsub.f32 %v1322_v57, %v5587_v63 }
 0x362   : > { %v1363_v3 = vmul.f32 %v1355_v61, %v5606_v8  ;;  %v1362_v6 = vmul.f32 %v1354_v62, %v5592_v0 }
 0x363   : > { %v1345_v7 = vpop.permute.xlu1 %1344  ;;  %v1341_v9 = vpop.permute.xlu0 %1340 }
 0x364   : > { %4863 = vtanh.f32 %v1363_v3  ;;  %v1359_v10 = vsub.f32 %v1345_v7, %v5599_v5  ;;  %v1358_v11 = vsub.f32 %v1341_v9, %v5587_v63 }
 0x365   : > { %4865 = vtanh.f32 %v1362_v6 }
 0x366   : > { %v1367_v12 = vmul.f32 %v1359_v10, %v5606_v8  ;;  %v1366_v14 = vmul.f32 %v1358_v11, %v5592_v0 }
 0x367   : > { %v1349_v18 = vpop.permute.xlu1 %1348  ;;  %v1330_v19 = vpop.permute.xlu0 %1329 }
 0x368   : > { %4867 = vtanh.f32 %v1367_v12  ;;  %v1360_v38 = vsub.f32 %v1349_v18, %v5613_v13  ;;  %v1356_v20 = vsub.f32 %v1330_v19, %v5613_v13 }
 0x369   : > { %4869 = vtanh.f32 %v1366_v14 }
 0x36a   : > { %v1368_v22 = vmul.f32 %v1360_v38, %v5620_v16  ;;  %v1364_v25 = vmul.f32 %v1356_v20, %v5620_v16 }
 0x36b   : > { %v1353_v5 = vpop.permute.xlu1 %1352  ;;  %v1334_v26 = vpop.permute.xlu0 %1333 }
 0x36c   : > { %4871 = vtanh.f32 %v1368_v22  ;;  %v1361_v63 = vsub.f32 %v1353_v5, %v5627_v21  ;;  %v1357_v8 = vsub.f32 %v1334_v26, %v5627_v21 }
 0x36d   : > { %4873 = vtanh.f32 %v1364_v25 }
 0x36e   : > { %v4864_v0 = vpop.eup %4863  ;;  %v1369_v27 = vmul.f32 %v1361_v63, %v5634_v24  ;;  %v1365_v28 = vmul.f32 %v1357_v8, %v5634_v24 }
 0x36f   : > { %v4866_v29 = vpop.eup %4865  ;;  %v1413_v30 = vmul.f32 %v4864_v0, %v5653_v34  ;;  %v1379_v58 = vmul.f32 %v4864_v0, %v5648_v33 }
 0x370   : > { %4875 = vtanh.f32 %v1369_v27  ;;  %v1412_v16 = vmul.f32 %v4866_v29, %v5658_v36  ;;  %v1378_v24 = vmul.f32 %v4866_v29, %v5643_v32 }
 0x371   : > { %4877 = vtanh.f32 %v1365_v28  ;;  %v1421_v41 = vsel %vm822_vm0, %v1413_v30, 0.0  ;;  %v1387_v50 = vsel %vm822_vm0, %v1379_v58, 0.0 }
 0x372   : > { %v4868_v13 = vpop.eup %4867  ;;  %v1420_v42 = vsel %vm822_vm0, %v1412_v16, 0.0  ;;  %v1386_v51 = vsel %vm822_vm0, %v1378_v24, 0.0 }
 0x373   : > { %v4870_v31 = vpop.eup %4869  ;;  %v1417_v35 = vmul.f32 %v4868_v13, %v5653_v34  ;;  %v1383_v37 = vmul.f32 %v4868_v13, %v5648_v33  ;;  %v1422_v55 = vadd.f32 %v1421_v41, %v1420_v42  ;;  %v1388_v6 = vadd.f32 %v1387_v50, %v1386_v51 }
 0x374   : > { %v1382_v21 = vmul.f32 %v4870_v31, %v5643_v32  ;;  %v1416_v39 = vmul.f32 %v4870_v31, %v5658_v36 }
 0x375   : > { %v1434_v46 = vsel %vm822_vm0, %v1417_v35, 0.0  ;;  %v1400_v36 = vsel %vm822_vm0, %v1383_v37, 0.0 }
 0x376   : > { %v4872_v40 = vpop.eup %4871  ;;  %v1433_v34 = vsel %vm822_vm0, %v1416_v39, 0.0  ;;  %v1399_v33 = vsel %vm822_vm0, %v1382_v21, 0.0 }
 0x377   : > { %v4874_v43 = vpop.eup %4873  ;;  %v1384_v47 = vmul.f32 %v4872_v40, %v5668_v44  ;;  %v1418_v48 = vmul.f32 %v4872_v40, %v5673_v45  ;;  %v1435_v56 = vadd.f32 %v1434_v46, %v1433_v34  ;;  %v1401_v62 = vadd.f32 %v1400_v36, %v1399_v33 }
 0x378   : > { %v1380_v32 = vmul.f32 %v4874_v43, %v5668_v44  ;;  %v1414_v49 = vmul.f32 %v4874_v43, %v5673_v45  ;;  %v1455_v36 = vmul.f32 %v5722_v15, %v5853_v54 }
 0x379   : > { %v1436_v52 = vsel %vm822_vm0, %v1418_v48, 0.0  ;;  %v1402_v17 = vsel %vm822_vm0, %v1384_v47, 0.0 }
 0x37a   : > { %v4876_v53 = vpop.eup %4875  ;;  %v1423_v57 = vsel %vm822_vm0, %v1414_v49, 0.0  ;;  %v1389_v3 = vsel %vm822_vm0, %v1380_v32, 0.0  ;;  %v1437_v7 = vadd.f32 %v1436_v52, %v1435_v56  ;;  %v1403_v11 = vadd.f32 %v1402_v17, %v1401_v62  ;;  %v5928_v62 = vld [vmem:[%s7804_s8] sm:$0xff] }
 0x37b   : > { %v4878_v61 = vpop.eup %4877  ;;  %v1385_v44 = vmul.f32 %v4876_v53, %v5690_v1  ;;  %v1419_v45 = vmul.f32 %v4876_v53, %v5695_v2  ;;  %v1424_v12 = vadd.f32 %v1423_v57, %v1422_v55  ;;  %v1390_v19 = vadd.f32 %v1389_v3, %v1388_v6  ;;  %v5922_v57 = vld [vmem:[%s7804_s8 + $0x8] sm:$0xff]  ;;  %v5940_v6 = vld [vmem:[%s7805_s9] sm:$0xff] }
 0x37c   : > { %v1381_v9 = vmul.f32 %v4878_v61, %v5690_v1  ;;  %v1415_v10 = vmul.f32 %v4878_v61, %v5695_v2  ;;  %v1456_v51 = vadd.f32 %v1455_v36, %v5729_v23 }
 0x37d   : > { %v1404_v14 = vsel %vm822_vm0, %v1385_v44, 0.0  ;;  %v1438_v18 = vsel %vm822_vm0, %v1419_v45, 0.0  ;;  %v5934_v44 = vld [vmem:[%s7805_s9 + $0x8] sm:$0xff] }
 0x37e   : > { %v1439_v38 = vadd.f32 %v1438_v18, %v1437_v7  ;;  %v1391_v20 = vsel %vm822_vm0, %v1381_v9, 0.0  ;;  %v1425_v22 = vsel %vm822_vm0, %v1415_v10, 0.0  ;;  %v1405_v5 = vadd.f32 %v1404_v14, %v1403_v11 }
 0x37f   : > { %v1426_v25 = vadd.f32 %v1425_v22, %v1424_v12  ;;  %v1392_v63 = vadd.f32 %v1391_v20, %v1390_v19  ;;  %v5950_v20 = vld [vmem:[%s7804_s8 + $0x10] sm:$0xff] }
 0x380   : > { %v1440_v26 = vrot.slane %v1439_v38, 4  ;;  %v1406_v2 = vrot.slane %v1405_v5, 4 }
 0x381   : > { %v1427_v8 = vrot.slane %v1426_v25, 4  ;;  %v1393_v28 = vrot.slane %v1392_v63, 4 }
 0x382   : > { %v1441_v1 = vadd.f32 %v1440_v26, %v1439_v38  ;;  %v1407_v16 = vadd.f32 %v1406_v2, %v1405_v5  ;;  %v5957_v5 = vld [vmem:[%s7805_s9 + $0x10] sm:$0xff] }
 0x383   : > { %v1428_v0 = vadd.f32 %v1427_v8, %v1426_v25  ;;  %v1394_v35 = vadd.f32 %v1393_v28, %v1392_v63 }
 0x384   : > { %v1442_v27 = vrot.slane %v1441_v1, 2  ;;  %v1408_v58 = vrot.slane %v1407_v16, 2 }
 0x385   : > { %v1429_v29 = vrot.slane %v1428_v0, 2  ;;  %v1395_v24 = vrot.slane %v1394_v35, 2 }
 0x386   : > { %v1443_v13 = vadd.f32 %v1442_v27, %v1441_v1  ;;  %v1409_v42 = vadd.f32 %v1408_v58, %v1407_v16 }
 0x387   : > { %v1430_v30 = vadd.f32 %v1429_v29, %v1428_v0  ;;  %v1396_v43 = vadd.f32 %v1395_v24, %v1394_v35  ;;  %v5964_v0 = vld [vmem:[%s7804_s8 + $0x18] sm:$0xff]  ;;  %v5978_v35 = vld [vmem:[%s7807_s11 + $0x8] sm:$0xff] }
 0x388   : > { %v1444_v31 = vrot.slane %v1443_v13, 1  ;;  %v1410_v34 = vrot.slane %v1409_v42, 1  ;;  %v5971_v29 = vld [vmem:[%s7805_s9 + $0x18] sm:$0xff] }
 0x389   : > { %v1431_v37 = vrot.slane %v1430_v30, 1  ;;  %v1397_v46 = vrot.slane %v1396_v43, 1 }
 0x38a   : > { %v1445_v21 = vadd.f32 %v1444_v31, %v1443_v13  ;;  %v1411_v48 = vadd.f32 %v1410_v34, %v1409_v42  ;;  %v5997_v42 = vld [vmem:[%s7806_s10] sm:$0xff] }
 0x38b   : > { %v1432_v39 = vadd.f32 %v1431_v37, %v1430_v30  ;;  %v1398_v47 = vadd.f32 %v1397_v46, %v1396_v43 }
 0x38d   : > { %v1448_v40 = vsel %vm1000_vm2, %v1445_v21, %v1432_v39  ;;  %v1459_v49 = vsel %vm1000_vm2, %v1411_v48, %v1398_v47  ;;  %v5984_v21 = vld [vmem:[%s7807_s11] sm:$0xff] }
 0x38e   : > { %v1450_v41 = vadd.f32 %v1448_v40, %v5715_v4  ;;  %v1461_v53 = vadd.f32 %v1459_v49, %v1456_v51  ;;  %v5991_v40 = vld [vmem:[%s7806_s10 + $0x8] sm:$0xff]  ;;  %v6010_v51 = vld [vmem:[%s7806_s10 + $0x10] sm:$0xff] }
 0x390   : > { %4879 = vrcp.f32 %v1450_v41 }
 0x39a   : > { %v4880_v33 = vpop.eup %4879 }
 0x39b   : > { %v1452_v32 = vmul.f32 %v4880_v33, %v1450_v41 }
 0x39d   : > { %v1453_v50 = vsub.f32 2.0, %v1452_v32 }
 0x39f   : > { %v1454_v52 = vmul.f32 %v4880_v33, %v1453_v50 }
 0x3a1   : > { %v5913_v55 = vmul.f32 %v1461_v53, %v1454_v52  ;;  %v6016_v53 = vld [vmem:[%s7807_s11 + $0x10] sm:$0xff] }
 0x3a3   : > { %v1466_v56 = vrot.slane %v5913_v55, %v5578_v60  ;;  %v1485_v17 = vrot.slane %v5913_v55, %v5576_v59 }
 0x3a5   : > { %1472 = vbcast.lane.b32.xlu1 %v1466_v56, 264  ;;  %1468 = vbcast.lane.b32.xlu0 %v1466_v56, 256 }
 0x3a9   : > { %1491 = vbcast.lane.b32.xlu1 %v1485_v17, 264  ;;  %1487 = vbcast.lane.b32.xlu0 %v1485_v17, 256 }
 0x3ad   : > { %1495 = vbcast.lane.b32.xlu1 %v1485_v17, 272  ;;  %1476 = vbcast.lane.b32.xlu0 %v1466_v56, 272 }
 0x3b1   : > { %1499 = vbcast.lane.b32.xlu1 %v1485_v17, 280  ;;  %1480 = vbcast.lane.b32.xlu0 %v1466_v56, 280 }
 0x417   : > { %v1473_v15 = vpop.permute.xlu1 %1472  ;;  %v1469_v54 = vpop.permute.xlu0 %1468 }
 0x418   : > { %v1502_v61 = vsub.f32 %v1473_v15, %v5922_v57  ;;  %v1501_v3 = vsub.f32 %v1469_v54, %v5928_v62 }
 0x41a   : > { %v1510_v45 = vmul.f32 %v5934_v44, %v1502_v61  ;;  %v1509_v7 = vmul.f32 %v5940_v6, %v1501_v3 }
 0x41b   : > { %v1492_v9 = vpop.permute.xlu1 %1491  ;;  %v1488_v10 = vpop.permute.xlu0 %1487 }
 0x41c   : > { %4881 = vtanh.f32 %v1510_v45  ;;  %v1506_v11 = vsub.f32 %v1492_v9, %v5922_v57  ;;  %v1505_v12 = vsub.f32 %v1488_v10, %v5928_v62 }
 0x41d   : > { %4883 = vtanh.f32 %v1509_v7 }
 0x41e   : > { %v1514_v14 = vmul.f32 %v5934_v44, %v1506_v11  ;;  %v1513_v18 = vmul.f32 %v5940_v6, %v1505_v12 }
 0x41f   : > { %v1496_v19 = vpop.permute.xlu1 %1495  ;;  %v1477_v38 = vpop.permute.xlu0 %1476 }
 0x420   : > { %4885 = vtanh.f32 %v1514_v14  ;;  %v1507_v22 = vsub.f32 %v1496_v19, %v5950_v20  ;;  %v1503_v25 = vsub.f32 %v1477_v38, %v5950_v20 }
 0x421   : > { %4887 = vtanh.f32 %v1513_v18 }
 0x422   : > { %v1515_v26 = vmul.f32 %v5957_v5, %v1507_v22  ;;  %v1511_v63 = vmul.f32 %v5957_v5, %v1503_v25  ;;  %v6032_v22 = vld [vmem:[%s7806_s10 + $0x18] sm:$0xff] }
 0x423   : > { %v1500_v8 = vpop.permute.xlu1 %1499  ;;  %v1481_v1 = vpop.permute.xlu0 %1480 }
 0x424   : > { %4889 = vtanh.f32 %v1515_v26  ;;  %v1508_v2 = vsub.f32 %v1500_v8, %v5964_v0  ;;  %v1504_v27 = vsub.f32 %v1481_v1, %v5964_v0  ;;  %v6038_v26 = vld [vmem:[%s7807_s11 + $0x18] sm:$0xff] }
 0x425   : > { %4891 = vtanh.f32 %v1511_v63 }
 0x426   : > { %v4882_v28 = vpop.eup %4881  ;;  %v1516_v13 = vmul.f32 %v5971_v29, %v1508_v2  ;;  %v1512_v30 = vmul.f32 %v5971_v29, %v1504_v27 }
 0x427   : > { %v4884_v16 = vpop.eup %4883  ;;  %v1560_v37 = vmul.f32 %v5978_v35, %v4882_v28  ;;  %v1526_v34 = vmul.f32 %v5991_v40, %v4882_v28 }
 0x428   : > { %4893 = vtanh.f32 %v1516_v13  ;;  %v1559_v39 = vmul.f32 %v5984_v21, %v4884_v16  ;;  %v1525_v47 = vmul.f32 %v5997_v42, %v4884_v16 }
 0x429   : > { %4895 = vtanh.f32 %v1512_v30  ;;  %v1568_v36 = vsel %vm822_vm0, %v1560_v37, 0.0  ;;  %v1534_v3 = vsel %vm822_vm0, %v1526_v34, 0.0 }
 0x42a   : > { %v4886_v31 = vpop.eup %4885  ;;  %v1567_v33 = vsel %vm822_vm0, %v1559_v39, 0.0  ;;  %v1533_v45 = vsel %vm822_vm0, %v1525_v47, 0.0 }
 0x42b   : > { %v4888_v58 = vpop.eup %4887  ;;  %v1564_v24 = vmul.f32 %v5978_v35, %v4886_v31  ;;  %v1530_v41 = vmul.f32 %v5991_v40, %v4886_v31  ;;  %v1569_v10 = vadd.f32 %v1568_v36, %v1567_v33  ;;  %v1535_v8 = vadd.f32 %v1534_v3, %v1533_v45 }
 0x42c   : > { %v1529_v43 = vmul.f32 %v5997_v42, %v4888_v58  ;;  %v1563_v46 = vmul.f32 %v5984_v21, %v4888_v58 }
 0x42d   : > { %v1581_v49 = vsel %vm822_vm0, %v1564_v24, 0.0  ;;  %v1547_v17 = vsel %vm822_vm0, %v1530_v41, 0.0 }
 0x42e   : > { %v4890_v48 = vpop.eup %4889  ;;  %v1580_v50 = vsel %vm822_vm0, %v1563_v46, 0.0  ;;  %v1546_v15 = vsel %vm822_vm0, %v1529_v43, 0.0 }
 0x42f   : > { %v4892_v32 = vpop.eup %4891  ;;  %v1531_v52 = vmul.f32 %v6010_v51, %v4890_v48  ;;  %v1565_v56 = vmul.f32 %v6016_v53, %v4890_v48  ;;  %v1582_v11 = vadd.f32 %v1581_v49, %v1580_v50  ;;  %v1548_v19 = vadd.f32 %v1547_v17, %v1546_v15 }
 0x430   : > { %v1527_v54 = vmul.f32 %v6010_v51, %v4892_v32  ;;  %v1561_v61 = vmul.f32 %v6016_v53, %v4892_v32 }
 0x431   : > { %v1583_v7 = vsel %vm822_vm0, %v1565_v56, 0.0  ;;  %v1549_v12 = vsel %vm822_vm0, %v1531_v52, 0.0 }
 0x432   : > { %v4894_v9 = vpop.eup %4893  ;;  %v1570_v14 = vsel %vm822_vm0, %v1561_v61, 0.0  ;;  %v1536_v38 = vsel %vm822_vm0, %v1527_v54, 0.0  ;;  %v1584_v1 = vadd.f32 %v1583_v7, %v1582_v11  ;;  %v1550_v28 = vadd.f32 %v1549_v12, %v1548_v19 }
 0x433   : > { %v4896_v18 = vpop.eup %4895  ;;  %v1532_v25 = vmul.f32 %v6032_v22, %v4894_v9  ;;  %v1566_v63 = vmul.f32 %v6038_v26, %v4894_v9  ;;  %v1571_v13 = vadd.f32 %v1570_v14, %v1569_v10  ;;  %v1537_v31 = vadd.f32 %v1536_v38, %v1535_v8 }
 0x434   : > { %v1528_v2 = vmul.f32 %v6032_v22, %v4896_v18  ;;  %v1562_v27 = vmul.f32 %v6038_v26, %v4896_v18 }
 0x435   : > { %v1551_v30 = vsel %vm822_vm0, %v1532_v25, 0.0  ;;  %v1585_v16 = vsel %vm822_vm0, %v1566_v63, 0.0  ;;  %v6052_v25 = vld [vmem:[%s7808_s12] ss:$0 sm:$0xff] }
 0x436   : > { %v1586_v37 = vadd.f32 %v1585_v16, %v1584_v1  ;;  %v1538_v39 = vsel %vm822_vm0, %v1528_v2, 0.0  ;;  %v1572_v58 = vsel %vm822_vm0, %v1562_v27, 0.0  ;;  %v1552_v41 = vadd.f32 %v1551_v30, %v1550_v28 }
 0x437   : > { %v1573_v24 = vadd.f32 %v1572_v58, %v1571_v13  ;;  %v1539_v46 = vadd.f32 %v1538_v39, %v1537_v31  ;;  %v1602_v63 = vmul.f32 %v6052_v25, %v5913_v55 }
 0x438   : > { %v1587_v43 = vrot.slane %v1586_v37, 4  ;;  %v1553_v36 = vrot.slane %v1552_v41, 4 }
 0x439   : > { %v1574_v34 = vrot.slane %v1573_v24, 4  ;;  %v1540_v32 = vrot.slane %v1539_v46, 4  ;;  %v1603_v28 = vadd.f32 %v1602_v63, %v5729_v23 }
 0x43a   : > { %v1588_v47 = vadd.f32 %v1587_v43, %v1586_v37  ;;  %v1554_v56 = vadd.f32 %v1553_v36, %v1552_v41 }
 0x43b   : > { %v1575_v48 = vadd.f32 %v1574_v34, %v1573_v24  ;;  %v1541_v15 = vadd.f32 %v1540_v32, %v1539_v46 }
 0x43c   : > { %v1589_v33 = vrot.slane %v1588_v47, 2  ;;  %v1555_v45 = vrot.slane %v1554_v56, 2 }
 0x43d   : > { %v1576_v49 = vrot.slane %v1575_v48, 2  ;;  %v1542_v7 = vrot.slane %v1541_v15, 2 }
 0x43e   : > { %v1590_v50 = vadd.f32 %v1589_v33, %v1588_v47  ;;  %v1556_v11 = vadd.f32 %v1555_v45, %v1554_v56 }
 0x43f   : > { %v1577_v52 = vadd.f32 %v1576_v49, %v1575_v48  ;;  %v1543_v12 = vadd.f32 %v1542_v7, %v1541_v15 }
 0x440   : > { %v1591_v17 = vrot.slane %v1590_v50, 1  ;;  %v1557_v18 = vrot.slane %v1556_v11, 1 }
 0x441   : > { %v1578_v54 = vrot.slane %v1577_v52, 1  ;;  %v1544_v14 = vrot.slane %v1543_v12, 1 }
 0x442   : > { %v1592_v61 = vadd.f32 %v1591_v17, %v1590_v50  ;;  %v1558_v38 = vadd.f32 %v1557_v18, %v1556_v11 }
 0x443   : > { %v1579_v3 = vadd.f32 %v1578_v54, %v1577_v52  ;;  %v1545_v19 = vadd.f32 %v1544_v14, %v1543_v12 }
 0x445   : > { %v1595_v9 = vsel %vm1000_vm2, %v1592_v61, %v1579_v3  ;;  %v1606_v2 = vsel %vm1000_vm2, %v1558_v38, %v1545_v19 }
 0x446   : > { %v1597_v10 = vadd.f32 %v1595_v9, %v5715_v4  ;;  %v1608_v30 = vadd.f32 %v1606_v2, %v1603_v28 }
 0x448   : > { %4897 = vrcp.f32 %v1597_v10 }
 0x452   : > { %v4898_v8 = vpop.eup %4897 }
 0x453   : > { %v1599_v1 = vmul.f32 %v4898_v8, %v1597_v10 }
 0x455   : > { %v1600_v27 = vsub.f32 2.0, %v1599_v1 }
 0x457   : > { %v1601_v13 = vmul.f32 %v4898_v8, %v1600_v27 }
 0x459   : > { %v6058_v16 = vmul.f32 %v1608_v30, %v1601_v13 }
 0x45b   : > { %v1613_v31 = vrot.slane %v6058_v16, %v5578_v60  ;;  %v1632_v37 = vrot.slane %v6058_v16, %v5576_v59 }
 0x45d   : > { %1619 = vbcast.lane.b32.xlu1 %v1613_v31, 264  ;;  %1615 = vbcast.lane.b32.xlu0 %v1613_v31, 256 }
 0x461   : > { %1638 = vbcast.lane.b32.xlu1 %v1632_v37, 264  ;;  %1634 = vbcast.lane.b32.xlu0 %v1632_v37, 256 }
 0x465   : > { %1642 = vbcast.lane.b32.xlu1 %v1632_v37, 272  ;;  %1623 = vbcast.lane.b32.xlu0 %v1613_v31, 272 }
 0x469   : > { %1646 = vbcast.lane.b32.xlu1 %v1632_v37, 280  ;;  %1627 = vbcast.lane.b32.xlu0 %v1613_v31, 280 }
 0x4cf   : > { %v1620_v55 = vpop.permute.xlu1 %1619  ;;  %v1616_v39 = vpop.permute.xlu0 %1615 }
 0x4d0   : > { %v1649_v58 = vsub.f32 %v1620_v55, %v5922_v57  ;;  %v1648_v24 = vsub.f32 %v1616_v39, %v5928_v62 }
 0x4d2   : > { %v1657_v41 = vmul.f32 %v5934_v44, %v1649_v58  ;;  %v1656_v43 = vmul.f32 %v5940_v6, %v1648_v24 }
 0x4d3   : > { %v1639_v46 = vpop.permute.xlu1 %1638  ;;  %v1635_v34 = vpop.permute.xlu0 %1634 }
 0x4d4   : > { %4899 = vtanh.f32 %v1657_v41  ;;  %v1653_v47 = vsub.f32 %v1639_v46, %v5922_v57  ;;  %v1652_v48 = vsub.f32 %v1635_v34, %v5928_v62 }
 0x4d5   : > { %4901 = vtanh.f32 %v1656_v43 }
 0x4d6   : > { %v1661_v36 = vmul.f32 %v5934_v44, %v1653_v47  ;;  %v1660_v33 = vmul.f32 %v5940_v6, %v1652_v48 }
 0x4d7   : > { %v1643_v32 = vpop.permute.xlu1 %1642  ;;  %v1624_v49 = vpop.permute.xlu0 %1623 }
 0x4d8   : > { %4903 = vtanh.f32 %v1661_v36  ;;  %v1654_v50 = vsub.f32 %v1643_v32, %v5950_v20  ;;  %v1650_v52 = vsub.f32 %v1624_v49, %v5950_v20 }
 0x4d9   : > { %4905 = vtanh.f32 %v1660_v33 }
 0x4da   : > { %v1662_v56 = vmul.f32 %v5957_v5, %v1654_v50  ;;  %v1658_v17 = vmul.f32 %v5957_v5, %v1650_v52 }
 0x4db   : > { %v1647_v57 = vpop.permute.xlu1 %1646  ;;  %v1628_v15 = vpop.permute.xlu0 %1627 }
 0x4dc   : > { %4907 = vtanh.f32 %v1662_v56  ;;  %v1655_v62 = vsub.f32 %v1647_v57, %v5964_v0  ;;  %v1651_v44 = vsub.f32 %v1628_v15, %v5964_v0 }
 0x4dd   : > { %4909 = vtanh.f32 %v1658_v17 }
 0x4de   : > { %v4900_v6 = vpop.eup %4899  ;;  %v1663_v54 = vmul.f32 %v5971_v29, %v1655_v62  ;;  %v1659_v61 = vmul.f32 %v5971_v29, %v1651_v44 }
 0x4df   : > { %v4902_v3 = vpop.eup %4901  ;;  %v1707_v45 = vmul.f32 %v5978_v35, %v4900_v6  ;;  %v1673_v12 = vmul.f32 %v5991_v40, %v4900_v6 }
 0x4e0   : > { %4911 = vtanh.f32 %v1663_v54  ;;  %v1706_v5 = vmul.f32 %v5984_v21, %v4902_v3  ;;  %v1672_v29 = vmul.f32 %v5997_v42, %v4902_v3 }
 0x4e1   : > { %4913 = vtanh.f32 %v1659_v61  ;;  %v1715_v18 = vsel %vm822_vm0, %v1707_v45, 0.0  ;;  %v1681_v27 = vsel %vm822_vm0, %v1673_v12, 0.0 }
 0x4e2   : > { %v4904_v20 = vpop.eup %4903  ;;  %v1714_v19 = vsel %vm822_vm0, %v1706_v5, 0.0  ;;  %v1680_v28 = vsel %vm822_vm0, %v1672_v29, 0.0 }
 0x4e3   : > { %v4906_v7 = vpop.eup %4905  ;;  %v1711_v9 = vmul.f32 %v5978_v35, %v4904_v20  ;;  %v1677_v10 = vmul.f32 %v5991_v40, %v4904_v20  ;;  %v1716_v31 = vadd.f32 %v1715_v18, %v1714_v19  ;;  %v1682_v43 = vadd.f32 %v1681_v27, %v1680_v28 }
 0x4e4   : > { %v1676_v0 = vmul.f32 %v5997_v42, %v4906_v7  ;;  %v1710_v11 = vmul.f32 %v5984_v21, %v4906_v7 }
 0x4e5   : > { %v1728_v63 = vsel %vm822_vm0, %v1711_v9, 0.0  ;;  %v1694_v21 = vsel %vm822_vm0, %v1677_v10, 0.0 }
 0x4e6   : > { %v4908_v14 = vpop.eup %4907  ;;  %v1727_v35 = vsel %vm822_vm0, %v1710_v11, 0.0  ;;  %v1693_v40 = vsel %vm822_vm0, %v1676_v0, 0.0 }
 0x4e7   : > { %v4910_v38 = vpop.eup %4909  ;;  %v1678_v8 = vmul.f32 %v6010_v51, %v4908_v14  ;;  %v1712_v1 = vmul.f32 %v6016_v53, %v4908_v14  ;;  %v1729_v37 = vadd.f32 %v1728_v63, %v1727_v35  ;;  %v1695_v24 = vadd.f32 %v1694_v21, %v1693_v40 }
 0x4e8   : > { %v1674_v42 = vmul.f32 %v6010_v51, %v4910_v38  ;;  %v1708_v2 = vmul.f32 %v6016_v53, %v4910_v38  ;;  %v1749_v21 = vmul.f32 %v6052_v25, %v6058_v16 }
 0x4e9   : > { %v1730_v13 = vsel %vm822_vm0, %v1712_v1, 0.0  ;;  %v1696_v55 = vsel %vm822_vm0, %v1678_v8, 0.0 }
 0x4ea   : > { %v4912_v30 = vpop.eup %4911  ;;  %v1717_v39 = vsel %vm822_vm0, %v1708_v2, 0.0  ;;  %v1683_v41 = vsel %vm822_vm0, %v1674_v42, 0.0  ;;  %v1731_v46 = vadd.f32 %v1730_v13, %v1729_v37  ;;  %v1697_v48 = vadd.f32 %v1696_v55, %v1695_v24  ;;  %v6134_v37 = vld [vmem:[%s7804_s8] sm:$0xff]  ;;  %v6139_v55 = vld [vmem:[%s7805_s9 + $0x8] sm:$0xff] }
 0x4eb   : > { %v4914_v58 = vpop.eup %4913  ;;  %v1679_v51 = vmul.f32 %v6032_v22, %v4912_v30  ;;  %v1713_v53 = vmul.f32 %v6038_v26, %v4912_v30  ;;  %v1718_v36 = vadd.f32 %v1717_v39, %v1716_v31  ;;  %v1684_v49 = vadd.f32 %v1683_v41, %v1682_v43 }
 0x4ec   : > { %v1675_v34 = vmul.f32 %v6032_v22, %v4914_v58  ;;  %v1709_v47 = vmul.f32 %v6038_v26, %v4914_v58  ;;  %v1750_v27 = vadd.f32 %v1749_v21, %v5729_v23  ;;  %v6129_v23 = vld [vmem:[%s7804_s8 + $0x8] sm:$0xff]  ;;  %v6144_v58 = vld [vmem:[%s7805_s9] sm:$0xff] }
 0x4ed   : > { %v1698_v33 = vsel %vm822_vm0, %v1679_v51, 0.0  ;;  %v1732_v32 = vsel %vm822_vm0, %v1713_v53, 0.0 }
 0x4ee   : > { %v1733_v50 = vadd.f32 %v1732_v32, %v1731_v46  ;;  %v1685_v52 = vsel %vm822_vm0, %v1675_v34, 0.0  ;;  %v1719_v56 = vsel %vm822_vm0, %v1709_v47, 0.0  ;;  %v1699_v57 = vadd.f32 %v1698_v33, %v1697_v48 }
 0x4ef   : > { %v1720_v17 = vadd.f32 %v1719_v56, %v1718_v36  ;;  %v1686_v62 = vadd.f32 %v1685_v52, %v1684_v49  ;;  %v6155_v36 = vld [vmem:[%s7804_s8 + $0x10] sm:$0xff] }
 0x4f0   : > { %v1734_v15 = vrot.slane %v1733_v50, 4  ;;  %v1700_v26 = vrot.slane %v1699_v57, 4  ;;  %v6162_v49 = vld [vmem:[%s7805_s9 + $0x10] sm:$0xff] }
 0x4f1   : > { %v1721_v44 = vrot.slane %v1720_v17, 4  ;;  %v1687_v61 = vrot.slane %v1686_v62, 4 }
 0x4f2   : > { %v1735_v22 = vadd.f32 %v1734_v15, %v1733_v50  ;;  %v1701_v5 = vadd.f32 %v1700_v26, %v1699_v57  ;;  %v6169_v57 = vld [vmem:[%s7804_s8 + $0x18] sm:$0xff] }
 0x4f3   : > { %v1722_v6 = vadd.f32 %v1721_v44, %v1720_v17  ;;  %v1688_v9 = vadd.f32 %v1687_v61, %v1686_v62  ;;  %v6176_v44 = vld [vmem:[%s7805_s9 + $0x18] sm:$0xff] }
 0x4f4   : > { %v1736_v54 = vrot.slane %v1735_v22, 2  ;;  %v1702_v12 = vrot.slane %v1701_v5, 2 }
 0x4f5   : > { %v1723_v3 = vrot.slane %v1722_v6, 2  ;;  %v1689_v29 = vrot.slane %v1688_v9, 2 }
 0x4f6   : > { %v1737_v20 = vadd.f32 %v1736_v54, %v1735_v22  ;;  %v1703_v19 = vadd.f32 %v1702_v12, %v1701_v5  ;;  %v6185_v5 = vld [vmem:[%s7807_s11 + $0x8] sm:$0xff] }
 0x4f7   : > { %v1724_v45 = vadd.f32 %v1723_v3, %v1722_v6  ;;  %v1690_v38 = vadd.f32 %v1689_v29, %v1688_v9 }
 0x4f8   : > { %v1738_v7 = vrot.slane %v1737_v20, 1  ;;  %v1704_v63 = vrot.slane %v1703_v19, 1 }
 0x4f9   : > { %v1725_v10 = vrot.slane %v1724_v45, 1  ;;  %v1691_v35 = vrot.slane %v1690_v38, 1 }
 0x4fa   : > { %v1739_v0 = vadd.f32 %v1738_v7, %v1737_v20  ;;  %v1705_v8 = vadd.f32 %v1704_v63, %v1703_v19  ;;  %v6190_v7 = vld [vmem:[%s7807_s11] sm:$0xff]  ;;  %v6211_v63 = vld [vmem:[%s7806_s10 + $0x10] sm:$0xff] }
 0x4fb   : > { %v1726_v11 = vadd.f32 %v1725_v10, %v1724_v45  ;;  %v1692_v1 = vadd.f32 %v1691_v35, %v1690_v38  ;;  %v6195_v10 = vld [vmem:[%s7806_s10 + $0x8] sm:$0xff]  ;;  %v6216_v35 = vld [vmem:[%s7807_s11 + $0x10] sm:$0xff] }
 0x4fd   : > { %v1742_v14 = vsel %vm1000_vm2, %v1739_v0, %v1726_v11  ;;  %v1753_v2 = vsel %vm1000_vm2, %v1705_v8, %v1692_v1  ;;  %v6201_v11 = vld [vmem:[%s7806_s10] sm:$0xff] }
 0x4fe   : > { %v1744_v18 = vadd.f32 %v1742_v14, %v5715_v4  ;;  %v1755_v30 = vadd.f32 %v1753_v2, %v1750_v27 }
 0x500   : > { %4915 = vrcp.f32 %v1744_v18 }
 0x50a   : > { %v4916_v40 = vpop.eup %4915 }
 0x50b   : > { %v1746_v42 = vmul.f32 %v4916_v40, %v1744_v18 }
 0x50d   : > { %v1747_v28 = vsub.f32 2.0, %v1746_v42 }
 0x50f   : > { %v1748_v13 = vmul.f32 %v4916_v40, %v1747_v28 }
 0x511   : > { %v6118_v4 = vmul.f32 %v1755_v30, %v1748_v13 }
 0x513   : > { %v1766_v31 = vrot.slane %v6118_v4, %v5578_v60  ;;  %1758 = vst.msk [vmem:[#allocation4] sm:$0x3] %vm1757_vm3, %v6118_v4  ;;  %v1785_v16 = vrot.slane %v6118_v4, %v5576_v59 }
 0x515   : > { %1772 = vbcast.lane.b32.xlu1 %v1766_v31, 264  ;;  %1768 = vbcast.lane.b32.xlu0 %v1766_v31, 256 }
 0x519   : > { %1791 = vbcast.lane.b32.xlu1 %v1785_v16, 264  ;;  %1787 = vbcast.lane.b32.xlu0 %v1785_v16, 256 }
 0x51d   : > { %1795 = vbcast.lane.b32.xlu1 %v1785_v16, 272  ;;  %1776 = vbcast.lane.b32.xlu0 %v1766_v31, 272 }
 0x521   : > { %1799 = vbcast.lane.b32.xlu1 %v1785_v16, 280  ;;  %1780 = vbcast.lane.b32.xlu0 %v1766_v31, 280 }
 0x587   : > { %v1773_v39 = vpop.permute.xlu1 %1772  ;;  %v1769_v24 = vpop.permute.xlu0 %1768 }
 0x588   : > { %v1806_v41 = vsub.f32 %v1773_v39, %v6129_v23  ;;  %v1805_v51 = vsub.f32 %v1769_v24, %v6134_v37 }
 0x58a   : > { %v1818_v53 = vmul.f32 %v6139_v55, %v1806_v41  ;;  %v1817_v43 = vmul.f32 %v6144_v58, %v1805_v51  ;;  %v6233_v41 = vld [vmem:[%s7806_s10 + $0x18] sm:$0xff] }
 0x58b   : > { %v1792_v46 = vpop.permute.xlu1 %1791  ;;  %v1788_v34 = vpop.permute.xlu0 %1787  ;;  %v6238_v51 = vld [vmem:[%s7807_s11 + $0x18] sm:$0xff] }
 0x58c   : > { %4917 = vtanh.f32 %v1818_v53  ;;  %v1810_v47 = vsub.f32 %v1792_v46, %v6129_v23  ;;  %v1809_v48 = vsub.f32 %v1788_v34, %v6134_v37 }
 0x58d   : > { %4919 = vtanh.f32 %v1817_v43 }
 0x58e   : > { %v1822_v33 = vmul.f32 %v6139_v55, %v1810_v47  ;;  %v1821_v32 = vmul.f32 %v6144_v58, %v1809_v48 }
 0x58f   : > { %v1796_v50 = vpop.permute.xlu1 %1795  ;;  %v1777_v52 = vpop.permute.xlu0 %1776 }
 0x590   : > { %4921 = vtanh.f32 %v1822_v33  ;;  %v1811_v56 = vsub.f32 %v1796_v50, %v6155_v36  ;;  %v1807_v17 = vsub.f32 %v1777_v52, %v6155_v36 }
 0x591   : > { %4923 = vtanh.f32 %v1821_v32 }
 0x592   : > { %v1823_v15 = vmul.f32 %v6162_v49, %v1811_v56  ;;  %v1819_v62 = vmul.f32 %v6162_v49, %v1807_v17 }
 0x593   : > { %v1800_v22 = vpop.permute.xlu1 %1799  ;;  %v1781_v6 = vpop.permute.xlu0 %1780 }
 0x594   : > { %4925 = vtanh.f32 %v1823_v15  ;;  %v1812_v26 = vsub.f32 %v1800_v22, %v6169_v57  ;;  %v1808_v54 = vsub.f32 %v1781_v6, %v6169_v57 }
 0x595   : > { %4927 = vtanh.f32 %v1819_v62 }
 0x596   : > { %v4918_v61 = vpop.eup %4917  ;;  %v1824_v3 = vmul.f32 %v6176_v44, %v1812_v26  ;;  %v1820_v20 = vmul.f32 %v6176_v44, %v1808_v54 }
 0x597   : > { %v4920_v45 = vpop.eup %4919  ;;  %v1876_v0 = vmul.f32 %v4918_v61, %v6185_v5  ;;  %v1838_v8 = vmul.f32 %v4918_v61, %v6195_v10 }
 0x598   : > { %4929 = vtanh.f32 %v1824_v3  ;;  %v1875_v12 = vmul.f32 %v4920_v45, %v6190_v7  ;;  %v1837_v1 = vmul.f32 %v4920_v45, %v6201_v11 }
 0x599   : > { %4931 = vtanh.f32 %v1820_v20  ;;  %v1884_v40 = vsel %vm822_vm0, %v1876_v0, 0.0  ;;  %v1846_v53 = vsel %vm822_vm0, %v1838_v8, 0.0 }
 0x59a   : > { %v4922_v9 = vpop.eup %4921  ;;  %v1883_v42 = vsel %vm822_vm0, %v1875_v12, 0.0  ;;  %v1845_v43 = vsel %vm822_vm0, %v1837_v1, 0.0 }
 0x59b   : > { %v4924_v29 = vpop.eup %4923  ;;  %v1880_v14 = vmul.f32 %v4922_v9, %v6185_v5  ;;  %v1842_v18 = vmul.f32 %v4922_v9, %v6195_v10  ;;  %v1885_v47 = vadd.f32 %v1884_v40, %v1883_v42  ;;  %v1847_v62 = vadd.f32 %v1846_v53, %v1845_v43  ;;  %v5258_v53 = vld [vmem:[%s7810_s14] ss:$0 sm:$0xff] }
 0x59c   : > { %v1841_v19 = vmul.f32 %v4924_v29, %v6201_v11  ;;  %v1879_v38 = vmul.f32 %v4924_v29, %v6190_v7 }
 0x59d   : > { %v1897_v27 = vsel %vm822_vm0, %v1880_v14, 0.0  ;;  %v1859_v31 = vsel %vm822_vm0, %v1842_v18, 0.0 }
 0x59e   : > { %v4926_v21 = vpop.eup %4925  ;;  %v1896_v28 = vsel %vm822_vm0, %v1879_v38, 0.0  ;;  %v1858_v16 = vsel %vm822_vm0, %v1841_v19, 0.0 }
 0x59f   : > { %v4928_v2 = vpop.eup %4927  ;;  %v1843_v13 = vmul.f32 %v4926_v21, %v6211_v63  ;;  %v1881_v30 = vmul.f32 %v4926_v21, %v6216_v35  ;;  %v1898_v48 = vadd.f32 %v1897_v27, %v1896_v28  ;;  %v1860_v52 = vadd.f32 %v1859_v31, %v1858_v16 }
 0x5a0   : > { %v1839_v39 = vmul.f32 %v4928_v2, %v6211_v63  ;;  %v1877_v24 = vmul.f32 %v4928_v2, %v6216_v35 }
 0x5a1   : > { %v1899_v46 = vsel %vm822_vm0, %v1881_v30, 0.0  ;;  %v1861_v33 = vsel %vm822_vm0, %v1843_v13, 0.0  ;;  %v1761_v13 = vld [vmem:[#allocation3 + $0x2] sm:$0x3] }
 0x5a2   : > { %v4930_v34 = vpop.eup %4929  ;;  %v1886_v32 = vsel %vm822_vm0, %v1877_v24, 0.0  ;;  %v1848_v56 = vsel %vm822_vm0, %v1839_v39, 0.0  ;;  %v1900_v22 = vadd.f32 %v1899_v46, %v1898_v48  ;;  %v1862_v54 = vadd.f32 %v1861_v33, %v1860_v52 }
 0x5a3   : > { %v4932_v50 = vpop.eup %4931  ;;  %v1844_v17 = vmul.f32 %v4930_v34, %v6233_v41  ;;  %v1882_v15 = vmul.f32 %v4930_v34, %v6238_v51  ;;  %v1887_v61 = vadd.f32 %v1886_v32, %v1885_v47  ;;  %v1849_v45 = vadd.f32 %v1848_v56, %v1847_v62 }
 0x5a4   : > { %v1840_v6 = vmul.f32 %v4932_v50, %v6233_v41  ;;  %v1878_v26 = vmul.f32 %v4932_v50, %v6238_v51  ;;  %v6257_v43 = vadd.f32 %v5258_v53, %v1761_v13 }
 0x5a5   : > { %v1863_v3 = vsel %vm822_vm0, %v1844_v17, 0.0  ;;  %v1901_v20 = vsel %vm822_vm0, %v1882_v15, 0.0  ;;  %v1759_v17 = vld [vmem:[#allocation2 + $0x2] sm:$0x3] }
 0x5a6   : > { %v1902_v9 = vadd.f32 %v1901_v20, %v1900_v22  ;;  %v1850_v0 = vsel %vm822_vm0, %v1840_v6, 0.0  ;;  %v1888_v12 = vsel %vm822_vm0, %v1878_v26, 0.0  ;;  %v1864_v14 = vadd.f32 %v1863_v3, %v1862_v54  ;;  %v5259_v22 = vld [vmem:[%s7809_s13] ss:$0 sm:$0xff] }
 0x5a7   : > { %v1889_v29 = vadd.f32 %v1888_v12, %v1887_v61  ;;  %v1851_v19 = vadd.f32 %v1850_v0, %v1849_v45  ;;  %v6264_v6 = vadd.f32 %v5259_v22, %v1759_v17  ;;  %v1918_v26 = vmul.f32 %v6052_v25, %v6118_v4 }
 0x5a8   : > { %v1903_v18 = vrot.slane %v1902_v9, 4  ;;  %v1865_v21 = vrot.slane %v1864_v14, 4 }
 0x5a9   : > { %v1890_v38 = vrot.slane %v1889_v29, 4  ;;  %v1852_v42 = vrot.slane %v1851_v19, 4  ;;  %v1919_v45 = vadd.f32 %v1918_v26, %v6264_v6 }
 0x5aa   : > { %v1904_v8 = vadd.f32 %v1903_v18, %v1902_v9  ;;  %v1866_v30 = vadd.f32 %v1865_v21, %v1864_v14 }
 0x5ab   : > { %v1891_v1 = vadd.f32 %v1890_v38, %v1889_v29  ;;  %v1853_v16 = vadd.f32 %v1852_v42, %v1851_v19 }
 0x5ac   : > { %v1905_v40 = vrot.slane %v1904_v8, 2  ;;  %v1867_v34 = vrot.slane %v1866_v30, 2 }
 0x5ad   : > { %v1892_v2 = vrot.slane %v1891_v1, 2  ;;  %v1854_v47 = vrot.slane %v1853_v16, 2 }
 0x5ae   : > { %v1906_v27 = vadd.f32 %v1905_v40, %v1904_v8  ;;  %v1868_v32 = vadd.f32 %v1867_v34, %v1866_v30 }
 0x5af   : > { %v1893_v28 = vadd.f32 %v1892_v2, %v1891_v1  ;;  %v1855_v50 = vadd.f32 %v1854_v47, %v1853_v16 }
 0x5b0   : > { %v1907_v31 = vrot.slane %v1906_v27, 1  ;;  %v1869_v56 = vrot.slane %v1868_v32, 1 }
 0x5b1   : > { %v1894_v39 = vrot.slane %v1893_v28, 1  ;;  %v1856_v52 = vrot.slane %v1855_v50, 1 }
 0x5b2   : > { %v1908_v24 = vadd.f32 %v1907_v31, %v1906_v27  ;;  %v1870_v62 = vadd.f32 %v1869_v56, %v1868_v32 }
 0x5b3   : > { %v1895_v46 = vadd.f32 %v1894_v39, %v1893_v28  ;;  %v1857_v15 = vadd.f32 %v1856_v52, %v1855_v50 }
 0x5b5   : > { %v1911_v48 = vsel %vm1000_vm2, %v1908_v24, %v1895_v46  ;;  %v1922_v3 = vsel %vm1000_vm2, %v1870_v62, %v1857_v15 }
 0x5b6   : > { %v1913_v33 = vadd.f32 %v1911_v48, %v6257_v43  ;;  %v1924_v0 = vadd.f32 %v1922_v3, %v1919_v45 }
 0x5b8   : > { %4933 = vrcp.f32 %v1913_v33 }
 0x5c2   : > { %v4934_v54 = vpop.eup %4933 }
 0x5c3   : > { %v1915_v61 = vmul.f32 %v4934_v54, %v1913_v33 }
 0x5c5   : > { %v1916_v20 = vsub.f32 2.0, %v1915_v61 }
 0x5c7   : > { %v1917_v9 = vmul.f32 %v4934_v54, %v1916_v20 }
 0x5c9   : > { %v6270_v12 = vmul.f32 %v1924_v0, %v1917_v9 }
 0x5cb   : > { %v1929_v29 = vrot.slane %v6270_v12, %v5578_v60  ;;  %v1948_v14 = vrot.slane %v6270_v12, %v5576_v59 }
 0x5cd   : > { %1935 = vbcast.lane.b32.xlu1 %v1929_v29, 264  ;;  %1931 = vbcast.lane.b32.xlu0 %v1929_v29, 256 }
 0x5d1   : > { %1954 = vbcast.lane.b32.xlu1 %v1948_v14, 264  ;;  %1950 = vbcast.lane.b32.xlu0 %v1948_v14, 256 }
 0x5d5   : > { %1958 = vbcast.lane.b32.xlu1 %v1948_v14, 272  ;;  %1939 = vbcast.lane.b32.xlu0 %v1929_v29, 272 }
 0x5d9   : > { %1962 = vbcast.lane.b32.xlu1 %v1948_v14, 280  ;;  %1943 = vbcast.lane.b32.xlu0 %v1929_v29, 280 }
 0x63f   : > { %v1936_v4 = vpop.permute.xlu1 %1935  ;;  %v1932_v18 = vpop.permute.xlu0 %1931 }
 0x640   : > { %v1965_v19 = vsub.f32 %v1936_v4, %v6129_v23  ;;  %v1964_v38 = vsub.f32 %v1932_v18, %v6134_v37 }
 0x642   : > { %v1973_v8 = vmul.f32 %v1965_v19, %v6139_v55  ;;  %v1972_v1 = vmul.f32 %v1964_v38, %v6144_v58 }
 0x643   : > { %v1955_v21 = vpop.permute.xlu1 %1954  ;;  %v1951_v40 = vpop.permute.xlu0 %1950 }
 0x644   : > { %4935 = vtanh.f32 %v1973_v8  ;;  %v1969_v42 = vsub.f32 %v1955_v21, %v6129_v23  ;;  %v1968_v2 = vsub.f32 %v1951_v40, %v6134_v37 }
 0x645   : > { %4937 = vtanh.f32 %v1972_v1 }
 0x646   : > { %v1977_v27 = vmul.f32 %v1969_v42, %v6139_v55  ;;  %v1976_v28 = vmul.f32 %v1968_v2, %v6144_v58 }
 0x647   : > { %v1959_v13 = vpop.permute.xlu1 %1958  ;;  %v1940_v30 = vpop.permute.xlu0 %1939 }
 0x648   : > { %4939 = vtanh.f32 %v1977_v27  ;;  %v1970_v31 = vsub.f32 %v1959_v13, %v6155_v36  ;;  %v1966_v16 = vsub.f32 %v1940_v30, %v6155_v36 }
 0x649   : > { %4941 = vtanh.f32 %v1976_v28 }
 0x64a   : > { %v1978_v39 = vmul.f32 %v1970_v31, %v6162_v49  ;;  %v1974_v24 = vmul.f32 %v1966_v16, %v6162_v49 }
 0x64b   : > { %v1963_v53 = vpop.permute.xlu1 %1962  ;;  %v1944_v46 = vpop.permute.xlu0 %1943 }
 0x64c   : > { %4943 = vtanh.f32 %v1978_v39  ;;  %v1971_v34 = vsub.f32 %v1963_v53, %v6169_v57  ;;  %v1967_v47 = vsub.f32 %v1944_v46, %v6169_v57 }
 0x64d   : > { %4945 = vtanh.f32 %v1974_v24 }
 0x64e   : > { %v4936_v48 = vpop.eup %4935  ;;  %v1979_v33 = vmul.f32 %v1971_v34, %v6176_v44  ;;  %v1975_v32 = vmul.f32 %v1967_v47, %v6176_v44 }
 0x64f   : > { %v4938_v50 = vpop.eup %4937  ;;  %v2023_v56 = vmul.f32 %v4936_v48, %v6185_v5  ;;  %v1989_v61 = vmul.f32 %v4936_v48, %v6195_v10 }
 0x650   : > { %4947 = vtanh.f32 %v1979_v33  ;;  %v2022_v17 = vmul.f32 %v4938_v50, %v6190_v7  ;;  %v1988_v3 = vmul.f32 %v4938_v50, %v6201_v11 }
 0x651   : > { %4949 = vtanh.f32 %v1975_v32  ;;  %v2031_v45 = vsel %vm822_vm0, %v2023_v56, 0.0  ;;  %v1997_v21 = vsel %vm822_vm0, %v1989_v61, 0.0 }
 0x652   : > { %v4940_v52 = vpop.eup %4939  ;;  %v2030_v9 = vsel %vm822_vm0, %v2022_v17, 0.0  ;;  %v1996_v40 = vsel %vm822_vm0, %v1988_v3, 0.0 }
 0x653   : > { %v4942_v15 = vpop.eup %4941  ;;  %v2027_v62 = vmul.f32 %v4940_v52, %v6185_v5  ;;  %v1993_v22 = vmul.f32 %v4940_v52, %v6195_v10  ;;  %v2032_v27 = vadd.f32 %v2031_v45, %v2030_v9  ;;  %v1998_v46 = vadd.f32 %v1997_v21, %v1996_v40 }
 0x654   : > { %v1992_v26 = vmul.f32 %v4942_v15, %v6201_v11  ;;  %v2026_v54 = vmul.f32 %v4942_v15, %v6190_v7 }
 0x655   : > { %v2044_v29 = vsel %vm822_vm0, %v2027_v62, 0.0  ;;  %v2010_v19 = vsel %vm822_vm0, %v1993_v22, 0.0 }
 0x656   : > { %v4944_v20 = vpop.eup %4943  ;;  %v2043_v14 = vsel %vm822_vm0, %v2026_v54, 0.0  ;;  %v2009_v38 = vsel %vm822_vm0, %v1992_v26, 0.0 }
 0x657   : > { %v4946_v0 = vpop.eup %4945  ;;  %v1994_v4 = vmul.f32 %v4944_v20, %v6211_v63  ;;  %v2028_v18 = vmul.f32 %v4944_v20, %v6216_v35  ;;  %v2045_v28 = vadd.f32 %v2044_v29, %v2043_v14  ;;  %v2011_v16 = vadd.f32 %v2010_v19, %v2009_v38 }
 0x658   : > { %v1990_v8 = vmul.f32 %v4946_v0, %v6211_v63  ;;  %v2024_v1 = vmul.f32 %v4946_v0, %v6216_v35 }
 0x659   : > { %v2046_v42 = vsel %vm822_vm0, %v2028_v18, 0.0  ;;  %v2012_v13 = vsel %vm822_vm0, %v1994_v4, 0.0 }
 0x65a   : > { %v4948_v2 = vpop.eup %4947  ;;  %v2033_v30 = vsel %vm822_vm0, %v2024_v1, 0.0  ;;  %v1999_v39 = vsel %vm822_vm0, %v1990_v8, 0.0  ;;  %v2047_v34 = vadd.f32 %v2046_v42, %v2045_v28  ;;  %v2013_v33 = vadd.f32 %v2012_v13, %v2011_v16 }
 0x65b   : > { %v4950_v31 = vpop.eup %4949  ;;  %v1995_v24 = vmul.f32 %v4948_v2, %v6233_v41  ;;  %v2029_v53 = vmul.f32 %v4948_v2, %v6238_v51  ;;  %v2034_v32 = vadd.f32 %v2033_v30, %v2032_v27  ;;  %v2000_v56 = vadd.f32 %v1999_v39, %v1998_v46 }
 0x65c   : > { %v1991_v47 = vmul.f32 %v4950_v31, %v6233_v41  ;;  %v2025_v48 = vmul.f32 %v4950_v31, %v6238_v51 }
 0x65d   : > { %v2014_v50 = vsel %vm822_vm0, %v1995_v24, 0.0  ;;  %v2048_v52 = vsel %vm822_vm0, %v2029_v53, 0.0  ;;  %v2065_v53 = vmul.f32 %v6052_v25, %v6270_v12 }
 0x65e   : > { %v2049_v17 = vadd.f32 %v2048_v52, %v2047_v34  ;;  %v2001_v15 = vsel %vm822_vm0, %v1991_v47, 0.0  ;;  %v2035_v62 = vsel %vm822_vm0, %v2025_v48, 0.0  ;;  %v2015_v26 = vadd.f32 %v2014_v50, %v2013_v33 }
 0x65f   : > { %v2036_v22 = vadd.f32 %v2035_v62, %v2034_v32  ;;  %v2002_v61 = vadd.f32 %v2001_v15, %v2000_v56  ;;  %v2066_v33 = vadd.f32 %v2065_v53, %v6264_v6 }
 0x660   : > { %v2050_v54 = vrot.slane %v2049_v17, 4  ;;  %v2016_v9 = vrot.slane %v2015_v26, 4 }
 0x661   : > { %v2037_v3 = vrot.slane %v2036_v22, 4  ;;  %v2003_v29 = vrot.slane %v2002_v61, 4 }
 0x662   : > { %v2051_v20 = vadd.f32 %v2050_v54, %v2049_v17  ;;  %v2017_v19 = vadd.f32 %v2016_v9, %v2015_v26 }
 0x663   : > { %v2038_v45 = vadd.f32 %v2037_v3, %v2036_v22  ;;  %v2004_v8 = vadd.f32 %v2003_v29, %v2002_v61 }
 0x664   : > { %v2052_v0 = vrot.slane %v2051_v20, 2  ;;  %v2018_v42 = vrot.slane %v2017_v19, 2 }
 0x665   : > { %v2039_v14 = vrot.slane %v2038_v45, 2  ;;  %v2005_v2 = vrot.slane %v2004_v8, 2 }
 0x666   : > { %v2053_v4 = vadd.f32 %v2052_v0, %v2051_v20  ;;  %v2019_v13 = vadd.f32 %v2018_v42, %v2017_v19 }
 0x667   : > { %v2040_v18 = vadd.f32 %v2039_v14, %v2038_v45  ;;  %v2006_v30 = vadd.f32 %v2005_v2, %v2004_v8 }
 0x668   : > { %v2054_v38 = vrot.slane %v2053_v4, 1  ;;  %v2020_v16 = vrot.slane %v2019_v13, 1 }
 0x669   : > { %v2041_v1 = vrot.slane %v2040_v18, 1  ;;  %v2007_v31 = vrot.slane %v2006_v30, 1 }
 0x66a   : > { %v2055_v21 = vadd.f32 %v2054_v38, %v2053_v4  ;;  %v2021_v24 = vadd.f32 %v2020_v16, %v2019_v13 }
 0x66b   : > { %v2042_v40 = vadd.f32 %v2041_v1, %v2040_v18  ;;  %v2008_v39 = vadd.f32 %v2007_v31, %v2006_v30 }
 0x66d   : > { %v2058_v27 = vsel %vm1000_vm2, %v2055_v21, %v2042_v40  ;;  %v2069_v47 = vsel %vm1000_vm2, %v2021_v24, %v2008_v39 }
 0x66e   : > { %v2060_v28 = vadd.f32 %v2058_v27, %v6257_v43  ;;  %v2071_v50 = vadd.f32 %v2069_v47, %v2066_v33 }
 0x670   : > { %4951 = vrcp.f32 %v2060_v28 }
 0x67a   : > { %v4952_v46 = vpop.eup %4951 }
 0x67b   : > { %v2062_v34 = vmul.f32 %v4952_v46, %v2060_v28 }
 0x67d   : > { %v2063_v48 = vsub.f32 2.0, %v2062_v34 }
 0x67f   : > { %v2064_v32 = vmul.f32 %v4952_v46, %v2063_v48 }
 0x681   : > { %v6330_v52 = vmul.f32 %v2071_v50, %v2064_v32 }
 0x683   : > { %v2076_v56 = vrot.slane %v6330_v52, %v5578_v60  ;;  %v2095_v17 = vrot.slane %v6330_v52, %v5576_v59 }
 0x685   : > { %2082 = vbcast.lane.b32.xlu1 %v2076_v56, 264  ;;  %2078 = vbcast.lane.b32.xlu0 %v2076_v56, 256 }
 0x689   : > { %2101 = vbcast.lane.b32.xlu1 %v2095_v17, 264  ;;  %2097 = vbcast.lane.b32.xlu0 %v2095_v17, 256 }
 0x68d   : > { %2105 = vbcast.lane.b32.xlu1 %v2095_v17, 272  ;;  %2086 = vbcast.lane.b32.xlu0 %v2076_v56, 272 }
 0x691   : > { %2109 = vbcast.lane.b32.xlu1 %v2095_v17, 280  ;;  %2090 = vbcast.lane.b32.xlu0 %v2076_v56, 280 }
 0x6f7   : > { %v2083_v25 = vpop.permute.xlu1 %2082  ;;  %v2079_v12 = vpop.permute.xlu0 %2078 }
 0x6f8   : > { %v2112_v15 = vsub.f32 %v2083_v25, %v6129_v23  ;;  %v2111_v62 = vsub.f32 %v2079_v12, %v6134_v37 }
 0x6fa   : > { %v2120_v22 = vmul.f32 %v2112_v15, %v6139_v55  ;;  %v2119_v26 = vmul.f32 %v2111_v62, %v6144_v58 }
 0x6fb   : > { %v2102_v54 = vpop.permute.xlu1 %2101  ;;  %v2098_v61 = vpop.permute.xlu0 %2097 }
 0x6fc   : > { %4953 = vtanh.f32 %v2120_v22  ;;  %v2116_v3 = vsub.f32 %v2102_v54, %v6129_v23  ;;  %v2115_v20 = vsub.f32 %v2098_v61, %v6134_v37 }
 0x6fd   : > { %4955 = vtanh.f32 %v2119_v26 }
 0x6fe   : > { %v2124_v45 = vmul.f32 %v2116_v3, %v6139_v55  ;;  %v2123_v9 = vmul.f32 %v2115_v20, %v6144_v58 }
 0x6ff   : > { %v2106_v0 = vpop.permute.xlu1 %2105  ;;  %v2087_v29 = vpop.permute.xlu0 %2086 }
 0x700   : > { %4957 = vtanh.f32 %v2124_v45  ;;  %v2117_v14 = vsub.f32 %v2106_v0, %v6155_v36  ;;  %v2113_v4 = vsub.f32 %v2087_v29, %v6155_v36 }
 0x701   : > { %4959 = vtanh.f32 %v2123_v9 }
 0x702   : > { %v2125_v18 = vmul.f32 %v2117_v14, %v6162_v49  ;;  %v2121_v19 = vmul.f32 %v2113_v4, %v6162_v49 }
 0x703   : > { %v2110_v38 = vpop.permute.xlu1 %2109  ;;  %v2091_v8 = vpop.permute.xlu0 %2090 }
 0x704   : > { %4961 = vtanh.f32 %v2125_v18  ;;  %v2118_v1 = vsub.f32 %v2110_v38, %v6169_v57  ;;  %v2114_v21 = vsub.f32 %v2091_v8, %v6169_v57 }
 0x705   : > { %4963 = vtanh.f32 %v2121_v19 }
 0x706   : > { %v4954_v40 = vpop.eup %4953  ;;  %v2126_v42 = vmul.f32 %v2118_v1, %v6176_v44  ;;  %v2122_v2 = vmul.f32 %v2114_v21, %v6176_v44 }
 0x707   : > { %v4956_v27 = vpop.eup %4955  ;;  %v2170_v13 = vmul.f32 %v4954_v40, %v6185_v5  ;;  %v2136_v46 = vmul.f32 %v4954_v40, %v6195_v10 }
 0x708   : > { %4965 = vtanh.f32 %v2126_v42  ;;  %v2169_v30 = vmul.f32 %v4956_v27, %v6190_v7  ;;  %v2135_v34 = vmul.f32 %v4956_v27, %v6201_v11 }
 0x709   : > { %4967 = vtanh.f32 %v2122_v2  ;;  %v2178_v48 = vsel %vm822_vm0, %v2170_v13, 0.0  ;;  %v2144_v26 = vsel %vm822_vm0, %v2136_v46, 0.0 }
 0x70a   : > { %v4958_v28 = vpop.eup %4957  ;;  %v2177_v33 = vsel %vm822_vm0, %v2169_v30, 0.0  ;;  %v2143_v54 = vsel %vm822_vm0, %v2135_v34, 0.0 }
 0x70b   : > { %v4960_v31 = vpop.eup %4959  ;;  %v2174_v16 = vmul.f32 %v4958_v28, %v6185_v5  ;;  %v2140_v39 = vmul.f32 %v4958_v28, %v6195_v10  ;;  %v2179_v20 = vadd.f32 %v2178_v48, %v2177_v33  ;;  %v2145_v38 = vadd.f32 %v2144_v26, %v2143_v54 }
 0x70c   : > { %v2139_v24 = vmul.f32 %v4960_v31, %v6201_v11  ;;  %v2173_v53 = vmul.f32 %v4960_v31, %v6190_v7 }
 0x70d   : > { %v2191_v50 = vsel %vm822_vm0, %v2174_v16, 0.0  ;;  %v2157_v12 = vsel %vm822_vm0, %v2140_v39, 0.0 }
 0x70e   : > { %v4962_v47 = vpop.eup %4961  ;;  %v2190_v56 = vsel %vm822_vm0, %v2173_v53, 0.0  ;;  %v2156_v15 = vsel %vm822_vm0, %v2139_v24, 0.0 }
 0x70f   : > { %v4964_v32 = vpop.eup %4963  ;;  %v2141_v17 = vmul.f32 %v4962_v47, %v6211_v63  ;;  %v2175_v25 = vmul.f32 %v4962_v47, %v6216_v35  ;;  %v2192_v45 = vadd.f32 %v2191_v50, %v2190_v56  ;;  %v2158_v14 = vadd.f32 %v2157_v12, %v2156_v15 }
 0x710   : > { %v2137_v62 = vmul.f32 %v4964_v32, %v6211_v63  ;;  %v2171_v22 = vmul.f32 %v4964_v32, %v6216_v35 }
 0x711   : > { %v2193_v61 = vsel %vm822_vm0, %v2175_v25, 0.0  ;;  %v2159_v9 = vsel %vm822_vm0, %v2141_v17, 0.0 }
 0x712   : > { %v4966_v3 = vpop.eup %4965  ;;  %v2180_v0 = vsel %vm822_vm0, %v2171_v22, 0.0  ;;  %v2146_v4 = vsel %vm822_vm0, %v2137_v62, 0.0  ;;  %v2194_v8 = vadd.f32 %v2193_v61, %v2192_v45  ;;  %v2160_v40 = vadd.f32 %v2159_v9, %v2158_v14 }
 0x713   : > { %v4968_v29 = vpop.eup %4967  ;;  %v2142_v18 = vmul.f32 %v4966_v3, %v6233_v41  ;;  %v2176_v19 = vmul.f32 %v4966_v3, %v6238_v51  ;;  %v2181_v42 = vadd.f32 %v2180_v0, %v2179_v20  ;;  %v2147_v28 = vadd.f32 %v2146_v4, %v2145_v38 }
 0x714   : > { %v2138_v1 = vmul.f32 %v4968_v29, %v6233_v41  ;;  %v2172_v21 = vmul.f32 %v4968_v29, %v6238_v51 }
 0x715   : > { %v2161_v2 = vsel %vm822_vm0, %v2142_v18, 0.0  ;;  %v2195_v27 = vsel %vm822_vm0, %v2176_v19, 0.0  ;;  %v6389_v18 = vld [vmem:[%s7808_s12] ss:$0 sm:$0xff] }
 0x716   : > { %v2196_v13 = vadd.f32 %v2195_v27, %v2194_v8  ;;  %v2148_v30 = vsel %vm822_vm0, %v2138_v1, 0.0  ;;  %v2182_v31 = vsel %vm822_vm0, %v2172_v21, 0.0  ;;  %v2162_v39 = vadd.f32 %v2161_v2, %v2160_v40 }
 0x717   : > { %v2183_v16 = vadd.f32 %v2182_v31, %v2181_v42  ;;  %v2149_v53 = vadd.f32 %v2148_v30, %v2147_v28  ;;  %v2212_v19 = vmul.f32 %v6389_v18, %v6330_v52 }
 0x718   : > { %v2197_v24 = vrot.slane %v2196_v13, 4  ;;  %v2163_v48 = vrot.slane %v2162_v39, 4 }
 0x719   : > { %v2184_v46 = vrot.slane %v2183_v16, 4  ;;  %v2150_v32 = vrot.slane %v2149_v53, 4  ;;  %v2213_v40 = vadd.f32 %v2212_v19, %v6264_v6 }
 0x71a   : > { %v2198_v34 = vadd.f32 %v2197_v24, %v2196_v13  ;;  %v2164_v25 = vadd.f32 %v2163_v48, %v2162_v39 }
 0x71b   : > { %v2185_v47 = vadd.f32 %v2184_v46, %v2183_v16  ;;  %v2151_v15 = vadd.f32 %v2150_v32, %v2149_v53 }
 0x71c   : > { %v2199_v33 = vrot.slane %v2198_v34, 2  ;;  %v2165_v54 = vrot.slane %v2164_v25, 2 }
 0x71d   : > { %v2186_v50 = vrot.slane %v2185_v47, 2  ;;  %v2152_v61 = vrot.slane %v2151_v15, 2 }
 0x71e   : > { %v2200_v56 = vadd.f32 %v2199_v33, %v2198_v34  ;;  %v2166_v45 = vadd.f32 %v2165_v54, %v2164_v25 }
 0x71f   : > { %v2187_v17 = vadd.f32 %v2186_v50, %v2185_v47  ;;  %v2153_v9 = vadd.f32 %v2152_v61, %v2151_v15 }
 0x720   : > { %v2201_v12 = vrot.slane %v2200_v56, 1  ;;  %v2167_v29 = vrot.slane %v2166_v45, 1 }
 0x721   : > { %v2188_v62 = vrot.slane %v2187_v17, 1  ;;  %v2154_v0 = vrot.slane %v2153_v9, 1 }
 0x722   : > { %v2202_v22 = vadd.f32 %v2201_v12, %v2200_v56  ;;  %v2168_v4 = vadd.f32 %v2167_v29, %v2166_v45 }
 0x723   : > { %v2189_v26 = vadd.f32 %v2188_v62, %v2187_v17  ;;  %v2155_v14 = vadd.f32 %v2154_v0, %v2153_v9 }
 0x725   : > { %v2205_v3 = vsel %vm1000_vm2, %v2202_v22, %v2189_v26  ;;  %v2216_v1 = vsel %vm1000_vm2, %v2168_v4, %v2155_v14 }
 0x726   : > { %v2207_v20 = vadd.f32 %v2205_v3, %v6257_v43  ;;  %v2218_v2 = vadd.f32 %v2216_v1, %v2213_v40 }
 0x728   : > { %4969 = vrcp.f32 %v2207_v20 }
 0x732   : > { %v4970_v38 = vpop.eup %4969 }
 0x733   : > { %v2209_v8 = vmul.f32 %v4970_v38, %v2207_v20 }
 0x735   : > { %v2210_v21 = vsub.f32 2.0, %v2209_v8 }
 0x737   : > { %v2211_v42 = vmul.f32 %v4970_v38, %v2210_v21 }
 0x739   : > { %v6395_v27 = vmul.f32 %v2218_v2, %v2211_v42 }
 0x73b   : > { %v2223_v28 = vrot.slane %v6395_v27, %v5578_v60  ;;  %v2242_v13 = vrot.slane %v6395_v27, %v5576_v59 }
 0x73d   : > { %2229 = vbcast.lane.b32.xlu1 %v2223_v28, 264  ;;  %2225 = vbcast.lane.b32.xlu0 %v2223_v28, 256 }
 0x741   : > { %2248 = vbcast.lane.b32.xlu1 %v2242_v13, 264  ;;  %2244 = vbcast.lane.b32.xlu0 %v2242_v13, 256 }
 0x745   : > { %2252 = vbcast.lane.b32.xlu1 %v2242_v13, 272  ;;  %2233 = vbcast.lane.b32.xlu0 %v2223_v28, 272 }
 0x749   : > { %2256 = vbcast.lane.b32.xlu1 %v2242_v13, 280  ;;  %2237 = vbcast.lane.b32.xlu0 %v2223_v28, 280 }
 0x7af   : > { %v2230_v52 = vpop.permute.xlu1 %2229  ;;  %v2226_v30 = vpop.permute.xlu0 %2225 }
 0x7b0   : > { %v2259_v31 = vsub.f32 %v2230_v52, %v6129_v23  ;;  %v2258_v16 = vsub.f32 %v2226_v30, %v6134_v37 }
 0x7b2   : > { %v2267_v39 = vmul.f32 %v2259_v31, %v6139_v55  ;;  %v2266_v24 = vmul.f32 %v2258_v16, %v6144_v58 }
 0x7b3   : > { %v2249_v53 = vpop.permute.xlu1 %2248  ;;  %v2245_v46 = vpop.permute.xlu0 %2244 }
 0x7b4   : > { %4971 = vtanh.f32 %v2267_v39  ;;  %v2263_v34 = vsub.f32 %v2249_v53, %v6129_v23  ;;  %v2262_v47 = vsub.f32 %v2245_v46, %v6134_v37 }
 0x7b5   : > { %4973 = vtanh.f32 %v2266_v24 }
 0x7b6   : > { %v2271_v48 = vmul.f32 %v2263_v34, %v6139_v55  ;;  %v2270_v33 = vmul.f32 %v2262_v47, %v6144_v58 }
 0x7b7   : > { %v2253_v32 = vpop.permute.xlu1 %2252  ;;  %v2234_v50 = vpop.permute.xlu0 %2233 }
 0x7b8   : > { %4975 = vtanh.f32 %v2271_v48  ;;  %v2264_v56 = vsub.f32 %v2253_v32, %v6155_v36  ;;  %v2260_v17 = vsub.f32 %v2234_v50, %v6155_v36 }
 0x7b9   : > { %4977 = vtanh.f32 %v2270_v33 }
 0x7ba   : > { %v2272_v25 = vmul.f32 %v2264_v56, %v6162_v49  ;;  %v2268_v12 = vmul.f32 %v2260_v17, %v6162_v49 }
 0x7bb   : > { %v2257_v23 = vpop.permute.xlu1 %2256  ;;  %v2238_v15 = vpop.permute.xlu0 %2237 }
 0x7bc   : > { %4979 = vtanh.f32 %v2272_v25  ;;  %v2265_v37 = vsub.f32 %v2257_v23, %v6169_v57  ;;  %v2261_v55 = vsub.f32 %v2238_v15, %v6169_v57 }
 0x7bd   : > { %4981 = vtanh.f32 %v2268_v12 }
 0x7be   : > { %v4972_v58 = vpop.eup %4971  ;;  %v2273_v62 = vmul.f32 %v2265_v37, %v6176_v44  ;;  %v2269_v22 = vmul.f32 %v2261_v55, %v6176_v44 }
 0x7bf   : > { %v4974_v26 = vpop.eup %4973  ;;  %v2317_v54 = vmul.f32 %v4972_v58, %v6185_v5  ;;  %v2283_v9 = vmul.f32 %v4972_v58, %v6195_v10 }
 0x7c0   : > { %4983 = vtanh.f32 %v2273_v62  ;;  %v2316_v49 = vmul.f32 %v4974_v26, %v6190_v7  ;;  %v2282_v44 = vmul.f32 %v4974_v26, %v6201_v11 }
 0x7c1   : > { %4985 = vtanh.f32 %v2269_v22  ;;  %v2325_v29 = vsel %vm822_vm0, %v2317_v54, 0.0  ;;  %v2291_v21 = vsel %vm822_vm0, %v2283_v9, 0.0 }
 0x7c2   : > { %v4976_v36 = vpop.eup %4975  ;;  %v2324_v14 = vsel %vm822_vm0, %v2316_v49, 0.0  ;;  %v2290_v40 = vsel %vm822_vm0, %v2282_v44, 0.0 }
 0x7c3   : > { %v4978_v61 = vpop.eup %4977  ;;  %v2321_v3 = vmul.f32 %v4976_v36, %v6185_v5  ;;  %v2287_v20 = vmul.f32 %v4976_v36, %v6195_v10  ;;  %v2326_v28 = vadd.f32 %v2325_v29, %v2324_v14  ;;  %v2292_v24 = vadd.f32 %v2291_v21, %v2290_v40 }
 0x7c4   : > { %v2286_v57 = vmul.f32 %v4978_v61, %v6201_v11  ;;  %v2320_v45 = vmul.f32 %v4978_v61, %v6190_v7 }
 0x7c5   : > { %v2338_v19 = vsel %vm822_vm0, %v2321_v3, 0.0  ;;  %v2304_v7 = vsel %vm822_vm0, %v2287_v20, 0.0 }
 0x7c6   : > { %v4980_v0 = vpop.eup %4979  ;;  %v2337_v5 = vsel %vm822_vm0, %v2320_v45, 0.0  ;;  %v2303_v10 = vsel %vm822_vm0, %v2286_v57, 0.0 }
 0x7c7   : > { %v4982_v4 = vpop.eup %4981  ;;  %v2288_v38 = vmul.f32 %v4980_v0, %v6211_v63  ;;  %v2322_v8 = vmul.f32 %v4980_v0, %v6216_v35  ;;  %v2339_v13 = vadd.f32 %v2338_v19, %v2337_v5  ;;  %v2305_v16 = vadd.f32 %v2304_v7, %v2303_v10 }
 0x7c8   : > { %v2284_v11 = vmul.f32 %v4982_v4, %v6211_v63  ;;  %v2318_v1 = vmul.f32 %v4982_v4, %v6216_v35  ;;  %v2359_v7 = vmul.f32 %v6389_v18, %v6395_v27 }
 0x7c9   : > { %v2340_v42 = vsel %vm822_vm0, %v2322_v8, 0.0  ;;  %v2306_v52 = vsel %vm822_vm0, %v2288_v38, 0.0 }
 0x7ca   : > { %v4984_v2 = vpop.eup %4983  ;;  %v2327_v30 = vsel %vm822_vm0, %v2318_v1, 0.0  ;;  %v2293_v39 = vsel %vm822_vm0, %v2284_v11, 0.0  ;;  %v2341_v53 = vadd.f32 %v2340_v42, %v2339_v13  ;;  %v2307_v47 = vadd.f32 %v2306_v52, %v2305_v16 }
 0x7cb   : > { %v4986_v31 = vpop.eup %4985  ;;  %v2289_v63 = vmul.f32 %v4984_v2, %v6233_v41  ;;  %v2323_v35 = vmul.f32 %v4984_v2, %v6238_v51  ;;  %v2328_v48 = vadd.f32 %v2327_v30, %v2326_v28  ;;  %v2294_v50 = vadd.f32 %v2293_v39, %v2292_v24  ;;  %v6470_v39 = vld [vmem:[%s7804_s8] sm:$0xff] }
 0x7cc   : > { %v2285_v46 = vmul.f32 %v4986_v31, %v6233_v41  ;;  %v2319_v34 = vmul.f32 %v4986_v31, %v6238_v51  ;;  %v2360_v40 = vadd.f32 %v2359_v7, %v6264_v6  ;;  %v6464_v31 = vld [vmem:[%s7804_s8 + $0x8] sm:$0xff] }
 0x7cd   : > { %v2308_v33 = vsel %vm822_vm0, %v2289_v63, 0.0  ;;  %v2342_v32 = vsel %vm822_vm0, %v2323_v35, 0.0  ;;  %v6476_v35 = vld [vmem:[%s7805_s9 + $0x8] sm:$0xff] }
 0x7ce   : > { %v2343_v56 = vadd.f32 %v2342_v32, %v2341_v53  ;;  %v2295_v17 = vsel %vm822_vm0, %v2285_v46, 0.0  ;;  %v2329_v25 = vsel %vm822_vm0, %v2319_v34, 0.0  ;;  %v2309_v23 = vadd.f32 %v2308_v33, %v2307_v47  ;;  %v6482_v53 = vld [vmem:[%s7805_s9] sm:$0xff] }
 0x7cf   : > { %v2330_v12 = vadd.f32 %v2329_v25, %v2328_v48  ;;  %v2296_v37 = vadd.f32 %v2295_v17, %v2294_v50  ;;  %v6492_v25 = vld [vmem:[%s7804_s8 + $0x10] sm:$0xff] }
 0x7d0   : > { %v2344_v15 = vrot.slane %v2343_v56, 4  ;;  %v2310_v51 = vrot.slane %v2309_v23, 4 }
 0x7d1   : > { %v2331_v55 = vrot.slane %v2330_v12, 4  ;;  %v2297_v22 = vrot.slane %v2296_v37, 4 }
 0x7d2   : > { %v2345_v41 = vadd.f32 %v2344_v15, %v2343_v56  ;;  %v2311_v49 = vadd.f32 %v2310_v51, %v2309_v23  ;;  %v6499_v15 = vld [vmem:[%s7805_s9 + $0x10] sm:$0xff]  ;;  %v6506_v51 = vld [vmem:[%s7804_s8 + $0x18] sm:$0xff] }
 0x7d3   : > { %v2332_v58 = vadd.f32 %v2331_v55, %v2330_v12  ;;  %v2298_v3 = vadd.f32 %v2297_v22, %v2296_v37 }
 0x7d4   : > { %v2346_v62 = vrot.slane %v2345_v41, 2  ;;  %v2312_v9 = vrot.slane %v2311_v49, 2 }
 0x7d5   : > { %v2333_v26 = vrot.slane %v2332_v58, 2  ;;  %v2299_v44 = vrot.slane %v2298_v3, 2 }
 0x7d6   : > { %v2347_v36 = vadd.f32 %v2346_v62, %v2345_v41  ;;  %v2313_v14 = vadd.f32 %v2312_v9, %v2311_v49 }
 0x7d7   : > { %v2334_v54 = vadd.f32 %v2333_v26, %v2332_v58  ;;  %v2300_v4 = vadd.f32 %v2299_v44, %v2298_v3 }
 0x7d8   : > { %v2348_v61 = vrot.slane %v2347_v36, 1  ;;  %v2314_v5 = vrot.slane %v2313_v14, 1 }
 0x7d9   : > { %v2335_v20 = vrot.slane %v2334_v54, 1  ;;  %v2301_v19 = vrot.slane %v2300_v4, 1 }
 0x7da   : > { %v2349_v57 = vadd.f32 %v2348_v61, %v2347_v36  ;;  %v2315_v8 = vadd.f32 %v2314_v5, %v2313_v14  ;;  %v6513_v36 = vld [vmem:[%s7805_s9 + $0x18] sm:$0xff] }
 0x7db   : > { %v2336_v45 = vadd.f32 %v2335_v20, %v2334_v54  ;;  %v2302_v38 = vadd.f32 %v2301_v19, %v2300_v4  ;;  %v6520_v20 = vld [vmem:[%s7807_s11 + $0x8] sm:$0xff]  ;;  %v6539_v4 = vld [vmem:[%s7806_s10] sm:$0xff] }
 0x7dd   : > { %v2352_v0 = vsel %vm1000_vm2, %v2349_v57, %v2336_v45  ;;  %v2363_v1 = vsel %vm1000_vm2, %v2315_v8, %v2302_v38  ;;  %v6526_v45 = vld [vmem:[%s7807_s11] sm:$0xff] }
 0x7de   : > { %v2354_v29 = vadd.f32 %v2352_v0, %v6257_v43  ;;  %v2365_v2 = vadd.f32 %v2363_v1, %v2360_v40 }
 0x7e0   : > { %4987 = vrcp.f32 %v2354_v29 }
 0x7ea   : > { %v4988_v10 = vpop.eup %4987 }
 0x7eb   : > { %v2356_v11 = vmul.f32 %v4988_v10, %v2354_v29  ;;  %v6533_v29 = vld [vmem:[%s7806_s10 + $0x8] sm:$0xff] }
 0x7ed   : > { %v2357_v21 = vsub.f32 2.0, %v2356_v11 }
 0x7ef   : > { %v2358_v42 = vmul.f32 %v4988_v10, %v2357_v21 }
 0x7f1   : > { %v6455_v28 = vmul.f32 %v2365_v2, %v2358_v42  ;;  %v6552_v42 = vld [vmem:[%s7806_s10 + $0x10] sm:$0xff] }
 0x7f3   : > { %v2370_v13 = vrot.slane %v6455_v28, %v5578_v60  ;;  %v2389_v52 = vrot.slane %v6455_v28, %v5576_v59 }
 0x7f5   : > { %2376 = vbcast.lane.b32.xlu1 %v2370_v13, 264  ;;  %2372 = vbcast.lane.b32.xlu0 %v2370_v13, 256 }
 0x7f9   : > { %2395 = vbcast.lane.b32.xlu1 %v2389_v52, 264  ;;  %2391 = vbcast.lane.b32.xlu0 %v2389_v52, 256 }
 0x7fd   : > { %2399 = vbcast.lane.b32.xlu1 %v2389_v52, 272  ;;  %2380 = vbcast.lane.b32.xlu0 %v2370_v13, 272 }
 0x801   : > { %2403 = vbcast.lane.b32.xlu1 %v2389_v52, 280  ;;  %2384 = vbcast.lane.b32.xlu0 %v2370_v13, 280  ;;  %v6558_v13 = vld [vmem:[%s7807_s11 + $0x10] sm:$0xff] }
 0x867   : > { %v2377_v27 = vpop.permute.xlu1 %2376  ;;  %v2373_v30 = vpop.permute.xlu0 %2372 }
 0x868   : > { %v2406_v16 = vsub.f32 %v2377_v27, %v6464_v31  ;;  %v2405_v63 = vsub.f32 %v2373_v30, %v6470_v39 }
 0x86a   : > { %v2414_v24 = vmul.f32 %v6476_v35, %v2406_v16  ;;  %v2413_v46 = vmul.f32 %v6482_v53, %v2405_v63 }
 0x86b   : > { %v2396_v34 = vpop.permute.xlu1 %2395  ;;  %v2392_v47 = vpop.permute.xlu0 %2391 }
 0x86c   : > { %4989 = vtanh.f32 %v2414_v24  ;;  %v2410_v48 = vsub.f32 %v2396_v34, %v6464_v31  ;;  %v2409_v33 = vsub.f32 %v2392_v47, %v6470_v39 }
 0x86d   : > { %4991 = vtanh.f32 %v2413_v46 }
 0x86e   : > { %v2418_v32 = vmul.f32 %v6476_v35, %v2410_v48  ;;  %v2417_v50 = vmul.f32 %v6482_v53, %v2409_v33 }
 0x86f   : > { %v2400_v56 = vpop.permute.xlu1 %2399  ;;  %v2381_v17 = vpop.permute.xlu0 %2380 }
 0x870   : > { %4993 = vtanh.f32 %v2418_v32  ;;  %v2411_v12 = vsub.f32 %v2400_v56, %v6492_v25  ;;  %v2407_v23 = vsub.f32 %v2381_v17, %v6492_v25 }
 0x871   : > { %4995 = vtanh.f32 %v2417_v50 }
 0x872   : > { %v2419_v37 = vmul.f32 %v6499_v15, %v2411_v12  ;;  %v2415_v55 = vmul.f32 %v6499_v15, %v2407_v23  ;;  %v6574_v23 = vld [vmem:[%s7806_s10 + $0x18] sm:$0xff] }
 0x873   : > { %v2404_v41 = vpop.permute.xlu1 %2403  ;;  %v2385_v58 = vpop.permute.xlu0 %2384 }
 0x874   : > { %4997 = vtanh.f32 %v2419_v37  ;;  %v2412_v62 = vsub.f32 %v2404_v41, %v6506_v51  ;;  %v2408_v22 = vsub.f32 %v2385_v58, %v6506_v51 }
 0x875   : > { %4999 = vtanh.f32 %v2415_v55  ;;  %v6580_v55 = vld [vmem:[%s7807_s11 + $0x18] sm:$0xff] }
 0x876   : > { %v4990_v26 = vpop.eup %4989  ;;  %v2420_v54 = vmul.f32 %v6513_v36, %v2412_v62  ;;  %v2416_v49 = vmul.f32 %v6513_v36, %v2408_v22 }
 0x877   : > { %v4992_v61 = vpop.eup %4991  ;;  %v2464_v57 = vmul.f32 %v6520_v20, %v4990_v26  ;;  %v2430_v38 = vmul.f32 %v6533_v29, %v4990_v26 }
 0x878   : > { %5001 = vtanh.f32 %v2420_v54  ;;  %v2463_v9 = vmul.f32 %v6526_v45, %v4992_v61  ;;  %v2429_v8 = vmul.f32 %v6539_v4, %v4992_v61 }
 0x879   : > { %5003 = vtanh.f32 %v2416_v49  ;;  %v2472_v10 = vsel %vm822_vm0, %v2464_v57, 0.0  ;;  %v2438_v24 = vsel %vm822_vm0, %v2430_v38, 0.0 }
 0x87a   : > { %v4994_v3 = vpop.eup %4993  ;;  %v2471_v11 = vsel %vm822_vm0, %v2463_v9, 0.0  ;;  %v2437_v46 = vsel %vm822_vm0, %v2429_v8, 0.0 }
 0x87b   : > { %v4996_v44 = vpop.eup %4995  ;;  %v2468_v0 = vmul.f32 %v6520_v20, %v4994_v3  ;;  %v2434_v14 = vmul.f32 %v6533_v29, %v4994_v3  ;;  %v2473_v48 = vadd.f32 %v2472_v10, %v2471_v11  ;;  %v2439_v58 = vadd.f32 %v2438_v24, %v2437_v46 }
 0x87c   : > { %v2433_v19 = vmul.f32 %v6539_v4, %v4996_v44  ;;  %v2467_v5 = vmul.f32 %v6526_v45, %v4996_v44 }
 0x87d   : > { %v2485_v21 = vsel %vm822_vm0, %v2468_v0, 0.0  ;;  %v2451_v27 = vsel %vm822_vm0, %v2434_v14, 0.0 }
 0x87e   : > { %v4998_v7 = vpop.eup %4997  ;;  %v2484_v40 = vsel %vm822_vm0, %v2467_v5, 0.0  ;;  %v2450_v30 = vsel %vm822_vm0, %v2433_v19, 0.0 }
 0x87f   : > { %v5000_v1 = vpop.eup %4999  ;;  %v2435_v2 = vmul.f32 %v6552_v42, %v4998_v7  ;;  %v2469_v52 = vmul.f32 %v6558_v13, %v4998_v7  ;;  %v2486_v33 = vadd.f32 %v2485_v21, %v2484_v40  ;;  %v2452_v17 = vadd.f32 %v2451_v27, %v2450_v30 }
 0x880   : > { %v2431_v16 = vmul.f32 %v6552_v42, %v5000_v1  ;;  %v2465_v63 = vmul.f32 %v6558_v13, %v5000_v1 }
 0x881   : > { %v2487_v34 = vsel %vm822_vm0, %v2469_v52, 0.0  ;;  %v2453_v32 = vsel %vm822_vm0, %v2435_v2, 0.0 }
 0x882   : > { %v5002_v47 = vpop.eup %5001  ;;  %v2474_v50 = vsel %vm822_vm0, %v2465_v63, 0.0  ;;  %v2440_v12 = vsel %vm822_vm0, %v2431_v16, 0.0  ;;  %v2488_v62 = vadd.f32 %v2487_v34, %v2486_v33  ;;  %v2454_v54 = vadd.f32 %v2453_v32, %v2452_v17 }
 0x883   : > { %v5004_v56 = vpop.eup %5003  ;;  %v2436_v37 = vmul.f32 %v6574_v23, %v5002_v47  ;;  %v2470_v41 = vmul.f32 %v6580_v55, %v5002_v47  ;;  %v2475_v49 = vadd.f32 %v2474_v50, %v2473_v48  ;;  %v2441_v57 = vadd.f32 %v2440_v12, %v2439_v58 }
 0x884   : > { %v2432_v22 = vmul.f32 %v6574_v23, %v5004_v56  ;;  %v2466_v26 = vmul.f32 %v6580_v55, %v5004_v56 }
 0x885   : > { %v2455_v61 = vsel %vm822_vm0, %v2436_v37, 0.0  ;;  %v2489_v3 = vsel %vm822_vm0, %v2470_v41, 0.0  ;;  %v2506_v41 = vmul.f32 %v6389_v18, %v6455_v28 }
 0x886   : > { %v2490_v9 = vadd.f32 %v2489_v3, %v2488_v62  ;;  %v2442_v44 = vsel %vm822_vm0, %v2432_v22, 0.0  ;;  %v2476_v0 = vsel %vm822_vm0, %v2466_v26, 0.0  ;;  %v2456_v19 = vadd.f32 %v2455_v61, %v2454_v54 }
 0x887   : > { %v2477_v14 = vadd.f32 %v2476_v0, %v2475_v49  ;;  %v2443_v38 = vadd.f32 %v2442_v44, %v2441_v57  ;;  %v2507_v54 = vadd.f32 %v2506_v41, %v6264_v6 }
 0x888   : > { %v2491_v5 = vrot.slane %v2490_v9, 4  ;;  %v2457_v11 = vrot.slane %v2456_v19, 4 }
 0x889   : > { %v2478_v8 = vrot.slane %v2477_v14, 4  ;;  %v2444_v21 = vrot.slane %v2443_v38, 4 }
 0x88a   : > { %v2492_v7 = vadd.f32 %v2491_v5, %v2490_v9  ;;  %v2458_v27 = vadd.f32 %v2457_v11, %v2456_v19 }
 0x88b   : > { %v2479_v10 = vadd.f32 %v2478_v8, %v2477_v14  ;;  %v2445_v16 = vadd.f32 %v2444_v21, %v2443_v38 }
 0x88c   : > { %v2493_v1 = vrot.slane %v2492_v7, 2  ;;  %v2459_v34 = vrot.slane %v2458_v27, 2 }
 0x88d   : > { %v2480_v40 = vrot.slane %v2479_v10, 2  ;;  %v2446_v47 = vrot.slane %v2445_v16, 2 }
 0x88e   : > { %v2494_v2 = vadd.f32 %v2493_v1, %v2492_v7  ;;  %v2460_v32 = vadd.f32 %v2459_v34, %v2458_v27 }
 0x88f   : > { %v2481_v52 = vadd.f32 %v2480_v40, %v2479_v10  ;;  %v2447_v50 = vadd.f32 %v2446_v47, %v2445_v16 }
 0x890   : > { %v2495_v30 = vrot.slane %v2494_v2, 1  ;;  %v2461_v17 = vrot.slane %v2460_v32, 1 }
 0x891   : > { %v2482_v63 = vrot.slane %v2481_v52, 1  ;;  %v2448_v56 = vrot.slane %v2447_v50, 1 }
 0x892   : > { %v2496_v24 = vadd.f32 %v2495_v30, %v2494_v2  ;;  %v2462_v37 = vadd.f32 %v2461_v17, %v2460_v32 }
 0x893   : > { %v2483_v46 = vadd.f32 %v2482_v63, %v2481_v52  ;;  %v2449_v12 = vadd.f32 %v2448_v56, %v2447_v50 }
 0x895   : > { %v2499_v48 = vsel %vm1000_vm2, %v2496_v24, %v2483_v46  ;;  %v2510_v22 = vsel %vm1000_vm2, %v2462_v37, %v2449_v12 }
 0x896   : > { %v2501_v33 = vadd.f32 %v2499_v48, %v6257_v43  ;;  %v2512_v61 = vadd.f32 %v2510_v22, %v2507_v54 }
 0x898   : > { %5005 = vrcp.f32 %v2501_v33 }
 0x8a2   : > { %v5006_v58 = vpop.eup %5005 }
 0x8a3   : > { %v2503_v62 = vmul.f32 %v5006_v58, %v2501_v33 }
 0x8a5   : > { %v2504_v26 = vsub.f32 2.0, %v2503_v62 }
 0x8a7   : > { %v2505_v49 = vmul.f32 %v5006_v58, %v2504_v26 }
 0x8a9   : > { %v6595_v3 = vmul.f32 %v2512_v61, %v2505_v49 }
 0x8ab   : > { %v2517_v57 = vrot.slane %v6595_v3, %v5578_v60  ;;  %v2536_v9 = vrot.slane %v6595_v3, %v5576_v59 }
 0x8ad   : > { %2523 = vbcast.lane.b32.xlu1 %v2517_v57, 264  ;;  %2519 = vbcast.lane.b32.xlu0 %v2517_v57, 256 }
 0x8b1   : > { %2542 = vbcast.lane.b32.xlu1 %v2536_v9, 264  ;;  %2538 = vbcast.lane.b32.xlu0 %v2536_v9, 256 }
 0x8b5   : > { %2546 = vbcast.lane.b32.xlu1 %v2536_v9, 272  ;;  %2527 = vbcast.lane.b32.xlu0 %v2517_v57, 272 }
 0x8b9   : > { %2550 = vbcast.lane.b32.xlu1 %v2536_v9, 280  ;;  %2531 = vbcast.lane.b32.xlu0 %v2517_v57, 280 }
 0x91f   : > { %v2524_v28 = vpop.permute.xlu1 %2523  ;;  %v2520_v44 = vpop.permute.xlu0 %2519 }
 0x920   : > { %v2553_v0 = vsub.f32 %v2524_v28, %v6464_v31  ;;  %v2552_v14 = vsub.f32 %v2520_v44, %v6470_v39 }
 0x922   : > { %v2561_v19 = vmul.f32 %v6476_v35, %v2553_v0  ;;  %v2560_v5 = vmul.f32 %v6482_v53, %v2552_v14 }
 0x923   : > { %v2543_v38 = vpop.permute.xlu1 %2542  ;;  %v2539_v8 = vpop.permute.xlu0 %2538 }
 0x924   : > { %5007 = vtanh.f32 %v2561_v19  ;;  %v2557_v7 = vsub.f32 %v2543_v38, %v6464_v31  ;;  %v2556_v10 = vsub.f32 %v2539_v8, %v6470_v39 }
 0x925   : > { %5009 = vtanh.f32 %v2560_v5 }
 0x926   : > { %v2565_v11 = vmul.f32 %v6476_v35, %v2557_v7  ;;  %v2564_v1 = vmul.f32 %v6482_v53, %v2556_v10 }
 0x927   : > { %v2547_v21 = vpop.permute.xlu1 %2546  ;;  %v2528_v40 = vpop.permute.xlu0 %2527 }
 0x928   : > { %5011 = vtanh.f32 %v2565_v11  ;;  %v2558_v2 = vsub.f32 %v2547_v21, %v6492_v25  ;;  %v2554_v52 = vsub.f32 %v2528_v40, %v6492_v25 }
 0x929   : > { %5013 = vtanh.f32 %v2564_v1 }
 0x92a   : > { %v2566_v27 = vmul.f32 %v6499_v15, %v2558_v2  ;;  %v2562_v30 = vmul.f32 %v6499_v15, %v2554_v52 }
 0x92b   : > { %v2551_v31 = vpop.permute.xlu1 %2550  ;;  %v2532_v16 = vpop.permute.xlu0 %2531 }
 0x92c   : > { %5015 = vtanh.f32 %v2566_v27  ;;  %v2559_v39 = vsub.f32 %v2551_v31, %v6506_v51  ;;  %v2555_v35 = vsub.f32 %v2532_v16, %v6506_v51 }
 0x92d   : > { %5017 = vtanh.f32 %v2562_v30 }
 0x92e   : > { %v5008_v53 = vpop.eup %5007  ;;  %v2567_v63 = vmul.f32 %v6513_v36, %v2559_v39  ;;  %v2563_v24 = vmul.f32 %v6513_v36, %v2555_v35 }
 0x92f   : > { %v5010_v46 = vpop.eup %5009  ;;  %v2611_v34 = vmul.f32 %v6520_v20, %v5008_v53  ;;  %v2577_v50 = vmul.f32 %v6533_v29, %v5008_v53 }
 0x930   : > { %5019 = vtanh.f32 %v2567_v63  ;;  %v2610_v15 = vmul.f32 %v6526_v45, %v5010_v46  ;;  %v2576_v36 = vmul.f32 %v6539_v4, %v5010_v46 }
 0x931   : > { %5021 = vtanh.f32 %v2563_v24  ;;  %v2619_v17 = vsel %vm822_vm0, %v2611_v34, 0.0  ;;  %v2585_v26 = vsel %vm822_vm0, %v2577_v50, 0.0 }
 0x932   : > { %v5012_v25 = vpop.eup %5011  ;;  %v2618_v12 = vsel %vm822_vm0, %v2610_v15, 0.0  ;;  %v2584_v54 = vsel %vm822_vm0, %v2576_v36, 0.0 }
 0x933   : > { %v5014_v47 = vpop.eup %5013  ;;  %v2615_v48 = vmul.f32 %v6520_v20, %v5012_v25  ;;  %v2581_v33 = vmul.f32 %v6533_v29, %v5012_v25  ;;  %v2620_v57 = vadd.f32 %v2619_v17, %v2618_v12  ;;  %v2586_v5 = vadd.f32 %v2585_v26, %v2584_v54 }
 0x934   : > { %v2580_v51 = vmul.f32 %v6539_v4, %v5014_v47  ;;  %v2614_v32 = vmul.f32 %v6526_v45, %v5014_v47 }
 0x935   : > { %v2632_v41 = vsel %vm822_vm0, %v2615_v48, 0.0  ;;  %v2598_v45 = vsel %vm822_vm0, %v2581_v33, 0.0 }
 0x936   : > { %v5016_v56 = vpop.eup %5015  ;;  %v2631_v20 = vsel %vm822_vm0, %v2614_v32, 0.0  ;;  %v2597_v29 = vsel %vm822_vm0, %v2580_v51, 0.0 }
 0x937   : > { %v5018_v37 = vpop.eup %5017  ;;  %v2582_v58 = vmul.f32 %v6552_v42, %v5016_v56  ;;  %v2616_v62 = vmul.f32 %v6558_v13, %v5016_v56  ;;  %v2633_v9 = vadd.f32 %v2632_v41, %v2631_v20  ;;  %v2599_v14 = vadd.f32 %v2598_v45, %v2597_v29 }
 0x938   : > { %v2578_v4 = vmul.f32 %v6552_v42, %v5018_v37  ;;  %v2612_v22 = vmul.f32 %v6558_v13, %v5018_v37  ;;  %v2653_v45 = vmul.f32 %v6389_v18, %v6595_v3  ;;  %v6671_v3 = vld [vmem:[%s7804_s8] sm:$0xff] }
 0x939   : > { %v2634_v49 = vsel %vm822_vm0, %v2616_v62, 0.0  ;;  %v2600_v28 = vsel %vm822_vm0, %v2582_v58, 0.0 }
 0x93a   : > { %v5020_v61 = vpop.eup %5019  ;;  %v2621_v44 = vsel %vm822_vm0, %v2612_v22, 0.0  ;;  %v2587_v19 = vsel %vm822_vm0, %v2578_v4, 0.0  ;;  %v2635_v38 = vadd.f32 %v2634_v49, %v2633_v9  ;;  %v2601_v10 = vadd.f32 %v2600_v28, %v2599_v14  ;;  %v6676_v9 = vld [vmem:[%s7805_s9 + $0x8] sm:$0xff] }
 0x93b   : > { %v5022_v0 = vpop.eup %5021  ;;  %v2583_v42 = vmul.f32 %v6574_v23, %v5020_v61  ;;  %v2617_v13 = vmul.f32 %v6580_v55, %v5020_v61  ;;  %v2622_v11 = vadd.f32 %v2621_v44, %v2620_v57  ;;  %v2588_v40 = vadd.f32 %v2587_v19, %v2586_v5  ;;  %v6681_v44 = vld [vmem:[%s7805_s9] sm:$0xff] }
 0x93c   : > { %v2579_v8 = vmul.f32 %v6574_v23, %v5022_v0  ;;  %v2613_v7 = vmul.f32 %v6580_v55, %v5022_v0  ;;  %v2654_v26 = vadd.f32 %v2653_v45, %v6264_v6  ;;  %v6666_v6 = vld [vmem:[%s7804_s8 + $0x8] sm:$0xff] }
 0x93d   : > { %v2602_v1 = vsel %vm822_vm0, %v2583_v42, 0.0  ;;  %v2636_v21 = vsel %vm822_vm0, %v2617_v13, 0.0 }
 0x93e   : > { %v2637_v2 = vadd.f32 %v2636_v21, %v2635_v38  ;;  %v2589_v52 = vsel %vm822_vm0, %v2579_v8, 0.0  ;;  %v2623_v27 = vsel %vm822_vm0, %v2613_v7, 0.0  ;;  %v2603_v31 = vadd.f32 %v2602_v1, %v2601_v10  ;;  %v6692_v10 = vld [vmem:[%s7804_s8 + $0x10] sm:$0xff] }
 0x93f   : > { %v2624_v30 = vadd.f32 %v2623_v27, %v2622_v11  ;;  %v2590_v39 = vadd.f32 %v2589_v52, %v2588_v40  ;;  %v6699_v21 = vld [vmem:[%s7805_s9 + $0x10] sm:$0xff] }
 0x940   : > { %v2638_v16 = vrot.slane %v2637_v2, 4  ;;  %v2604_v55 = vrot.slane %v2603_v31, 4 }
 0x941   : > { %v2625_v35 = vrot.slane %v2624_v30, 4  ;;  %v2591_v24 = vrot.slane %v2590_v39, 4 }
 0x942   : > { %v2639_v23 = vadd.f32 %v2638_v16, %v2637_v2  ;;  %v2605_v15 = vadd.f32 %v2604_v55, %v2603_v31 }
 0x943   : > { %v2626_v53 = vadd.f32 %v2625_v35, %v2624_v30  ;;  %v2592_v48 = vadd.f32 %v2591_v24, %v2590_v39  ;;  %v6706_v30 = vld [vmem:[%s7804_s8 + $0x18] sm:$0xff] }
 0x944   : > { %v2640_v63 = vrot.slane %v2639_v23, 2  ;;  %v2606_v50 = vrot.slane %v2605_v15, 2  ;;  %v6713_v39 = vld [vmem:[%s7805_s9 + $0x18] sm:$0xff] }
 0x945   : > { %v2627_v46 = vrot.slane %v2626_v53, 2  ;;  %v2593_v36 = vrot.slane %v2592_v48, 2 }
 0x946   : > { %v2641_v25 = vadd.f32 %v2640_v63, %v2639_v23  ;;  %v2607_v12 = vadd.f32 %v2606_v50, %v2605_v15  ;;  %v6727_v15 = vld [vmem:[%s7807_s11] sm:$0xff] }
 0x947   : > { %v2628_v34 = vadd.f32 %v2627_v46, %v2626_v53  ;;  %v2594_v37 = vadd.f32 %v2593_v36, %v2592_v48  ;;  %v6732_v48 = vld [vmem:[%s7806_s10 + $0x8] sm:$0xff] }
 0x948   : > { %v2642_v47 = vrot.slane %v2641_v25, 1  ;;  %v2608_v41 = vrot.slane %v2607_v12, 1 }
 0x949   : > { %v2629_v33 = vrot.slane %v2628_v34, 1  ;;  %v2595_v20 = vrot.slane %v2594_v37, 1 }
 0x94a   : > { %v2643_v51 = vadd.f32 %v2642_v47, %v2641_v25  ;;  %v2609_v58 = vadd.f32 %v2608_v41, %v2607_v12  ;;  %v6753_v41 = vld [vmem:[%s7807_s11 + $0x10] sm:$0xff] }
 0x94b   : > { %v2630_v32 = vadd.f32 %v2629_v33, %v2628_v34  ;;  %v2596_v62 = vadd.f32 %v2595_v20, %v2594_v37  ;;  %v6722_v34 = vld [vmem:[%s7807_s11 + $0x8] sm:$0xff]  ;;  %v6748_v37 = vld [vmem:[%s7806_s10 + $0x10] sm:$0xff] }
 0x94d   : > { %v2646_v56 = vsel %vm1000_vm2, %v2643_v51, %v2630_v32  ;;  %v2657_v22 = vsel %vm1000_vm2, %v2609_v58, %v2596_v62  ;;  %v6738_v51 = vld [vmem:[%s7806_s10] sm:$0xff] }
 0x94e   : > { %v2648_v17 = vadd.f32 %v2646_v56, %v6257_v43  ;;  %v2659_v61 = vadd.f32 %v2657_v22, %v2654_v26 }
 0x950   : > { %5023 = vrcp.f32 %v2648_v17 }
 0x95a   : > { %v5024_v29 = vpop.eup %5023 }
 0x95b   : > { %v2650_v4 = vmul.f32 %v5024_v29, %v2648_v17 }
 0x95d   : > { %v2651_v54 = vsub.f32 2.0, %v2650_v4 }
 0x95f   : > { %v2652_v49 = vmul.f32 %v5024_v29, %v2651_v54 }
 0x961   : > { %v6655_v43 = vmul.f32 %v2659_v61, %v2652_v49 }
 0x963   : > { %v2669_v57 = vrot.slane %v6655_v43, %v5578_v60  ;;  %2661 = vst.msk [vmem:[#allocation4 + $0x2] sm:$0x3] %vm1757_vm3, %v6655_v43  ;;  %v2688_v18 = vrot.slane %v6655_v43, %v5576_v59 }
 0x965   : > { %2675 = vbcast.lane.b32.xlu1 %v2669_v57, 264  ;;  %2671 = vbcast.lane.b32.xlu0 %v2669_v57, 256 }
 0x969   : > { %2694 = vbcast.lane.b32.xlu1 %v2688_v18, 264  ;;  %2690 = vbcast.lane.b32.xlu0 %v2688_v18, 256 }
 0x96d   : > { %2698 = vbcast.lane.b32.xlu1 %v2688_v18, 272  ;;  %2679 = vbcast.lane.b32.xlu0 %v2669_v57, 272 }
 0x971   : > { %2702 = vbcast.lane.b32.xlu1 %v2688_v18, 280  ;;  %2683 = vbcast.lane.b32.xlu0 %v2669_v57, 280 }
 0x9d7   : > { %v2676_v28 = vpop.permute.xlu1 %2675  ;;  %v2672_v0 = vpop.permute.xlu0 %2671 }
 0x9d8   : > { %v2709_v14 = vsub.f32 %v2676_v28, %v6666_v6  ;;  %v2708_v19 = vsub.f32 %v2672_v0, %v6671_v3  ;;  %v6770_v0 = vld [vmem:[%s7806_s10 + $0x18] sm:$0xff] }
 0x9da   : > { %v2721_v42 = vmul.f32 %v6676_v9, %v2709_v14  ;;  %v2720_v13 = vmul.f32 %v6681_v44, %v2708_v19  ;;  %v6775_v14 = vld [vmem:[%s7807_s11 + $0x18] sm:$0xff] }
 0x9db   : > { %v2695_v5 = vpop.permute.xlu1 %2694  ;;  %v2691_v38 = vpop.permute.xlu0 %2690 }
 0x9dc   : > { %5025 = vtanh.f32 %v2721_v42  ;;  %v2713_v8 = vsub.f32 %v2695_v5, %v6666_v6  ;;  %v2712_v7 = vsub.f32 %v2691_v38, %v6671_v3 }
 0x9dd   : > { %5027 = vtanh.f32 %v2720_v13 }
 0x9de   : > { %v2725_v11 = vmul.f32 %v6676_v9, %v2713_v8  ;;  %v2724_v1 = vmul.f32 %v6681_v44, %v2712_v7 }
 0x9df   : > { %v2699_v40 = vpop.permute.xlu1 %2698  ;;  %v2680_v2 = vpop.permute.xlu0 %2679 }
 0x9e0   : > { %5029 = vtanh.f32 %v2725_v11  ;;  %v2714_v52 = vsub.f32 %v2699_v40, %v6692_v10  ;;  %v2710_v27 = vsub.f32 %v2680_v2, %v6692_v10 }
 0x9e1   : > { %5031 = vtanh.f32 %v2724_v1 }
 0x9e2   : > { %v2726_v31 = vmul.f32 %v6699_v21, %v2714_v52  ;;  %v2722_v16 = vmul.f32 %v6699_v21, %v2710_v27 }
 0x9e3   : > { %v2703_v35 = vpop.permute.xlu1 %2702  ;;  %v2684_v23 = vpop.permute.xlu0 %2683 }
 0x9e4   : > { %5033 = vtanh.f32 %v2726_v31  ;;  %v2715_v53 = vsub.f32 %v2703_v35, %v6706_v30  ;;  %v2711_v55 = vsub.f32 %v2684_v23, %v6706_v30 }
 0x9e5   : > { %5035 = vtanh.f32 %v2722_v16 }
 0x9e6   : > { %v5026_v63 = vpop.eup %5025  ;;  %v2727_v24 = vmul.f32 %v6713_v39, %v2715_v53  ;;  %v2723_v46 = vmul.f32 %v6713_v39, %v2711_v55 }
 0x9e7   : > { %v5028_v25 = vpop.eup %5027  ;;  %v2779_v33 = vmul.f32 %v5026_v63, %v6722_v34  ;;  %v2741_v20 = vmul.f32 %v5026_v63, %v6732_v48 }
 0x9e8   : > { %5037 = vtanh.f32 %v2727_v24  ;;  %v2778_v32 = vmul.f32 %v5028_v25, %v6727_v15  ;;  %v2740_v58 = vmul.f32 %v5028_v25, %v6738_v51 }
 0x9e9   : > { %5039 = vtanh.f32 %v2723_v46  ;;  %v2787_v45 = vsel %vm822_vm0, %v2779_v33, 0.0  ;;  %v2749_v19 = vsel %vm822_vm0, %v2741_v20, 0.0 }
 0x9ea   : > { %v5030_v47 = vpop.eup %5029  ;;  %v2786_v29 = vsel %vm822_vm0, %v2778_v32, 0.0  ;;  %v2748_v42 = vsel %vm822_vm0, %v2740_v58, 0.0 }
 0x9eb   : > { %v5032_v50 = vpop.eup %5031  ;;  %v2783_v36 = vmul.f32 %v5030_v47, %v6722_v34  ;;  %v2745_v56 = vmul.f32 %v5030_v47, %v6732_v48  ;;  %v2788_v38 = vadd.f32 %v2787_v45, %v2786_v29  ;;  %v2750_v31 = vadd.f32 %v2749_v19, %v2748_v42 }
 0x9ec   : > { %v2744_v17 = vmul.f32 %v5032_v50, %v6738_v51  ;;  %v2782_v12 = vmul.f32 %v5032_v50, %v6727_v15 }
 0x9ed   : > { %v2800_v22 = vsel %vm822_vm0, %v2783_v36, 0.0  ;;  %v2762_v61 = vsel %vm822_vm0, %v2745_v56, 0.0 }
 0x9ee   : > { %v5034_v62 = vpop.eup %5033  ;;  %v2799_v26 = vsel %vm822_vm0, %v2782_v12, 0.0  ;;  %v2761_v57 = vsel %vm822_vm0, %v2744_v17, 0.0 }
 0x9ef   : > { %v5036_v4 = vpop.eup %5035  ;;  %v2746_v54 = vmul.f32 %v5034_v62, %v6748_v37  ;;  %v2784_v49 = vmul.f32 %v5034_v62, %v6753_v41  ;;  %v2801_v8 = vadd.f32 %v2800_v22, %v2799_v26  ;;  %v2763_v40 = vadd.f32 %v2762_v61, %v2761_v57  ;;  %v2664_v26 = vld [vmem:[#allocation3 + $0x4] sm:$0x3] }
 0x9f0   : > { %v2742_v18 = vmul.f32 %v5036_v4, %v6748_v37  ;;  %v2780_v28 = vmul.f32 %v5036_v4, %v6753_v41 }
 0x9f1   : > { %v2802_v13 = vsel %vm822_vm0, %v2784_v49, 0.0  ;;  %v2764_v7 = vsel %vm822_vm0, %v2746_v54, 0.0 }
 0x9f2   : > { %v5038_v5 = vpop.eup %5037  ;;  %v2789_v11 = vsel %vm822_vm0, %v2780_v28, 0.0  ;;  %v2751_v2 = vsel %vm822_vm0, %v2742_v18, 0.0  ;;  %v2803_v16 = vadd.f32 %v2802_v13, %v2801_v8  ;;  %v2765_v53 = vadd.f32 %v2764_v7, %v2763_v40  ;;  %v5277_v28 = vld [vmem:[%s7810_s14] ss:$0 sm:$0xff] }
 0x9f3   : > { %v5040_v1 = vpop.eup %5039  ;;  %v2747_v52 = vmul.f32 %v5038_v5, %v6770_v0  ;;  %v2785_v27 = vmul.f32 %v5038_v5, %v6775_v14  ;;  %v2790_v55 = vadd.f32 %v2789_v11, %v2788_v38  ;;  %v2752_v46 = vadd.f32 %v2751_v2, %v2750_v31  ;;  %v2662_v2 = vld [vmem:[#allocation2 + $0x4] sm:$0x3]  ;;  %v5278_v31 = vld [vmem:[%s7809_s13] ss:$0 sm:$0xff] }
 0x9f4   : > { %v2743_v35 = vmul.f32 %v5040_v1, %v6770_v0  ;;  %v2781_v23 = vmul.f32 %v5040_v1, %v6775_v14  ;;  %v6794_v19 = vadd.f32 %v5277_v28, %v2664_v26 }
 0x9f5   : > { %v2766_v63 = vsel %vm822_vm0, %v2747_v52, 0.0  ;;  %v2804_v24 = vsel %vm822_vm0, %v2785_v27, 0.0 }
 0x9f6   : > { %v2805_v25 = vadd.f32 %v2804_v24, %v2803_v16  ;;  %v2753_v47 = vsel %vm822_vm0, %v2743_v35, 0.0  ;;  %v2791_v33 = vsel %vm822_vm0, %v2781_v23, 0.0  ;;  %v2767_v50 = vadd.f32 %v2766_v63, %v2765_v53  ;;  %v6806_v35 = vld [vmem:[%s7808_s12] ss:$0 sm:$0xff] }
 0x9f7   : > { %v2792_v32 = vadd.f32 %v2791_v33, %v2790_v55  ;;  %v2754_v56 = vadd.f32 %v2753_v47, %v2752_v46  ;;  %v6801_v16 = vadd.f32 %v5278_v31, %v2662_v2  ;;  %v2821_v23 = vmul.f32 %v6806_v35, %v6655_v43 }
 0x9f8   : > { %v2806_v36 = vrot.slane %v2805_v25, 4  ;;  %v2768_v58 = vrot.slane %v2767_v50, 4 }
 0x9f9   : > { %v2793_v17 = vrot.slane %v2792_v32, 4  ;;  %v2755_v45 = vrot.slane %v2754_v56, 4  ;;  %v2822_v46 = vadd.f32 %v2821_v23, %v6801_v16 }
 0x9fa   : > { %v2807_v12 = vadd.f32 %v2806_v36, %v2805_v25  ;;  %v2769_v54 = vadd.f32 %v2768_v58, %v2767_v50 }
 0x9fb   : > { %v2794_v20 = vadd.f32 %v2793_v17, %v2792_v32  ;;  %v2756_v61 = vadd.f32 %v2755_v45, %v2754_v56 }
 0x9fc   : > { %v2808_v62 = vrot.slane %v2807_v12, 2  ;;  %v2770_v13 = vrot.slane %v2769_v54, 2 }
 0x9fd   : > { %v2795_v29 = vrot.slane %v2794_v20, 2  ;;  %v2757_v5 = vrot.slane %v2756_v61, 2 }
 0x9fe   : > { %v2809_v4 = vadd.f32 %v2808_v62, %v2807_v12  ;;  %v2771_v7 = vadd.f32 %v2770_v13, %v2769_v54 }
 0x9ff   : > { %v2796_v22 = vadd.f32 %v2795_v29, %v2794_v20  ;;  %v2758_v11 = vadd.f32 %v2757_v5, %v2756_v61 }
 0xa00   : > { %v2810_v49 = vrot.slane %v2809_v4, 1  ;;  %v2772_v40 = vrot.slane %v2771_v7, 1 }
 0xa01   : > { %v2797_v57 = vrot.slane %v2796_v22, 1  ;;  %v2759_v1 = vrot.slane %v2758_v11, 1 }
 0xa02   : > { %v2811_v18 = vadd.f32 %v2810_v49, %v2809_v4  ;;  %v2773_v27 = vadd.f32 %v2772_v40, %v2771_v7 }
 0xa03   : > { %v2798_v42 = vadd.f32 %v2797_v57, %v2796_v22  ;;  %v2760_v52 = vadd.f32 %v2759_v1, %v2758_v11 }
 0xa05   : > { %v2814_v38 = vsel %vm1000_vm2, %v2811_v18, %v2798_v42  ;;  %v2825_v63 = vsel %vm1000_vm2, %v2773_v27, %v2760_v52 }
 0xa06   : > { %v2816_v8 = vadd.f32 %v2814_v38, %v6794_v19  ;;  %v2827_v47 = vadd.f32 %v2825_v63, %v2822_v46 }
 0xa08   : > { %5041 = vrcp.f32 %v2816_v8 }
 0xa12   : > { %v5042_v53 = vpop.eup %5041 }
 0xa13   : > { %v2818_v55 = vmul.f32 %v5042_v53, %v2816_v8 }
 0xa15   : > { %v2819_v24 = vsub.f32 2.0, %v2818_v55 }
 0xa17   : > { %v2820_v25 = vmul.f32 %v5042_v53, %v2819_v24 }
 0xa19   : > { %v6812_v33 = vmul.f32 %v2827_v47, %v2820_v25 }
 0xa1b   : > { %v2832_v32 = vrot.slane %v6812_v33, %v5578_v60  ;;  %v2851_v50 = vrot.slane %v6812_v33, %v5576_v59 }
 0xa1d   : > { %2838 = vbcast.lane.b32.xlu1 %v2832_v32, 264  ;;  %2834 = vbcast.lane.b32.xlu0 %v2832_v32, 256 }
 0xa21   : > { %2857 = vbcast.lane.b32.xlu1 %v2851_v50, 264  ;;  %2853 = vbcast.lane.b32.xlu0 %v2851_v50, 256 }
 0xa25   : > { %2861 = vbcast.lane.b32.xlu1 %v2851_v50, 272  ;;  %2842 = vbcast.lane.b32.xlu0 %v2832_v32, 272 }
 0xa29   : > { %2865 = vbcast.lane.b32.xlu1 %v2851_v50, 280  ;;  %2846 = vbcast.lane.b32.xlu0 %v2832_v32, 280 }
 0xa8f   : > { %v2839_v43 = vpop.permute.xlu1 %2838  ;;  %v2835_v36 = vpop.permute.xlu0 %2834 }
 0xa90   : > { %v2868_v56 = vsub.f32 %v2839_v43, %v6666_v6  ;;  %v2867_v17 = vsub.f32 %v2835_v36, %v6671_v3 }
 0xa92   : > { %v2876_v12 = vmul.f32 %v2868_v56, %v6676_v9  ;;  %v2875_v20 = vmul.f32 %v2867_v17, %v6681_v44 }
 0xa93   : > { %v2858_v58 = vpop.permute.xlu1 %2857  ;;  %v2854_v62 = vpop.permute.xlu0 %2853 }
 0xa94   : > { %5043 = vtanh.f32 %v2876_v12  ;;  %v2872_v45 = vsub.f32 %v2858_v58, %v6666_v6  ;;  %v2871_v29 = vsub.f32 %v2854_v62, %v6671_v3 }
 0xa95   : > { %5045 = vtanh.f32 %v2875_v20 }
 0xa96   : > { %v2880_v4 = vmul.f32 %v2872_v45, %v6676_v9  ;;  %v2879_v22 = vmul.f32 %v2871_v29, %v6681_v44 }
 0xa97   : > { %v2862_v26 = vpop.permute.xlu1 %2861  ;;  %v2843_v54 = vpop.permute.xlu0 %2842 }
 0xa98   : > { %5047 = vtanh.f32 %v2880_v4  ;;  %v2873_v49 = vsub.f32 %v2862_v26, %v6692_v10  ;;  %v2869_v61 = vsub.f32 %v2843_v54, %v6692_v10 }
 0xa99   : > { %5049 = vtanh.f32 %v2879_v22 }
 0xa9a   : > { %v2881_v57 = vmul.f32 %v2873_v49, %v6699_v21  ;;  %v2877_v18 = vmul.f32 %v2869_v61, %v6699_v21 }
 0xa9b   : > { %v2866_v28 = vpop.permute.xlu1 %2865  ;;  %v2847_v42 = vpop.permute.xlu0 %2846 }
 0xa9c   : > { %5051 = vtanh.f32 %v2881_v57  ;;  %v2874_v13 = vsub.f32 %v2866_v28, %v6706_v30  ;;  %v2870_v5 = vsub.f32 %v2847_v42, %v6706_v30 }
 0xa9d   : > { %5053 = vtanh.f32 %v2877_v18 }
 0xa9e   : > { %v5044_v38 = vpop.eup %5043  ;;  %v2882_v8 = vmul.f32 %v2874_v13, %v6713_v39  ;;  %v2878_v7 = vmul.f32 %v2870_v5, %v6713_v39 }
 0xa9f   : > { %v5046_v11 = vpop.eup %5045  ;;  %v2926_v40 = vmul.f32 %v5044_v38, %v6722_v34  ;;  %v2892_v55 = vmul.f32 %v5044_v38, %v6732_v48 }
 0xaa0   : > { %5055 = vtanh.f32 %v2882_v8  ;;  %v2925_v2 = vmul.f32 %v5046_v11, %v6727_v15  ;;  %v2891_v63 = vmul.f32 %v5046_v11, %v6738_v51 }
 0xaa1   : > { %5057 = vtanh.f32 %v2878_v7  ;;  %v2934_v46 = vsel %vm822_vm0, %v2926_v40, 0.0  ;;  %v2900_v58 = vsel %vm822_vm0, %v2892_v55, 0.0 }
 0xaa2   : > { %v5048_v1 = vpop.eup %5047  ;;  %v2933_v25 = vsel %vm822_vm0, %v2925_v2, 0.0  ;;  %v2899_v62 = vsel %vm822_vm0, %v2891_v63, 0.0 }
 0xaa3   : > { %v5050_v52 = vpop.eup %5049  ;;  %v2930_v27 = vmul.f32 %v5048_v1, %v6722_v34  ;;  %v2896_v31 = vmul.f32 %v5048_v1, %v6732_v48  ;;  %v2935_v4 = vadd.f32 %v2934_v46, %v2933_v25  ;;  %v2901_v42 = vadd.f32 %v2900_v58, %v2899_v62 }
 0xaa4   : > { %v2895_v23 = vmul.f32 %v5050_v52, %v6738_v51  ;;  %v2929_v53 = vmul.f32 %v5050_v52, %v6727_v15 }
 0xaa5   : > { %v2947_v32 = vsel %vm822_vm0, %v2930_v27, 0.0  ;;  %v2913_v56 = vsel %vm822_vm0, %v2896_v31, 0.0 }
 0xaa6   : > { %v5052_v24 = vpop.eup %5051  ;;  %v2946_v50 = vsel %vm822_vm0, %v2929_v53, 0.0  ;;  %v2912_v17 = vsel %vm822_vm0, %v2895_v23, 0.0 }
 0xaa7   : > { %v5054_v47 = vpop.eup %5053  ;;  %v2897_v43 = vmul.f32 %v5052_v24, %v6748_v37  ;;  %v2931_v36 = vmul.f32 %v5052_v24, %v6753_v41  ;;  %v2948_v22 = vadd.f32 %v2947_v32, %v2946_v50  ;;  %v2914_v61 = vadd.f32 %v2913_v56, %v2912_v17 }
 0xaa8   : > { %v2893_v12 = vmul.f32 %v5054_v47, %v6748_v37  ;;  %v2927_v20 = vmul.f32 %v5054_v47, %v6753_v41 }
 0xaa9   : > { %v2949_v45 = vsel %vm822_vm0, %v2931_v36, 0.0  ;;  %v2915_v26 = vsel %vm822_vm0, %v2897_v43, 0.0 }
 0xaaa   : > { %v5056_v29 = vpop.eup %5055  ;;  %v2936_v54 = vsel %vm822_vm0, %v2927_v20, 0.0  ;;  %v2902_v57 = vsel %vm822_vm0, %v2893_v12, 0.0  ;;  %v2950_v13 = vadd.f32 %v2949_v45, %v2948_v22  ;;  %v2916_v8 = vadd.f32 %v2915_v26, %v2914_v61 }
 0xaab   : > { %v5058_v49 = vpop.eup %5057  ;;  %v2898_v18 = vmul.f32 %v5056_v29, %v6770_v0  ;;  %v2932_v28 = vmul.f32 %v5056_v29, %v6775_v14  ;;  %v2937_v7 = vadd.f32 %v2936_v54, %v2935_v4  ;;  %v2903_v40 = vadd.f32 %v2902_v57, %v2901_v42 }
 0xaac   : > { %v2894_v5 = vmul.f32 %v5058_v49, %v6770_v0  ;;  %v2928_v38 = vmul.f32 %v5058_v49, %v6775_v14 }
 0xaad   : > { %v2917_v11 = vsel %vm822_vm0, %v2898_v18, 0.0  ;;  %v2951_v1 = vsel %vm822_vm0, %v2932_v28, 0.0  ;;  %v2968_v28 = vmul.f32 %v6806_v35, %v6812_v33 }
 0xaae   : > { %v2952_v2 = vadd.f32 %v2951_v1, %v2950_v13  ;;  %v2904_v52 = vsel %vm822_vm0, %v2894_v5, 0.0  ;;  %v2938_v27 = vsel %vm822_vm0, %v2928_v38, 0.0  ;;  %v2918_v23 = vadd.f32 %v2917_v11, %v2916_v8 }
 0xaaf   : > { %v2939_v31 = vadd.f32 %v2938_v27, %v2937_v7  ;;  %v2905_v55 = vadd.f32 %v2904_v52, %v2903_v40  ;;  %v2969_v8 = vadd.f32 %v2968_v28, %v6801_v16 }
 0xab0   : > { %v2953_v53 = vrot.slane %v2952_v2, 4  ;;  %v2919_v25 = vrot.slane %v2918_v23, 4 }
 0xab1   : > { %v2940_v63 = vrot.slane %v2939_v31, 4  ;;  %v2906_v32 = vrot.slane %v2905_v55, 4 }
 0xab2   : > { %v2954_v24 = vadd.f32 %v2953_v53, %v2952_v2  ;;  %v2920_v56 = vadd.f32 %v2919_v25, %v2918_v23 }
 0xab3   : > { %v2941_v46 = vadd.f32 %v2940_v63, %v2939_v31  ;;  %v2907_v12 = vadd.f32 %v2906_v32, %v2905_v55 }
 0xab4   : > { %v2955_v47 = vrot.slane %v2954_v24, 2  ;;  %v2921_v45 = vrot.slane %v2920_v56, 2 }
 0xab5   : > { %v2942_v50 = vrot.slane %v2941_v46, 2  ;;  %v2908_v29 = vrot.slane %v2907_v12, 2 }
 0xab6   : > { %v2956_v43 = vadd.f32 %v2955_v47, %v2954_v24  ;;  %v2922_v26 = vadd.f32 %v2921_v45, %v2920_v56 }
 0xab7   : > { %v2943_v36 = vadd.f32 %v2942_v50, %v2941_v46  ;;  %v2909_v54 = vadd.f32 %v2908_v29, %v2907_v12 }
 0xab8   : > { %v2957_v17 = vrot.slane %v2956_v43, 1  ;;  %v2923_v61 = vrot.slane %v2922_v26, 1 }
 0xab9   : > { %v2944_v20 = vrot.slane %v2943_v36, 1  ;;  %v2910_v49 = vrot.slane %v2909_v54, 1 }
 0xaba   : > { %v2958_v58 = vadd.f32 %v2957_v17, %v2956_v43  ;;  %v2924_v18 = vadd.f32 %v2923_v61, %v2922_v26 }
 0xabb   : > { %v2945_v62 = vadd.f32 %v2944_v20, %v2943_v36  ;;  %v2911_v57 = vadd.f32 %v2910_v49, %v2909_v54 }
 0xabd   : > { %v2961_v4 = vsel %vm1000_vm2, %v2958_v58, %v2945_v62  ;;  %v2972_v5 = vsel %vm1000_vm2, %v2924_v18, %v2911_v57 }
 0xabe   : > { %v2963_v22 = vadd.f32 %v2961_v4, %v6794_v19  ;;  %v2974_v11 = vadd.f32 %v2972_v5, %v2969_v8 }
 0xac0   : > { %5059 = vrcp.f32 %v2963_v22 }
 0xaca   : > { %v5060_v42 = vpop.eup %5059 }
 0xacb   : > { %v2965_v13 = vmul.f32 %v5060_v42, %v2963_v22 }
 0xacd   : > { %v2966_v38 = vsub.f32 2.0, %v2965_v13 }
 0xacf   : > { %v2967_v7 = vmul.f32 %v5060_v42, %v2966_v38 }
 0xad1   : > { %v6872_v1 = vmul.f32 %v2974_v11, %v2967_v7 }
 0xad3   : > { %v2979_v40 = vrot.slane %v6872_v1, %v5578_v60  ;;  %v2998_v2 = vrot.slane %v6872_v1, %v5576_v59 }
 0xad5   : > { %2985 = vbcast.lane.b32.xlu1 %v2979_v40, 264  ;;  %2981 = vbcast.lane.b32.xlu0 %v2979_v40, 256 }
 0xad9   : > { %3004 = vbcast.lane.b32.xlu1 %v2998_v2, 264  ;;  %3000 = vbcast.lane.b32.xlu0 %v2998_v2, 256 }
 0xadd   : > { %3008 = vbcast.lane.b32.xlu1 %v2998_v2, 272  ;;  %2989 = vbcast.lane.b32.xlu0 %v2979_v40, 272 }
 0xae1   : > { %3012 = vbcast.lane.b32.xlu1 %v2998_v2, 280  ;;  %2993 = vbcast.lane.b32.xlu0 %v2979_v40, 280 }
 0xb47   : > { %v2986_v33 = vpop.permute.xlu1 %2985  ;;  %v2982_v52 = vpop.permute.xlu0 %2981 }
 0xb48   : > { %v3015_v27 = vsub.f32 %v2986_v33, %v6666_v6  ;;  %v3014_v31 = vsub.f32 %v2982_v52, %v6671_v3 }
 0xb4a   : > { %v3023_v23 = vmul.f32 %v3015_v27, %v6676_v9  ;;  %v3022_v53 = vmul.f32 %v3014_v31, %v6681_v44 }
 0xb4b   : > { %v3005_v55 = vpop.permute.xlu1 %3004  ;;  %v3001_v63 = vpop.permute.xlu0 %3000 }
 0xb4c   : > { %5061 = vtanh.f32 %v3023_v23  ;;  %v3019_v24 = vsub.f32 %v3005_v55, %v6666_v6  ;;  %v3018_v46 = vsub.f32 %v3001_v63, %v6671_v3 }
 0xb4d   : > { %5063 = vtanh.f32 %v3022_v53 }
 0xb4e   : > { %v3027_v25 = vmul.f32 %v3019_v24, %v6676_v9  ;;  %v3026_v47 = vmul.f32 %v3018_v46, %v6681_v44 }
 0xb4f   : > { %v3009_v32 = vpop.permute.xlu1 %3008  ;;  %v2990_v50 = vpop.permute.xlu0 %2989 }
 0xb50   : > { %5065 = vtanh.f32 %v3027_v25  ;;  %v3020_v43 = vsub.f32 %v3009_v32, %v6692_v10  ;;  %v3016_v36 = vsub.f32 %v2990_v50, %v6692_v10 }
 0xb51   : > { %5067 = vtanh.f32 %v3026_v47 }
 0xb52   : > { %v3028_v56 = vmul.f32 %v3020_v43, %v6699_v21  ;;  %v3024_v17 = vmul.f32 %v3016_v36, %v6699_v21 }
 0xb53   : > { %v3013_v12 = vpop.permute.xlu1 %3012  ;;  %v2994_v20 = vpop.permute.xlu0 %2993 }
 0xb54   : > { %5069 = vtanh.f32 %v3028_v56  ;;  %v3021_v58 = vsub.f32 %v3013_v12, %v6706_v30  ;;  %v3017_v62 = vsub.f32 %v2994_v20, %v6706_v30 }
 0xb55   : > { %5071 = vtanh.f32 %v3024_v17 }
 0xb56   : > { %v5062_v45 = vpop.eup %5061  ;;  %v3029_v29 = vmul.f32 %v3021_v58, %v6713_v39  ;;  %v3025_v4 = vmul.f32 %v3017_v62, %v6713_v39 }
 0xb57   : > { %v5064_v22 = vpop.eup %5063  ;;  %v3073_v54 = vmul.f32 %v5062_v45, %v6722_v34  ;;  %v3039_v13 = vmul.f32 %v5062_v45, %v6732_v48 }
 0xb58   : > { %5073 = vtanh.f32 %v3029_v29  ;;  %v3072_v49 = vmul.f32 %v5064_v22, %v6727_v15  ;;  %v3038_v5 = vmul.f32 %v5064_v22, %v6738_v51 }
 0xb59   : > { %5075 = vtanh.f32 %v3025_v4  ;;  %v3081_v8 = vsel %vm822_vm0, %v3073_v54, 0.0  ;;  %v3047_v55 = vsel %vm822_vm0, %v3039_v13, 0.0 }
 0xb5a   : > { %v5066_v26 = vpop.eup %5065  ;;  %v3080_v7 = vsel %vm822_vm0, %v3072_v49, 0.0  ;;  %v3046_v63 = vsel %vm822_vm0, %v3038_v5, 0.0 }
 0xb5b   : > { %v5068_v61 = vpop.eup %5067  ;;  %v3077_v57 = vmul.f32 %v5066_v26, %v6722_v34  ;;  %v3043_v18 = vmul.f32 %v5066_v26, %v6732_v48  ;;  %v3082_v25 = vadd.f32 %v3081_v8, %v3080_v7  ;;  %v3048_v20 = vadd.f32 %v3047_v55, %v3046_v63 }
 0xb5c   : > { %v3042_v28 = vmul.f32 %v5068_v61, %v6738_v51  ;;  %v3076_v42 = vmul.f32 %v5068_v61, %v6727_v15 }
 0xb5d   : > { %v3094_v40 = vsel %vm822_vm0, %v3077_v57, 0.0  ;;  %v3060_v27 = vsel %vm822_vm0, %v3043_v18, 0.0 }
 0xb5e   : > { %v5070_v38 = vpop.eup %5069  ;;  %v3093_v2 = vsel %vm822_vm0, %v3076_v42, 0.0  ;;  %v3059_v31 = vsel %vm822_vm0, %v3042_v28, 0.0 }
 0xb5f   : > { %v5072_v11 = vpop.eup %5071  ;;  %v3044_v33 = vmul.f32 %v5070_v38, %v6748_v37  ;;  %v3078_v52 = vmul.f32 %v5070_v38, %v6753_v41  ;;  %v3095_v47 = vadd.f32 %v3094_v40, %v3093_v2  ;;  %v3061_v36 = vadd.f32 %v3060_v27, %v3059_v31 }
 0xb60   : > { %v3040_v23 = vmul.f32 %v5072_v11, %v6748_v37  ;;  %v3074_v53 = vmul.f32 %v5072_v11, %v6753_v41 }
 0xb61   : > { %v3096_v24 = vsel %vm822_vm0, %v3078_v52, 0.0  ;;  %v3062_v32 = vsel %vm822_vm0, %v3044_v33, 0.0 }
 0xb62   : > { %v5074_v46 = vpop.eup %5073  ;;  %v3083_v50 = vsel %vm822_vm0, %v3074_v53, 0.0  ;;  %v3049_v56 = vsel %vm822_vm0, %v3040_v23, 0.0  ;;  %v3097_v58 = vadd.f32 %v3096_v24, %v3095_v47  ;;  %v3063_v29 = vadd.f32 %v3062_v32, %v3061_v36 }
 0xb63   : > { %v5076_v43 = vpop.eup %5075  ;;  %v3045_v17 = vmul.f32 %v5074_v46, %v6770_v0  ;;  %v3079_v12 = vmul.f32 %v5074_v46, %v6775_v14  ;;  %v3084_v4 = vadd.f32 %v3083_v50, %v3082_v25  ;;  %v3050_v54 = vadd.f32 %v3049_v56, %v3048_v20 }
 0xb64   : > { %v3041_v62 = vmul.f32 %v5076_v43, %v6770_v0  ;;  %v3075_v45 = vmul.f32 %v5076_v43, %v6775_v14 }
 0xb65   : > { %v3064_v22 = vsel %vm822_vm0, %v3045_v17, 0.0  ;;  %v3098_v26 = vsel %vm822_vm0, %v3079_v12, 0.0  ;;  %v3115_v12 = vmul.f32 %v6806_v35, %v6872_v1 }
 0xb66   : > { %v3099_v49 = vadd.f32 %v3098_v26, %v3097_v58  ;;  %v3051_v61 = vsel %vm822_vm0, %v3041_v62, 0.0  ;;  %v3085_v57 = vsel %vm822_vm0, %v3075_v45, 0.0  ;;  %v3065_v28 = vadd.f32 %v3064_v22, %v3063_v29 }
 0xb67   : > { %v3086_v18 = vadd.f32 %v3085_v57, %v3084_v4  ;;  %v3052_v13 = vadd.f32 %v3051_v61, %v3050_v54  ;;  %v3116_v29 = vadd.f32 %v3115_v12, %v6801_v16 }
 0xb68   : > { %v3100_v42 = vrot.slane %v3099_v49, 4  ;;  %v3066_v7 = vrot.slane %v3065_v28, 4 }
 0xb69   : > { %v3087_v5 = vrot.slane %v3086_v18, 4  ;;  %v3053_v40 = vrot.slane %v3052_v13, 4 }
 0xb6a   : > { %v3101_v38 = vadd.f32 %v3100_v42, %v3099_v49  ;;  %v3067_v27 = vadd.f32 %v3066_v7, %v3065_v28 }
 0xb6b   : > { %v3088_v8 = vadd.f32 %v3087_v5, %v3086_v18  ;;  %v3054_v23 = vadd.f32 %v3053_v40, %v3052_v13 }
 0xb6c   : > { %v3102_v11 = vrot.slane %v3101_v38, 2  ;;  %v3068_v24 = vrot.slane %v3067_v27, 2 }
 0xb6d   : > { %v3089_v2 = vrot.slane %v3088_v8, 2  ;;  %v3055_v46 = vrot.slane %v3054_v23, 2 }
 0xb6e   : > { %v3103_v33 = vadd.f32 %v3102_v11, %v3101_v38  ;;  %v3069_v32 = vadd.f32 %v3068_v24, %v3067_v27 }
 0xb6f   : > { %v3090_v52 = vadd.f32 %v3089_v2, %v3088_v8  ;;  %v3056_v50 = vadd.f32 %v3055_v46, %v3054_v23 }
 0xb70   : > { %v3104_v31 = vrot.slane %v3103_v33, 1  ;;  %v3070_v36 = vrot.slane %v3069_v32, 1 }
 0xb71   : > { %v3091_v53 = vrot.slane %v3090_v52, 1  ;;  %v3057_v43 = vrot.slane %v3056_v50, 1 }
 0xb72   : > { %v3105_v55 = vadd.f32 %v3104_v31, %v3103_v33  ;;  %v3071_v17 = vadd.f32 %v3070_v36, %v3069_v32 }
 0xb73   : > { %v3092_v63 = vadd.f32 %v3091_v53, %v3090_v52  ;;  %v3058_v56 = vadd.f32 %v3057_v43, %v3056_v50 }
 0xb75   : > { %v3108_v25 = vsel %vm1000_vm2, %v3105_v55, %v3092_v63  ;;  %v3119_v62 = vsel %vm1000_vm2, %v3071_v17, %v3058_v56 }
 0xb76   : > { %v3110_v47 = vadd.f32 %v3108_v25, %v6794_v19  ;;  %v3121_v22 = vadd.f32 %v3119_v62, %v3116_v29 }
 0xb78   : > { %5077 = vrcp.f32 %v3110_v47 }
 0xb82   : > { %v5078_v20 = vpop.eup %5077 }
 0xb83   : > { %v3112_v58 = vmul.f32 %v5078_v20, %v3110_v47 }
 0xb85   : > { %v3113_v45 = vsub.f32 2.0, %v3112_v58 }
 0xb87   : > { %v3114_v4 = vmul.f32 %v5078_v20, %v3113_v45 }
 0xb89   : > { %v6932_v26 = vmul.f32 %v3121_v22, %v3114_v4 }
 0xb8b   : > { %v3126_v54 = vrot.slane %v6932_v26, %v5578_v60  ;;  %v3145_v49 = vrot.slane %v6932_v26, %v5576_v59 }
 0xb8d   : > { %3132 = vbcast.lane.b32.xlu1 %v3126_v54, 264  ;;  %3128 = vbcast.lane.b32.xlu0 %v3126_v54, 256 }
 0xb91   : > { %3151 = vbcast.lane.b32.xlu1 %v3145_v49, 264  ;;  %3147 = vbcast.lane.b32.xlu0 %v3145_v49, 256 }
 0xb95   : > { %3155 = vbcast.lane.b32.xlu1 %v3145_v49, 272  ;;  %3136 = vbcast.lane.b32.xlu0 %v3126_v54, 272 }
 0xb99   : > { %3159 = vbcast.lane.b32.xlu1 %v3145_v49, 280  ;;  %3140 = vbcast.lane.b32.xlu0 %v3126_v54, 280 }
 0xbff   : > { %v3133_v1 = vpop.permute.xlu1 %3132  ;;  %v3129_v61 = vpop.permute.xlu0 %3128 }
 0xc00   : > { %v3162_v57 = vsub.f32 %v3133_v1, %v6666_v6  ;;  %v3161_v18 = vsub.f32 %v3129_v61, %v6671_v3 }
 0xc02   : > { %v3170_v28 = vmul.f32 %v3162_v57, %v6676_v9  ;;  %v3169_v42 = vmul.f32 %v3161_v18, %v6681_v44 }
 0xc03   : > { %v3152_v13 = vpop.permute.xlu1 %3151  ;;  %v3148_v5 = vpop.permute.xlu0 %3147 }
 0xc04   : > { %5079 = vtanh.f32 %v3170_v28  ;;  %v3166_v38 = vsub.f32 %v3152_v13, %v6666_v6  ;;  %v3165_v8 = vsub.f32 %v3148_v5, %v6671_v3 }
 0xc05   : > { %5081 = vtanh.f32 %v3169_v42 }
 0xc06   : > { %v3174_v7 = vmul.f32 %v3166_v38, %v6676_v9  ;;  %v3173_v11 = vmul.f32 %v3165_v8, %v6681_v44 }
 0xc07   : > { %v3156_v40 = vpop.permute.xlu1 %3155  ;;  %v3137_v2 = vpop.permute.xlu0 %3136 }
 0xc08   : > { %5083 = vtanh.f32 %v3174_v7  ;;  %v3167_v33 = vsub.f32 %v3156_v40, %v6692_v10  ;;  %v3163_v52 = vsub.f32 %v3137_v2, %v6692_v10 }
 0xc09   : > { %5085 = vtanh.f32 %v3173_v11 }
 0xc0a   : > { %v3175_v27 = vmul.f32 %v3167_v33, %v6699_v21  ;;  %v3171_v31 = vmul.f32 %v3163_v52, %v6699_v21 }
 0xc0b   : > { %v3160_v6 = vpop.permute.xlu1 %3159  ;;  %v3141_v23 = vpop.permute.xlu0 %3140 }
 0xc0c   : > { %5087 = vtanh.f32 %v3175_v27  ;;  %v3168_v3 = vsub.f32 %v3160_v6, %v6706_v30  ;;  %v3164_v9 = vsub.f32 %v3141_v23, %v6706_v30 }
 0xc0d   : > { %5089 = vtanh.f32 %v3171_v31 }
 0xc0e   : > { %v5080_v44 = vpop.eup %5079  ;;  %v3176_v53 = vmul.f32 %v3168_v3, %v6713_v39  ;;  %v3172_v55 = vmul.f32 %v3164_v9, %v6713_v39 }
 0xc0f   : > { %v5082_v63 = vpop.eup %5081  ;;  %v3220_v24 = vmul.f32 %v5080_v44, %v6722_v34  ;;  %v3186_v50 = vmul.f32 %v5080_v44, %v6732_v48 }
 0xc10   : > { %5091 = vtanh.f32 %v3176_v53  ;;  %v3219_v21 = vmul.f32 %v5082_v63, %v6727_v15  ;;  %v3185_v39 = vmul.f32 %v5082_v63, %v6738_v51 }
 0xc11   : > { %5093 = vtanh.f32 %v3172_v55  ;;  %v3228_v36 = vsel %vm822_vm0, %v3220_v24, 0.0  ;;  %v3194_v45 = vsel %vm822_vm0, %v3186_v50, 0.0 }
 0xc12   : > { %v5084_v10 = vpop.eup %5083  ;;  %v3227_v56 = vsel %vm822_vm0, %v3219_v21, 0.0  ;;  %v3193_v29 = vsel %vm822_vm0, %v3185_v39, 0.0 }
 0xc13   : > { %v5086_v46 = vpop.eup %5085  ;;  %v3224_v25 = vmul.f32 %v5084_v10, %v6722_v34  ;;  %v3190_v47 = vmul.f32 %v5084_v10, %v6732_v48  ;;  %v3229_v54 = vadd.f32 %v3228_v36, %v3227_v56  ;;  %v3195_v42 = vadd.f32 %v3194_v45, %v3193_v29 }
 0xc14   : > { %v3189_v30 = vmul.f32 %v5086_v46, %v6738_v51  ;;  %v3223_v32 = vmul.f32 %v5086_v46, %v6727_v15 }
 0xc15   : > { %v3241_v12 = vsel %vm822_vm0, %v3224_v25, 0.0  ;;  %v3207_v15 = vsel %vm822_vm0, %v3190_v47, 0.0 }
 0xc16   : > { %v5088_v43 = vpop.eup %5087  ;;  %v3240_v34 = vsel %vm822_vm0, %v3223_v32, 0.0  ;;  %v3206_v48 = vsel %vm822_vm0, %v3189_v30, 0.0 }
 0xc17   : > { %v5090_v17 = vpop.eup %5089  ;;  %v3191_v20 = vmul.f32 %v5088_v43, %v6748_v37  ;;  %v3225_v58 = vmul.f32 %v5088_v43, %v6753_v41  ;;  %v3242_v49 = vadd.f32 %v3241_v12, %v3240_v34  ;;  %v3208_v18 = vadd.f32 %v3207_v15, %v3206_v48 }
 0xc18   : > { %v3187_v51 = vmul.f32 %v5090_v17, %v6748_v37  ;;  %v3221_v62 = vmul.f32 %v5090_v17, %v6753_v41  ;;  %v3262_v15 = vmul.f32 %v6806_v35, %v6932_v26 }
 0xc19   : > { %v3243_v4 = vsel %vm822_vm0, %v3225_v58, 0.0  ;;  %v3209_v1 = vsel %vm822_vm0, %v3191_v20, 0.0 }
 0xc1a   : > { %v5092_v22 = vpop.eup %5091  ;;  %v3230_v61 = vsel %vm822_vm0, %v3221_v62, 0.0  ;;  %v3196_v28 = vsel %vm822_vm0, %v3187_v51, 0.0  ;;  %v3244_v13 = vadd.f32 %v3243_v4, %v3242_v49  ;;  %v3210_v8 = vadd.f32 %v3209_v1, %v3208_v18  ;;  %v7007_v18 = vld [vmem:[%s7804_s8] sm:$0xff] }
 0xc1b   : > { %v5094_v57 = vpop.eup %5093  ;;  %v3192_v37 = vmul.f32 %v5092_v22, %v6770_v0  ;;  %v3226_v41 = vmul.f32 %v5092_v22, %v6775_v14  ;;  %v3231_v7 = vadd.f32 %v3230_v61, %v3229_v54  ;;  %v3197_v2 = vadd.f32 %v3196_v28, %v3195_v42  ;;  %v7001_v61 = vld [vmem:[%s7804_s8 + $0x8] sm:$0xff]  ;;  %v7019_v42 = vld [vmem:[%s7805_s9] sm:$0xff] }
 0xc1c   : > { %v3188_v5 = vmul.f32 %v5094_v57, %v6770_v0  ;;  %v3222_v38 = vmul.f32 %v5094_v57, %v6775_v14  ;;  %v3263_v29 = vadd.f32 %v3262_v15, %v6801_v16 }
 0xc1d   : > { %v3211_v11 = vsel %vm822_vm0, %v3192_v37, 0.0  ;;  %v3245_v40 = vsel %vm822_vm0, %v3226_v41, 0.0  ;;  %v7013_v37 = vld [vmem:[%s7805_s9 + $0x8] sm:$0xff] }
 0xc1e   : > { %v3246_v33 = vadd.f32 %v3245_v40, %v3244_v13  ;;  %v3198_v52 = vsel %vm822_vm0, %v3188_v5, 0.0  ;;  %v3232_v27 = vsel %vm822_vm0, %v3222_v38, 0.0  ;;  %v3212_v6 = vadd.f32 %v3211_v11, %v3210_v8 }
 0xc1f   : > { %v3233_v31 = vadd.f32 %v3232_v27, %v3231_v7  ;;  %v3199_v3 = vadd.f32 %v3198_v52, %v3197_v2  ;;  %v7029_v52 = vld [vmem:[%s7804_s8 + $0x10] sm:$0xff] }
 0xc20   : > { %v3247_v23 = vrot.slane %v3246_v33, 4  ;;  %v3213_v14 = vrot.slane %v3212_v6, 4 }
 0xc21   : > { %v3234_v9 = vrot.slane %v3233_v31, 4  ;;  %v3200_v55 = vrot.slane %v3199_v3, 4 }
 0xc22   : > { %v3248_v0 = vadd.f32 %v3247_v23, %v3246_v33  ;;  %v3214_v21 = vadd.f32 %v3213_v14, %v3212_v6  ;;  %v7036_v6 = vld [vmem:[%s7805_s9 + $0x10] sm:$0xff] }
 0xc23   : > { %v3235_v44 = vadd.f32 %v3234_v9, %v3233_v31  ;;  %v3201_v25 = vadd.f32 %v3200_v55, %v3199_v3 }
 0xc24   : > { %v3249_v53 = vrot.slane %v3248_v0, 2  ;;  %v3215_v50 = vrot.slane %v3214_v21, 2 }
 0xc25   : > { %v3236_v63 = vrot.slane %v3235_v44, 2  ;;  %v3202_v39 = vrot.slane %v3201_v25, 2 }
 0xc26   : > { %v3250_v10 = vadd.f32 %v3249_v53, %v3248_v0  ;;  %v3216_v56 = vadd.f32 %v3215_v50, %v3214_v21 }
 0xc27   : > { %v3237_v24 = vadd.f32 %v3236_v63, %v3235_v44  ;;  %v3203_v17 = vadd.f32 %v3202_v39, %v3201_v25  ;;  %v7043_v44 = vld [vmem:[%s7804_s8 + $0x18] sm:$0xff]  ;;  %v7057_v25 = vld [vmem:[%s7807_s11 + $0x8] sm:$0xff] }
 0xc28   : > { %v3251_v46 = vrot.slane %v3250_v10, 1  ;;  %v3217_v34 = vrot.slane %v3216_v56, 1  ;;  %v7050_v63 = vld [vmem:[%s7805_s9 + $0x18] sm:$0xff] }
 0xc29   : > { %v3238_v47 = vrot.slane %v3237_v24, 1  ;;  %v3204_v12 = vrot.slane %v3203_v17, 1 }
 0xc2a   : > { %v3252_v30 = vadd.f32 %v3251_v46, %v3250_v10  ;;  %v3218_v58 = vadd.f32 %v3217_v34, %v3216_v56  ;;  %v7076_v56 = vld [vmem:[%s7806_s10] sm:$0xff] }
 0xc2b   : > { %v3239_v32 = vadd.f32 %v3238_v47, %v3237_v24  ;;  %v3205_v20 = vadd.f32 %v3204_v12, %v3203_v17 }
 0xc2d   : > { %v3255_v43 = vsel %vm1000_vm2, %v3252_v30, %v3239_v32  ;;  %v3266_v62 = vsel %vm1000_vm2, %v3218_v58, %v3205_v20  ;;  %v7063_v30 = vld [vmem:[%s7807_s11] sm:$0xff] }
 0xc2e   : > { %v3257_v36 = vadd.f32 %v3255_v43, %v6794_v19  ;;  %v3268_v22 = vadd.f32 %v3266_v62, %v3263_v29  ;;  %v7070_v43 = vld [vmem:[%s7806_s10 + $0x8] sm:$0xff]  ;;  %v7089_v29 = vld [vmem:[%s7806_s10 + $0x10] sm:$0xff] }
 0xc30   : > { %5095 = vrcp.f32 %v3257_v36 }
 0xc3a   : > { %v5096_v48 = vpop.eup %5095 }
 0xc3b   : > { %v3259_v51 = vmul.f32 %v5096_v48, %v3257_v36 }
 0xc3d   : > { %v3260_v45 = vsub.f32 2.0, %v3259_v51 }
 0xc3f   : > { %v3261_v4 = vmul.f32 %v5096_v48, %v3260_v45 }
 0xc41   : > { %v6992_v54 = vmul.f32 %v3268_v22, %v3261_v4  ;;  %v7095_v22 = vld [vmem:[%s7807_s11 + $0x10] sm:$0xff] }
 0xc43   : > { %v3273_v49 = vrot.slane %v6992_v54, %v5578_v60  ;;  %v3292_v1 = vrot.slane %v6992_v54, %v5576_v59 }
 0xc45   : > { %3279 = vbcast.lane.b32.xlu1 %v3273_v49, 264  ;;  %3275 = vbcast.lane.b32.xlu0 %v3273_v49, 256 }
 0xc49   : > { %3298 = vbcast.lane.b32.xlu1 %v3292_v1, 264  ;;  %3294 = vbcast.lane.b32.xlu0 %v3292_v1, 256 }
 0xc4d   : > { %3302 = vbcast.lane.b32.xlu1 %v3292_v1, 272  ;;  %3283 = vbcast.lane.b32.xlu0 %v3273_v49, 272 }
 0xc51   : > { %3306 = vbcast.lane.b32.xlu1 %v3292_v1, 280  ;;  %3287 = vbcast.lane.b32.xlu0 %v3273_v49, 280 }
 0xcb7   : > { %v3280_v35 = vpop.permute.xlu1 %3279  ;;  %v3276_v26 = vpop.permute.xlu0 %3275 }
 0xcb8   : > { %v3309_v57 = vsub.f32 %v3280_v35, %v7001_v61  ;;  %v3308_v28 = vsub.f32 %v3276_v26, %v7007_v18 }
 0xcba   : > { %v3317_v41 = vmul.f32 %v7013_v37, %v3309_v57  ;;  %v3316_v13 = vmul.f32 %v7019_v42, %v3308_v28 }
 0xcbb   : > { %v3299_v5 = vpop.permute.xlu1 %3298  ;;  %v3295_v38 = vpop.permute.xlu0 %3294 }
 0xcbc   : > { %5097 = vtanh.f32 %v3317_v41  ;;  %v3313_v8 = vsub.f32 %v3299_v5, %v7001_v61  ;;  %v3312_v7 = vsub.f32 %v3295_v38, %v7007_v18 }
 0xcbd   : > { %5099 = vtanh.f32 %v3316_v13 }
 0xcbe   : > { %v3321_v11 = vmul.f32 %v7013_v37, %v3313_v8  ;;  %v3320_v40 = vmul.f32 %v7019_v42, %v3312_v7 }
 0xcbf   : > { %v3303_v2 = vpop.permute.xlu1 %3302  ;;  %v3284_v33 = vpop.permute.xlu0 %3283 }
 0xcc0   : > { %5101 = vtanh.f32 %v3321_v11  ;;  %v3314_v27 = vsub.f32 %v3303_v2, %v7029_v52  ;;  %v3310_v31 = vsub.f32 %v3284_v33, %v7029_v52 }
 0xcc1   : > { %5103 = vtanh.f32 %v3320_v40 }
 0xcc2   : > { %v3322_v23 = vmul.f32 %v7036_v6, %v3314_v27  ;;  %v3318_v3 = vmul.f32 %v7036_v6, %v3310_v31  ;;  %v7111_v27 = vld [vmem:[%s7806_s10 + $0x18] sm:$0xff] }
 0xcc3   : > { %v3307_v9 = vpop.permute.xlu1 %3306  ;;  %v3288_v0 = vpop.permute.xlu0 %3287 }
 0xcc4   : > { %5105 = vtanh.f32 %v3322_v23  ;;  %v3315_v14 = vsub.f32 %v3307_v9, %v7043_v44  ;;  %v3311_v53 = vsub.f32 %v3288_v0, %v7043_v44  ;;  %v7117_v23 = vld [vmem:[%s7807_s11 + $0x18] sm:$0xff] }
 0xcc5   : > { %5107 = vtanh.f32 %v3318_v3 }
 0xcc6   : > { %v5098_v55 = vpop.eup %5097  ;;  %v3323_v10 = vmul.f32 %v7050_v63, %v3315_v14  ;;  %v3319_v24 = vmul.f32 %v7050_v63, %v3311_v53 }
 0xcc7   : > { %v5100_v21 = vpop.eup %5099  ;;  %v3367_v47 = vmul.f32 %v7057_v25, %v5098_v55  ;;  %v3333_v34 = vmul.f32 %v7070_v43, %v5098_v55 }
 0xcc8   : > { %5109 = vtanh.f32 %v3323_v10  ;;  %v3366_v32 = vmul.f32 %v7063_v30, %v5100_v21  ;;  %v3332_v20 = vmul.f32 %v7076_v56, %v5100_v21 }
 0xcc9   : > { %5111 = vtanh.f32 %v3319_v24  ;;  %v3375_v15 = vsel %vm822_vm0, %v3367_v47, 0.0  ;;  %v3341_v28 = vsel %vm822_vm0, %v3333_v34, 0.0 }
 0xcca   : > { %v5102_v46 = vpop.eup %5101  ;;  %v3374_v48 = vsel %vm822_vm0, %v3366_v32, 0.0  ;;  %v3340_v41 = vsel %vm822_vm0, %v3332_v20, 0.0 }
 0xccb   : > { %v5104_v50 = vpop.eup %5103  ;;  %v3371_v39 = vmul.f32 %v7057_v25, %v5102_v46  ;;  %v3337_v36 = vmul.f32 %v7070_v43, %v5102_v46  ;;  %v3376_v38 = vadd.f32 %v3375_v15, %v3374_v48  ;;  %v3342_v9 = vadd.f32 %v3341_v28, %v3340_v41 }
 0xccc   : > { %v3336_v17 = vmul.f32 %v7076_v56, %v5104_v50  ;;  %v3370_v12 = vmul.f32 %v7063_v30, %v5104_v50 }
 0xccd   : > { %v3388_v62 = vsel %vm822_vm0, %v3371_v39, 0.0  ;;  %v3354_v1 = vsel %vm822_vm0, %v3337_v36, 0.0 }
 0xcce   : > { %v5106_v58 = vpop.eup %5105  ;;  %v3387_v45 = vsel %vm822_vm0, %v3370_v12, 0.0  ;;  %v3353_v35 = vsel %vm822_vm0, %v3336_v17, 0.0 }
 0xccf   : > { %v5108_v51 = vpop.eup %5107  ;;  %v3338_v4 = vmul.f32 %v7089_v29, %v5106_v58  ;;  %v3372_v49 = vmul.f32 %v7095_v22, %v5106_v58  ;;  %v3389_v8 = vadd.f32 %v3388_v62, %v3387_v45  ;;  %v3355_v2 = vadd.f32 %v3354_v1, %v3353_v35 }
 0xcd0   : > { %v3334_v26 = vmul.f32 %v7089_v29, %v5108_v51  ;;  %v3368_v57 = vmul.f32 %v7095_v22, %v5108_v51 }
 0xcd1   : > { %v3390_v13 = vsel %vm822_vm0, %v3372_v49, 0.0  ;;  %v3356_v7 = vsel %vm822_vm0, %v3338_v4, 0.0 }
 0xcd2   : > { %v5110_v5 = vpop.eup %5109  ;;  %v3377_v11 = vsel %vm822_vm0, %v3368_v57, 0.0  ;;  %v3343_v33 = vsel %vm822_vm0, %v3334_v26, 0.0  ;;  %v3391_v0 = vadd.f32 %v3390_v13, %v3389_v8  ;;  %v3357_v55 = vadd.f32 %v3356_v7, %v3355_v2 }
 0xcd3   : > { %v5112_v40 = vpop.eup %5111  ;;  %v3339_v31 = vmul.f32 %v7111_v27, %v5110_v5  ;;  %v3373_v3 = vmul.f32 %v7117_v23, %v5110_v5  ;;  %v3378_v10 = vadd.f32 %v3377_v11, %v3376_v38  ;;  %v3344_v46 = vadd.f32 %v3343_v33, %v3342_v9 }
 0xcd4   : > { %v3335_v14 = vmul.f32 %v7111_v27, %v5112_v40  ;;  %v3369_v53 = vmul.f32 %v7117_v23, %v5112_v40 }
 0xcd5   : > { %v3358_v24 = vsel %vm822_vm0, %v3339_v31, 0.0  ;;  %v3392_v21 = vsel %vm822_vm0, %v3373_v3, 0.0  ;;  %v7131_v31 = vld [vmem:[%s7808_s12] ss:$0 sm:$0xff] }
 0xcd6   : > { %v3393_v47 = vadd.f32 %v3392_v21, %v3391_v0  ;;  %v3345_v32 = vsel %vm822_vm0, %v3335_v14, 0.0  ;;  %v3379_v50 = vsel %vm822_vm0, %v3369_v53, 0.0  ;;  %v3359_v36 = vadd.f32 %v3358_v24, %v3357_v55 }
 0xcd7   : > { %v3380_v39 = vadd.f32 %v3379_v50, %v3378_v10  ;;  %v3346_v12 = vadd.f32 %v3345_v32, %v3344_v46  ;;  %v3409_v3 = vmul.f32 %v7131_v31, %v6992_v54 }
 0xcd8   : > { %v3394_v17 = vrot.slane %v3393_v47, 4  ;;  %v3360_v15 = vrot.slane %v3359_v36, 4 }
 0xcd9   : > { %v3381_v34 = vrot.slane %v3380_v39, 4  ;;  %v3347_v51 = vrot.slane %v3346_v12, 4  ;;  %v3410_v55 = vadd.f32 %v3409_v3, %v6801_v16 }
 0xcda   : > { %v3395_v20 = vadd.f32 %v3394_v17, %v3393_v47  ;;  %v3361_v49 = vadd.f32 %v3360_v15, %v3359_v36 }
 0xcdb   : > { %v3382_v58 = vadd.f32 %v3381_v34, %v3380_v39  ;;  %v3348_v35 = vadd.f32 %v3347_v51, %v3346_v12 }
 0xcdc   : > { %v3396_v48 = vrot.slane %v3395_v20, 2  ;;  %v3362_v41 = vrot.slane %v3361_v49, 2 }
 0xcdd   : > { %v3383_v62 = vrot.slane %v3382_v58, 2  ;;  %v3349_v13 = vrot.slane %v3348_v35, 2 }
 0xcde   : > { %v3397_v45 = vadd.f32 %v3396_v48, %v3395_v20  ;;  %v3363_v8 = vadd.f32 %v3362_v41, %v3361_v49 }
 0xcdf   : > { %v3384_v4 = vadd.f32 %v3383_v62, %v3382_v58  ;;  %v3350_v7 = vadd.f32 %v3349_v13, %v3348_v35 }
 0xce0   : > { %v3398_v1 = vrot.slane %v3397_v45, 1  ;;  %v3364_v40 = vrot.slane %v3363_v8, 1 }
 0xce1   : > { %v3385_v26 = vrot.slane %v3384_v4, 1  ;;  %v3351_v11 = vrot.slane %v3350_v7, 1 }
 0xce2   : > { %v3399_v57 = vadd.f32 %v3398_v1, %v3397_v45  ;;  %v3365_v33 = vadd.f32 %v3364_v40, %v3363_v8 }
 0xce3   : > { %v3386_v28 = vadd.f32 %v3385_v26, %v3384_v4  ;;  %v3352_v2 = vadd.f32 %v3351_v11, %v3350_v7 }
 0xce5   : > { %v3402_v5 = vsel %vm1000_vm2, %v3399_v57, %v3386_v28  ;;  %v3413_v14 = vsel %vm1000_vm2, %v3365_v33, %v3352_v2 }
 0xce6   : > { %v3404_v38 = vadd.f32 %v3402_v5, %v6794_v19  ;;  %v3415_v24 = vadd.f32 %v3413_v14, %v3410_v55 }
 0xce8   : > { %5113 = vrcp.f32 %v3404_v38 }
 0xcf2   : > { %v5114_v9 = vpop.eup %5113 }
 0xcf3   : > { %v3406_v0 = vmul.f32 %v5114_v9, %v3404_v38 }
 0xcf5   : > { %v3407_v53 = vsub.f32 2.0, %v3406_v0 }
 0xcf7   : > { %v3408_v10 = vmul.f32 %v5114_v9, %v3407_v53 }
 0xcf9   : > { %v7137_v21 = vmul.f32 %v3415_v24, %v3408_v10 }
 0xcfb   : > { %v3420_v46 = vrot.slane %v7137_v21, %v5578_v60  ;;  %v3439_v47 = vrot.slane %v7137_v21, %v5576_v59 }
 0xcfd   : > { %3426 = vbcast.lane.b32.xlu1 %v3420_v46, 264  ;;  %3422 = vbcast.lane.b32.xlu0 %v3420_v46, 256 }
 0xd01   : > { %3445 = vbcast.lane.b32.xlu1 %v3439_v47, 264  ;;  %3441 = vbcast.lane.b32.xlu0 %v3439_v47, 256 }
 0xd05   : > { %3449 = vbcast.lane.b32.xlu1 %v3439_v47, 272  ;;  %3430 = vbcast.lane.b32.xlu0 %v3420_v46, 272 }
 0xd09   : > { %3453 = vbcast.lane.b32.xlu1 %v3439_v47, 280  ;;  %3434 = vbcast.lane.b32.xlu0 %v3420_v46, 280 }
 0xd6f   : > { %v3427_v54 = vpop.permute.xlu1 %3426  ;;  %v3423_v32 = vpop.permute.xlu0 %3422 }
 0xd70   : > { %v3456_v50 = vsub.f32 %v3427_v54, %v7001_v61  ;;  %v3455_v39 = vsub.f32 %v3423_v32, %v7007_v18 }
 0xd72   : > { %v3464_v36 = vmul.f32 %v7013_v37, %v3456_v50  ;;  %v3463_v17 = vmul.f32 %v7019_v42, %v3455_v39 }
 0xd73   : > { %v3446_v12 = vpop.permute.xlu1 %3445  ;;  %v3442_v34 = vpop.permute.xlu0 %3441 }
 0xd74   : > { %5115 = vtanh.f32 %v3464_v36  ;;  %v3460_v20 = vsub.f32 %v3446_v12, %v7001_v61  ;;  %v3459_v58 = vsub.f32 %v3442_v34, %v7007_v18 }
 0xd75   : > { %5117 = vtanh.f32 %v3463_v17 }
 0xd76   : > { %v3468_v15 = vmul.f32 %v7013_v37, %v3460_v20  ;;  %v3467_v48 = vmul.f32 %v7019_v42, %v3459_v58 }
 0xd77   : > { %v3450_v51 = vpop.permute.xlu1 %3449  ;;  %v3431_v62 = vpop.permute.xlu0 %3430 }
 0xd78   : > { %5119 = vtanh.f32 %v3468_v15  ;;  %v3461_v45 = vsub.f32 %v3450_v51, %v7029_v52  ;;  %v3457_v4 = vsub.f32 %v3431_v62, %v7029_v52 }
 0xd79   : > { %5121 = vtanh.f32 %v3467_v48 }
 0xd7a   : > { %v3469_v49 = vmul.f32 %v7036_v6, %v3461_v45  ;;  %v3465_v1 = vmul.f32 %v7036_v6, %v3457_v4 }
 0xd7b   : > { %v3454_v61 = vpop.permute.xlu1 %3453  ;;  %v3435_v35 = vpop.permute.xlu0 %3434 }
 0xd7c   : > { %5123 = vtanh.f32 %v3469_v49  ;;  %v3462_v18 = vsub.f32 %v3454_v61, %v7043_v44  ;;  %v3458_v37 = vsub.f32 %v3435_v35, %v7043_v44 }
 0xd7d   : > { %5125 = vtanh.f32 %v3465_v1 }
 0xd7e   : > { %v5116_v42 = vpop.eup %5115  ;;  %v3470_v26 = vmul.f32 %v7050_v63, %v3462_v18  ;;  %v3466_v57 = vmul.f32 %v7050_v63, %v3458_v37 }
 0xd7f   : > { %v5118_v28 = vpop.eup %5117  ;;  %v3514_v41 = vmul.f32 %v7057_v25, %v5116_v42  ;;  %v3480_v7 = vmul.f32 %v7070_v43, %v5116_v42 }
 0xd80   : > { %5127 = vtanh.f32 %v3470_v26  ;;  %v3513_v6 = vmul.f32 %v7063_v30, %v5118_v28  ;;  %v3479_v63 = vmul.f32 %v7076_v56, %v5118_v28 }
 0xd81   : > { %5129 = vtanh.f32 %v3466_v57  ;;  %v3522_v40 = vsel %vm822_vm0, %v3514_v41, 0.0  ;;  %v3488_v53 = vsel %vm822_vm0, %v3480_v7, 0.0 }
 0xd82   : > { %v5120_v52 = vpop.eup %5119  ;;  %v3521_v2 = vsel %vm822_vm0, %v3513_v6, 0.0  ;;  %v3487_v55 = vsel %vm822_vm0, %v3479_v63, 0.0 }
 0xd83   : > { %v5122_v13 = vpop.eup %5121  ;;  %v3518_v5 = vmul.f32 %v7057_v25, %v5120_v52  ;;  %v3484_v38 = vmul.f32 %v7070_v43, %v5120_v52  ;;  %v3523_v46 = vadd.f32 %v3522_v40, %v3521_v2  ;;  %v3489_v17 = vadd.f32 %v3488_v53, %v3487_v55 }
 0xd84   : > { %v3483_v44 = vmul.f32 %v7076_v56, %v5122_v13  ;;  %v3517_v8 = vmul.f32 %v7063_v30, %v5122_v13 }
 0xd85   : > { %v3535_v3 = vsel %vm822_vm0, %v3518_v5, 0.0  ;;  %v3501_v30 = vsel %vm822_vm0, %v3484_v38, 0.0 }
 0xd86   : > { %v5124_v11 = vpop.eup %5123  ;;  %v3534_v25 = vsel %vm822_vm0, %v3517_v8, 0.0  ;;  %v3500_v43 = vsel %vm822_vm0, %v3483_v44, 0.0 }
 0xd87   : > { %v5126_v33 = vpop.eup %5125  ;;  %v3485_v9 = vmul.f32 %v7089_v29, %v5124_v11  ;;  %v3519_v0 = vmul.f32 %v7095_v22, %v5124_v11  ;;  %v3536_v47 = vadd.f32 %v3535_v3, %v3534_v25  ;;  %v3502_v39 = vadd.f32 %v3501_v30, %v3500_v43 }
 0xd88   : > { %v3481_v56 = vmul.f32 %v7089_v29, %v5126_v33  ;;  %v3515_v14 = vmul.f32 %v7095_v22, %v5126_v33  ;;  %v3556_v30 = vmul.f32 %v7131_v31, %v7137_v21 }
 0xd89   : > { %v3537_v10 = vsel %vm822_vm0, %v3519_v0, 0.0  ;;  %v3503_v54 = vsel %vm822_vm0, %v3485_v9, 0.0 }
 0xd8a   : > { %v5128_v24 = vpop.eup %5127  ;;  %v3524_v32 = vsel %vm822_vm0, %v3515_v14, 0.0  ;;  %v3490_v36 = vsel %vm822_vm0, %v3481_v56, 0.0  ;;  %v3538_v12 = vadd.f32 %v3537_v10, %v3536_v47  ;;  %v3504_v58 = vadd.f32 %v3503_v54, %v3502_v39  ;;  %v7213_v47 = vld [vmem:[%s7804_s8] sm:$0xff]  ;;  %v7218_v54 = vld [vmem:[%s7805_s9 + $0x8] sm:$0xff] }
 0xd8b   : > { %v5130_v50 = vpop.eup %5129  ;;  %v3486_v29 = vmul.f32 %v7111_v27, %v5128_v24  ;;  %v3520_v22 = vmul.f32 %v7117_v23, %v5128_v24  ;;  %v3525_v15 = vadd.f32 %v3524_v32, %v3523_v46  ;;  %v3491_v62 = vadd.f32 %v3490_v36, %v3489_v17 }
 0xd8c   : > { %v3482_v34 = vmul.f32 %v7111_v27, %v5130_v50  ;;  %v3516_v20 = vmul.f32 %v7117_v23, %v5130_v50  ;;  %v3557_v53 = vadd.f32 %v3556_v30, %v6801_v16  ;;  %v7208_v16 = vld [vmem:[%s7804_s8 + $0x8] sm:$0xff]  ;;  %v7223_v50 = vld [vmem:[%s7805_s9] sm:$0xff] }
 0xd8d   : > { %v3505_v48 = vsel %vm822_vm0, %v3486_v29, 0.0  ;;  %v3539_v51 = vsel %vm822_vm0, %v3520_v22, 0.0 }
 0xd8e   : > { %v3540_v45 = vadd.f32 %v3539_v51, %v3538_v12  ;;  %v3492_v4 = vsel %vm822_vm0, %v3482_v34, 0.0  ;;  %v3526_v49 = vsel %vm822_vm0, %v3516_v20, 0.0  ;;  %v3506_v61 = vadd.f32 %v3505_v48, %v3504_v58 }
 0xd8f   : > { %v3527_v1 = vadd.f32 %v3526_v49, %v3525_v15  ;;  %v3493_v18 = vadd.f32 %v3492_v4, %v3491_v62  ;;  %v7234_v15 = vld [vmem:[%s7804_s8 + $0x10] sm:$0xff] }
 0xd90   : > { %v3541_v35 = vrot.slane %v3540_v45, 4  ;;  %v3507_v23 = vrot.slane %v3506_v61, 4  ;;  %v7241_v62 = vld [vmem:[%s7805_s9 + $0x10] sm:$0xff] }
 0xd91   : > { %v3528_v37 = vrot.slane %v3527_v1, 4  ;;  %v3494_v57 = vrot.slane %v3493_v18, 4 }
 0xd92   : > { %v3542_v27 = vadd.f32 %v3541_v35, %v3540_v45  ;;  %v3508_v6 = vadd.f32 %v3507_v23, %v3506_v61  ;;  %v7248_v61 = vld [vmem:[%s7804_s8 + $0x18] sm:$0xff] }
 0xd93   : > { %v3529_v42 = vadd.f32 %v3528_v37, %v3527_v1  ;;  %v3495_v5 = vadd.f32 %v3494_v57, %v3493_v18  ;;  %v7255_v37 = vld [vmem:[%s7805_s9 + $0x18] sm:$0xff] }
 0xd94   : > { %v3543_v26 = vrot.slane %v3542_v27, 2  ;;  %v3509_v7 = vrot.slane %v3508_v6, 2 }
 0xd95   : > { %v3530_v28 = vrot.slane %v3529_v42, 2  ;;  %v3496_v63 = vrot.slane %v3495_v5, 2 }
 0xd96   : > { %v3544_v52 = vadd.f32 %v3543_v26, %v3542_v27  ;;  %v3510_v2 = vadd.f32 %v3509_v7, %v3508_v6  ;;  %v7264_v6 = vld [vmem:[%s7807_s11 + $0x8] sm:$0xff] }
 0xd97   : > { %v3531_v41 = vadd.f32 %v3530_v28, %v3529_v42  ;;  %v3497_v33 = vadd.f32 %v3496_v63, %v3495_v5 }
 0xd98   : > { %v3545_v13 = vrot.slane %v3544_v52, 1  ;;  %v3511_v3 = vrot.slane %v3510_v2, 1 }
 0xd99   : > { %v3532_v38 = vrot.slane %v3531_v41, 1  ;;  %v3498_v25 = vrot.slane %v3497_v33, 1 }
 0xd9a   : > { %v3546_v44 = vadd.f32 %v3545_v13, %v3544_v52  ;;  %v3512_v9 = vadd.f32 %v3511_v3, %v3510_v2  ;;  %v7269_v13 = vld [vmem:[%s7807_s11] sm:$0xff]  ;;  %v7290_v3 = vld [vmem:[%s7806_s10 + $0x10] sm:$0xff] }
 0xd9b   : > { %v3533_v8 = vadd.f32 %v3532_v38, %v3531_v41  ;;  %v3499_v0 = vadd.f32 %v3498_v25, %v3497_v33  ;;  %v7274_v38 = vld [vmem:[%s7806_s10 + $0x8] sm:$0xff]  ;;  %v7295_v25 = vld [vmem:[%s7807_s11 + $0x10] sm:$0xff] }
 0xd9d   : > { %v3549_v11 = vsel %vm1000_vm2, %v3546_v44, %v3533_v8  ;;  %v3560_v14 = vsel %vm1000_vm2, %v3512_v9, %v3499_v0  ;;  %v7280_v8 = vld [vmem:[%s7806_s10] sm:$0xff] }
 0xd9e   : > { %v3551_v40 = vadd.f32 %v3549_v11, %v6794_v19  ;;  %v3562_v24 = vadd.f32 %v3560_v14, %v3557_v53 }
 0xda0   : > { %5131 = vrcp.f32 %v3551_v40 }
 0xdaa   : > { %v5132_v43 = vpop.eup %5131 }
 0xdab   : > { %v3553_v56 = vmul.f32 %v5132_v43, %v3551_v40 }
 0xdad   : > { %v3554_v55 = vsub.f32 2.0, %v3553_v56 }
 0xdaf   : > { %v3555_v10 = vmul.f32 %v5132_v43, %v3554_v55 }
 0xdb1   : > { %v7197_v19 = vmul.f32 %v3562_v24, %v3555_v10 }
 0xdb3   : > { %v3572_v46 = vrot.slane %v7197_v19, %v5578_v60  ;;  %3564 = vst.msk [vmem:[#allocation4 + $0x4] sm:$0x3] %vm1757_vm3, %v7197_v19  ;;  %v3591_v21 = vrot.slane %v7197_v19, %v5576_v59 }
 0xdb5   : > { %3578 = vbcast.lane.b32.xlu1 %v3572_v46, 264  ;;  %3574 = vbcast.lane.b32.xlu0 %v3572_v46, 256 }
 0xdb9   : > { %3597 = vbcast.lane.b32.xlu1 %v3591_v21, 264  ;;  %3593 = vbcast.lane.b32.xlu0 %v3591_v21, 256 }
 0xdbd   : > { %3601 = vbcast.lane.b32.xlu1 %v3591_v21, 272  ;;  %3582 = vbcast.lane.b32.xlu0 %v3572_v46, 272 }
 0xdc1   : > { %3605 = vbcast.lane.b32.xlu1 %v3591_v21, 280  ;;  %3586 = vbcast.lane.b32.xlu0 %v3572_v46, 280 }
 0xe27   : > { %v3579_v32 = vpop.permute.xlu1 %3578  ;;  %v3575_v39 = vpop.permute.xlu0 %3574 }
 0xe28   : > { %v3612_v36 = vsub.f32 %v3579_v32, %v7208_v16  ;;  %v3611_v29 = vsub.f32 %v3575_v39, %v7213_v47 }
 0xe2a   : > { %v3624_v22 = vmul.f32 %v7218_v54, %v3612_v36  ;;  %v3623_v17 = vmul.f32 %v7223_v50, %v3611_v29  ;;  %v7312_v36 = vld [vmem:[%s7806_s10 + $0x18] sm:$0xff] }
 0xe2b   : > { %v3598_v12 = vpop.permute.xlu1 %3597  ;;  %v3594_v34 = vpop.permute.xlu0 %3593  ;;  %v7317_v29 = vld [vmem:[%s7807_s11 + $0x18] sm:$0xff] }
 0xe2c   : > { %5133 = vtanh.f32 %v3624_v22  ;;  %v3616_v20 = vsub.f32 %v3598_v12, %v7208_v16  ;;  %v3615_v58 = vsub.f32 %v3594_v34, %v7213_v47 }
 0xe2d   : > { %5135 = vtanh.f32 %v3623_v17 }
 0xe2e   : > { %v3628_v48 = vmul.f32 %v7218_v54, %v3616_v20  ;;  %v3627_v51 = vmul.f32 %v7223_v50, %v3615_v58 }
 0xe2f   : > { %v3602_v45 = vpop.permute.xlu1 %3601  ;;  %v3583_v4 = vpop.permute.xlu0 %3582 }
 0xe30   : > { %5137 = vtanh.f32 %v3628_v48  ;;  %v3617_v49 = vsub.f32 %v3602_v45, %v7234_v15  ;;  %v3613_v1 = vsub.f32 %v3583_v4, %v7234_v15 }
 0xe31   : > { %5139 = vtanh.f32 %v3627_v51 }
 0xe32   : > { %v3629_v35 = vmul.f32 %v7241_v62, %v3617_v49  ;;  %v3625_v18 = vmul.f32 %v7241_v62, %v3613_v1 }
 0xe33   : > { %v3606_v27 = vpop.permute.xlu1 %3605  ;;  %v3587_v42 = vpop.permute.xlu0 %3586 }
 0xe34   : > { %5141 = vtanh.f32 %v3629_v35  ;;  %v3618_v23 = vsub.f32 %v3606_v27, %v7248_v61  ;;  %v3614_v26 = vsub.f32 %v3587_v42, %v7248_v61 }
 0xe35   : > { %5143 = vtanh.f32 %v3625_v18 }
 0xe36   : > { %v5134_v57 = vpop.eup %5133  ;;  %v3630_v28 = vmul.f32 %v7255_v37, %v3618_v23  ;;  %v3626_v52 = vmul.f32 %v7255_v37, %v3614_v26 }
 0xe37   : > { %v5136_v41 = vpop.eup %5135  ;;  %v3682_v44 = vmul.f32 %v5134_v57, %v7264_v6  ;;  %v3644_v9 = vmul.f32 %v5134_v57, %v7274_v38 }
 0xe38   : > { %5145 = vtanh.f32 %v3630_v28  ;;  %v3681_v7 = vmul.f32 %v5136_v41, %v7269_v13  ;;  %v3643_v0 = vmul.f32 %v5136_v41, %v7280_v8 }
 0xe39   : > { %5147 = vtanh.f32 %v3626_v52  ;;  %v3690_v43 = vsel %vm822_vm0, %v3682_v44, 0.0  ;;  %v3652_v22 = vsel %vm822_vm0, %v3644_v9, 0.0 }
 0xe3a   : > { %v5138_v5 = vpop.eup %5137  ;;  %v3689_v56 = vsel %vm822_vm0, %v3681_v7, 0.0  ;;  %v3651_v17 = vsel %vm822_vm0, %v3643_v0, 0.0 }
 0xe3b   : > { %v5140_v63 = vpop.eup %5139  ;;  %v3686_v11 = vmul.f32 %v5138_v5, %v7264_v6  ;;  %v3648_v40 = vmul.f32 %v5138_v5, %v7274_v38  ;;  %v3691_v20 = vadd.f32 %v3690_v43, %v3689_v56  ;;  %v3653_v18 = vadd.f32 %v3652_v22, %v3651_v17  ;;  %v5297_v22 = vld [vmem:[%s7810_s14] ss:$0 sm:$0xff] }
 0xe3c   : > { %v3647_v2 = vmul.f32 %v5140_v63, %v7280_v8  ;;  %v3685_v33 = vmul.f32 %v5140_v63, %v7269_v13 }
 0xe3d   : > { %v3703_v53 = vsel %vm822_vm0, %v3686_v11, 0.0  ;;  %v3665_v46 = vsel %vm822_vm0, %v3648_v40, 0.0 }
 0xe3e   : > { %v5142_v30 = vpop.eup %5141  ;;  %v3702_v55 = vsel %vm822_vm0, %v3685_v33, 0.0  ;;  %v3664_v21 = vsel %vm822_vm0, %v3647_v2, 0.0 }
 0xe3f   : > { %v5144_v14 = vpop.eup %5143  ;;  %v3649_v10 = vmul.f32 %v5142_v30, %v7290_v3  ;;  %v3687_v24 = vmul.f32 %v5142_v30, %v7295_v25  ;;  %v3704_v58 = vadd.f32 %v3703_v53, %v3702_v55  ;;  %v3666_v4 = vadd.f32 %v3665_v46, %v3664_v21 }
 0xe40   : > { %v3645_v32 = vmul.f32 %v5144_v14, %v7290_v3  ;;  %v3683_v39 = vmul.f32 %v5144_v14, %v7295_v25 }
 0xe41   : > { %v3705_v12 = vsel %vm822_vm0, %v3687_v24, 0.0  ;;  %v3667_v48 = vsel %vm822_vm0, %v3649_v10, 0.0  ;;  %v3567_v10 = vld [vmem:[#allocation3 + $0x6] sm:$0x3] }
 0xe42   : > { %v5146_v34 = vpop.eup %5145  ;;  %v3692_v51 = vsel %vm822_vm0, %v3683_v39, 0.0  ;;  %v3654_v49 = vsel %vm822_vm0, %v3645_v32, 0.0  ;;  %v3706_v27 = vadd.f32 %v3705_v12, %v3704_v58  ;;  %v3668_v26 = vadd.f32 %v3667_v48, %v3666_v4 }
 0xe43   : > { %v5148_v45 = vpop.eup %5147  ;;  %v3650_v1 = vmul.f32 %v5146_v34, %v7312_v36  ;;  %v3688_v35 = vmul.f32 %v5146_v34, %v7317_v29  ;;  %v3693_v57 = vadd.f32 %v3692_v51, %v3691_v20  ;;  %v3655_v41 = vadd.f32 %v3654_v49, %v3653_v18 }
 0xe44   : > { %v3646_v42 = vmul.f32 %v5148_v45, %v7312_v36  ;;  %v3684_v23 = vmul.f32 %v5148_v45, %v7317_v29  ;;  %v7336_v17 = vadd.f32 %v5297_v22, %v3567_v10 }
 0xe45   : > { %v3669_v28 = vsel %vm822_vm0, %v3650_v1, 0.0  ;;  %v3707_v52 = vsel %vm822_vm0, %v3688_v35, 0.0  ;;  %v3565_v1 = vld [vmem:[#allocation2 + $0x6] sm:$0x3] }
 0xe46   : > { %v3708_v5 = vadd.f32 %v3707_v52, %v3706_v27  ;;  %v3656_v44 = vsel %vm822_vm0, %v3646_v42, 0.0  ;;  %v3694_v7 = vsel %vm822_vm0, %v3684_v23, 0.0  ;;  %v3670_v11 = vadd.f32 %v3669_v28, %v3668_v26  ;;  %v5298_v27 = vld [vmem:[%s7809_s13] ss:$0 sm:$0xff] }
 0xe47   : > { %v3695_v63 = vadd.f32 %v3694_v7, %v3693_v57  ;;  %v3657_v2 = vadd.f32 %v3656_v44, %v3655_v41  ;;  %v7343_v42 = vadd.f32 %v5298_v27, %v3565_v1  ;;  %v3724_v23 = vmul.f32 %v7131_v31, %v7197_v19 }
 0xe48   : > { %v3709_v40 = vrot.slane %v3708_v5, 4  ;;  %v3671_v30 = vrot.slane %v3670_v11, 4 }
 0xe49   : > { %v3696_v33 = vrot.slane %v3695_v63, 4  ;;  %v3658_v56 = vrot.slane %v3657_v2, 4  ;;  %v3725_v41 = vadd.f32 %v3724_v23, %v7343_v42 }
 0xe4a   : > { %v3710_v9 = vadd.f32 %v3709_v40, %v3708_v5  ;;  %v3672_v24 = vadd.f32 %v3671_v30, %v3670_v11 }
 0xe4b   : > { %v3697_v0 = vadd.f32 %v3696_v33, %v3695_v63  ;;  %v3659_v21 = vadd.f32 %v3658_v56, %v3657_v2 }
 0xe4c   : > { %v3711_v43 = vrot.slane %v3710_v9, 2  ;;  %v3673_v34 = vrot.slane %v3672_v24, 2 }
 0xe4d   : > { %v3698_v14 = vrot.slane %v3697_v0, 2  ;;  %v3660_v20 = vrot.slane %v3659_v21, 2 }
 0xe4e   : > { %v3712_v53 = vadd.f32 %v3711_v43, %v3710_v9  ;;  %v3674_v51 = vadd.f32 %v3673_v34, %v3672_v24 }
 0xe4f   : > { %v3699_v55 = vadd.f32 %v3698_v14, %v3697_v0  ;;  %v3661_v45 = vadd.f32 %v3660_v20, %v3659_v21 }
 0xe50   : > { %v3713_v46 = vrot.slane %v3712_v53, 1  ;;  %v3675_v49 = vrot.slane %v3674_v51, 1 }
 0xe51   : > { %v3700_v32 = vrot.slane %v3699_v55, 1  ;;  %v3662_v4 = vrot.slane %v3661_v45, 1 }
 0xe52   : > { %v3714_v39 = vadd.f32 %v3713_v46, %v3712_v53  ;;  %v3676_v18 = vadd.f32 %v3675_v49, %v3674_v51 }
 0xe53   : > { %v3701_v12 = vadd.f32 %v3700_v32, %v3699_v55  ;;  %v3663_v35 = vadd.f32 %v3662_v4, %v3661_v45 }
 0xe55   : > { %v3717_v58 = vsel %vm1000_vm2, %v3714_v39, %v3701_v12  ;;  %v3728_v28 = vsel %vm1000_vm2, %v3676_v18, %v3663_v35 }
 0xe56   : > { %v3719_v48 = vadd.f32 %v3717_v58, %v7336_v17  ;;  %v3730_v44 = vadd.f32 %v3728_v28, %v3725_v41 }
 0xe58   : > { %5149 = vrcp.f32 %v3719_v48 }
 0xe62   : > { %v5150_v26 = vpop.eup %5149 }
 0xe63   : > { %v3721_v57 = vmul.f32 %v5150_v26, %v3719_v48 }
 0xe65   : > { %v3722_v52 = vsub.f32 2.0, %v3721_v57 }
 0xe67   : > { %v3723_v5 = vmul.f32 %v5150_v26, %v3722_v52 }
 0xe69   : > { %v7349_v7 = vmul.f32 %v3730_v44, %v3723_v5 }
 0xe6b   : > { %v3735_v63 = vrot.slane %v7349_v7, %v5578_v60  ;;  %v3754_v11 = vrot.slane %v7349_v7, %v5576_v59 }
 0xe6d   : > { %3741 = vbcast.lane.b32.xlu1 %v3735_v63, 264  ;;  %3737 = vbcast.lane.b32.xlu0 %v3735_v63, 256 }
 0xe71   : > { %3760 = vbcast.lane.b32.xlu1 %v3754_v11, 264  ;;  %3756 = vbcast.lane.b32.xlu0 %v3754_v11, 256 }
 0xe75   : > { %3764 = vbcast.lane.b32.xlu1 %v3754_v11, 272  ;;  %3745 = vbcast.lane.b32.xlu0 %v3735_v63, 272 }
 0xe79   : > { %3768 = vbcast.lane.b32.xlu1 %v3754_v11, 280  ;;  %3749 = vbcast.lane.b32.xlu0 %v3735_v63, 280 }
 0xedf   : > { %v3742_v19 = vpop.permute.xlu1 %3741  ;;  %v3738_v40 = vpop.permute.xlu0 %3737 }
 0xee0   : > { %v3771_v2 = vsub.f32 %v3742_v19, %v7208_v16  ;;  %v3770_v33 = vsub.f32 %v3738_v40, %v7213_v47 }
 0xee2   : > { %v3779_v9 = vmul.f32 %v3771_v2, %v7218_v54  ;;  %v3778_v0 = vmul.f32 %v3770_v33, %v7223_v50 }
 0xee3   : > { %v3761_v30 = vpop.permute.xlu1 %3760  ;;  %v3757_v43 = vpop.permute.xlu0 %3756 }
 0xee4   : > { %5151 = vtanh.f32 %v3779_v9  ;;  %v3775_v56 = vsub.f32 %v3761_v30, %v7208_v16  ;;  %v3774_v14 = vsub.f32 %v3757_v43, %v7213_v47 }
 0xee5   : > { %5153 = vtanh.f32 %v3778_v0 }
 0xee6   : > { %v3783_v53 = vmul.f32 %v3775_v56, %v7218_v54  ;;  %v3782_v55 = vmul.f32 %v3774_v14, %v7223_v50 }
 0xee7   : > { %v3765_v10 = vpop.permute.xlu1 %3764  ;;  %v3746_v24 = vpop.permute.xlu0 %3745 }
 0xee8   : > { %5155 = vtanh.f32 %v3783_v53  ;;  %v3776_v46 = vsub.f32 %v3765_v10, %v7234_v15  ;;  %v3772_v21 = vsub.f32 %v3746_v24, %v7234_v15 }
 0xee9   : > { %5157 = vtanh.f32 %v3782_v55 }
 0xeea   : > { %v3784_v32 = vmul.f32 %v3776_v46, %v7241_v62  ;;  %v3780_v39 = vmul.f32 %v3772_v21, %v7241_v62 }
 0xeeb   : > { %v3769_v22 = vpop.permute.xlu1 %3768  ;;  %v3750_v12 = vpop.permute.xlu0 %3749 }
 0xeec   : > { %5159 = vtanh.f32 %v3784_v32  ;;  %v3777_v34 = vsub.f32 %v3769_v22, %v7248_v61  ;;  %v3773_v20 = vsub.f32 %v3750_v12, %v7248_v61 }
 0xeed   : > { %5161 = vtanh.f32 %v3780_v39 }
 0xeee   : > { %v5152_v58 = vpop.eup %5151  ;;  %v3785_v48 = vmul.f32 %v3777_v34, %v7255_v37  ;;  %v3781_v51 = vmul.f32 %v3773_v20, %v7255_v37 }
 0xeef   : > { %v5154_v45 = vpop.eup %5153  ;;  %v3829_v49 = vmul.f32 %v5152_v58, %v7264_v6  ;;  %v3795_v57 = vmul.f32 %v5152_v58, %v7274_v38 }
 0xef0   : > { %5163 = vtanh.f32 %v3785_v48  ;;  %v3828_v1 = vmul.f32 %v5154_v45, %v7269_v13  ;;  %v3794_v28 = vmul.f32 %v5154_v45, %v7280_v8 }
 0xef1   : > { %5165 = vtanh.f32 %v3781_v51  ;;  %v3837_v41 = vsel %vm822_vm0, %v3829_v49, 0.0  ;;  %v3803_v30 = vsel %vm822_vm0, %v3795_v57, 0.0 }
 0xef2   : > { %v5156_v4 = vpop.eup %5155  ;;  %v3836_v5 = vsel %vm822_vm0, %v3828_v1, 0.0  ;;  %v3802_v43 = vsel %vm822_vm0, %v3794_v28, 0.0 }
 0xef3   : > { %v5158_v35 = vpop.eup %5157  ;;  %v3833_v18 = vmul.f32 %v5156_v4, %v7264_v6  ;;  %v3799_v27 = vmul.f32 %v5156_v4, %v7274_v38  ;;  %v3838_v53 = vadd.f32 %v3837_v41, %v3836_v5  ;;  %v3804_v12 = vadd.f32 %v3803_v30, %v3802_v43 }
 0xef4   : > { %v3798_v23 = vmul.f32 %v5158_v35, %v7280_v8  ;;  %v3832_v26 = vmul.f32 %v5158_v35, %v7269_v13 }
 0xef5   : > { %v3850_v63 = vsel %vm822_vm0, %v3833_v18, 0.0  ;;  %v3816_v2 = vsel %vm822_vm0, %v3799_v27, 0.0 }
 0xef6   : > { %v5160_v52 = vpop.eup %5159  ;;  %v3849_v11 = vsel %vm822_vm0, %v3832_v26, 0.0  ;;  %v3815_v33 = vsel %vm822_vm0, %v3798_v23, 0.0 }
 0xef7   : > { %v5162_v44 = vpop.eup %5161  ;;  %v3800_v19 = vmul.f32 %v5160_v52, %v7290_v3  ;;  %v3834_v40 = vmul.f32 %v5160_v52, %v7295_v25  ;;  %v3851_v55 = vadd.f32 %v3850_v63, %v3849_v11  ;;  %v3817_v21 = vadd.f32 %v3816_v2, %v3815_v33 }
 0xef8   : > { %v3796_v9 = vmul.f32 %v5162_v44, %v7290_v3  ;;  %v3830_v0 = vmul.f32 %v5162_v44, %v7295_v25 }
 0xef9   : > { %v3852_v56 = vsel %vm822_vm0, %v3834_v40, 0.0  ;;  %v3818_v10 = vsel %vm822_vm0, %v3800_v19, 0.0 }
 0xefa   : > { %v5164_v14 = vpop.eup %5163  ;;  %v3839_v24 = vsel %vm822_vm0, %v3830_v0, 0.0  ;;  %v3805_v32 = vsel %vm822_vm0, %v3796_v9, 0.0  ;;  %v3853_v34 = vadd.f32 %v3852_v56, %v3851_v55  ;;  %v3819_v48 = vadd.f32 %v3818_v10, %v3817_v21 }
 0xefb   : > { %v5166_v46 = vpop.eup %5165  ;;  %v3801_v39 = vmul.f32 %v5164_v14, %v7312_v36  ;;  %v3835_v22 = vmul.f32 %v5164_v14, %v7317_v29  ;;  %v3840_v51 = vadd.f32 %v3839_v24, %v3838_v53  ;;  %v3806_v49 = vadd.f32 %v3805_v32, %v3804_v12 }
 0xefc   : > { %v3797_v20 = vmul.f32 %v5166_v46, %v7312_v36  ;;  %v3831_v58 = vmul.f32 %v5166_v46, %v7317_v29 }
 0xefd   : > { %v3820_v45 = vsel %vm822_vm0, %v3801_v39, 0.0  ;;  %v3854_v4 = vsel %vm822_vm0, %v3835_v22, 0.0  ;;  %v3871_v22 = vmul.f32 %v7131_v31, %v7349_v7 }
 0xefe   : > { %v3855_v1 = vadd.f32 %v3854_v4, %v3853_v34  ;;  %v3807_v35 = vsel %vm822_vm0, %v3797_v20, 0.0  ;;  %v3841_v18 = vsel %vm822_vm0, %v3831_v58, 0.0  ;;  %v3821_v23 = vadd.f32 %v3820_v45, %v3819_v48 }
 0xeff   : > { %v3842_v27 = vadd.f32 %v3841_v18, %v3840_v51  ;;  %v3808_v57 = vadd.f32 %v3807_v35, %v3806_v49  ;;  %v3872_v48 = vadd.f32 %v3871_v22, %v7343_v42 }
 0xf00   : > { %v3856_v26 = vrot.slane %v3855_v1, 4  ;;  %v3822_v5 = vrot.slane %v3821_v23, 4 }
 0xf01   : > { %v3843_v28 = vrot.slane %v3842_v27, 4  ;;  %v3809_v63 = vrot.slane %v3808_v57, 4 }
 0xf02   : > { %v3857_v52 = vadd.f32 %v3856_v26, %v3855_v1  ;;  %v3823_v2 = vadd.f32 %v3822_v5, %v3821_v23 }
 0xf03   : > { %v3844_v41 = vadd.f32 %v3843_v28, %v3842_v27  ;;  %v3810_v9 = vadd.f32 %v3809_v63, %v3808_v57 }
 0xf04   : > { %v3858_v44 = vrot.slane %v3857_v52, 2  ;;  %v3824_v56 = vrot.slane %v3823_v2, 2 }
 0xf05   : > { %v3845_v11 = vrot.slane %v3844_v41, 2  ;;  %v3811_v14 = vrot.slane %v3810_v9, 2 }
 0xf06   : > { %v3859_v19 = vadd.f32 %v3858_v44, %v3857_v52  ;;  %v3825_v10 = vadd.f32 %v3824_v56, %v3823_v2 }
 0xf07   : > { %v3846_v40 = vadd.f32 %v3845_v11, %v3844_v41  ;;  %v3812_v24 = vadd.f32 %v3811_v14, %v3810_v9 }
 0xf08   : > { %v3860_v33 = vrot.slane %v3859_v19, 1  ;;  %v3826_v21 = vrot.slane %v3825_v10, 1 }
 0xf09   : > { %v3847_v0 = vrot.slane %v3846_v40, 1  ;;  %v3813_v46 = vrot.slane %v3812_v24, 1 }
 0xf0a   : > { %v3861_v30 = vadd.f32 %v3860_v33, %v3859_v19  ;;  %v3827_v39 = vadd.f32 %v3826_v21, %v3825_v10 }
 0xf0b   : > { %v3848_v43 = vadd.f32 %v3847_v0, %v3846_v40  ;;  %v3814_v32 = vadd.f32 %v3813_v46, %v3812_v24 }
 0xf0d   : > { %v3864_v53 = vsel %vm1000_vm2, %v3861_v30, %v3848_v43  ;;  %v3875_v20 = vsel %vm1000_vm2, %v3827_v39, %v3814_v32 }
 0xf0e   : > { %v3866_v55 = vadd.f32 %v3864_v53, %v7336_v17  ;;  %v3877_v45 = vadd.f32 %v3875_v20, %v3872_v48 }
 0xf10   : > { %5167 = vrcp.f32 %v3866_v55 }
 0xf1a   : > { %v5168_v12 = vpop.eup %5167 }
 0xf1b   : > { %v3868_v34 = vmul.f32 %v5168_v12, %v3866_v55 }
 0xf1d   : > { %v3869_v58 = vsub.f32 2.0, %v3868_v34 }
 0xf1f   : > { %v3870_v51 = vmul.f32 %v5168_v12, %v3869_v58 }
 0xf21   : > { %v7409_v4 = vmul.f32 %v3877_v45, %v3870_v51 }
 0xf23   : > { %v3882_v49 = vrot.slane %v7409_v4, %v5578_v60  ;;  %v3901_v1 = vrot.slane %v7409_v4, %v5576_v59 }
 0xf25   : > { %3888 = vbcast.lane.b32.xlu1 %v3882_v49, 264  ;;  %3884 = vbcast.lane.b32.xlu0 %v3882_v49, 256 }
 0xf29   : > { %3907 = vbcast.lane.b32.xlu1 %v3901_v1, 264  ;;  %3903 = vbcast.lane.b32.xlu0 %v3901_v1, 256 }
 0xf2d   : > { %3911 = vbcast.lane.b32.xlu1 %v3901_v1, 272  ;;  %3892 = vbcast.lane.b32.xlu0 %v3882_v49, 272 }
 0xf31   : > { %3915 = vbcast.lane.b32.xlu1 %v3901_v1, 280  ;;  %3896 = vbcast.lane.b32.xlu0 %v3882_v49, 280 }
 0xf97   : > { %v3889_v31 = vpop.permute.xlu1 %3888  ;;  %v3885_v7 = vpop.permute.xlu0 %3884 }
 0xf98   : > { %v3918_v35 = vsub.f32 %v3889_v31, %v7208_v16  ;;  %v3917_v18 = vsub.f32 %v3885_v7, %v7213_v47 }
 0xf9a   : > { %v3926_v27 = vmul.f32 %v3918_v35, %v7218_v54  ;;  %v3925_v23 = vmul.f32 %v3917_v18, %v7223_v50 }
 0xf9b   : > { %v3908_v26 = vpop.permute.xlu1 %3907  ;;  %v3904_v57 = vpop.permute.xlu0 %3903 }
 0xf9c   : > { %5169 = vtanh.f32 %v3926_v27  ;;  %v3922_v28 = vsub.f32 %v3908_v26, %v7208_v16  ;;  %v3921_v52 = vsub.f32 %v3904_v57, %v7213_v47 }
 0xf9d   : > { %5171 = vtanh.f32 %v3925_v23 }
 0xf9e   : > { %v3930_v41 = vmul.f32 %v3922_v28, %v7218_v54  ;;  %v3929_v5 = vmul.f32 %v3921_v52, %v7223_v50 }
 0xf9f   : > { %v3912_v44 = vpop.permute.xlu1 %3911  ;;  %v3893_v63 = vpop.permute.xlu0 %3892 }
 0xfa0   : > { %5173 = vtanh.f32 %v3930_v41  ;;  %v3923_v11 = vsub.f32 %v3912_v44, %v7234_v15  ;;  %v3919_v19 = vsub.f32 %v3893_v63, %v7234_v15 }
 0xfa1   : > { %5175 = vtanh.f32 %v3929_v5 }
 0xfa2   : > { %v3931_v40 = vmul.f32 %v3923_v11, %v7241_v62  ;;  %v3927_v2 = vmul.f32 %v3919_v19, %v7241_v62 }
 0xfa3   : > { %v3916_v33 = vpop.permute.xlu1 %3915  ;;  %v3897_v9 = vpop.permute.xlu0 %3896 }
 0xfa4   : > { %5177 = vtanh.f32 %v3931_v40  ;;  %v3924_v0 = vsub.f32 %v3916_v33, %v7248_v61  ;;  %v3920_v30 = vsub.f32 %v3897_v9, %v7248_v61 }
 0xfa5   : > { %5179 = vtanh.f32 %v3927_v2 }
 0xfa6   : > { %v5170_v43 = vpop.eup %5169  ;;  %v3932_v56 = vmul.f32 %v3924_v0, %v7255_v37  ;;  %v3928_v14 = vmul.f32 %v3920_v30, %v7255_v37 }
 0xfa7   : > { %v5172_v53 = vpop.eup %5171  ;;  %v3976_v10 = vmul.f32 %v5170_v43, %v7264_v6  ;;  %v3942_v12 = vmul.f32 %v5170_v43, %v7274_v38 }
 0xfa8   : > { %5181 = vtanh.f32 %v3932_v56  ;;  %v3975_v24 = vmul.f32 %v5172_v53, %v7269_v13  ;;  %v3941_v34 = vmul.f32 %v5172_v53, %v7280_v8 }
 0xfa9   : > { %5183 = vtanh.f32 %v3928_v14  ;;  %v3984_v58 = vsel %vm822_vm0, %v3976_v10, 0.0  ;;  %v3950_v23 = vsel %vm822_vm0, %v3942_v12, 0.0 }
 0xfaa   : > { %v5174_v55 = vpop.eup %5173  ;;  %v3983_v48 = vsel %vm822_vm0, %v3975_v24, 0.0  ;;  %v3949_v26 = vsel %vm822_vm0, %v3941_v34, 0.0 }
 0xfab   : > { %v5176_v46 = vpop.eup %5175  ;;  %v3980_v21 = vmul.f32 %v5174_v55, %v7264_v6  ;;  %v3946_v32 = vmul.f32 %v5174_v55, %v7274_v38  ;;  %v3985_v52 = vadd.f32 %v3984_v58, %v3983_v48  ;;  %v3951_v33 = vadd.f32 %v3950_v23, %v3949_v26 }
 0xfac   : > { %v3945_v39 = vmul.f32 %v5176_v46, %v7280_v8  ;;  %v3979_v22 = vmul.f32 %v5176_v46, %v7269_v13 }
 0xfad   : > { %v3997_v45 = vsel %vm822_vm0, %v3980_v21, 0.0  ;;  %v3963_v7 = vsel %vm822_vm0, %v3946_v32, 0.0 }
 0xfae   : > { %v5178_v20 = vpop.eup %5177  ;;  %v3996_v49 = vsel %vm822_vm0, %v3979_v22, 0.0  ;;  %v3962_v35 = vsel %vm822_vm0, %v3945_v39, 0.0 }
 0xfaf   : > { %v5180_v51 = vpop.eup %5179  ;;  %v3947_v1 = vmul.f32 %v5178_v20, %v7290_v3  ;;  %v3981_v31 = vmul.f32 %v5178_v20, %v7295_v25  ;;  %v3998_v41 = vadd.f32 %v3997_v45, %v3996_v49  ;;  %v3964_v11 = vadd.f32 %v3963_v7, %v3962_v35 }
 0xfb0   : > { %v3943_v18 = vmul.f32 %v5180_v51, %v7290_v3  ;;  %v3977_v27 = vmul.f32 %v5180_v51, %v7295_v25 }
 0xfb1   : > { %v3999_v57 = vsel %vm822_vm0, %v3981_v31, 0.0  ;;  %v3965_v5 = vsel %vm822_vm0, %v3947_v1, 0.0 }
 0xfb2   : > { %v5182_v28 = vpop.eup %5181  ;;  %v3986_v44 = vsel %vm822_vm0, %v3977_v27, 0.0  ;;  %v3952_v19 = vsel %vm822_vm0, %v3943_v18, 0.0  ;;  %v4000_v9 = vadd.f32 %v3999_v57, %v3998_v41  ;;  %v3966_v43 = vadd.f32 %v3965_v5, %v3964_v11 }
 0xfb3   : > { %v5184_v63 = vpop.eup %5183  ;;  %v3948_v40 = vmul.f32 %v5182_v28, %v7312_v36  ;;  %v3982_v2 = vmul.f32 %v5182_v28, %v7317_v29  ;;  %v3987_v56 = vadd.f32 %v3986_v44, %v3985_v52  ;;  %v3953_v55 = vadd.f32 %v3952_v19, %v3951_v33 }
 0xfb4   : > { %v3944_v0 = vmul.f32 %v5184_v63, %v7312_v36  ;;  %v3978_v30 = vmul.f32 %v5184_v63, %v7317_v29 }
 0xfb5   : > { %v3967_v14 = vsel %vm822_vm0, %v3948_v40, 0.0  ;;  %v4001_v53 = vsel %vm822_vm0, %v3982_v2, 0.0  ;;  %v7468_v40 = vld [vmem:[%s7808_s12] ss:$0 sm:$0xff] }
 0xfb6   : > { %v4002_v10 = vadd.f32 %v4001_v53, %v4000_v9  ;;  %v3954_v24 = vsel %vm822_vm0, %v3944_v0, 0.0  ;;  %v3988_v46 = vsel %vm822_vm0, %v3978_v30, 0.0  ;;  %v3968_v32 = vadd.f32 %v3967_v14, %v3966_v43 }
 0xfb7   : > { %v3989_v21 = vadd.f32 %v3988_v46, %v3987_v56  ;;  %v3955_v22 = vadd.f32 %v3954_v24, %v3953_v55  ;;  %v4018_v2 = vmul.f32 %v7468_v40, %v7409_v4 }
 0xfb8   : > { %v4003_v39 = vrot.slane %v4002_v10, 4  ;;  %v3969_v58 = vrot.slane %v3968_v32, 4 }
 0xfb9   : > { %v3990_v12 = vrot.slane %v3989_v21, 4  ;;  %v3956_v51 = vrot.slane %v3955_v22, 4  ;;  %v4019_v43 = vadd.f32 %v4018_v2, %v7343_v42 }
 0xfba   : > { %v4004_v34 = vadd.f32 %v4003_v39, %v4002_v10  ;;  %v3970_v31 = vadd.f32 %v3969_v58, %v3968_v32 }
 0xfbb   : > { %v3991_v20 = vadd.f32 %v3990_v12, %v3989_v21  ;;  %v3957_v35 = vadd.f32 %v3956_v51, %v3955_v22 }
 0xfbc   : > { %v4005_v48 = vrot.slane %v4004_v34, 2  ;;  %v3971_v26 = vrot.slane %v3970_v31, 2 }
 0xfbd   : > { %v3992_v45 = vrot.slane %v3991_v20, 2  ;;  %v3958_v57 = vrot.slane %v3957_v35, 2 }
 0xfbe   : > { %v4006_v49 = vadd.f32 %v4005_v48, %v4004_v34  ;;  %v3972_v41 = vadd.f32 %v3971_v26, %v3970_v31 }
 0xfbf   : > { %v3993_v1 = vadd.f32 %v3992_v45, %v3991_v20  ;;  %v3959_v5 = vadd.f32 %v3958_v57, %v3957_v35 }
 0xfc0   : > { %v4007_v7 = vrot.slane %v4006_v49, 1  ;;  %v3973_v63 = vrot.slane %v3972_v41, 1 }
 0xfc1   : > { %v3994_v18 = vrot.slane %v3993_v1, 1  ;;  %v3960_v44 = vrot.slane %v3959_v5, 1 }
 0xfc2   : > { %v4008_v27 = vadd.f32 %v4007_v7, %v4006_v49  ;;  %v3974_v19 = vadd.f32 %v3973_v63, %v3972_v41 }
 0xfc3   : > { %v3995_v23 = vadd.f32 %v3994_v18, %v3993_v1  ;;  %v3961_v11 = vadd.f32 %v3960_v44, %v3959_v5 }
 0xfc5   : > { %v4011_v28 = vsel %vm1000_vm2, %v4008_v27, %v3995_v23  ;;  %v4022_v0 = vsel %vm1000_vm2, %v3974_v19, %v3961_v11 }
 0xfc6   : > { %v4013_v52 = vadd.f32 %v4011_v28, %v7336_v17  ;;  %v4024_v14 = vadd.f32 %v4022_v0, %v4019_v43 }
 0xfc8   : > { %5185 = vrcp.f32 %v4013_v52 }
 0xfd2   : > { %v5186_v33 = vpop.eup %5185 }
 0xfd3   : > { %v4015_v9 = vmul.f32 %v5186_v33, %v4013_v52 }
 0xfd5   : > { %v4016_v30 = vsub.f32 2.0, %v4015_v9 }
 0xfd7   : > { %v4017_v56 = vmul.f32 %v5186_v33, %v4016_v30 }
 0xfd9   : > { %v7474_v53 = vmul.f32 %v4024_v14, %v4017_v56 }
 0xfdb   : > { %v4029_v55 = vrot.slane %v7474_v53, %v5578_v60  ;;  %v4048_v10 = vrot.slane %v7474_v53, %v5576_v59 }
 0xfdd   : > { %4035 = vbcast.lane.b32.xlu1 %v4029_v55, 264  ;;  %4031 = vbcast.lane.b32.xlu0 %v4029_v55, 256 }
 0xfe1   : > { %4054 = vbcast.lane.b32.xlu1 %v4048_v10, 264  ;;  %4050 = vbcast.lane.b32.xlu0 %v4048_v10, 256 }
 0xfe5   : > { %4058 = vbcast.lane.b32.xlu1 %v4048_v10, 272  ;;  %4039 = vbcast.lane.b32.xlu0 %v4029_v55, 272 }
 0xfe9   : > { %4062 = vbcast.lane.b32.xlu1 %v4048_v10, 280  ;;  %4043 = vbcast.lane.b32.xlu0 %v4029_v55, 280 }
0x104f   : > { %v4036_v4 = vpop.permute.xlu1 %4035  ;;  %v4032_v24 = vpop.permute.xlu0 %4031 }
0x1050   : > { %v4065_v46 = vsub.f32 %v4036_v4, %v7208_v16  ;;  %v4064_v21 = vsub.f32 %v4032_v24, %v7213_v47 }
0x1052   : > { %v4073_v32 = vmul.f32 %v4065_v46, %v7218_v54  ;;  %v4072_v39 = vmul.f32 %v4064_v21, %v7223_v50 }
0x1053   : > { %v4055_v22 = vpop.permute.xlu1 %4054  ;;  %v4051_v12 = vpop.permute.xlu0 %4050 }
0x1054   : > { %5187 = vtanh.f32 %v4073_v32  ;;  %v4069_v34 = vsub.f32 %v4055_v22, %v7208_v16  ;;  %v4068_v20 = vsub.f32 %v4051_v12, %v7213_v47 }
0x1055   : > { %5189 = vtanh.f32 %v4072_v39 }
0x1056   : > { %v4077_v58 = vmul.f32 %v4069_v34, %v7218_v54  ;;  %v4076_v48 = vmul.f32 %v4068_v20, %v7223_v50 }
0x1057   : > { %v4059_v51 = vpop.permute.xlu1 %4058  ;;  %v4040_v45 = vpop.permute.xlu0 %4039 }
0x1058   : > { %5191 = vtanh.f32 %v4077_v58  ;;  %v4070_v49 = vsub.f32 %v4059_v51, %v7234_v15  ;;  %v4066_v1 = vsub.f32 %v4040_v45, %v7234_v15 }
0x1059   : > { %5193 = vtanh.f32 %v4076_v48 }
0x105a   : > { %v4078_v31 = vmul.f32 %v4070_v49, %v7241_v62  ;;  %v4074_v7 = vmul.f32 %v4066_v1, %v7241_v62 }
0x105b   : > { %v4063_v16 = vpop.permute.xlu1 %4062  ;;  %v4044_v35 = vpop.permute.xlu0 %4043 }
0x105c   : > { %5195 = vtanh.f32 %v4078_v31  ;;  %v4071_v47 = vsub.f32 %v4063_v16, %v7248_v61  ;;  %v4067_v54 = vsub.f32 %v4044_v35, %v7248_v61 }
0x105d   : > { %5197 = vtanh.f32 %v4074_v7 }
0x105e   : > { %v5188_v50 = vpop.eup %5187  ;;  %v4079_v18 = vmul.f32 %v4071_v47, %v7255_v37  ;;  %v4075_v27 = vmul.f32 %v4067_v54, %v7255_v37 }
0x105f   : > { %v5190_v23 = vpop.eup %5189  ;;  %v4123_v26 = vmul.f32 %v5188_v50, %v7264_v6  ;;  %v4089_v5 = vmul.f32 %v5188_v50, %v7274_v38 }
0x1060   : > { %5199 = vtanh.f32 %v4079_v18  ;;  %v4122_v62 = vmul.f32 %v5190_v23, %v7269_v13  ;;  %v4088_v37 = vmul.f32 %v5190_v23, %v7280_v8 }
0x1061   : > { %5201 = vtanh.f32 %v4075_v27  ;;  %v4131_v63 = vsel %vm822_vm0, %v4123_v26, 0.0  ;;  %v4097_v30 = vsel %vm822_vm0, %v4089_v5, 0.0 }
0x1062   : > { %v5192_v15 = vpop.eup %5191  ;;  %v4130_v11 = vsel %vm822_vm0, %v4122_v62, 0.0  ;;  %v4096_v43 = vsel %vm822_vm0, %v4088_v37, 0.0 }
0x1063   : > { %v5194_v57 = vpop.eup %5193  ;;  %v4127_v28 = vmul.f32 %v5192_v15, %v7264_v6  ;;  %v4093_v52 = vmul.f32 %v5192_v15, %v7274_v38  ;;  %v4132_v55 = vadd.f32 %v4131_v63, %v4130_v11  ;;  %v4098_v39 = vadd.f32 %v4097_v30, %v4096_v43 }
0x1064   : > { %v4092_v61 = vmul.f32 %v5194_v57, %v7280_v8  ;;  %v4126_v41 = vmul.f32 %v5194_v57, %v7269_v13 }
0x1065   : > { %v4144_v2 = vsel %vm822_vm0, %v4127_v28, 0.0  ;;  %v4110_v13 = vsel %vm822_vm0, %v4093_v52, 0.0 }
0x1066   : > { %v5196_v44 = vpop.eup %5195  ;;  %v4143_v6 = vsel %vm822_vm0, %v4126_v41, 0.0  ;;  %v4109_v38 = vsel %vm822_vm0, %v4092_v61, 0.0 }
0x1067   : > { %v5198_v19 = vpop.eup %5197  ;;  %v4094_v33 = vmul.f32 %v5196_v44, %v7290_v3  ;;  %v4128_v9 = vmul.f32 %v5196_v44, %v7295_v25  ;;  %v4145_v10 = vadd.f32 %v4144_v2, %v4143_v6  ;;  %v4111_v21 = vadd.f32 %v4110_v13, %v4109_v38 }
0x1068   : > { %v4090_v8 = vmul.f32 %v5198_v19, %v7290_v3  ;;  %v4124_v0 = vmul.f32 %v5198_v19, %v7295_v25  ;;  %v4165_v13 = vmul.f32 %v7468_v40, %v7474_v53 }
0x1069   : > { %v4146_v56 = vsel %vm822_vm0, %v4128_v9, 0.0  ;;  %v4112_v4 = vsel %vm822_vm0, %v4094_v33, 0.0 }
0x106a   : > { %v5200_v14 = vpop.eup %5199  ;;  %v4133_v24 = vsel %vm822_vm0, %v4124_v0, 0.0  ;;  %v4099_v32 = vsel %vm822_vm0, %v4090_v8, 0.0  ;;  %v4147_v22 = vadd.f32 %v4146_v56, %v4145_v10  ;;  %v4113_v20 = vadd.f32 %v4112_v4, %v4111_v21 }
0x106b   : > { %v5202_v46 = vpop.eup %5201  ;;  %v4095_v3 = vmul.f32 %v5200_v14, %v7312_v36  ;;  %v4129_v25 = vmul.f32 %v5200_v14, %v7317_v29  ;;  %v4134_v58 = vadd.f32 %v4133_v24, %v4132_v55  ;;  %v4100_v45 = vadd.f32 %v4099_v32, %v4098_v39  ;;  %v7549_v32 = vld [vmem:[%s7804_s8] sm:$0xff] }
0x106c   : > { %v4091_v12 = vmul.f32 %v5202_v46, %v7312_v36  ;;  %v4125_v34 = vmul.f32 %v5202_v46, %v7317_v29  ;;  %v4166_v43 = vadd.f32 %v4165_v13, %v7343_v42  ;;  %v7543_v46 = vld [vmem:[%s7804_s8 + $0x8] sm:$0xff] }
0x106d   : > { %v4114_v48 = vsel %vm822_vm0, %v4095_v3, 0.0  ;;  %v4148_v51 = vsel %vm822_vm0, %v4129_v25, 0.0  ;;  %v7555_v25 = vld [vmem:[%s7805_s9 + $0x8] sm:$0xff] }
0x106e   : > { %v4149_v49 = vadd.f32 %v4148_v51, %v4147_v22  ;;  %v4101_v1 = vsel %vm822_vm0, %v4091_v12, 0.0  ;;  %v4135_v31 = vsel %vm822_vm0, %v4125_v34, 0.0  ;;  %v4115_v16 = vadd.f32 %v4114_v48, %v4113_v20  ;;  %v7561_v22 = vld [vmem:[%s7805_s9] sm:$0xff] }
0x106f   : > { %v4136_v7 = vadd.f32 %v4135_v31, %v4134_v58  ;;  %v4102_v47 = vadd.f32 %v4101_v1, %v4100_v45  ;;  %v7571_v31 = vld [vmem:[%s7804_s8 + $0x10] sm:$0xff] }
0x1070   : > { %v4150_v35 = vrot.slane %v4149_v49, 4  ;;  %v4116_v29 = vrot.slane %v4115_v16, 4 }
0x1071   : > { %v4137_v54 = vrot.slane %v4136_v7, 4  ;;  %v4103_v27 = vrot.slane %v4102_v47, 4 }
0x1072   : > { %v4151_v36 = vadd.f32 %v4150_v35, %v4149_v49  ;;  %v4117_v62 = vadd.f32 %v4116_v29, %v4115_v16  ;;  %v7578_v35 = vld [vmem:[%s7805_s9 + $0x10] sm:$0xff]  ;;  %v7585_v29 = vld [vmem:[%s7804_s8 + $0x18] sm:$0xff] }
0x1073   : > { %v4138_v50 = vadd.f32 %v4137_v54, %v4136_v7  ;;  %v4104_v28 = vadd.f32 %v4103_v27, %v4102_v47 }
0x1074   : > { %v4152_v18 = vrot.slane %v4151_v36, 2  ;;  %v4118_v5 = vrot.slane %v4117_v62, 2 }
0x1075   : > { %v4139_v23 = vrot.slane %v4138_v50, 2  ;;  %v4105_v37 = vrot.slane %v4104_v28, 2 }
0x1076   : > { %v4153_v15 = vadd.f32 %v4152_v18, %v4151_v36  ;;  %v4119_v11 = vadd.f32 %v4118_v5, %v4117_v62 }
0x1077   : > { %v4140_v26 = vadd.f32 %v4139_v23, %v4138_v50  ;;  %v4106_v19 = vadd.f32 %v4105_v37, %v4104_v28 }
0x1078   : > { %v4154_v57 = vrot.slane %v4153_v15, 1  ;;  %v4120_v6 = vrot.slane %v4119_v11, 1 }
0x1079   : > { %v4141_v52 = vrot.slane %v4140_v26, 1  ;;  %v4107_v2 = vrot.slane %v4106_v19, 1 }
0x107a   : > { %v4155_v61 = vadd.f32 %v4154_v57, %v4153_v15  ;;  %v4121_v9 = vadd.f32 %v4120_v6, %v4119_v11  ;;  %v7592_v15 = vld [vmem:[%s7805_s9 + $0x18] sm:$0xff] }
0x107b   : > { %v4142_v41 = vadd.f32 %v4141_v52, %v4140_v26  ;;  %v4108_v33 = vadd.f32 %v4107_v2, %v4106_v19  ;;  %v7599_v52 = vld [vmem:[%s7807_s11 + $0x8] sm:$0xff]  ;;  %v7618_v19 = vld [vmem:[%s7806_s10] sm:$0xff] }
0x107d   : > { %v4158_v44 = vsel %vm1000_vm2, %v4155_v61, %v4142_v41  ;;  %v4169_v0 = vsel %vm1000_vm2, %v4121_v9, %v4108_v33  ;;  %v7605_v41 = vld [vmem:[%s7807_s11] sm:$0xff] }
0x107e   : > { %v4160_v63 = vadd.f32 %v4158_v44, %v7336_v17  ;;  %v4171_v14 = vadd.f32 %v4169_v0, %v4166_v43 }
0x1080   : > { %5203 = vrcp.f32 %v4160_v63 }
0x108a   : > { %v5204_v38 = vpop.eup %5203 }
0x108b   : > { %v4162_v8 = vmul.f32 %v5204_v38, %v4160_v63  ;;  %v7612_v63 = vld [vmem:[%s7806_s10 + $0x8] sm:$0xff] }
0x108d   : > { %v4163_v30 = vsub.f32 2.0, %v4162_v8 }
0x108f   : > { %v4164_v56 = vmul.f32 %v5204_v38, %v4163_v30 }
0x1091   : > { %v7534_v55 = vmul.f32 %v4171_v14, %v4164_v56  ;;  %v7631_v56 = vld [vmem:[%s7806_s10 + $0x10] sm:$0xff] }
0x1093   : > { %v4176_v10 = vrot.slane %v7534_v55, %v5578_v60  ;;  %v4195_v4 = vrot.slane %v7534_v55, %v5576_v59 }
0x1095   : > { %4182 = vbcast.lane.b32.xlu1 %v4176_v10, 264  ;;  %4178 = vbcast.lane.b32.xlu0 %v4176_v10, 256 }
0x1099   : > { %4201 = vbcast.lane.b32.xlu1 %v4195_v4, 264  ;;  %4197 = vbcast.lane.b32.xlu0 %v4195_v4, 256 }
0x109d   : > { %4205 = vbcast.lane.b32.xlu1 %v4195_v4, 272  ;;  %4186 = vbcast.lane.b32.xlu0 %v4176_v10, 272 }
0x10a1   : > { %4209 = vbcast.lane.b32.xlu1 %v4195_v4, 280  ;;  %4190 = vbcast.lane.b32.xlu0 %v4176_v10, 280  ;;  %v7637_v10 = vld [vmem:[%s7807_s11 + $0x10] sm:$0xff] }
0x1107   : > { %v4183_v53 = vpop.permute.xlu1 %4182  ;;  %v4179_v24 = vpop.permute.xlu0 %4178 }
0x1108   : > { %v4212_v21 = vsub.f32 %v4183_v53, %v7543_v46  ;;  %v4211_v3 = vsub.f32 %v4179_v24, %v7549_v32 }
0x110a   : > { %v4220_v39 = vmul.f32 %v7555_v25, %v4212_v21  ;;  %v4219_v12 = vmul.f32 %v7561_v22, %v4211_v3 }
0x110b   : > { %v4202_v34 = vpop.permute.xlu1 %4201  ;;  %v4198_v20 = vpop.permute.xlu0 %4197 }
0x110c   : > { %5205 = vtanh.f32 %v4220_v39  ;;  %v4216_v58 = vsub.f32 %v4202_v34, %v7543_v46  ;;  %v4215_v48 = vsub.f32 %v4198_v20, %v7549_v32 }
0x110d   : > { %5207 = vtanh.f32 %v4219_v12 }
0x110e   : > { %v4224_v51 = vmul.f32 %v7555_v25, %v4216_v58  ;;  %v4223_v45 = vmul.f32 %v7561_v22, %v4215_v48 }
0x110f   : > { %v4206_v49 = vpop.permute.xlu1 %4205  ;;  %v4187_v1 = vpop.permute.xlu0 %4186 }
0x1110   : > { %5209 = vtanh.f32 %v4224_v51  ;;  %v4217_v7 = vsub.f32 %v4206_v49, %v7571_v31  ;;  %v4213_v16 = vsub.f32 %v4187_v1, %v7571_v31 }
0x1111   : > { %5211 = vtanh.f32 %v4223_v45 }
0x1112   : > { %v4225_v47 = vmul.f32 %v7578_v35, %v4217_v7  ;;  %v4221_v54 = vmul.f32 %v7578_v35, %v4213_v16  ;;  %v7653_v16 = vld [vmem:[%s7806_s10 + $0x18] sm:$0xff] }
0x1113   : > { %v4210_v36 = vpop.permute.xlu1 %4209  ;;  %v4191_v50 = vpop.permute.xlu0 %4190 }
0x1114   : > { %5213 = vtanh.f32 %v4225_v47  ;;  %v4218_v18 = vsub.f32 %v4210_v36, %v7585_v29  ;;  %v4214_v27 = vsub.f32 %v4191_v50, %v7585_v29 }
0x1115   : > { %5215 = vtanh.f32 %v4221_v54  ;;  %v7659_v54 = vld [vmem:[%s7807_s11 + $0x18] sm:$0xff] }
0x1116   : > { %v5206_v23 = vpop.eup %5205  ;;  %v4226_v26 = vmul.f32 %v7592_v15, %v4218_v18  ;;  %v4222_v62 = vmul.f32 %v7592_v15, %v4214_v27 }
0x1117   : > { %v5208_v57 = vpop.eup %5207  ;;  %v4270_v61 = vmul.f32 %v7599_v52, %v5206_v23  ;;  %v4236_v33 = vmul.f32 %v7612_v63, %v5206_v23 }
0x1118   : > { %5217 = vtanh.f32 %v4226_v26  ;;  %v4269_v5 = vmul.f32 %v7605_v41, %v5208_v57  ;;  %v4235_v9 = vmul.f32 %v7618_v19, %v5208_v57 }
0x1119   : > { %5219 = vtanh.f32 %v4222_v62  ;;  %v4278_v38 = vsel %vm822_vm0, %v4270_v61, 0.0  ;;  %v4244_v39 = vsel %vm822_vm0, %v4236_v33, 0.0 }
0x111a   : > { %v5210_v28 = vpop.eup %5209  ;;  %v4277_v8 = vsel %vm822_vm0, %v4269_v5, 0.0  ;;  %v4243_v12 = vsel %vm822_vm0, %v4235_v9, 0.0 }
0x111b   : > { %v5212_v37 = vpop.eup %5211  ;;  %v4274_v44 = vmul.f32 %v7599_v52, %v5210_v28  ;;  %v4240_v11 = vmul.f32 %v7612_v63, %v5210_v28  ;;  %v4279_v58 = vadd.f32 %v4278_v38, %v4277_v8  ;;  %v4245_v50 = vadd.f32 %v4244_v39, %v4243_v12 }
0x111c   : > { %v4239_v2 = vmul.f32 %v7618_v19, %v5212_v37  ;;  %v4273_v6 = vmul.f32 %v7605_v41, %v5212_v37 }
0x111d   : > { %v4291_v30 = vsel %vm822_vm0, %v4274_v44, 0.0  ;;  %v4257_v53 = vsel %vm822_vm0, %v4240_v11, 0.0 }
0x111e   : > { %v5214_v13 = vpop.eup %5213  ;;  %v4290_v43 = vsel %vm822_vm0, %v4273_v6, 0.0  ;;  %v4256_v24 = vsel %vm822_vm0, %v4239_v2, 0.0 }
0x111f   : > { %v5216_v0 = vpop.eup %5215  ;;  %v4241_v14 = vmul.f32 %v7631_v56, %v5214_v13  ;;  %v4275_v4 = vmul.f32 %v7637_v10, %v5214_v13  ;;  %v4292_v48 = vadd.f32 %v4291_v30, %v4290_v43  ;;  %v4258_v1 = vadd.f32 %v4257_v53, %v4256_v24 }
0x1120   : > { %v4237_v21 = vmul.f32 %v7631_v56, %v5216_v0  ;;  %v4271_v3 = vmul.f32 %v7637_v10, %v5216_v0 }
0x1121   : > { %v4293_v34 = vsel %vm822_vm0, %v4275_v4, 0.0  ;;  %v4259_v51 = vsel %vm822_vm0, %v4241_v14, 0.0 }
0x1122   : > { %v5218_v20 = vpop.eup %5217  ;;  %v4280_v45 = vsel %vm822_vm0, %v4271_v3, 0.0  ;;  %v4246_v7 = vsel %vm822_vm0, %v4237_v21, 0.0  ;;  %v4294_v18 = vadd.f32 %v4293_v34, %v4292_v48  ;;  %v4260_v26 = vadd.f32 %v4259_v51, %v4258_v1 }
0x1123   : > { %v5220_v49 = vpop.eup %5219  ;;  %v4242_v47 = vmul.f32 %v7653_v16, %v5218_v20  ;;  %v4276_v36 = vmul.f32 %v7659_v54, %v5218_v20  ;;  %v4281_v62 = vadd.f32 %v4280_v45, %v4279_v58  ;;  %v4247_v61 = vadd.f32 %v4246_v7, %v4245_v50 }
0x1124   : > { %v4238_v27 = vmul.f32 %v7653_v16, %v5220_v49  ;;  %v4272_v23 = vmul.f32 %v7659_v54, %v5220_v49 }
0x1125   : > { %v4261_v57 = vsel %vm822_vm0, %v4242_v47, 0.0  ;;  %v4295_v28 = vsel %vm822_vm0, %v4276_v36, 0.0  ;;  %v4312_v36 = vmul.f32 %v7468_v40, %v7534_v55  ;;  %v4486_v55 = vld [vmem:[%s7813_s17] sm:$0xff] }
0x1126   : > { %v4296_v5 = vadd.f32 %v4295_v28, %v4294_v18  ;;  %v4248_v37 = vsel %vm822_vm0, %v4238_v27, 0.0  ;;  %v4282_v44 = vsel %vm822_vm0, %v4272_v23, 0.0  ;;  %v4262_v2 = vadd.f32 %v4261_v57, %v4260_v26 }
0x1127   : > { %v4283_v11 = vadd.f32 %v4282_v44, %v4281_v62  ;;  %v4249_v33 = vadd.f32 %v4248_v37, %v4247_v61  ;;  %v4313_v26 = vadd.f32 %v4312_v36, %v7343_v42  ;;  %v4487_v37 = vld [vmem:[%s7813_s17 + $0x8] sm:$0xff]  ;;  %v5374_v44 = vmov 0.0|0.0  }
0x1128   : > { %v4297_v6 = vrot.slane %v4296_v5, 4  ;;  %v4263_v8 = vrot.slane %v4262_v2, 4  ;;  %4752 = vmatprep.subr.bf16.mxu0 %v5374_v44 }
0x1129   : > { %v4284_v9 = vrot.slane %v4283_v11, 4  ;;  %v4250_v30 = vrot.slane %v4249_v33, 4 }
0x112a   : > { %v4298_v13 = vadd.f32 %v4297_v6, %v4296_v5  ;;  %v4264_v53 = vadd.f32 %v4263_v8, %v4262_v2  ;;  %v5376_v2 = vmov 0.0  }
0x112b   : > { %v4285_v38 = vadd.f32 %v4284_v9, %v4283_v11  ;;  %v4251_v21 = vadd.f32 %v4250_v30, %v4249_v33  ;;  %v4489_v11 = vld [vmem:[%s7813_s17 + $0x18] sm:$0xff]  ;;  %4749 = vmatprep.mubr.msk.f32.mxu0 %vm5375_vm4, %v5376_v2 }
0x112c   : > { %v4299_v0 = vrot.slane %v4298_v13, 2  ;;  %v4265_v34 = vrot.slane %v4264_v53, 2 }
0x112d   : > { %v4286_v43 = vrot.slane %v4285_v38, 2  ;;  %v4252_v20 = vrot.slane %v4251_v21, 2 }
0x112e   : > { %v4300_v14 = vadd.f32 %v4299_v0, %v4298_v13  ;;  %v4266_v51 = vadd.f32 %v4265_v34, %v4264_v53 }
0x112f   : > { %v4287_v4 = vadd.f32 %v4286_v43, %v4285_v38  ;;  %v4253_v45 = vadd.f32 %v4252_v20, %v4251_v21 }
0x1130   : > { %v4301_v24 = vrot.slane %v4300_v14, 1  ;;  %v4267_v1 = vrot.slane %v4266_v51, 1 }
0x1131   : > { %v4288_v3 = vrot.slane %v4287_v4, 1  ;;  %v4254_v49 = vrot.slane %v4253_v45, 1 }
0x1132   : > { %v4302_v39 = vadd.f32 %v4301_v24, %v4300_v14  ;;  %v4268_v47 = vadd.f32 %v4267_v1, %v4266_v51 }
0x1133   : > { %v4289_v12 = vadd.f32 %v4288_v3, %v4287_v4  ;;  %v4255_v7 = vadd.f32 %v4254_v49, %v4253_v45 }
0x1135   : > { %v4305_v58 = vsel %vm1000_vm2, %v4302_v39, %v4289_v12  ;;  %v4316_v27 = vsel %vm1000_vm2, %v4268_v47, %v4255_v7 }
0x1136   : > { %v4307_v48 = vadd.f32 %v4305_v58, %v7336_v17  ;;  %v4318_v57 = vadd.f32 %v4316_v27, %v4313_v26 }
0x1138   : > { %5221 = vrcp.f32 %v4307_v48 }
0x1142   : > { %v5222_v50 = vpop.eup %5221 }
0x1143   : > { %v4309_v18 = vmul.f32 %v5222_v50, %v4307_v48 }
0x1145   : > { %v4310_v23 = vsub.f32 2.0, %v4309_v18 }
0x1147   : > { %v4311_v62 = vmul.f32 %v5222_v50, %v4310_v23 }
0x1149   : > { %v7674_v28 = vmul.f32 %v4318_v57, %v4311_v62 }
0x114b   : > { %v4323_v61 = vrot.slane %v7674_v28, %v5578_v60  ;;  %v4342_v5 = vrot.slane %v7674_v28, %v5576_v59  ;;  %v4488_v60 = vld [vmem:[%s7813_s17 + $0x10] sm:$0xff]  ;;  %v4753_v59 = vpack.c.bf16 %v4487_v37, %v4486_v55 }
0x114c   : > { %v4756_v6 = vpack.c.bf16 %v4489_v11, %v4488_v60 }
0x114d   : > { %4329 = vbcast.lane.b32.xlu1 %v4323_v61, 264  ;;  %4325 = vbcast.lane.b32.xlu0 %v4323_v61, 256 }
0x114e   : > { %4754 = vmatpush3.bf16.msra.mxu0 %v4753_v59 }
0x114f   : > { %4755 = vmatprep.subr.bf16.mxu0 %v5374_v44 }
0x1151   : > { %4348 = vbcast.lane.b32.xlu1 %v4342_v5, 264  ;;  %4344 = vbcast.lane.b32.xlu0 %v4342_v5, 256 }
0x1152   : > { %4757 = vmatpush3.bf16.msra.mxu0 %v4756_v6 }
0x1155   : > { %4352 = vbcast.lane.b32.xlu1 %v4342_v5, 272  ;;  %4333 = vbcast.lane.b32.xlu0 %v4323_v61, 272 }
0x1159   : > { %4356 = vbcast.lane.b32.xlu1 %v4342_v5, 280  ;;  %4337 = vbcast.lane.b32.xlu0 %v4323_v61, 280 }
0x11bf   : > { %v4330_v33 = vpop.permute.xlu1 %4329  ;;  %v4326_v9 = vpop.permute.xlu0 %4325 }
0x11c0   : > { %v4359_v13 = vsub.f32 %v4330_v33, %v7543_v46  ;;  %v4358_v38 = vsub.f32 %v4326_v9, %v7549_v32 }
0x11c2   : > { %v4367_v8 = vmul.f32 %v7555_v25, %v4359_v13  ;;  %v4366_v0 = vmul.f32 %v7561_v22, %v4358_v38 }
0x11c3   : > { %v4349_v30 = vpop.permute.xlu1 %4348  ;;  %v4345_v43 = vpop.permute.xlu0 %4344 }
0x11c4   : > { %5223 = vtanh.f32 %v4367_v8  ;;  %v4363_v14 = vsub.f32 %v4349_v30, %v7543_v46  ;;  %v4362_v4 = vsub.f32 %v4345_v43, %v7549_v32 }
0x11c5   : > { %5225 = vtanh.f32 %v4366_v0 }
0x11c6   : > { %v4371_v53 = vmul.f32 %v7555_v25, %v4363_v14  ;;  %v4370_v24 = vmul.f32 %v7561_v22, %v4362_v4 }
0x11c7   : > { %v4353_v21 = vpop.permute.xlu1 %4352  ;;  %v4334_v3 = vpop.permute.xlu0 %4333 }
0x11c8   : > { %5227 = vtanh.f32 %v4371_v53  ;;  %v4364_v39 = vsub.f32 %v4353_v21, %v7571_v31  ;;  %v4360_v12 = vsub.f32 %v4334_v3, %v7571_v31 }
0x11c9   : > { %5229 = vtanh.f32 %v4370_v24 }
0x11ca   : > { %v4372_v34 = vmul.f32 %v7578_v35, %v4364_v39  ;;  %v4368_v20 = vmul.f32 %v7578_v35, %v4360_v12 }
0x11cb   : > { %v4357_v46 = vpop.permute.xlu1 %4356  ;;  %v4338_v58 = vpop.permute.xlu0 %4337 }
0x11cc   : > { %5231 = vtanh.f32 %v4372_v34  ;;  %v4365_v32 = vsub.f32 %v4357_v46, %v7585_v29  ;;  %v4361_v25 = vsub.f32 %v4338_v58, %v7585_v29 }
0x11cd   : > { %5233 = vtanh.f32 %v4368_v20 }
0x11ce   : > { %v5224_v22 = vpop.eup %5223  ;;  %v4373_v48 = vmul.f32 %v7592_v15, %v4365_v32  ;;  %v4369_v51 = vmul.f32 %v7592_v15, %v4361_v25 }
0x11cf   : > { %v5226_v45 = vpop.eup %5225  ;;  %v4417_v49 = vmul.f32 %v7599_v52, %v5224_v22  ;;  %v4383_v50 = vmul.f32 %v7612_v63, %v5224_v22 }
0x11d0   : > { %5235 = vtanh.f32 %v4373_v48  ;;  %v4416_v35 = vmul.f32 %v7605_v41, %v5226_v45  ;;  %v4382_v15 = vmul.f32 %v7618_v19, %v5226_v45 }
0x11d1   : > { %5237 = vtanh.f32 %v4369_v51  ;;  %v4425_v27 = vsel %vm822_vm0, %v4417_v49, 0.0  ;;  %v4391_v55 = vsel %vm822_vm0, %v4383_v50, 0.0 }
0x11d2   : > { %v5228_v31 = vpop.eup %5227  ;;  %v4424_v23 = vsel %vm822_vm0, %v4416_v35, 0.0  ;;  %v4390_v37 = vsel %vm822_vm0, %v4382_v15, 0.0 }
0x11d3   : > { %v5230_v1 = vpop.eup %5229  ;;  %v4421_v7 = vmul.f32 %v7599_v52, %v5228_v31  ;;  %v4387_v47 = vmul.f32 %v7612_v63, %v5228_v31  ;;  %v4426_v59 = vadd.f32 %v4425_v27, %v4424_v23  ;;  %v4392_v38 = vadd.f32 %v4391_v55, %v4390_v37 }
0x11d4   : > { %v4386_v29 = vmul.f32 %v7618_v19, %v5230_v1  ;;  %v4420_v36 = vmul.f32 %v7605_v41, %v5230_v1 }
0x11d5   : > { %v4438_v62 = vsel %vm822_vm0, %v4421_v7, 0.0  ;;  %v4404_v41 = vsel %vm822_vm0, %v4387_v47, 0.0 }
0x11d6   : > { %v5232_v18 = vpop.eup %5231  ;;  %v4437_v52 = vsel %vm822_vm0, %v4420_v36, 0.0  ;;  %v4403_v63 = vsel %vm822_vm0, %v4386_v29, 0.0 }
0x11d7   : > { %v5234_v26 = vpop.eup %5233  ;;  %v4388_v57 = vmul.f32 %v7631_v56, %v5232_v18  ;;  %v4422_v61 = vmul.f32 %v7637_v10, %v5232_v18  ;;  %v4439_v11 = vadd.f32 %v4438_v62, %v4437_v52  ;;  %v4405_v9 = vadd.f32 %v4404_v41, %v4403_v63 }
0x11d8   : > { %v4384_v19 = vmul.f32 %v7631_v56, %v5234_v26  ;;  %v4418_v5 = vmul.f32 %v7637_v10, %v5234_v26 }
0x11d9   : > { %v4440_v60 = vsel %vm822_vm0, %v4422_v61, 0.0  ;;  %v4406_v2 = vsel %vm822_vm0, %v4388_v57, 0.0  ;;  %v4459_v57 = vmul.f32 %v7468_v40, %v7674_v28  ;;  %v4729_v28 = vld [vmem:[%s7812_s16] ss:$0 sm:$0xff] }
0x11da   : > { %v5236_v44 = vpop.eup %5235  ;;  %v4427_v6 = vsel %vm822_vm0, %v4418_v5, 0.0  ;;  %v4393_v13 = vsel %vm822_vm0, %v4384_v19, 0.0  ;;  %v4441_v8 = vadd.f32 %v4440_v60, %v4439_v11  ;;  %v4407_v43 = vadd.f32 %v4406_v2, %v4405_v9  ;;  %v4728_v60 = vld [vmem:[%s7811_s15] ss:$0 sm:$0xff] }
0x11db   : > { %v5238_v33 = vpop.eup %5237  ;;  %v4389_v56 = vmul.f32 %v7653_v16, %v5236_v44  ;;  %v4423_v10 = vmul.f32 %v7659_v54, %v5236_v44  ;;  %v4428_v14 = vadd.f32 %v4427_v6, %v4426_v59  ;;  %v4394_v24 = vadd.f32 %v4393_v13, %v4392_v38 }
0x11dc   : > { %v4385_v0 = vmul.f32 %v7653_v16, %v5238_v33  ;;  %v4419_v30 = vmul.f32 %v7659_v54, %v5238_v33  ;;  %v4460_v19 = vadd.f32 %v4459_v57, %v7343_v42 }
0x11dd   : > { %v4408_v4 = vsel %vm822_vm0, %v4389_v56, 0.0  ;;  %v4442_v53 = vsel %vm822_vm0, %v4423_v10, 0.0 }
0x11de   : > { %v4443_v21 = vadd.f32 %v4442_v53, %v4441_v8  ;;  %v4395_v3 = vsel %vm822_vm0, %v4385_v0, 0.0  ;;  %v4429_v39 = vsel %vm822_vm0, %v4419_v30, 0.0  ;;  %v4409_v34 = vadd.f32 %v4408_v4, %v4407_v43 }
0x11df   : > { %v4430_v12 = vadd.f32 %v4429_v39, %v4428_v14  ;;  %v4396_v46 = vadd.f32 %v4395_v3, %v4394_v24 }
0x11e0   : > { %v4444_v20 = vrot.slane %v4443_v21, 4  ;;  %v4410_v54 = vrot.slane %v4409_v34, 4 }
0x11e1   : > { %v4431_v58 = vrot.slane %v4430_v12, 4  ;;  %v4397_v22 = vrot.slane %v4396_v46, 4 }
0x11e2   : > { %v4445_v16 = vadd.f32 %v4444_v20, %v4443_v21  ;;  %v4411_v31 = vadd.f32 %v4410_v54, %v4409_v34 }
0x11e3   : > { %v4432_v32 = vadd.f32 %v4431_v58, %v4430_v12  ;;  %v4398_v35 = vadd.f32 %v4397_v22, %v4396_v46 }
0x11e4   : > { %v4446_v25 = vrot.slane %v4445_v16, 2  ;;  %v4412_v29 = vrot.slane %v4411_v31, 2 }
0x11e5   : > { %v4433_v48 = vrot.slane %v4432_v32, 2  ;;  %v4399_v36 = vrot.slane %v4398_v35, 2 }
0x11e6   : > { %v4447_v51 = vadd.f32 %v4446_v25, %v4445_v16  ;;  %v4413_v18 = vadd.f32 %v4412_v29, %v4411_v31 }
0x11e7   : > { %v4434_v45 = vadd.f32 %v4433_v48, %v4432_v32  ;;  %v4400_v27 = vadd.f32 %v4399_v36, %v4398_v35 }
0x11e8   : > { %v4448_v49 = vrot.slane %v4447_v51, 1  ;;  %v4414_v23 = vrot.slane %v4413_v18, 1 }
0x11e9   : > { %v4435_v1 = vrot.slane %v4434_v45, 1  ;;  %v4401_v26 = vrot.slane %v4400_v27, 1 }
0x11ea   : > { %v4449_v7 = vadd.f32 %v4448_v49, %v4447_v51  ;;  %v4415_v62 = vadd.f32 %v4414_v23, %v4413_v18 }
0x11eb   : > { %v4436_v47 = vadd.f32 %v4435_v1, %v4434_v45  ;;  %v4402_v52 = vadd.f32 %v4401_v26, %v4400_v27 }
0x11ed   : > { %v4452_v50 = vsel %vm1000_vm2, %v4449_v7, %v4436_v47  ;;  %v4463_v63 = vsel %vm1000_vm2, %v4415_v62, %v4402_v52 }
0x11ee   : > { %v4454_v15 = vadd.f32 %v4452_v50, %v7336_v17  ;;  %v4465_v17 = vadd.f32 %v4463_v63, %v4460_v19 }
0x11f0   : > { %5239 = vrcp.f32 %v4454_v15 }
0x11fa   : > { %v5240_v61 = vpop.eup %5239 }
0x11fb   : > { %v4456_v41 = vmul.f32 %v5240_v61, %v4454_v15 }
0x11fd   : > { %v4457_v5 = vsub.f32 2.0, %v4456_v41 }
0x11ff   : > { %v4458_v55 = vmul.f32 %v5240_v61, %v4457_v5 }
0x1201   : > { %v4466_v37 = vmul.f32 %v4465_v17, %v4458_v55 }
0x1203   : > { %4467 = vst.msk [vmem:[#allocation4 + $0x6] sm:$0x3] %vm1757_vm3, %v4466_v37  ;;  %4468 = vst.msk [vmem:[#allocation5] sm:$0x3] %vm1757_vm3, %v4466_v37 }
0x120a   : > { %v4469_v40 = vld [vmem:[#allocation4] sm:$0xff] }
0x120b   : > { %v4477_v44 = vmul.f32 %v4728_v60, %v4469_v40 }
0x120d   : > { %v4485_v59 = vadd.f32 %v4729_v28, %v4477_v44 }
0x120f   : > { %4750 = vmatmul.mubr.msk.f32.vlgmr.msra.gmra.mrb[0].mxu0 %vm822_vm0, %v4485_v59 }
0x1210   : > { %5329 = shalt.err (!%p5326_p13)
}
0x1211   : > { %s7836_s18 = sld [smem:[#allocation16_spill]] }
0x1217   : > { %s5330_s20 = scalar_lea.hbm %s7836_s18, 32 }
0x1218   : > { %p5331_p0 = scmp.ne.s32.totalorder %s7836_s18, %s5330_s20  ;;  %p5336_p3 = scmp.lt.u32.totalorder %s5330_s20, %s7836_s18 }
0x121a   : > { %p5332_p1 = pnand %p5331_p0, %p7757_p6 }
0x121c   : > { %p5333_p2 = pneg %p5332_p1 }
0x121e   : > { %p5338_p4 = pnand %p5336_p3, %p5333_p2 }
0x1220   : > { %5341 = shalt.err (!%p5338_p4)
}
0x1221   : > { %4759 = dma.vmem_to_hbm [thread:$0]  (%p7757_p6), %s4592_s25, 32, %s7836_s18, [#allocation6]  }
0x1222   : > { %s7837_s26 = sld [smem:[#allocation15_spill]] }
0x1228   : > { %v4730_v42 = vld [vmem:[%s7837_s26] ss:$0 sm:$0xff] }
0x12e2   : > { %v4566_v11 = vpop.f32.mrb[0].mxu0 }
0x12e3   : > { %v4567_v2 = vadd.f32 %v4730_v42, %v4566_v11  ;;  %v4751_v6 = vpop.f32.mrb[1].mxu0 }
0x12e5   : > { %4570 = vst [vmem:[%s5515_s2] sm:$0xff] %v4567_v2 }
0x12e6   : > { %5355 = dma.done.wait (%p7757_p6), [#allocation6], 32  }
0x12e7   : > { %5357 = vsyncadd (%p7757_p6), [#allocation6], 4294967264 }
0x12e8 PF: > { %s32_s23 = sadd.s32 1, %s5368_s23   ;;  %s7838_s1 = sld [smem:[#allocation8_spill]] }
0x12e9   : > { %p29_p5 = scmp.ge.s32.totalorder %s32_s23, 4   ;;  %s7839_s22 = sld [smem:[#allocation9_spill]] }
0x12eb   :  { %31 = sbr.rel (!%p29_p5) target bundleno = 10 (0xa), region = 143 }
0x12f2   :  { %4615 = vsyncpa [#allocation6], 1 }
0x12f3   :  { %4617 = vsyncpa [#allocation6 + $0x1], 1 }

</bundles_post_ra>
